<compile_context>
chip_gen: v5e
topology: v5e:2x2
jax: 0.10.0
libtpu: 0.0.40
codegen_flags: <defaults>
</compile_context>

<pallas_src>
import functools
import math

import jax
import jax.numpy as jnp
from jax.experimental import pallas as pl
from jax.experimental.pallas import tpu as pltpu


def _gat_kernel(counts_ref, qblk_ref,               # SMEM (scalar prefetch)
                q_ref, k_ref, adj_ref, x_dst_ref,   # streamed tiles (bf16/int8)
                wrr_ref, brr_ref, ln_g_ref, ln_b_ref, wout_ref, bout_ref,
                out_ref,
                acc_ref, m_ref, l_ref,              # VMEM scratch
                *, num_heads, head_dim, head_pad):
    H, D, Dp = num_heads, head_dim, head_pad
    d = pl.program_id(0)
    s = pl.program_id(1)
    ns = pl.num_programs(1)
    g = d * ns + s
    inv_scale = 1.0 / math.sqrt(D)
    neg_inf = jnp.float32(-1e30)

    @pl.when(s == 0)
    def _init():
        acc_ref[...] = jnp.zeros_like(acc_ref)
        m_ref[...] = jnp.full_like(m_ref, neg_inf)
        l_ref[...] = jnp.zeros_like(l_ref)

    # Block-sparse: only tiles with edges do work (their Q/adj DMA is also
    # elided because the index_map repeats the previous block index).
    @pl.when(counts_ref[g] > 0)
    def _attend():
        mask = adj_ref[...] != 0                      # [TD, TS]
        kb = k_ref[...]                               # [TD, H*Dp] bf16
        qb = q_ref[...]                               # [TS, H*Dp] bf16
        m_prev = m_ref[...]                           # [TD, H]  (one load)
        l_prev = l_ref[...]
        for h in range(H):                            # static; H is small
            lo = h * Dp
            kh = kb[:, lo:lo + Dp]                    # 128-lane aligned slices
            qh = qb[:, lo:lo + Dp]
            # scores indexed [dst, src]: softmax is a lane-axis reduction;
            # contracting both minor dims == MXU trans_b form (no XLU xpose).
            sc = jax.lax.dot_general(
                kh, qh, (((1,), (1,)), ((), ())),
                preferred_element_type=jnp.float32) * inv_scale
            sc = jnp.where(mask, sc, neg_inf)
            m_p = m_prev[:, h:h + 1]
            m_new = jnp.maximum(m_p, jnp.max(sc, axis=-1, keepdims=True))
            p = jnp.where(mask, jnp.exp(sc - m_new), 0.0)     # f32 exp
            corr = jnp.exp(m_p - m_new)
            l_ref[:, h:h + 1] = corr * l_prev[:, h:h + 1] + jnp.sum(
                p, axis=-1, keepdims=True)
            acc_ref[:, lo:lo + Dp] = corr * acc_ref[:, lo:lo + Dp] + jnp.dot(
                p.astype(jnp.bfloat16), qh, preferred_element_type=jnp.float32)
            m_ref[:, h:h + 1] = m_new

    @pl.when(s == ns - 1)
    def _epilogue():
        HDp = H * Dp
        # fused [per-head residual | outer residual] projection (bf16 MXU)
        rr = jnp.dot(x_dst_ref[...], wrr_ref[...],
                     preferred_element_type=jnp.float32) + brr_ref[...]
        res_head = rr[:, :HDp]
        res_outer = rr[:, HDp:]
        l = l_ref[...]
        # isolated destinations (denom == 0) -> aggregation stays 0 (residual only)
        inv_l = pl.reciprocal(jnp.where(l > 0, l, 1.0), approx=True)
        for h in range(H):
            lo = h * Dp
            acc_ref[:, lo:lo + Dp] *= inv_l[:, h:h + 1]
        xc = acc_ref[...] + res_head                  # padded lanes stay exactly 0
        # LayerNorm over the H*D *real* features (moment form: zero pads drop out)
        n = jnp.float32(H * D)
        mu = jnp.sum(xc, axis=-1, keepdims=True) / n
        var = jnp.maximum(
            jnp.sum(xc * xc, axis=-1, keepdims=True) / n - mu * mu, 0.0)
        xn = (xc - mu) * jax.lax.rsqrt(var + 1e-5)
        xn = xn * ln_g_ref[...] + ln_b_ref[...]       # gamma/beta zero in pads
        # TODO(synk): dropout on alpha / post-norm skipped (eval-mode semantics).
        sw = xn * jax.nn.sigmoid(xn)                  # Swish
        y = sw + res_outer
        out = jnp.dot(y.astype(jnp.bfloat16), wout_ref[...],
                      preferred_element_type=jnp.float32) + bout_ref[...]
        out_ref[...] = out.astype(out_ref.dtype)


def _round_up(v, m):
    return (v + m - 1) // m * m


def multi_head_dot_gat(x, edge_index, params, num_classes, *, tile=128):
    """Multi-head dot-product GAT forward (eval mode), dense-mask formulation."""
    N, Fin = x.shape
    H, _, D = params["wq"].shape
    HD = H * D
    Dp = _round_up(D, 128)            # per-head dim padded to full vreg lanes
    HDp = H * Dp

    TD = TS = tile
    N_pad = _round_up(max(N, tile), tile)
    C_pad = _round_up(max(num_classes, 128), 128)     # lane-dense output stores
    nd, ns = N_pad // TD, N_pad // TS

    # ---- wrapper-side packing / padding (layout plumbing, not compute) ----
    x_pad = jnp.zeros((N_pad, Fin), jnp.float32).at[:N].set(x.astype(jnp.float32))
    x_bf = x_pad.astype(jnp.bfloat16)

    row, col = edge_index
    # adjacency transposed to [dst, src]; int8 keeps the N^2 stream small
    # TODO(synk): bit-packed (uint32) adjacency would cut this DMA a further 8x.
    adj_t = jnp.zeros((N_pad, N_pad), jnp.int8).at[col, row].set(1)

    # per-(dst_tile, src_tile) edge counts straight from the edge list (O(E), 1-D SMEM)
    counts = jnp.zeros((nd * ns,), jnp.int32).at[
        (col // TD) * ns + (row // TS)].add(1)
    # DMA-skip remap: empty tiles repeat the last nonzero src-block index so
    # Pallas elides the Q / adjacency fetch (pl.when already skips compute).
    cand = jnp.where(counts.reshape(nd, ns) > 0,
                     jnp.arange(ns, dtype=jnp.int32)[None, :], -1)
    qblk = jnp.maximum(jax.lax.cummax(cand, axis=1), 0).reshape(-1).astype(jnp.int32)

    def pad_heads(w):     # [..., H*D] -> [..., H*Dp] (zero pad inside each head)
        lead = w.shape[:-1]
        w = w.reshape(lead + (H, D))
        w = jnp.pad(w, [(0, 0)] * len(lead) + [(0, 0), (0, Dp - D)])
        return w.reshape(lead + (HDp,))

    wq = pad_heads(params["wq"].transpose(1, 0, 2).reshape(Fin, HD))
    wk = pad_heads(params["wk"].transpose(1, 0, 2).reshape(Fin, HD))
    # Q / K projections precomputed ONCE at full size; streamed into the kernel as bf16.
    q_all = jnp.dot(x_pad, wq).astype(jnp.bfloat16)   # [N_pad, HDp]
    k_all = jnp.dot(x_pad, wk).astype(jnp.bfloat16)   # [N_pad, HDp]

    wr = pad_heads(params["wr"].transpose(1, 0, 2).reshape(Fin, HD))
    br = pad_heads(params["br"].reshape(1, HD))
    wres = pad_heads(params["wres"])
    bres = pad_heads(params["bres"])
    wrr = jnp.concatenate([wr, wres], axis=1).astype(jnp.bfloat16)   # [Fin, 2*HDp]
    brr = jnp.concatenate([br, bres], axis=1).astype(jnp.float32)    # [1, 2*HDp]
    ln_g = pad_heads(params["ln_g"]).astype(jnp.float32)
    ln_b = pad_heads(params["ln_b"]).astype(jnp.float32)
    wout = jnp.pad(params["wout"].reshape(H, D, num_classes),
                   ((0, 0), (0, Dp - D), (0, 0))).reshape(HDp, num_classes)
    wout = jnp.zeros((HDp, C_pad), jnp.float32).at[:, :num_classes].set(wout)
    wout = wout.astype(jnp.bfloat16)
    bout = jnp.zeros((1, C_pad), jnp.float32).at[:, :num_classes].set(params["bout"])

    kernel = functools.partial(_gat_kernel, num_heads=H, head_dim=D, head_pad=Dp)

    grid_spec = pltpu.PrefetchScalarGridSpec(
        num_scalar_prefetch=2,
        grid=(nd, ns),
        in_specs=[
            # weight/bias blocks are constant across the grid; at production
            # sizes pipeline_mode=pl.Buffered(1) would halve their VMEM.
            pl.BlockSpec((TS, HDp), lambda di, si, c, qb: (qb[di * ns + si], 0)),  # Q (src)
            pl.BlockSpec((TD, HDp), lambda di, si, c, qb: (di, 0)),                # K (dst)
            pl.BlockSpec((TD, TS), lambda di, si, c, qb: (di, qb[di * ns + si])),  # adj tile
            pl.BlockSpec((TD, Fin), lambda di, si, c, qb: (di, 0)),                # x (dst, bf16)
            pl.BlockSpec((Fin, 2 * HDp), lambda di, si, c, qb: (0, 0)),            # [Wr | Wres]
            pl.BlockSpec((1, 2 * HDp), lambda di, si, c, qb: (0, 0)),              # [br | bres]
            pl.BlockSpec((1, HDp), lambda di, si, c, qb: (0, 0)),                  # LN gamma
            pl.BlockSpec((1, HDp), lambda di, si, c, qb: (0, 0)),                  # LN beta
            pl.BlockSpec((HDp, C_pad), lambda di, si, c, qb: (0, 0)),              # Wout
            pl.BlockSpec((1, C_pad), lambda di, si, c, qb: (0, 0)),                # bout
        ],
        out_specs=pl.BlockSpec((TD, C_pad), lambda di, si, c, qb: (di, 0)),
        scratch_shapes=[
            pltpu.VMEM((TD, HDp), jnp.float32),   # online-softmax accumulator
            pltpu.VMEM((TD, H), jnp.float32),     # running max per head
            pltpu.VMEM((TD, H), jnp.float32),     # running denom per head
        ],
    )

    out = pl.pallas_call(
        kernel,
        grid_spec=grid_spec,
        out_shape=jax.ShapeDtypeStruct((N_pad, C_pad), jnp.float32),
        compiler_params=pltpu.CompilerParams(
            dimension_semantics=("parallel", "arbitrary"),
            vmem_limit_bytes=32 * 1024 * 1024,
        ),
    )(counts, qblk, q_all, k_all, adj_t, x_bf,
      wrr, brr, ln_g, ln_b, wout, bout)

    return out[:N, :num_classes]


def init_params(key, in_features, hidden_features, num_heads, out_features):
    ks = jax.random.split(key, 8)
    H, Fin, D, C = num_heads, in_features, hidden_features, out_features
    final = H * D
    s = 0.1
    return {
        # per-head q/k/residual projections (stored transposed: [in, out])
        "wq": jax.random.normal(ks[0], (H, Fin, D), jnp.float32) * s,
        "wk": jax.random.normal(ks[1], (H, Fin, D), jnp.float32) * s,
        "wr": jax.random.normal(ks[2], (H, Fin, D), jnp.float32) * s,
        "br": jax.random.normal(ks[3], (H, D), jnp.float32) * s,
        # LayerNorm(hidden * heads)
        "ln_g": jnp.ones((1, final), jnp.float32),
        "ln_b": jnp.zeros((1, final), jnp.float32),
        # outer residual Linear(in_features -> final)
        "wres": jax.random.normal(ks[4], (Fin, final), jnp.float32) * s,
        "bres": jax.random.normal(ks[5], (1, final), jnp.float32) * s,
        # output Linear(final -> out_features)
        "wout": jax.random.normal(ks[6], (final, C), jnp.float32) * s,
        "bout": jax.random.normal(ks[7], (1, C), jnp.float32) * s,
    }


def _reference(x, edge_index, params, num_classes):
    """Pure-JAX f32 reference of the PyTorch forward (eval mode)."""
    N = x.shape[0]
    H, _, D = params["wq"].shape
    row, col = edge_index
    adj = jnp.zeros((N, N), jnp.float32).at[row, col].set(1.0)     # [src, dst]
    heads = []
    for h in range(H):
        Q = x @ params["wq"][h]
        K = x @ params["wk"][h]
        S = (Q @ K.T) / jnp.sqrt(jnp.float32(D))
        S = jnp.where(adj > 0, S, -1e30)
        m = jnp.max(S, axis=0, keepdims=True)
        e = jnp.where(adj > 0, jnp.exp(S - m), 0.0)
        den = jnp.sum(e, axis=0, keepdims=True)
        alpha = e / jnp.where(den > 0, den, 1.0)
        agg = alpha.T @ Q
        heads.append(agg + x @ params["wr"][h] + params["br"][h][None, :])
    xc = jnp.concatenate(heads, axis=1)
    mu = jnp.mean(xc, axis=-1, keepdims=True)
    var = jnp.mean((xc - mu) ** 2, axis=-1, keepdims=True)
    xn = (xc - mu) * jax.lax.rsqrt(var + 1e-5)
    xn = xn * params["ln_g"] + params["ln_b"]
    sw = xn * jax.nn.sigmoid(xn)
    y = sw + x @ params["wres"] + params["bres"]
    return y @ params["wout"] + params["bout"]


if __name__ == "__main__":
    # small, deterministic problem
    N, IN_F, HID, HEADS, CLASSES = 16, 8, 16, 4, 4

    key = jax.random.PRNGKey(0)
    k_x, k_p = jax.random.split(key)

    x = jax.random.normal(k_x, (N, IN_F), jnp.float32)

    # deterministic edge_index: self-loops + ring (i -> i+1) + skip (i -> i+3)
    rows, cols = [], []
    for i in range(N):
        for j in (i, (i + 1) % N, (i + 3) % N):
            rows.append(i)
            cols.append(j)
    edge_index = jnp.array([rows, cols], jnp.int32)

    params = init_params(k_p, IN_F, HID, HEADS, CLASSES)

    out = multi_head_dot_gat(x, edge_index, params, CLASSES)
    out = jax.block_until_ready(out)
    assert out.shape == (N, CLASSES)
    assert bool(jnp.all(jnp.isfinite(out)))

    ref = _reference(x, edge_index, params, CLASSES)
    err = float(jnp.max(jnp.abs(out - ref)))
    assert err < 5e-2, f"max abs error vs reference: {err}"

    print("KERNEL_OK")
</pallas_src>

<mosaic_0001>
module attributes {stable_mosaic.version = 11 : i64} {
  func.func @_gat_kernel(%arg0: i32, %arg1: i32, %arg2: memref<1xi32, #tpu.memory_space<smem>>, %arg3: memref<1xi32, #tpu.memory_space<smem>>, %arg4: memref<128x512xbf16, #tpu.memory_space<vmem>>, %arg5: memref<128x512xbf16, #tpu.memory_space<vmem>>, %arg6: memref<128x128xi8, #tpu.memory_space<vmem>>, %arg7: memref<128x8xbf16, #tpu.memory_space<vmem>>, %arg8: memref<8x1024xbf16, #tpu.memory_space<vmem>>, %arg9: memref<1x1024xf32, #tpu.memory_space<vmem>>, %arg10: memref<1x512xf32, #tpu.memory_space<vmem>>, %arg11: memref<1x512xf32, #tpu.memory_space<vmem>>, %arg12: memref<512x128xbf16, #tpu.memory_space<vmem>>, %arg13: memref<1x128xf32, #tpu.memory_space<vmem>>, %arg14: memref<128x128xf32, #tpu.memory_space<vmem>>, %arg15: memref<128x512xf32, #tpu.memory_space<vmem>>, %arg16: memref<128x4xf32, #tpu.memory_space<vmem>>, %arg17: memref<128x4xf32, #tpu.memory_space<vmem>>) attributes {dimension_semantics = [#tpu.dimension_semantics<parallel>, #tpu.dimension_semantics<arbitrary>], iteration_bounds = array<i64: 1, 1>, scalar_prefetch = 2 : i64, scratch_operands = 3 : i64, tpu.core_type = #tpu.core_type<tc>, window_params = [{transform_indices = @transform_0, window_bounds = array<i64: 128, 512>}, {transform_indices = @transform_1, window_bounds = array<i64: 128, 512>}, {transform_indices = @transform_2, window_bounds = array<i64: 128, 128>}, {transform_indices = @transform_3, window_bounds = array<i64: 128, 8>}, {pipeline_mode = #tpu.pipeline_mode<synchronous>, transform_indices = @transform_4, window_bounds = array<i64: 8, 1024>}, {pipeline_mode = #tpu.pipeline_mode<synchronous>, transform_indices = @transform_5, window_bounds = array<i64: 1, 1024>}, {pipeline_mode = #tpu.pipeline_mode<synchronous>, transform_indices = @transform_6, window_bounds = array<i64: 1, 512>}, {pipeline_mode = #tpu.pipeline_mode<synchronous>, transform_indices = @transform_7, window_bounds = array<i64: 1, 512>}, {pipeline_mode = #tpu.pipeline_mode<synchronous>, transform_indices = @transform_8, window_bounds = array<i64: 512, 128>}, {pipeline_mode = #tpu.pipeline_mode<synchronous>, transform_indices = @transform_9, window_bounds = array<i64: 1, 128>}, {transform_indices = @transform_10, window_bounds = array<i64: 128, 128>}]} {
    %c1_i32 = arith.constant 1 : i32
    %0 = arith.muli %arg0, %c1_i32 : i32
    %1 = arith.addi %0, %arg1 : i32
    %c0_i32 = arith.constant 0 : i32
    %2 = arith.cmpi eq, %arg1, %c0_i32 : i32
    %3 = arith.extui %2 : i1 to i32
    %cst = arith.constant -1.000000e+30 : f32
    %c0_i32_0 = arith.constant 0 : i32
    %4 = arith.cmpi ne, %3, %c0_i32_0 : i32
    scf.if %4 {
      %cst_6 = arith.constant 0.000000e+00 : f32
      %13 = vector.broadcast %cst_6 : f32 to vector<128x512xf32>
      %c0 = arith.constant 0 : index
      %c0_7 = arith.constant 0 : index
      %14 = vector.load %arg15[%c0, %c0_7] : memref<128x512xf32, #tpu.memory_space<vmem>>, vector<128x512xf32>
      tpu.vector_store %arg15[%c0, %c0_7], %13 {strides = array<i32>} : memref<128x512xf32, #tpu.memory_space<vmem>>, vector<128x512xf32>,
      %15 = vector.broadcast %cst : f32 to vector<128x4xf32>
      %c0_8 = arith.constant 0 : index
      %c0_9 = arith.constant 0 : index
      %16 = vector.load %arg16[%c0_8, %c0_9] : memref<128x4xf32, #tpu.memory_space<vmem>>, vector<128x4xf32>
      tpu.vector_store %arg16[%c0_8, %c0_9], %15 {strides = array<i32>} : memref<128x4xf32, #tpu.memory_space<vmem>>, vector<128x4xf32>,
      %cst_10 = arith.constant 0.000000e+00 : f32
      %17 = vector.broadcast %cst_10 : f32 to vector<128x4xf32>
      %c0_11 = arith.constant 0 : index
      %c0_12 = arith.constant 0 : index
      %18 = vector.load %arg17[%c0_11, %c0_12] : memref<128x4xf32, #tpu.memory_space<vmem>>, vector<128x4xf32>
      tpu.vector_store %arg17[%c0_11, %c0_12], %17 {strides = array<i32>} : memref<128x4xf32, #tpu.memory_space<vmem>>, vector<128x4xf32>,
    } else {
    }
    %5 = arith.index_cast %1 : i32 to index
    %6 = memref.load %arg2[%5] : memref<1xi32, #tpu.memory_space<smem>>
    %c0_i32_1 = arith.constant 0 : i32
    %7 = arith.cmpi sgt, %6, %c0_i32_1 : i32
    %8 = arith.extui %7 : i1 to i32
    %cst_2 = arith.constant -1.000000e+30 : f32
    %c0_i32_3 = arith.constant 0 : i32
    %9 = arith.cmpi ne, %8, %c0_i32_3 : i32
    scf.if %9 {
      %c0 = arith.constant 0 : index
      %c0_6 = arith.constant 0 : index
      %13 = vector.load %arg6[%c0, %c0_6] : memref<128x128xi8, #tpu.memory_space<vmem>>, vector<128x128xi8>
      %c0_i8 = arith.constant 0 : i8
      %14 = vector.broadcast %c0_i8 : i8 to vector<128x128xi8>
      %15 = arith.cmpi ne, %13, %14 : vector<128x128xi8>
      %c0_7 = arith.constant 0 : index
      %c0_8 = arith.constant 0 : index
      %16 = vector.load %arg5[%c0_7, %c0_8] : memref<128x512xbf16, #tpu.memory_space<vmem>>, vector<128x512xbf16>
      %c0_9 = arith.constant 0 : index
      %c0_10 = arith.constant 0 : index
      %17 = vector.load %arg4[%c0_9, %c0_10] : memref<128x512xbf16, #tpu.memory_space<vmem>>, vector<128x512xbf16>
      %c0_11 = arith.constant 0 : index
      %c0_12 = arith.constant 0 : index
      %18 = vector.load %arg16[%c0_11, %c0_12] : memref<128x4xf32, #tpu.memory_space<vmem>>, vector<128x4xf32>
      %c0_13 = arith.constant 0 : index
      %c0_14 = arith.constant 0 : index
      %19 = vector.load %arg17[%c0_13, %c0_14] : memref<128x4xf32, #tpu.memory_space<vmem>>, vector<128x4xf32>
      %20 = vector.extract_strided_slice %16 {offsets = [0, 0], sizes = [128, 128], strides = [1, 1]} : vector<128x512xbf16> to vector<128x128xbf16>
      %21 = vector.extract_strided_slice %17 {offsets = [0, 0], sizes = [128, 128], strides = [1, 1]} : vector<128x512xbf16> to vector<128x128xbf16>
      %cst_15 = arith.constant dense<0.000000e+00> : vector<128x128xf32>
      %22 = tpu.matmul %20, %21, %cst_15 {dimension_numbers = #tpu.dot_dimension_numbers<[1], [1], [0], [0], [0, 0, 1, 0], [], []>} : vector<128x128xbf16>, vector<128x128xbf16>, vector<128x128xf32> -> vector<128x128xf32>
      %cst_16 = arith.constant 2.500000e-01 : f32
      %23 = vector.broadcast %cst_16 : f32 to vector<128x128xf32>
      %24 = arith.mulf %22, %23 : vector<128x128xf32>
      %25 = vector.broadcast %cst_2 : f32 to vector<128x128xf32>
      %26 = arith.select %15, %24, %25 : vector<128x128xi1>, vector<128x128xf32>
      %27 = vector.extract_strided_slice %18 {offsets = [0, 0], sizes = [128, 1], strides = [1, 1]} : vector<128x4xf32> to vector<128x1xf32>
      %cst_17 = arith.constant dense<0xFF800000> : vector<128xf32>
      %28 = vector.multi_reduction <maximumf>, %26, %cst_17 [1] : vector<128x128xf32> to vector<128xf32>
      %29 = vector.shape_cast %28 : vector<128xf32> to vector<128x1xf32>
      %30 = arith.maximumf %27, %29 : vector<128x1xf32>
      %31 = vector.broadcast %30 : vector<128x1xf32> to vector<128x128xf32>
      %32 = arith.subf %26, %31 : vector<128x128xf32>
      %33 = math.exp %32 : vector<128x128xf32>
      %cst_18 = arith.constant 0.000000e+00 : f32
      %34 = vector.broadcast %cst_18 : f32 to vector<128x128xf32>
      %35 = arith.select %15, %33, %34 : vector<128x128xi1>, vector<128x128xf32>
      %36 = arith.subf %27, %30 : vector<128x1xf32>
      %37 = math.exp %36 : vector<128x1xf32>
      %38 = vector.extract_strided_slice %19 {offsets = [0, 0], sizes = [128, 1], strides = [1, 1]} : vector<128x4xf32> to vector<128x1xf32>
      %39 = arith.mulf %37, %38 : vector<128x1xf32>
      %cst_19 = arith.constant dense<0.000000e+00> : vector<128xf32>
      %40 = vector.multi_reduction <add>, %35, %cst_19 [1] : vector<128x128xf32> to vector<128xf32>
      %41 = vector.shape_cast %40 : vector<128xf32> to vector<128x1xf32>
      %42 = arith.addf %39, %41 : vector<128x1xf32>
      %c0_20 = arith.constant 0 : index
      %c0_21 = arith.constant 0 : index
      %43 = vector.load %arg17[%c0_20, %c0_21] : memref<128x4xf32, #tpu.memory_space<vmem>>, vector<128x1xf32>
      tpu.vector_store %arg17[%c0_20, %c0_21], %42 {strides = array<i32>} : memref<128x4xf32, #tpu.memory_space<vmem>>, vector<128x1xf32>,
      %c0_22 = arith.constant 0 : index
      %c0_23 = arith.constant 0 : index
      %44 = vector.load %arg15[%c0_22, %c0_23] : memref<128x512xf32, #tpu.memory_space<vmem>>, vector<128x128xf32>
      %45 = vector.broadcast %37 : vector<128x1xf32> to vector<128x128xf32>
      %46 = arith.mulf %45, %44 : vector<128x128xf32>
      %47 = arith.truncf %35 : vector<128x128xf32> to vector<128x128xbf16>
      %cst_24 = arith.constant dense<0.000000e+00> : vector<128x128xf32>
      %48 = tpu.matmul %47, %21, %cst_24 {dimension_numbers = #tpu.dot_dimension_numbers<[1], [0], [0], [1], [0, 0, 1, 1], [], []>} : vector<128x128xbf16>, vector<128x128xbf16>, vector<128x128xf32> -> vector<128x128xf32>
      %49 = arith.addf %46, %48 : vector<128x128xf32>
      %c0_25 = arith.constant 0 : index
      %c0_26 = arith.constant 0 : index
      %50 = vector.load %arg15[%c0_25, %c0_26] : memref<128x512xf32, #tpu.memory_space<vmem>>, vector<128x128xf32>
      tpu.vector_store %arg15[%c0_25, %c0_26], %49 {strides = array<i32>} : memref<128x512xf32, #tpu.memory_space<vmem>>, vector<128x128xf32>,
      %c0_27 = arith.constant 0 : index
      %c0_28 = arith.constant 0 : index
      %51 = vector.load %arg16[%c0_27, %c0_28] : memref<128x4xf32, #tpu.memory_space<vmem>>, vector<128x1xf32>
      tpu.vector_store %arg16[%c0_27, %c0_28], %30 {strides = array<i32>} : memref<128x4xf32, #tpu.memory_space<vmem>>, vector<128x1xf32>,
      %52 = vector.extract_strided_slice %16 {offsets = [0, 128], sizes = [128, 128], strides = [1, 1]} : vector<128x512xbf16> to vector<128x128xbf16>
      %53 = vector.extract_strided_slice %17 {offsets = [0, 128], sizes = [128, 128], strides = [1, 1]} : vector<128x512xbf16> to vector<128x128xbf16>
      %cst_29 = arith.constant dense<0.000000e+00> : vector<128x128xf32>
      %54 = tpu.matmul %52, %53, %cst_29 {dimension_numbers = #tpu.dot_dimension_numbers<[1], [1], [0], [0], [0, 0, 1, 0], [], []>} : vector<128x128xbf16>, vector<128x128xbf16>, vector<128x128xf32> -> vector<128x128xf32>
      %cst_30 = arith.constant 2.500000e-01 : f32
      %55 = vector.broadcast %cst_30 : f32 to vector<128x128xf32>
      %56 = arith.mulf %54, %55 : vector<128x128xf32>
      %57 = vector.broadcast %cst_2 : f32 to vector<128x128xf32>
      %58 = arith.select %15, %56, %57 : vector<128x128xi1>, vector<128x128xf32>
      %59 = vector.extract_strided_slice %18 {offsets = [0, 1], sizes = [128, 1], strides = [1, 1]} : vector<128x4xf32> to vector<128x1xf32>
      %cst_31 = arith.constant dense<0xFF800000> : vector<128xf32>
      %60 = vector.multi_reduction <maximumf>, %58, %cst_31 [1] : vector<128x128xf32> to vector<128xf32>
      %61 = vector.shape_cast %60 : vector<128xf32> to vector<128x1xf32>
      %62 = arith.maximumf %59, %61 : vector<128x1xf32>
      %63 = vector.broadcast %62 : vector<128x1xf32> to vector<128x128xf32>
      %64 = arith.subf %58, %63 : vector<128x128xf32>
      %65 = math.exp %64 : vector<128x128xf32>
      %cst_32 = arith.constant 0.000000e+00 : f32
      %66 = vector.broadcast %cst_32 : f32 to vector<128x128xf32>
      %67 = arith.select %15, %65, %66 : vector<128x128xi1>, vector<128x128xf32>
      %68 = arith.subf %59, %62 : vector<128x1xf32>
      %69 = math.exp %68 : vector<128x1xf32>
      %70 = vector.extract_strided_slice %19 {offsets = [0, 1], sizes = [128, 1], strides = [1, 1]} : vector<128x4xf32> to vector<128x1xf32>
      %71 = arith.mulf %69, %70 : vector<128x1xf32>
      %cst_33 = arith.constant dense<0.000000e+00> : vector<128xf32>
      %72 = vector.multi_reduction <add>, %67, %cst_33 [1] : vector<128x128xf32> to vector<128xf32>
      %73 = vector.shape_cast %72 : vector<128xf32> to vector<128x1xf32>
      %74 = arith.addf %71, %73 : vector<128x1xf32>
      %c0_34 = arith.constant 0 : index
      %c1 = arith.constant 1 : index
      %75 = vector.load %arg17[%c0_34, %c1] : memref<128x4xf32, #tpu.memory_space<vmem>>, vector<128x1xf32>
      tpu.vector_store %arg17[%c0_34, %c1], %74 {strides = array<i32>} : memref<128x4xf32, #tpu.memory_space<vmem>>, vector<128x1xf32>,
      %c0_35 = arith.constant 0 : index
      %c128 = arith.constant 128 : index
      %76 = vector.load %arg15[%c0_35, %c128] : memref<128x512xf32, #tpu.memory_space<vmem>>, vector<128x128xf32>
      %77 = vector.broadcast %69 : vector<128x1xf32> to vector<128x128xf32>
      %78 = arith.mulf %77, %76 : vector<128x128xf32>
      %79 = arith.truncf %67 : vector<128x128xf32> to vector<128x128xbf16>
      %cst_36 = arith.constant dense<0.000000e+00> : vector<128x128xf32>
      %80 = tpu.matmul %79, %53, %cst_36 {dimension_numbers = #tpu.dot_dimension_numbers<[1], [0], [0], [1], [0, 0, 1, 1], [], []>} : vector<128x128xbf16>, vector<128x128xbf16>, vector<128x128xf32> -> vector<128x128xf32>
      %81 = arith.addf %78, %80 : vector<128x128xf32>
      %c0_37 = arith.constant 0 : index
      %c128_38 = arith.constant 128 : index
      %82 = vector.load %arg15[%c0_37, %c128_38] : memref<128x512xf32, #tpu.memory_space<vmem>>, vector<128x128xf32>
      tpu.vector_store %arg15[%c0_37, %c128_38], %81 {strides = array<i32>} : memref<128x512xf32, #tpu.memory_space<vmem>>, vector<128x128xf32>,
      %c0_39 = arith.constant 0 : index
      %c1_40 = arith.constant 1 : index
      %83 = vector.load %arg16[%c0_39, %c1_40] : memref<128x4xf32, #tpu.memory_space<vmem>>, vector<128x1xf32>
      tpu.vector_store %arg16[%c0_39, %c1_40], %62 {strides = array<i32>} : memref<128x4xf32, #tpu.memory_space<vmem>>, vector<128x1xf32>,
      %84 = vector.extract_strided_slice %16 {offsets = [0, 256], sizes = [128, 128], strides = [1, 1]} : vector<128x512xbf16> to vector<128x128xbf16>
      %85 = vector.extract_strided_slice %17 {offsets = [0, 256], sizes = [128, 128], strides = [1, 1]} : vector<128x512xbf16> to vector<128x128xbf16>
      %cst_41 = arith.constant dense<0.000000e+00> : vector<128x128xf32>
      %86 = tpu.matmul %84, %85, %cst_41 {dimension_numbers = #tpu.dot_dimension_numbers<[1], [1], [0], [0], [0, 0, 1, 0], [], []>} : vector<128x128xbf16>, vector<128x128xbf16>, vector<128x128xf32> -> vector<128x128xf32>
      %cst_42 = arith.constant 2.500000e-01 : f32
      %87 = vector.broadcast %cst_42 : f32 to vector<128x128xf32>
      %88 = arith.mulf %86, %87 : vector<128x128xf32>
      %89 = vector.broadcast %cst_2 : f32 to vector<128x128xf32>
      %90 = arith.select %15, %88, %89 : vector<128x128xi1>, vector<128x128xf32>
      %91 = vector.extract_strided_slice %18 {offsets = [0, 2], sizes = [128, 1], strides = [1, 1]} : vector<128x4xf32> to vector<128x1xf32>
      %cst_43 = arith.constant dense<0xFF800000> : vector<128xf32>
      %92 = vector.multi_reduction <maximumf>, %90, %cst_43 [1] : vector<128x128xf32> to vector<128xf32>
      %93 = vector.shape_cast %92 : vector<128xf32> to vector<128x1xf32>
      %94 = arith.maximumf %91, %93 : vector<128x1xf32>
      %95 = vector.broadcast %94 : vector<128x1xf32> to vector<128x128xf32>
      %96 = arith.subf %90, %95 : vector<128x128xf32>
      %97 = math.exp %96 : vector<128x128xf32>
      %cst_44 = arith.constant 0.000000e+00 : f32
      %98 = vector.broadcast %cst_44 : f32 to vector<128x128xf32>
      %99 = arith.select %15, %97, %98 : vector<128x128xi1>, vector<128x128xf32>
      %100 = arith.subf %91, %94 : vector<128x1xf32>
      %101 = math.exp %100 : vector<128x1xf32>
      %102 = vector.extract_strided_slice %19 {offsets = [0, 2], sizes = [128, 1], strides = [1, 1]} : vector<128x4xf32> to vector<128x1xf32>
      %103 = arith.mulf %101, %102 : vector<128x1xf32>
      %cst_45 = arith.constant dense<0.000000e+00> : vector<128xf32>
      %104 = vector.multi_reduction <add>, %99, %cst_45 [1] : vector<128x128xf32> to vector<128xf32>
      %105 = vector.shape_cast %104 : vector<128xf32> to vector<128x1xf32>
      %106 = arith.addf %103, %105 : vector<128x1xf32>
      %c0_46 = arith.constant 0 : index
      %c2 = arith.constant 2 : index
      %107 = vector.load %arg17[%c0_46, %c2] : memref<128x4xf32, #tpu.memory_space<vmem>>, vector<128x1xf32>
      tpu.vector_store %arg17[%c0_46, %c2], %106 {strides = array<i32>} : memref<128x4xf32, #tpu.memory_space<vmem>>, vector<128x1xf32>,
      %c0_47 = arith.constant 0 : index
      %c256 = arith.constant 256 : index
      %108 = vector.load %arg15[%c0_47, %c256] : memref<128x512xf32, #tpu.memory_space<vmem>>, vector<128x128xf32>
      %109 = vector.broadcast %101 : vector<128x1xf32> to vector<128x128xf32>
      %110 = arith.mulf %109, %108 : vector<128x128xf32>
      %111 = arith.truncf %99 : vector<128x128xf32> to vector<128x128xbf16>
      %cst_48 = arith.constant dense<0.000000e+00> : vector<128x128xf32>
      %112 = tpu.matmul %111, %85, %cst_48 {dimension_numbers = #tpu.dot_dimension_numbers<[1], [0], [0], [1], [0, 0, 1, 1], [], []>} : vector<128x128xbf16>, vector<128x128xbf16>, vector<128x128xf32> -> vector<128x128xf32>
      %113 = arith.addf %110, %112 : vector<128x128xf32>
      %c0_49 = arith.constant 0 : index
      %c256_50 = arith.constant 256 : index
      %114 = vector.load %arg15[%c0_49, %c256_50] : memref<128x512xf32, #tpu.memory_space<vmem>>, vector<128x128xf32>
      tpu.vector_store %arg15[%c0_49, %c256_50], %113 {strides = array<i32>} : memref<128x512xf32, #tpu.memory_space<vmem>>, vector<128x128xf32>,
      %c0_51 = arith.constant 0 : index
      %c2_52 = arith.constant 2 : index
      %115 = vector.load %arg16[%c0_51, %c2_52] : memref<128x4xf32, #tpu.memory_space<vmem>>, vector<128x1xf32>
      tpu.vector_store %arg16[%c0_51, %c2_52], %94 {strides = array<i32>} : memref<128x4xf32, #tpu.memory_space<vmem>>, vector<128x1xf32>,
      %116 = vector.extract_strided_slice %16 {offsets = [0, 384], sizes = [128, 128], strides = [1, 1]} : vector<128x512xbf16> to vector<128x128xbf16>
      %117 = vector.extract_strided_slice %17 {offsets = [0, 384], sizes = [128, 128], strides = [1, 1]} : vector<128x512xbf16> to vector<128x128xbf16>
      %cst_53 = arith.constant dense<0.000000e+00> : vector<128x128xf32>
      %118 = tpu.matmul %116, %117, %cst_53 {dimension_numbers = #tpu.dot_dimension_numbers<[1], [1], [0], [0], [0, 0, 1, 0], [], []>} : vector<128x128xbf16>, vector<128x128xbf16>, vector<128x128xf32> -> vector<128x128xf32>
      %cst_54 = arith.constant 2.500000e-01 : f32
      %119 = vector.broadcast %cst_54 : f32 to vector<128x128xf32>
      %120 = arith.mulf %118, %119 : vector<128x128xf32>
      %121 = vector.broadcast %cst_2 : f32 to vector<128x128xf32>
      %122 = arith.select %15, %120, %121 : vector<128x128xi1>, vector<128x128xf32>
      %123 = vector.extract_strided_slice %18 {offsets = [0, 3], sizes = [128, 1], strides = [1, 1]} : vector<128x4xf32> to vector<128x1xf32>
      %cst_55 = arith.constant dense<0xFF800000> : vector<128xf32>
      %124 = vector.multi_reduction <maximumf>, %122, %cst_55 [1] : vector<128x128xf32> to vector<128xf32>
      %125 = vector.shape_cast %124 : vector<128xf32> to vector<128x1xf32>
      %126 = arith.maximumf %123, %125 : vector<128x1xf32>
      %127 = vector.broadcast %126 : vector<128x1xf32> to vector<128x128xf32>
      %128 = arith.subf %122, %127 : vector<128x128xf32>
      %129 = math.exp %128 : vector<128x128xf32>
      %cst_56 = arith.constant 0.000000e+00 : f32
      %130 = vector.broadcast %cst_56 : f32 to vector<128x128xf32>
      %131 = arith.select %15, %129, %130 : vector<128x128xi1>, vector<128x128xf32>
      %132 = arith.subf %123, %126 : vector<128x1xf32>
      %133 = math.exp %132 : vector<128x1xf32>
      %134 = vector.extract_strided_slice %19 {offsets = [0, 3], sizes = [128, 1], strides = [1, 1]} : vector<128x4xf32> to vector<128x1xf32>
      %135 = arith.mulf %133, %134 : vector<128x1xf32>
      %cst_57 = arith.constant dense<0.000000e+00> : vector<128xf32>
      %136 = vector.multi_reduction <add>, %131, %cst_57 [1] : vector<128x128xf32> to vector<128xf32>
      %137 = vector.shape_cast %136 : vector<128xf32> to vector<128x1xf32>
      %138 = arith.addf %135, %137 : vector<128x1xf32>
      %c0_58 = arith.constant 0 : index
      %c3 = arith.constant 3 : index
      %139 = vector.load %arg17[%c0_58, %c3] : memref<128x4xf32, #tpu.memory_space<vmem>>, vector<128x1xf32>
      tpu.vector_store %arg17[%c0_58, %c3], %138 {strides = array<i32>} : memref<128x4xf32, #tpu.memory_space<vmem>>, vector<128x1xf32>,
      %c0_59 = arith.constant 0 : index
      %c384 = arith.constant 384 : index
      %140 = vector.load %arg15[%c0_59, %c384] : memref<128x512xf32, #tpu.memory_space<vmem>>, vector<128x128xf32>
      %141 = vector.broadcast %133 : vector<128x1xf32> to vector<128x128xf32>
      %142 = arith.mulf %141, %140 : vector<128x128xf32>
      %143 = arith.truncf %131 : vector<128x128xf32> to vector<128x128xbf16>
      %cst_60 = arith.constant dense<0.000000e+00> : vector<128x128xf32>
      %144 = tpu.matmul %143, %117, %cst_60 {dimension_numbers = #tpu.dot_dimension_numbers<[1], [0], [0], [1], [0, 0, 1, 1], [], []>} : vector<128x128xbf16>, vector<128x128xbf16>, vector<128x128xf32> -> vector<128x128xf32>
      %145 = arith.addf %142, %144 : vector<128x128xf32>
      %c0_61 = arith.constant 0 : index
      %c384_62 = arith.constant 384 : index
      %146 = vector.load %arg15[%c0_61, %c384_62] : memref<128x512xf32, #tpu.memory_space<vmem>>, vector<128x128xf32>
      tpu.vector_store %arg15[%c0_61, %c384_62], %145 {strides = array<i32>} : memref<128x512xf32, #tpu.memory_space<vmem>>, vector<128x128xf32>,
      %c0_63 = arith.constant 0 : index
      %c3_64 = arith.constant 3 : index
      %147 = vector.load %arg16[%c0_63, %c3_64] : memref<128x4xf32, #tpu.memory_space<vmem>>, vector<128x1xf32>
      tpu.vector_store %arg16[%c0_63, %c3_64], %126 {strides = array<i32>} : memref<128x4xf32, #tpu.memory_space<vmem>>, vector<128x1xf32>,
    } else {
    }
    %c0_i32_4 = arith.constant 0 : i32
    %10 = arith.cmpi eq, %arg1, %c0_i32_4 : i32
    %11 = arith.extui %10 : i1 to i32
    %c0_i32_5 = arith.constant 0 : i32
    %12 = arith.cmpi ne, %11, %c0_i32_5 : i32
    scf.if %12 {
      %c0 = arith.constant 0 : index
      %c0_6 = arith.constant 0 : index
      %13 = vector.load %arg7[%c0, %c0_6] : memref<128x8xbf16, #tpu.memory_space<vmem>>, vector<128x8xbf16>
      %c0_7 = arith.constant 0 : index
      %c0_8 = arith.constant 0 : index
      %14 = vector.load %arg8[%c0_7, %c0_8] : memref<8x1024xbf16, #tpu.memory_space<vmem>>, vector<8x1024xbf16>
      %cst_9 = arith.constant dense<0.000000e+00> : vector<128x1024xf32>
      %15 = tpu.matmul %13, %14, %cst_9 {dimension_numbers = #tpu.dot_dimension_numbers<[1], [0], [0], [1], [0, 0, 1, 1], [], []>} : vector<128x8xbf16>, vector<8x1024xbf16>, vector<128x1024xf32> -> vector<128x1024xf32>
      %c0_10 = arith.constant 0 : index
      %c0_11 = arith.constant 0 : index
      %16 = vector.load %arg9[%c0_10, %c0_11] : memref<1x1024xf32, #tpu.memory_space<vmem>>, vector<1x1024xf32>
      %17 = vector.broadcast %16 : vector<1x1024xf32> to vector<128x1024xf32>
      %18 = arith.addf %15, %17 : vector<128x1024xf32>
      %19 = vector.extract_strided_slice %18 {offsets = [0, 0], sizes = [128, 512], strides = [1, 1]} : vector<128x1024xf32> to vector<128x512xf32>
      %20 = vector.extract_strided_slice %18 {offsets = [0, 512], sizes = [128, 512], strides = [1, 1]} : vector<128x1024xf32> to vector<128x512xf32>
      %c0_12 = arith.constant 0 : index
      %c0_13 = arith.constant 0 : index
      %21 = vector.load %arg17[%c0_12, %c0_13] : memref<128x4xf32, #tpu.memory_space<vmem>>, vector<128x4xf32>
      %cst_14 = arith.constant 0.000000e+00 : f32
      %22 = vector.broadcast %cst_14 : f32 to vector<128x4xf32>
      %23 = arith.cmpf ogt, %21, %22 : vector<128x4xf32>
      %cst_15 = arith.constant 1.000000e+00 : f32
      %24 = vector.broadcast %cst_15 : f32 to vector<128x4xf32>
      %25 = arith.select %23, %21, %24 : vector<128x4xi1>, vector<128x4xf32>
      %26 = tpu.reciprocal %25 {approx = true} : vector<128x4xf32> -> vector<128x4xf32>
      %c0_16 = arith.constant 0 : index
      %c0_17 = arith.constant 0 : index
      %27 = vector.load %arg15[%c0_16, %c0_17] : memref<128x512xf32, #tpu.memory_space<vmem>>, vector<128x128xf32>
      %28 = vector.extract_strided_slice %26 {offsets = [0, 0], sizes = [128, 1], strides = [1, 1]} : vector<128x4xf32> to vector<128x1xf32>
      %29 = vector.broadcast %28 : vector<128x1xf32> to vector<128x128xf32>
      %30 = arith.mulf %27, %29 : vector<128x128xf32>
      %c0_18 = arith.constant 0 : index
      %c0_19 = arith.constant 0 : index
      %31 = vector.load %arg15[%c0_18, %c0_19] : memref<128x512xf32, #tpu.memory_space<vmem>>, vector<128x128xf32>
      tpu.vector_store %arg15[%c0_18, %c0_19], %30 {strides = array<i32>} : memref<128x512xf32, #tpu.memory_space<vmem>>, vector<128x128xf32>,
      %c0_20 = arith.constant 0 : index
      %c128 = arith.constant 128 : index
      %32 = vector.load %arg15[%c0_20, %c128] : memref<128x512xf32, #tpu.memory_space<vmem>>, vector<128x128xf32>
      %33 = vector.extract_strided_slice %26 {offsets = [0, 1], sizes = [128, 1], strides = [1, 1]} : vector<128x4xf32> to vector<128x1xf32>
      %34 = vector.broadcast %33 : vector<128x1xf32> to vector<128x128xf32>
      %35 = arith.mulf %32, %34 : vector<128x128xf32>
      %c0_21 = arith.constant 0 : index
      %c128_22 = arith.constant 128 : index
      %36 = vector.load %arg15[%c0_21, %c128_22] : memref<128x512xf32, #tpu.memory_space<vmem>>, vector<128x128xf32>
      tpu.vector_store %arg15[%c0_21, %c128_22], %35 {strides = array<i32>} : memref<128x512xf32, #tpu.memory_space<vmem>>, vector<128x128xf32>,
      %c0_23 = arith.constant 0 : index
      %c256 = arith.constant 256 : index
      %37 = vector.load %arg15[%c0_23, %c256] : memref<128x512xf32, #tpu.memory_space<vmem>>, vector<128x128xf32>
      %38 = vector.extract_strided_slice %26 {offsets = [0, 2], sizes = [128, 1], strides = [1, 1]} : vector<128x4xf32> to vector<128x1xf32>
      %39 = vector.broadcast %38 : vector<128x1xf32> to vector<128x128xf32>
      %40 = arith.mulf %37, %39 : vector<128x128xf32>
      %c0_24 = arith.constant 0 : index
      %c256_25 = arith.constant 256 : index
      %41 = vector.load %arg15[%c0_24, %c256_25] : memref<128x512xf32, #tpu.memory_space<vmem>>, vector<128x128xf32>
      tpu.vector_store %arg15[%c0_24, %c256_25], %40 {strides = array<i32>} : memref<128x512xf32, #tpu.memory_space<vmem>>, vector<128x128xf32>,
      %c0_26 = arith.constant 0 : index
      %c384 = arith.constant 384 : index
      %42 = vector.load %arg15[%c0_26, %c384] : memref<128x512xf32, #tpu.memory_space<vmem>>, vector<128x128xf32>
      %43 = vector.extract_strided_slice %26 {offsets = [0, 3], sizes = [128, 1], strides = [1, 1]} : vector<128x4xf32> to vector<128x1xf32>
      %44 = vector.broadcast %43 : vector<128x1xf32> to vector<128x128xf32>
      %45 = arith.mulf %42, %44 : vector<128x128xf32>
      %c0_27 = arith.constant 0 : index
      %c384_28 = arith.constant 384 : index
      %46 = vector.load %arg15[%c0_27, %c384_28] : memref<128x512xf32, #tpu.memory_space<vmem>>, vector<128x128xf32>
      tpu.vector_store %arg15[%c0_27, %c384_28], %45 {strides = array<i32>} : memref<128x512xf32, #tpu.memory_space<vmem>>, vector<128x128xf32>,
      %c0_29 = arith.constant 0 : index
      %c0_30 = arith.constant 0 : index
      %47 = vector.load %arg15[%c0_29, %c0_30] : memref<128x512xf32, #tpu.memory_space<vmem>>, vector<128x512xf32>
      %48 = arith.addf %47, %19 : vector<128x512xf32>
      %cst_31 = arith.constant dense<0.000000e+00> : vector<128xf32>
      %49 = vector.multi_reduction <add>, %48, %cst_31 [1] : vector<128x512xf32> to vector<128xf32>
      %50 = vector.shape_cast %49 : vector<128xf32> to vector<128x1xf32>
      %cst_32 = arith.constant 6.400000e+01 : f32
      %51 = vector.broadcast %cst_32 : f32 to vector<128x1xf32>
      %52 = arith.divf %50, %51 : vector<128x1xf32>
      %53 = arith.mulf %48, %48 : vector<128x512xf32>
      %cst_33 = arith.constant dense<0.000000e+00> : vector<128xf32>
      %54 = vector.multi_reduction <add>, %53, %cst_33 [1] : vector<128x512xf32> to vector<128xf32>
      %55 = vector.shape_cast %54 : vector<128xf32> to vector<128x1xf32>
      %cst_34 = arith.constant 6.400000e+01 : f32
      %56 = vector.broadcast %cst_34 : f32 to vector<128x1xf32>
      %57 = arith.divf %55, %56 : vector<128x1xf32>
      %58 = arith.mulf %52, %52 : vector<128x1xf32>
      %59 = arith.subf %57, %58 : vector<128x1xf32>
      %cst_35 = arith.constant 0.000000e+00 : f32
      %60 = vector.broadcast %cst_35 : f32 to vector<128x1xf32>
      %61 = arith.maximumf %59, %60 : vector<128x1xf32>
      %62 = vector.broadcast %52 : vector<128x1xf32> to vector<128x512xf32>
      %63 = arith.subf %48, %62 : vector<128x512xf32>
      %cst_36 = arith.constant 9.99999974E-6 : f32
      %64 = vector.broadcast %cst_36 : f32 to vector<128x1xf32>
      %65 = arith.addf %61, %64 : vector<128x1xf32>
      %66 = math.rsqrt %65 : vector<128x1xf32>
      %67 = vector.broadcast %66 : vector<128x1xf32> to vector<128x512xf32>
      %68 = arith.mulf %63, %67 : vector<128x512xf32>
      %c0_37 = arith.constant 0 : index
      %c0_38 = arith.constant 0 : index
      %69 = vector.load %arg10[%c0_37, %c0_38] : memref<1x512xf32, #tpu.memory_space<vmem>>, vector<1x512xf32>
      %70 = vector.broadcast %69 : vector<1x512xf32> to vector<128x512xf32>
      %71 = arith.mulf %68, %70 : vector<128x512xf32>
      %c0_39 = arith.constant 0 : index
      %c0_40 = arith.constant 0 : index
      %72 = vector.load %arg11[%c0_39, %c0_40] : memref<1x512xf32, #tpu.memory_space<vmem>>, vector<1x512xf32>
      %73 = vector.broadcast %72 : vector<1x512xf32> to vector<128x512xf32>
      %74 = arith.addf %71, %73 : vector<128x512xf32>
      %75 = arith.negf %74 : vector<128x512xf32>
      %76 = math.exp %75 : vector<128x512xf32>
      %cst_41 = arith.constant 1.000000e+00 : f32
      %77 = vector.broadcast %cst_41 : f32 to vector<128x512xf32>
      %78 = arith.addf %77, %76 : vector<128x512xf32>
      %79 = arith.divf %77, %78 : vector<128x512xf32>
      %80 = arith.mulf %74, %79 : vector<128x512xf32>
      %81 = arith.addf %80, %20 : vector<128x512xf32>
      %82 = arith.truncf %81 : vector<128x512xf32> to vector<128x512xbf16>
      %c0_42 = arith.constant 0 : index
      %c0_43 = arith.constant 0 : index
      %83 = vector.load %arg12[%c0_42, %c0_43] : memref<512x128xbf16, #tpu.memory_space<vmem>>, vector<512x128xbf16>
      %cst_44 = arith.constant dense<0.000000e+00> : vector<128x128xf32>
      %84 = tpu.matmul %82, %83, %cst_44 {dimension_numbers = #tpu.dot_dimension_numbers<[1], [0], [0], [1], [0, 0, 1, 1], [], []>} : vector<128x512xbf16>, vector<512x128xbf16>, vector<128x128xf32> -> vector<128x128xf32>
      %c0_45 = arith.constant 0 : index
      %c0_46 = arith.constant 0 : index
      %85 = vector.load %arg13[%c0_45, %c0_46] : memref<1x128xf32, #tpu.memory_space<vmem>>, vector<1x128xf32>
      %86 = vector.broadcast %85 : vector<1x128xf32> to vector<128x128xf32>
      %87 = arith.addf %84, %86 : vector<128x128xf32>
      %c0_47 = arith.constant 0 : index
      %c0_48 = arith.constant 0 : index
      %88 = vector.load %arg14[%c0_47, %c0_48] : memref<128x128xf32, #tpu.memory_space<vmem>>, vector<128x128xf32>
      tpu.vector_store %arg14[%c0_47, %c0_48], %87 {strides = array<i32>} : memref<128x128xf32, #tpu.memory_space<vmem>>, vector<128x128xf32>,
    } else {
    }
    return
  }
  func.func @transform_0(%arg0: i32, %arg1: i32, %arg2: memref<1xi32, #tpu.memory_space<smem>>, %arg3: memref<1xi32, #tpu.memory_space<smem>>) -> (i32, i32) {
    %c1_i32 = arith.constant 1 : i32
    %0 = arith.muli %arg0, %c1_i32 : i32
    %1 = arith.addi %0, %arg1 : i32
    %2 = arith.index_cast %1 : i32 to index
    %3 = memref.load %arg3[%2] : memref<1xi32, #tpu.memory_space<smem>>
    %c0_i32 = arith.constant 0 : i32
    %c0_i32_0 = arith.constant 0 : i32
    return %3, %c0_i32 : i32, i32
  }
  func.func @transform_1(%arg0: i32, %arg1: i32, %arg2: memref<1xi32, #tpu.memory_space<smem>>, %arg3: memref<1xi32, #tpu.memory_space<smem>>) -> (i32, i32) {
    %c0_i32 = arith.constant 0 : i32
    %c0_i32_0 = arith.constant 0 : i32
    return %arg0, %c0_i32 : i32, i32
  }
  func.func @transform_2(%arg0: i32, %arg1: i32, %arg2: memref<1xi32, #tpu.memory_space<smem>>, %arg3: memref<1xi32, #tpu.memory_space<smem>>) -> (i32, i32) {
    %c1_i32 = arith.constant 1 : i32
    %0 = arith.muli %arg0, %c1_i32 : i32
    %1 = arith.addi %0, %arg1 : i32
    %2 = arith.index_cast %1 : i32 to index
    %3 = memref.load %arg3[%2] : memref<1xi32, #tpu.memory_space<smem>>
    %c0_i32 = arith.constant 0 : i32
    return %arg0, %3 : i32, i32
  }
  func.func @transform_3(%arg0: i32, %arg1: i32, %arg2: memref<1xi32, #tpu.memory_space<smem>>, %arg3: memref<1xi32, #tpu.memory_space<smem>>) -> (i32, i32) {
    %c0_i32 = arith.constant 0 : i32
    %c0_i32_0 = arith.constant 0 : i32
    return %arg0, %c0_i32 : i32, i32
  }
  func.func @transform_4(%arg0: i32, %arg1: i32, %arg2: memref<1xi32, #tpu.memory_space<smem>>, %arg3: memref<1xi32, #tpu.memory_space<smem>>) -> (i32, i32) {
    %c0_i32 = arith.constant 0 : i32
    %c0_i32_0 = arith.constant 0 : i32
    %c0_i32_1 = arith.constant 0 : i32
    return %c0_i32, %c0_i32_0 : i32, i32
  }
  func.func @transform_5(%arg0: i32, %arg1: i32, %arg2: memref<1xi32, #tpu.memory_space<smem>>, %arg3: memref<1xi32, #tpu.memory_space<smem>>) -> (i32, i32) {
    %c0_i32 = arith.constant 0 : i32
    %c0_i32_0 = arith.constant 0 : i32
    %c0_i32_1 = arith.constant 0 : i32
    return %c0_i32, %c0_i32_0 : i32, i32
  }
  func.func @transform_6(%arg0: i32, %arg1: i32, %arg2: memref<1xi32, #tpu.memory_space<smem>>, %arg3: memref<1xi32, #tpu.memory_space<smem>>) -> (i32, i32) {
    %c0_i32 = arith.constant 0 : i32
    %c0_i32_0 = arith.constant 0 : i32
    %c0_i32_1 = arith.constant 0 : i32
    return %c0_i32, %c0_i32_0 : i32, i32
  }
  func.func @transform_7(%arg0: i32, %arg1: i32, %arg2: memref<1xi32, #tpu.memory_space<smem>>, %arg3: memref<1xi32, #tpu.memory_space<smem>>) -> (i32, i32) {
    %c0_i32 = arith.constant 0 : i32
    %c0_i32_0 = arith.constant 0 : i32
    %c0_i32_1 = arith.constant 0 : i32
    return %c0_i32, %c0_i32_0 : i32, i32
  }
  func.func @transform_8(%arg0: i32, %arg1: i32, %arg2: memref<1xi32, #tpu.memory_space<smem>>, %arg3: memref<1xi32, #tpu.memory_space<smem>>) -> (i32, i32) {
    %c0_i32 = arith.constant 0 : i32
    %c0_i32_0 = arith.constant 0 : i32
    %c0_i32_1 = arith.constant 0 : i32
    return %c0_i32, %c0_i32_0 : i32, i32
  }
  func.func @transform_9(%arg0: i32, %arg1: i32, %arg2: memref<1xi32, #tpu.memory_space<smem>>, %arg3: memref<1xi32, #tpu.memory_space<smem>>) -> (i32, i32) {
    %c0_i32 = arith.constant 0 : i32
    %c0_i32_0 = arith.constant 0 : i32
    %c0_i32_1 = arith.constant 0 : i32
    return %c0_i32, %c0_i32_0 : i32, i32
  }
  func.func @transform_10(%arg0: i32, %arg1: i32, %arg2: memref<1xi32, #tpu.memory_space<smem>>, %arg3: memref<1xi32, #tpu.memory_space<smem>>) -> (i32, i32) {
    %c0_i32 = arith.constant 0 : i32
    %c0_i32_0 = arith.constant 0 : i32
    return %arg0, %c0_i32 : i32, i32
  }
}

</mosaic_0001>

<bundles_post_ra>
// kernel: tpu_custom_call.1
= control target key start
LH: loop header
LB: loop body
LE: loop exit
PB: predicated region body
PF: predicated region fallthrough
CT: control target
= control target key end

     0   :  { %19 = vsyncpa [#allocation9], 0  ;;  %s14530_s0 = inlined_call_operand.<no memory space> [shape: s32[1], index: 0, kind: input, shape index: {}]   ;;  %s14531_s1 = inlined_call_operand.<no memory space> [shape: s32[1], index: 1, kind: input, shape index: {}]   ;;  %s14532_s2 = inlined_call_operand.hbm [shape: bf16[128,512], index: 2, kind: input, shape index: {}]   ;;  %s14533_s3 = inlined_call_operand.hbm [shape: bf16[128,512], index: 3, kind: input, shape index: {}]   ;;  %s14534_s4 = inlined_call_operand.vmem [shape: s8[128,128], index: 4, kind: input, shape index: {}]   ;;  %s14535_s5 = inlined_call_operand.vmem [shape: bf16[128,8], index: 5, kind: input, shape index: {}]   ;;  %s14536_s6 = inlined_call_operand.vmem [shape: bf16[8,1024], index: 6, kind: input, shape index: {}]   ;;  %s14537_s7 = inlined_call_operand.hbm [shape: f32[1,1024], index: 7, kind: input, shape index: {}]   ;;  %s14538_s8 = inlined_call_operand.vmem [shape: f32[1,512], index: 8, kind: input, shape index: {}]   ;;  %s14539_s9 = inlined_call_operand.vmem [shape: f32[1,512], index: 9, kind: input, shape index: {}]   ;;  %s14540_s10 = inlined_call_operand.hbm [shape: bf16[512,128], index: 10, kind: input, shape index: {}]   ;;  %s14541_s11 = inlined_call_operand.vmem [shape: f32[1,128], index: 11, kind: input, shape index: {}]   ;;  %s14542_s12 = inlined_call_operand.hbm [shape: f32[128,128], index: 12, kind: output, shape index: {}]  }
   0x1   :  { %20 = vsyncpa [#allocation12], 0 }
   0x2   :  { %21 = vsyncpa [#allocation15], 0 }
   0x3   :  { %22 = vsyncpa [#allocation10], 0  ;;  %s46_s23 = sshll.u32 %s14533_s3, 4  ;;  %s8687_s24 = smov [#allocation11]   ;;  %s47_s23 = int_to_ptr.hbm [resolvable:$true] %s46_s23 }
   0x4   :  { %s48_s25 = sshll.u32 %s8687_s24, 4  ;;  %s7743_s28 = sshll.u32 %s14531_s1, 8  ;;  %s49_s25 = int_to_ptr.vmem [resolvable:$true] %s48_s25 }
   0x5   :  { %s8688_s29 = smov 256   ;;  %s8689_s30 = smov 16  }
   0x6   :  { %54 = dma.hbm_to_vmem [thread:$0]  %s47_s23, 4096, %s49_s25, [#allocation12], %s8688_s29, %s8688_s29, %s8689_s30  }
   0x7   :  { %s32_s15 = scalar_lea.hbm %s14532_s2, %s7743_s28  ;;  %s8690_s17 = smov [#allocation8]  }
   0x8   :  { %s33_s16 = sshll.u32 %s32_s15, 4  ;;  %s35_s18 = sshll.u32 %s8690_s17, 4  ;;  %s34_s16 = int_to_ptr.hbm [resolvable:$true] %s33_s16  ;;  %s36_s18 = int_to_ptr.vmem [resolvable:$true] %s35_s18 }
   0x9   :  { %s8583_s3 = sshra.s32 %s34_s16, 4  ;;  %s8587_s22 = scalar_lea.hbm %s14532_s2, 256  ;;  %s8584_s3 = int_to_ptr.hbm [resolvable:$true] %s8583_s3 }
   0xa   :  { %s8585_s19 = scalar_lea.hbm %s8584_s3, 256  ;;  %p8588_p1 = scmp.lt.s32.totalorder %s8584_s3, %s14532_s2 }
   0xb   :  { %p8586_p0 = scmp.ne.s32.totalorder %s8584_s3, %s8585_s19  ;;  %p8589_p2 = scmp.lt.s32.totalorder %s8587_s22, %s8585_s19 }
   0xd   :  { %p8590_p3 = por %p8589_p2, %p8588_p1 }
   0xf   :  { %p8591_p4 = pnand %p8590_p3, %p8586_p0 }
  0x11   :  { %8594 = shalt.err (!%p8591_p4)
}
  0x12   :  { %41 = dma.hbm_to_vmem [thread:$0]  %s34_s16, 4096, %s36_s18, [#allocation9], %s8688_s29, %s8688_s29, %s8689_s30  }
  0x13   :  { %s74_s27 = sshll.u32 %s14537_s7, 4  ;;  %s8691_s28 = smov [#allocation13]   ;;  %s75_s27 = int_to_ptr.hbm [resolvable:$true] %s74_s27 }
  0x14   :  { %s76_s13 = sshll.u32 %s8691_s28, 4  ;;  %s88_s17 = sshll.u32 %s14540_s10, 4  ;;  %s77_s13 = int_to_ptr.vmem [resolvable:$true] %s76_s13  ;;  %s89_s17 = int_to_ptr.hbm [resolvable:$true] %s88_s17 }
  0x15   :  { %79 = dma.hbm_to_vmem [thread:$0]  %s75_s27, 128, %s77_s13, [#allocation12]  }
  0x16   :  { %s8692_s2 = smov [#allocation14]   ;;  %s8693_s19 = smov 64  }
  0x17   :  { %s90_s3 = sshll.u32 %s8692_s2, 4  ;;  %s8694_s20 = smov 4   ;;  %s91_s3 = int_to_ptr.vmem [resolvable:$true] %s90_s3 }
  0x18   :  { %96 = dma.hbm_to_vmem [thread:$0]  %s89_s17, 4096, %s91_s3, [#allocation15], %s8693_s19, %s8693_s19, %s8694_s20  }
  0x19   :  { %8679 = dma.done.wait [#allocation9], 4096  }
  0x1a   :  { %8680 = vsyncadd [#allocation9], 4294963200 }
  0x1b   :  { %8681 = dma.done.wait [#allocation12], 4224  }
  0x1c   :  { %8682 = vsyncadd [#allocation12], 4294963072 }
  0x1d   :  { %8683 = dma.done.wait [#allocation15], 4096  }
  0x1e   :  { %8684 = vsyncadd [#allocation15], 4294963200  ;;  %p126_p5 = scmp.lt.s32.totalorder %s14531_s1, 0  ;;  %v8695_v0 = vmov 0.0   ;;  %vm204_vm0 = vcmask 31744   ;;  %p7101_p6 = scmp.le.s32.totalorder %s14530_s0, 0 }
  0x1f   :  { %140 = vst [vmem:[#allocation2 + $0xb0] sm:$0xff] %v8695_v0  ;;  %v8696_v1 = vmov -1e+30  }
  0x20   :  { %s16007_s1 = smov (!%p126_p5, %s14531_s1), 0  ;;  %141 = vst [vmem:[#allocation2 + $0x1b0] sm:$0xff] %v8695_v0 }
  0x21   :  { %142 = vst [vmem:[#allocation2 + $0xd8] sm:$0xff] %v8695_v0  ;;  %s7100_s16 = sshll.u32 %s16007_s1, 3 }
  0x22   :  { %143 = vst [vmem:[#allocation2 + $0x18] sm:$0xff] %v8695_v0  ;;  %s8808_s22 = scalar_lea.vmem %s14534_s4, %s7100_s16 }
  0x23   :  { %144 = vst [vmem:[#allocation2 + $0x50] sm:$0xff] %v8695_v0 }
  0x24   :  { %145 = vst [vmem:[#allocation2 + $0x168] sm:$0xff] %v8695_v0 }
  0x25   :  { %146 = vst [vmem:[#allocation2 + $0x130] sm:$0xff] %v8695_v0 }
  0x26   :  { %147 = vst [vmem:[#allocation2 + $0x48] sm:$0xff] %v8695_v0 }
  0x27   :  { %148 = vst [vmem:[#allocation2 + $0x180] sm:$0xff] %v8695_v0 }
  0x28   :  { %149 = vst [vmem:[#allocation2 + $0x110] sm:$0xff] %v8695_v0 }
  0x29   :  { %150 = vst [vmem:[#allocation2 + $0x118] sm:$0xff] %v8695_v0 }
  0x2a   :  { %151 = vst [vmem:[#allocation2 + $0x98] sm:$0xff] %v8695_v0 }
  0x2b   :  { %152 = vst [vmem:[#allocation2 + $0x120] sm:$0xff] %v8695_v0 }
  0x2c   :  { %153 = vst [vmem:[#allocation2 + $0x150] sm:$0xff] %v8695_v0 }
  0x2d   :  { %154 = vst [vmem:[#allocation2 + $0x108] sm:$0xff] %v8695_v0 }
  0x2e   :  { %155 = vst [vmem:[#allocation2 + $0x60] sm:$0xff] %v8695_v0 }
  0x2f   :  { %156 = vst [vmem:[#allocation2 + $0xe0] sm:$0xff] %v8695_v0 }
  0x30   :  { %157 = vst [vmem:[#allocation2 + $0x188] sm:$0xff] %v8695_v0 }
  0x31   :  { %158 = vst [vmem:[#allocation2 + $0x138] sm:$0xff] %v8695_v0 }
  0x32   :  { %159 = vst [vmem:[#allocation2 + $0x140] sm:$0xff] %v8695_v0 }
  0x33   :  { %160 = vst [vmem:[#allocation2 + $0x80] sm:$0xff] %v8695_v0 }
  0x34   :  { %161 = vst [vmem:[#allocation2 + $0x1a8] sm:$0xff] %v8695_v0 }
  0x35   :  { %162 = vst [vmem:[#allocation2 + $0x1b8] sm:$0xff] %v8695_v0 }
  0x36   :  { %163 = vst [vmem:[#allocation2 + $0x28] sm:$0xff] %v8695_v0 }
  0x37   :  { %164 = vst [vmem:[#allocation2 + $0x1e8] sm:$0xff] %v8695_v0 }
  0x38   :  { %165 = vst [vmem:[#allocation2 + $0xf8] sm:$0xff] %v8695_v0 }
  0x39   :  { %166 = vst [vmem:[#allocation2 + $0x160] sm:$0xff] %v8695_v0 }
  0x3a   :  { %167 = vst [vmem:[#allocation2 + $0x30] sm:$0xff] %v8695_v0 }
  0x3b   :  { %168 = vst [vmem:[#allocation2 + $0x1e0] sm:$0xff] %v8695_v0 }
  0x3c   :  { %169 = vst [vmem:[#allocation2] sm:$0xff] %v8695_v0 }
  0x3d   :  { %170 = vst [vmem:[#allocation2 + $0xf0] sm:$0xff] %v8695_v0 }
  0x3e   :  { %171 = vst [vmem:[#allocation2 + $0x8] sm:$0xff] %v8695_v0 }
  0x3f   :  { %172 = vst [vmem:[#allocation2 + $0x148] sm:$0xff] %v8695_v0 }
  0x40   :  { %173 = vst [vmem:[#allocation2 + $0x1d0] sm:$0xff] %v8695_v0 }
  0x41   :  { %174 = vst [vmem:[#allocation2 + $0x100] sm:$0xff] %v8695_v0 }
  0x42   :  { %175 = vst [vmem:[#allocation2 + $0xc8] sm:$0xff] %v8695_v0 }
  0x43   :  { %176 = vst [vmem:[#allocation2 + $0x40] sm:$0xff] %v8695_v0 }
  0x44   :  { %177 = vst [vmem:[#allocation2 + $0x1f8] sm:$0xff] %v8695_v0 }
  0x45   :  { %178 = vst [vmem:[#allocation2 + $0x20] sm:$0xff] %v8695_v0 }
  0x46   :  { %179 = vst [vmem:[#allocation2 + $0x128] sm:$0xff] %v8695_v0 }
  0x47   :  { %180 = vst [vmem:[#allocation2 + $0x1a0] sm:$0xff] %v8695_v0 }
  0x48   :  { %181 = vst [vmem:[#allocation2 + $0x1f0] sm:$0xff] %v8695_v0 }
  0x49   :  { %182 = vst [vmem:[#allocation2 + $0xe8] sm:$0xff] %v8695_v0 }
  0x4a   :  { %183 = vst [vmem:[#allocation2 + $0x78] sm:$0xff] %v8695_v0 }
  0x4b   :  { %184 = vst [vmem:[#allocation2 + $0x70] sm:$0xff] %v8695_v0 }
  0x4c   :  { %185 = vst [vmem:[#allocation2 + $0x90] sm:$0xff] %v8695_v0 }
  0x4d   :  { %186 = vst [vmem:[#allocation2 + $0x1d8] sm:$0xff] %v8695_v0 }
  0x4e   :  { %187 = vst [vmem:[#allocation2 + $0xd0] sm:$0xff] %v8695_v0 }
  0x4f   :  { %188 = vst [vmem:[#allocation2 + $0xb8] sm:$0xff] %v8695_v0 }
  0x50   :  { %189 = vst [vmem:[#allocation2 + $0x88] sm:$0xff] %v8695_v0 }
  0x51   :  { %190 = vst [vmem:[#allocation2 + $0xa8] sm:$0xff] %v8695_v0 }
  0x52   :  { %191 = vst [vmem:[#allocation2 + $0x1c8] sm:$0xff] %v8695_v0 }
  0x53   :  { %192 = vst [vmem:[#allocation2 + $0x170] sm:$0xff] %v8695_v0 }
  0x54   :  { %193 = vst [vmem:[#allocation2 + $0x178] sm:$0xff] %v8695_v0 }
  0x55   :  { %194 = vst [vmem:[#allocation2 + $0x68] sm:$0xff] %v8695_v0 }
  0x56   :  { %195 = vst [vmem:[#allocation2 + $0x190] sm:$0xff] %v8695_v0 }
  0x57   :  { %196 = vst [vmem:[#allocation2 + $0x198] sm:$0xff] %v8695_v0 }
  0x58   :  { %197 = vst [vmem:[#allocation2 + $0x38] sm:$0xff] %v8695_v0 }
  0x59   :  { %198 = vst [vmem:[#allocation2 + $0xc0] sm:$0xff] %v8695_v0 }
  0x5a   :  { %199 = vst [vmem:[#allocation2 + $0x1c0] sm:$0xff] %v8695_v0 }
  0x5b   :  { %200 = vst [vmem:[#allocation2 + $0x158] sm:$0xff] %v8695_v0 }
  0x5c   :  { %201 = vst [vmem:[#allocation2 + $0x10] sm:$0xff] %v8695_v0 }
  0x5d   :  { %202 = vst [vmem:[#allocation2 + $0x58] sm:$0xff] %v8695_v0 }
  0x5e   :  { %203 = vst [vmem:[#allocation2 + $0xa0] sm:$0xff] %v8695_v0 }
  0x5f   :  { %205 = vst.msk [vmem:[#allocation3] sm:$0xff] %vm204_vm0, %v8696_v1 }
  0x60   :  { %206 = vst.msk [vmem:[#allocation3 + $0x8] sm:$0xff] %vm204_vm0, %v8696_v1 }
  0x61   :  { %207 = vst.msk [vmem:[#allocation3 + $0x10] sm:$0xff] %vm204_vm0, %v8696_v1 }
  0x62   :  { %208 = vst.msk [vmem:[#allocation3 + $0x18] sm:$0xff] %vm204_vm0, %v8696_v1 }
  0x63   :  { %209 = vst.msk [vmem:[#allocation3 + $0x20] sm:$0xff] %vm204_vm0, %v8696_v1 }
  0x64   :  { %210 = vst.msk [vmem:[#allocation3 + $0x28] sm:$0xff] %vm204_vm0, %v8696_v1 }
  0x65   :  { %211 = vst.msk [vmem:[#allocation3 + $0x30] sm:$0xff] %vm204_vm0, %v8696_v1 }
  0x66   :  { %212 = vst.msk [vmem:[#allocation3 + $0x38] sm:$0xff] %vm204_vm0, %v8696_v1 }
  0x67   :  { %213 = vst.msk [vmem:[#allocation3 + $0x40] sm:$0xff] %vm204_vm0, %v8696_v1 }
  0x68   :  { %214 = vst.msk [vmem:[#allocation3 + $0x48] sm:$0xff] %vm204_vm0, %v8696_v1 }
  0x69   :  { %215 = vst.msk [vmem:[#allocation3 + $0x50] sm:$0xff] %vm204_vm0, %v8696_v1 }
  0x6a   :  { %216 = vst.msk [vmem:[#allocation3 + $0x58] sm:$0xff] %vm204_vm0, %v8696_v1 }
  0x6b   :  { %217 = vst.msk [vmem:[#allocation3 + $0x60] sm:$0xff] %vm204_vm0, %v8696_v1 }
  0x6c   :  { %218 = vst.msk [vmem:[#allocation3 + $0x68] sm:$0xff] %vm204_vm0, %v8696_v1 }
  0x6d   :  { %219 = vst.msk [vmem:[#allocation3 + $0x70] sm:$0xff] %vm204_vm0, %v8696_v1 }
  0x6e   :  { %220 = vst.msk [vmem:[#allocation3 + $0x78] sm:$0xff] %vm204_vm0, %v8696_v1 }
  0x6f   :  { %221 = vst.msk [vmem:[#allocation4] sm:$0xff] %vm204_vm0, %v8695_v0 }
  0x70   :  { %222 = vst.msk [vmem:[#allocation4 + $0x8] sm:$0xff] %vm204_vm0, %v8695_v0 }
  0x71   :  { %223 = vst.msk [vmem:[#allocation4 + $0x10] sm:$0xff] %vm204_vm0, %v8695_v0 }
  0x72   :  { %224 = vst.msk [vmem:[#allocation4 + $0x18] sm:$0xff] %vm204_vm0, %v8695_v0 }
  0x73   :  { %225 = vst.msk [vmem:[#allocation4 + $0x20] sm:$0xff] %vm204_vm0, %v8695_v0 }
  0x74   :  { %226 = vst.msk [vmem:[#allocation4 + $0x28] sm:$0xff] %vm204_vm0, %v8695_v0 }
  0x75   :  { %227 = vst.msk [vmem:[#allocation4 + $0x30] sm:$0xff] %vm204_vm0, %v8695_v0 }
  0x76   :  { %228 = vst.msk [vmem:[#allocation4 + $0x38] sm:$0xff] %vm204_vm0, %v8695_v0 }
  0x77   :  { %229 = vst.msk [vmem:[#allocation4 + $0x40] sm:$0xff] %vm204_vm0, %v8695_v0 }
  0x78   :  { %230 = vst.msk [vmem:[#allocation4 + $0x48] sm:$0xff] %vm204_vm0, %v8695_v0 }
  0x79   :  { %231 = vst.msk [vmem:[#allocation4 + $0x50] sm:$0xff] %vm204_vm0, %v8695_v0 }
  0x7a   :  { %232 = vst.msk [vmem:[#allocation4 + $0x58] sm:$0xff] %vm204_vm0, %v8695_v0  ;;  %241 = sbr.rel (%p7101_p6) target bundleno = 1737 (0x6c9), region = 65 }
  0x7b   :  { %233 = vst.msk [vmem:[#allocation4 + $0x60] sm:$0xff] %vm204_vm0, %v8695_v0 }
  0x7c   :  { %234 = vst.msk [vmem:[#allocation4 + $0x68] sm:$0xff] %vm204_vm0, %v8695_v0 }
  0x7d   :  { %235 = vst.msk [vmem:[#allocation4 + $0x70] sm:$0xff] %vm204_vm0, %v8695_v0 }
  0x7e   :  { %236 = vst.msk [vmem:[#allocation4 + $0x78] sm:$0xff] %vm204_vm0, %v8695_v0 }
  0x7f   :  { %v7164_v2 = vld [vmem:[#allocation8 + $0xe0] sm:$0xf]  ;;  %v7806_v3 = vld [vmem:[#allocation8 + $0xec] sm:$0xf0]  ;;  %v7804_v4 = vld [vmem:[#allocation8 + $0xe4] sm:$0xf] }
  0x80   :  { %v7165_v5 = vor.u32 %v7806_v3, %v7164_v2  ;;  %v7250_v6 = vld [vmem:[#allocation8 + $0xf0] sm:$0xf0]  ;;  %v7160_v8 = vld [vmem:[#allocation8 + $0xc0] sm:$0xf]  ;;  %v7802_v9 = vld [vmem:[#allocation8 + $0xcc] sm:$0xf0] }
  0x81   :  { %v7253_v7 = vor.u32 %v7804_v4, %v7250_v6  ;;  %v7800_v10 = vld [vmem:[#allocation8 + $0xc4] sm:$0xf]  ;;  %v7246_v11 = vld [vmem:[#allocation8 + $0xd0] sm:$0xf0]  ;;  %v7161_v12 = vor.u32 %v7802_v9, %v7160_v8  ;;  %v7156_v14 = vld [vmem:[#allocation8 + $0xa0] sm:$0xf] }
  0x82   :  { %442 = vmatpush.bf16.xpose.msra.mxu0 %v7165_v5  ;;  %1080 = vmatpush.bf16.msra.mxu1 %v7165_v5  ;;  %v7249_v13 = vor.u32 %v7800_v10, %v7246_v11  ;;  %v7798_v15 = vld [vmem:[#allocation8 + $0xac] sm:$0xf0]  ;;  %v7796_v16 = vld [vmem:[#allocation8 + $0xa4] sm:$0xf]  ;;  %v7242_v17 = vld [vmem:[#allocation8 + $0xb0] sm:$0xf0] }
  0x83   :  { %1241 = vmatpush.bf16.xpose.msra.mxu2 %v7253_v7  ;;  %1763 = vmatpush.bf16.msra.mxu3 %v7253_v7  ;;  %v7157_v18 = vor.u32 %v7798_v15, %v7156_v14  ;;  %v7245_v19 = vor.u32 %v7796_v16, %v7242_v17  ;;  %v7152_v20 = vld [vmem:[#allocation8 + $0x80] sm:$0xf]  ;;  %v7794_v21 = vld [vmem:[#allocation8 + $0x8c] sm:$0xf0]  ;;  %v7792_v22 = vld [vmem:[#allocation8 + $0x84] sm:$0xf] }
  0x84   :  { %v7238_v23 = vld [vmem:[#allocation8 + $0x90] sm:$0xf0]  ;;  %v7153_v24 = vor.u32 %v7794_v21, %v7152_v20  ;;  %v7148_v26 = vld [vmem:[#allocation8 + $0x60] sm:$0xf]  ;;  %v7790_v27 = vld [vmem:[#allocation8 + $0x6c] sm:$0xf0] }
  0x85   :  { %v7241_v25 = vor.u32 %v7792_v22, %v7238_v23  ;;  %v7788_v28 = vld [vmem:[#allocation8 + $0x64] sm:$0xf]  ;;  %v7234_v29 = vld [vmem:[#allocation8 + $0x70] sm:$0xf0]  ;;  %v7149_v30 = vor.u32 %v7790_v27, %v7148_v26  ;;  %v7144_v32 = vld [vmem:[#allocation8 + $0x40] sm:$0xf] }
  0x86   :  { %1081 = vmatpush.bf16.msra.mxu1 %v7161_v12  ;;  %v7237_v31 = vor.u32 %v7788_v28, %v7234_v29  ;;  %v7786_v33 = vld [vmem:[#allocation8 + $0x4c] sm:$0xf0]  ;;  %v7784_v34 = vld [vmem:[#allocation8 + $0x44] sm:$0xf]  ;;  %v7230_v35 = vld [vmem:[#allocation8 + $0x50] sm:$0xf0] }
  0x87   :  { %1764 = vmatpush.bf16.msra.mxu3 %v7249_v13  ;;  %v7145_v36 = vor.u32 %v7786_v33, %v7144_v32  ;;  %v7233_v37 = vor.u32 %v7784_v34, %v7230_v35  ;;  %v7140_v38 = vld [vmem:[#allocation8 + $0x20] sm:$0xf]  ;;  %v7782_v39 = vld [vmem:[#allocation8 + $0x2c] sm:$0xf0]  ;;  %v7780_v40 = vld [vmem:[#allocation8 + $0x24] sm:$0xf] }
  0x88   :  { %v7226_v41 = vld [vmem:[#allocation8 + $0x30] sm:$0xf0]  ;;  %v7141_v42 = vor.u32 %v7782_v39, %v7140_v38  ;;  %v7136_v44 = vld [vmem:[#allocation8] sm:$0xf]  ;;  %v7778_v45 = vld [vmem:[#allocation8 + $0xc] sm:$0xf0] }
  0x89   :  { %v7229_v43 = vor.u32 %v7780_v40, %v7226_v41  ;;  %v7776_v46 = vld [vmem:[#allocation8 + $0x4] sm:$0xf]  ;;  %v7222_v47 = vld [vmem:[#allocation8 + $0x10] sm:$0xf0]  ;;  %v7137_v48 = vor.u32 %v7778_v45, %v7136_v44  ;;  %v7104_v50 = vld [vmem:[#allocation11] sm:$0xf] }
  0x8a   :  { %443 = vmatpush.bf16.xpose.msra.mxu0 %v7161_v12  ;;  %1082 = vmatpush.bf16.msra.mxu1 %v7157_v18  ;;  %v7225_v49 = vor.u32 %v7776_v46, %v7222_v47  ;;  %v7746_v51 = vld [vmem:[#allocation11 + $0xc] sm:$0xf0]  ;;  %v7744_v52 = vld [vmem:[#allocation11 + $0x4] sm:$0xf]  ;;  %v7190_v53 = vld [vmem:[#allocation11 + $0x10] sm:$0xf0] }
  0x8b   :  { %1242 = vmatpush.bf16.xpose.msra.mxu2 %v7249_v13  ;;  %1765 = vmatpush.bf16.msra.mxu3 %v7245_v19  ;;  %v7105_v54 = vor.u32 %v7746_v51, %v7104_v50  ;;  %v7193_v55 = vor.u32 %v7744_v52, %v7190_v53  ;;  %v7108_v56 = vld [vmem:[#allocation11 + $0x20] sm:$0xf]  ;;  %v7750_v57 = vld [vmem:[#allocation11 + $0x2c] sm:$0xf0]  ;;  %v7748_v58 = vld [vmem:[#allocation11 + $0x24] sm:$0xf] }
  0x8c   :  { %v7194_v59 = vld [vmem:[#allocation11 + $0x30] sm:$0xf0]  ;;  %v7109_v60 = vor.u32 %v7750_v57, %v7108_v56  ;;  %v7112_v62 = vld [vmem:[#allocation11 + $0x40] sm:$0xf]  ;;  %v7754_v63 = vld [vmem:[#allocation11 + $0x4c] sm:$0xf0] }
  0x8d   :  { %v7197_v61 = vor.u32 %v7748_v58, %v7194_v59  ;;  %v7752_v0 = vld [vmem:[#allocation11 + $0x44] sm:$0xf]  ;;  %v7198_v1 = vld [vmem:[#allocation11 + $0x50] sm:$0xf0]  ;;  %v7113_v2 = vor.u32 %v7754_v63, %v7112_v62  ;;  %v7116_v4 = vld [vmem:[#allocation11 + $0x60] sm:$0xf] }
  0x8e   :  { %1083 = vmatpush.bf16.msra.mxu1 %v7153_v24  ;;  %v7201_v3 = vor.u32 %v7752_v0, %v7198_v1  ;;  %v7758_v5 = vld [vmem:[#allocation11 + $0x6c] sm:$0xf0]  ;;  %v7756_v6 = vld [vmem:[#allocation11 + $0x64] sm:$0xf]  ;;  %v7202_v7 = vld [vmem:[#allocation11 + $0x70] sm:$0xf0] }
  0x8f   :  { %1766 = vmatpush.bf16.msra.mxu3 %v7241_v25  ;;  %v7117_v8 = vor.u32 %v7758_v5, %v7116_v4  ;;  %v7205_v9 = vor.u32 %v7756_v6, %v7202_v7  ;;  %v7120_v10 = vld [vmem:[#allocation11 + $0x80] sm:$0xf]  ;;  %v7762_v11 = vld [vmem:[#allocation11 + $0x8c] sm:$0xf0]  ;;  %v7760_v12 = vld [vmem:[#allocation11 + $0x84] sm:$0xf] }
  0x90   :  { %v7206_v13 = vld [vmem:[#allocation11 + $0x90] sm:$0xf0]  ;;  %v7121_v14 = vor.u32 %v7762_v11, %v7120_v10  ;;  %v7124_v16 = vld [vmem:[#allocation11 + $0xa0] sm:$0xf]  ;;  %v7766_v17 = vld [vmem:[#allocation11 + $0xac] sm:$0xf0] }
  0x91   :  { %v7209_v15 = vor.u32 %v7760_v12, %v7206_v13  ;;  %v7125_v20 = vor.u32 %v7766_v17, %v7124_v16  ;;  %v14549_v22 = vmov 0   ;;  %v7128_v23 = vld [vmem:[#allocation11 + $0xc0] sm:$0xf]  ;;  %v7214_v26 = vld [vmem:[#allocation11 + $0xd0] sm:$0xf0]  ;;  %v14962_v47 = vmov 0 }
  0x92   :  { %444 = vmatpush.bf16.xpose.msra.mxu0 %v7157_v18  ;;  %1084 = vmatpush.bf16.msra.mxu1 %v7149_v30  ;;  %v7764_v18 = vld [vmem:[#allocation11 + $0xa4] sm:$0xf]  ;;  %v7132_v32 = vld [vmem:[#allocation11 + $0xe0] sm:$0xf]  ;;  %v7774_v33 = vld [vmem:[#allocation11 + $0xec] sm:$0xf0] }
  0x93   :  { %1243 = vmatpush.bf16.xpose.msra.mxu2 %v7245_v19  ;;  %1767 = vmatpush.bf16.msra.mxu3 %v7237_v31  ;;  %v7210_v19 = vld [vmem:[#allocation11 + $0xb0] sm:$0xf0]  ;;  %v242_v29 = vld [vmem:[%s8808_s22] sm:$0xff]  ;;  %v14966_v7 = vmov 0 }
  0x94   :  { %v7213_v21 = vor.u32 %v7764_v18, %v7210_v19  ;;  %7886 = vset.pattern.permute.xlu1 %v14549_v22  ;;  %7890 = vset.pattern.permute.xlu0 %v14549_v22  ;;  %vm246_vm1 = vnez %v242_v29  ;;  %v7772_v34 = vld [vmem:[#allocation11 + $0xe4] sm:$0xf]  ;;  %v7218_v35 = vld [vmem:[#allocation11 + $0xf0] sm:$0xf0] }
  0x95   :  { %v7221_v38 = vor.u32 %v7772_v34, %v7218_v35 }
  0x96   :  { %1085 = vmatpush.bf16.msra.mxu1 %v7145_v36 }
  0x97   :  { %1768 = vmatpush.bf16.msra.mxu3 %v7233_v37 }
  0x9a   :  { %445 = vmatpush.bf16.xpose.msra.mxu0 %v7153_v24  ;;  %1086 = vmatpush.bf16.msra.mxu1 %v7141_v42  ;;  %v7770_v24 = vld [vmem:[#allocation11 + $0xcc] sm:$0xf0] }
  0x9b   :  { %1244 = vmatpush.bf16.xpose.msra.mxu2 %v7241_v25  ;;  %1769 = vmatpush.bf16.msra.mxu3 %v7229_v43  ;;  %v7768_v25 = vld [vmem:[#allocation11 + $0xc4] sm:$0xf]  ;;  %v7129_v27 = vor.u32 %v7770_v24, %v7128_v23 }
  0x9c   :  { %v7217_v28 = vor.u32 %v7768_v25, %v7214_v26 }
  0x9e   :  { %1087 = vmatpush.bf16.msra.mxu1 %v7137_v48 }
  0x9f   :  { %1770 = vmatpush.bf16.msra.mxu3 %v7225_v49 }
  0xa2   :  { %446 = vmatpush.bf16.xpose.msra.mxu0 %v7149_v30  ;;  %v507_v30 = vsel %vm246_vm1, 16843009, %v14549_v22 }
  0xa3   :  { %1245 = vmatpush.bf16.xpose.msra.mxu2 %v7237_v31  ;;  %v511_v31 = vunpack.c.0.s8 %v507_v30  ;;  %v512_v41 = vunpack.c.1.s8 %v507_v30  ;;  %v514_v59 = vunpack.c.3.s8 %v507_v30 }
  0xa5   :  { %v529_v44 = vpack.c.b16 %v512_v41, %v512_v41  ;;  %v533_v0 = vpack.c.b16 %v514_v59, %v514_v59  ;;  %v14976_v59 = vmov 0 }
  0xa7   :  { %v530_v50 = vpack.c.b8 %v529_v44, %v529_v44  ;;  %v534_v10 = vpack.c.b8 %v533_v0, %v533_v0  ;;  %v244_v44 = vld [vmem:[%s8808_s22 + $0x10] sm:$0xff] }
  0xa8   :  { %vm248_vm15 = vnez %v244_v44 }
  0xa9   :  { %vm560_vm5 = vnez %v530_v50  ;;  %vm562_vm9 = vnez %v534_v10 }
  0xaa   :  { %447 = vmatpush.bf16.xpose.msra.mxu0 %v7145_v36  ;;  %v527_v36 = vpack.c.b16 %v511_v31, %v511_v31  ;;  %v576_v57 = vsel %vm560_vm5, 16843009, %v14549_v22  ;;  %v578_v17 = vsel %vm562_vm9, 16843009, %v14549_v22 }
  0xab   :  { %1246 = vmatpush.bf16.xpose.msra.mxu2 %v7233_v37  ;;  %v7133_v37 = vor.u32 %v7774_v33, %v7132_v32  ;;  %v592_v62 = vunpack.c.0.s8 %v576_v57  ;;  %v594_v23 = vunpack.c.0.s8 %v578_v17  ;;  %v14971_v32 = vmov 0 }
  0xac   :  { %v528_v39 = vpack.c.b8 %v527_v36, %v527_v36 }
  0xad   :  { %vm8944_vm7 = vcmp.ne.s32.totalorder %v592_v62, 0  ;;  %vm8974_vm11 = vcmp.ne.s32.totalorder %v594_v23, 0 }
  0xae   :  { %vm559_vm2 = vnez %v528_v39 }
  0xaf   :  { %v575_v40 = vsel %vm559_vm2, 16843009, %v14549_v22 }
  0xb2   :  { %448 = vmatpush.bf16.xpose.msra.mxu0 %v7141_v42  ;;  %v513_v42 = vunpack.c.2.s8 %v507_v30 }
  0xb3   :  { %1247 = vmatpush.bf16.xpose.msra.mxu2 %v7229_v43  ;;  %v591_v43 = vunpack.c.0.s8 %v575_v40 }
  0xb4   :  { %v531_v45 = vpack.c.b16 %v513_v42, %v513_v42 }
  0xb5   :  { %vm8926_vm3 = vcmp.ne.s32.totalorder %v591_v43, 0 }
  0xb6   :  { %v14963_v47 = vsel %vm8926_vm3, 4294967295, %v14962_v47  ;;  %v532_v51 = vpack.c.b8 %v531_v45, %v531_v45 }
  0xb8   :  { %vm561_vm6 = vnez %v532_v51 }
  0xb9   :  { %v577_v58 = vsel %vm561_vm6, 16843009, %v14549_v22 }
  0xba   :  { %449 = vmatpush.bf16.xpose.msra.mxu0 %v7137_v48  ;;  %v593_v63 = vunpack.c.0.s8 %v577_v58  ;;  %v14973_v58 = vmov 0 }
  0xbb   :  { %1248 = vmatpush.bf16.xpose.msra.mxu2 %v7225_v49  ;;  %v243_v49 = vld [vmem:[%s8808_s22 + $0x8] sm:$0xff] }
  0xbc   :  { %vm247_vm4 = vnez %v243_v49  ;;  %vm8948_vm8 = vcmp.ne.s32.totalorder %v593_v63, 0 }
  0xbd   :  { %v14967_v7 = vsel %vm8948_vm8, 4294967295, %v14966_v7 }
  0xbe   :  { %14968 = vst [vmem:[#allocation21_spill] sm:$0xff] %v14967_v7 }
  0xc1   :  { %450 = vmatmul.bf16.vlgmr.msra.gmra.mxu0 %v7105_v54  ;;  %v508_v54 = vsel %vm247_vm4, 16843009, %v14549_v22 }
  0xc2   :  { %1249 = vmatmul.bf16.vlgmr.msra.gmra.mxu2 %v7193_v55  ;;  %v516_v19 = vunpack.c.1.s8 %v508_v54 }
  0xc4   :  { %v537_v25 = vpack.c.b16 %v516_v19, %v516_v19 }
  0xc6   :  { %v538_v35 = vpack.c.b8 %v537_v25, %v537_v25 }
  0xc8   :  { %vm564_vm13 = vnez %v538_v35 }
  0xc9   :  { %v580_v45 = vsel %vm564_vm13, 16843009, %v14549_v22 }
  0xca   :  { %v596_v50 = vunpack.c.0.s8 %v580_v45 }
  0xcc   :  { %vm9008_vm1 = vcmp.ne.s32.totalorder %v596_v50, 0 }
  0xcd   :  { %v14974_v58 = vsel %vm9008_vm1, 4294967295, %v14973_v58 }
  0xce   :  { %14975 = vst [vmem:[#allocation22_spill] sm:$0xff] %v14974_v58 }
  0xd1   :  { %455 = vmatmul.bf16.gmra.mxu0 %v7109_v60  ;;  %v515_v60 = vunpack.c.0.s8 %v508_v54 }
  0xd2   :  { %1254 = vmatmul.bf16.gmra.mxu2 %v7197_v61 }
  0xd3   :  { %v535_v1 = vpack.c.b16 %v515_v60, %v515_v60 }
  0xd5   :  { %v536_v11 = vpack.c.b8 %v535_v1, %v535_v1 }
  0xd7   :  { %vm563_vm10 = vnez %v536_v11 }
  0xd8   :  { %v579_v18 = vsel %vm563_vm10, 16843009, %v14549_v22 }
  0xd9   :  { %v595_v24 = vunpack.c.0.s8 %v579_v18 }
  0xdb   :  { %vm8978_vm12 = vcmp.ne.s32.totalorder %v595_v24, 0 }
  0xdc   :  { %v14972_v32 = vsel %vm8978_vm12, 4294967295, %v14971_v32 }
  0xe1   :  { %460 = vmatmul.bf16.gmra.mxu0 %v7113_v2 }
  0xe2   :  { %1259 = vmatmul.bf16.gmra.mxu2 %v7201_v3 }
  0xf1   :  { %465 = vmatmul.bf16.gmra.mxu0 %v7117_v8 }
  0xf2   :  { %1264 = vmatmul.bf16.gmra.mxu2 %v7205_v9 }
 0x101   :  { %470 = vmatmul.bf16.gmra.mxu0 %v7121_v14 }
 0x102   :  { %1269 = vmatmul.bf16.gmra.mxu2 %v7209_v15 }
 0x111   :  { %475 = vmatmul.bf16.gmra.mxu0 %v7125_v20  ;;  %v517_v20 = vunpack.c.2.s8 %v508_v54 }
 0x112   :  { %1274 = vmatmul.bf16.gmra.mxu2 %v7213_v21 }
 0x113   :  { %v539_v26 = vpack.c.b16 %v517_v20, %v517_v20 }
 0x115   :  { %v540_v36 = vpack.c.b8 %v539_v26, %v539_v26 }
 0x117   :  { %vm565_vm14 = vnez %v540_v36 }
 0x121   :  { %480 = vmatmul.bf16.gmra.mxu0 %v7129_v27 }
 0x122   :  { %1279 = vmatmul.bf16.gmra.mxu2 %v7217_v28 }
 0x131   :  { %485 = vmatmul.bf16.gmra.mxu0 %v7133_v37  ;;  %v518_v37 = vunpack.c.3.s8 %v508_v54 }
 0x132   :  { %1284 = vmatmul.bf16.gmra.mxu2 %v7221_v38 }
 0x133   :  { %v541_v40 = vpack.c.b16 %v518_v37, %v518_v37 }
 0x13e   :  { %v451_v46 = vpop.f32.mrf.mxu0 }
 0x13f   :  { %v491_v48 = vmul.f32 0.25, %v451_v46  ;;  %v581_v46 = vsel %vm565_vm14, 16843009, %v14549_v22 }
 0x140   :  { %v597_v51 = vunpack.c.0.s8 %v581_v46  ;;  %v14986_v46 = vmov 0 }
 0x141   :  { %v8933_v52 = vsel %vm8926_vm3, %v491_v48, -1e+30  ;;  %v542_v48 = vpack.c.b8 %v541_v40, %v541_v40 }
 0x142   :  { %639 = vmax.xlane.f32.xlu0 %v8933_v52  ;;  %vm9012_vm2 = vcmp.ne.s32.totalorder %v597_v51, 0 }
 0x143   :  { %vm566_vm0 = vnez %v542_v48  ;;  %v14977_v59 = vsel %vm9012_vm2, 4294967295, %v14976_v59 }
 0x144   :  { %14978 = vst [vmem:[#allocation23_spill] sm:$0xff] %v14977_v59  ;;  %v582_v62 = vsel %vm566_vm0, 16843009, %v14549_v22 }
 0x145   :  { %v1250_v53 = vpop.f32.mrf.mxu2 }
 0x146   :  { %v1290_v55 = vmul.f32 0.25, %v1250_v53  ;;  %v453_v56 = vpop.f32.mrf.mxu0  ;;  %v9006_v53 = vsel %vm248_vm15, 16843009, %v14549_v22 }
 0x147   :  { %v492_v2 = vmul.f32 0.25, %v453_v56  ;;  %v519_v63 = vunpack.c.0.s8 %v9006_v53  ;;  %v520_v1 = vunpack.c.1.s8 %v9006_v53  ;;  %v521_v19 = vunpack.c.2.s8 %v9006_v53 }
 0x148   :  { %v8941_v61 = vsel %vm8926_vm3, %v1290_v55, -1e+30  ;;  %v522_v51 = vunpack.c.3.s8 %v9006_v53 }
 0x149   :  { %v8963_v13 = vsel %vm8944_vm7, %v492_v2, -1e+30  ;;  %v547_v24 = vpack.c.b16 %v521_v19, %v521_v19 }
 0x14a   :  { %1322 = vmax.xlane.f32.xlu0 %v8941_v61 }
 0x14b   :  { %v548_v35 = vpack.c.b8 %v547_v24, %v547_v24 }
 0x14d   :  { %v1252_v3 = vpop.f32.mrf.mxu2  ;;  %vm569_vm10 = vnez %v548_v35 }
 0x14e   :  { %v1291_v4 = vmul.f32 0.25, %v1252_v3  ;;  %v456_v5 = vpop.f32.mrf.mxu0  ;;  %v585_v50 = vsel %vm569_vm10, 16843009, %v14549_v22 }
 0x14f   :  { %v493_v8 = vmul.f32 0.25, %v456_v5  ;;  %v543_v5 = vpack.c.b16 %v519_v63, %v519_v63  ;;  %v601_v53 = vunpack.c.0.s8 %v585_v50 }
 0x150   :  { %v8954_v9 = vsel %vm8944_vm7, %v1291_v4, -1e+30  ;;  %v598_v4 = vunpack.c.0.s8 %v582_v62 }
 0x151   :  { %1324 = vmax.xlane.f32.xlu2 %v8954_v9  ;;  %v8959_v12 = vsel %vm8948_vm8, %v493_v8, -1e+30  ;;  %v545_v8 = vpack.c.b16 %v520_v1, %v520_v1  ;;  %v544_v17 = vpack.c.b8 %v543_v5, %v543_v5  ;;  %vm9083_vm15 = vcmp.ne.s32.totalorder %v601_v53, 0 }
 0x152   :  { %643 = vmax.xlane.f32.xlu1 %v8959_v12  ;;  %641 = vmax.xlane.f32.xlu0 %v8963_v13  ;;  %vm9034_vm4 = vcmp.ne.s32.totalorder %v598_v4, 0  ;;  %v14992_v5 = vmov 0 }
 0x153   :  { %v546_v18 = vpack.c.b8 %v545_v8, %v545_v8  ;;  %vm567_vm5 = vnez %v544_v17  ;;  %v14993_v5 = vsel %vm9083_vm15, 4294967295, %v14992_v5 }
 0x154   :  { %14994 = vst [vmem:[#allocation31_spill] sm:$0xff] %v14993_v5 }
 0x155   :  { %v1255_v14 = vpop.f32.mrf.mxu2  ;;  %vm568_vm6 = vnez %v546_v18 }
 0x156   :  { %v1292_v15 = vmul.f32 0.25, %v1255_v14  ;;  %v458_v16 = vpop.f32.mrf.mxu0 }
 0x157   :  { %v494_v27 = vmul.f32 0.25, %v458_v16 }
 0x158   :  { %v8971_v21 = vsel %vm8948_vm8, %v1292_v15, -1e+30  ;;  %v14979_v15 = vmov 0 }
 0x159   :  { %v8989_v38 = vsel %vm8974_vm11, %v494_v27, -1e+30  ;;  %v14980_v15 = vsel %vm9034_vm4, 4294967295, %v14979_v15 }
 0x15a   :  { %1326 = vmax.xlane.f32.xlu1 %v8971_v21  ;;  %14981 = vst [vmem:[#allocation24_spill] sm:$0xff] %v14980_v15 }
 0x15d   :  { %v1257_v28 = vpop.f32.mrf.mxu2 }
 0x15e   :  { %v1293_v29 = vmul.f32 0.25, %v1257_v28  ;;  %v461_v30 = vpop.f32.mrf.mxu0  ;;  %v583_v28 = vsel %vm567_vm5, 16843009, %v14549_v22 }
 0x15f   :  { %v495_v33 = vmul.f32 0.25, %v461_v30  ;;  %v245_v30 = vld [vmem:[%s8808_s22 + $0x18] sm:$0xff]  ;;  %v599_v36 = vunpack.c.0.s8 %v583_v28 }
 0x160   :  { %v8984_v34 = vsel %vm8974_vm11, %v1293_v29, -1e+30  ;;  %v584_v29 = vsel %vm568_vm6, 16843009, %v14549_v22  ;;  %vm249_vm9 = vnez %v245_v30 }
 0x161   :  { %1328 = vmax.xlane.f32.xlu0 %v8984_v34  ;;  %v8993_v39 = vsel %vm8978_vm12, %v495_v33, -1e+30  ;;  %v600_v37 = vunpack.c.0.s8 %v584_v29  ;;  %vm9057_vm13 = vcmp.ne.s32.totalorder %v599_v36, 0 }
 0x162   :  { %645 = vmax.xlane.f32.xlu1 %v8989_v38  ;;  %647 = vmax.xlane.f32.xlu2 %v8993_v39 }
 0x163   :  { %vm9062_vm14 = vcmp.ne.s32.totalorder %v600_v37, 0 }
 0x164   :  { %v14987_v46 = vsel %vm9062_vm14, 4294967295, %v14986_v46 }
 0x165   :  { %v1260_v41 = vpop.f32.mrf.mxu2  ;;  %14988 = vst [vmem:[#allocation27_spill] sm:$0xff] %v14987_v46  ;;  %v7422_v46 = vld [vmem:[#allocation8 + $0xd8] sm:$0xf0] }
 0x166   :  { %v1294_v42 = vmul.f32 0.25, %v1260_v41  ;;  %v463_v43 = vpop.f32.mrf.mxu0 }
 0x167   :  { %v496_v54 = vmul.f32 0.25, %v463_v43  ;;  %v510_v43 = vsel %vm249_vm9, 16843009, %v14549_v22 }
 0x168   :  { %v9002_v49 = vsel %vm8978_vm12, %v1294_v42, -1e+30  ;;  %v14983_v42 = vmov 0 }
 0x169   :  { %v9026_v2 = vsel %vm9008_vm1, %v496_v54, -1e+30  ;;  %v14984_v42 = vsel %vm9057_vm13, 4294967295, %v14983_v42 }
 0x16a   :  { %1330 = vmax.xlane.f32.xlu2 %v9002_v49  ;;  %14985 = vst [vmem:[#allocation26_spill] sm:$0xff] %v14984_v42 }
 0x16d   :  { %v1262_v55 = vpop.f32.mrf.mxu2 }
 0x16e   :  { %v1295_v56 = vmul.f32 0.25, %v1262_v55  ;;  %v466_v57 = vpop.f32.mrf.mxu0 }
 0x16f   :  { %v497_v60 = vmul.f32 0.25, %v466_v57 }
 0x170   :  { %v9020_v0 = vsel %vm9008_vm1, %v1295_v56, -1e+30  ;;  %v523_v56 = vunpack.c.0.s8 %v510_v43 }
 0x171   :  { %1332 = vmax.xlane.f32.xlu1 %v9020_v0  ;;  %v9030_v3 = vsel %vm9012_vm2, %v497_v60, -1e+30  ;;  %v549_v60 = vpack.c.b16 %v522_v51, %v522_v51 }
 0x172   :  { %649 = vmax.xlane.f32.xlu2 %v9026_v2  ;;  %651 = vmax.xlane.f32.xlu0 %v9030_v3  ;;  %v551_v62 = vpack.c.b16 %v523_v56, %v523_v56 }
 0x175   :  { %v1265_v10 = vpop.f32.mrf.mxu2 }
 0x176   :  { %v1296_v11 = vmul.f32 0.25, %v1265_v10  ;;  %v468_v14 = vpop.f32.mrf.mxu0  ;;  %v550_v10 = vpack.c.b8 %v549_v60, %v549_v60  ;;  %v526_v60 = vunpack.c.3.s8 %v510_v43 }
 0x177   :  { %v498_v16 = vmul.f32 0.25, %v468_v14  ;;  %v524_v14 = vunpack.c.1.s8 %v510_v43 }
 0x178   :  { %v9045_v23 = vsel %vm9012_vm2, %v1296_v11, -1e+30  ;;  %v552_v11 = vpack.c.b8 %v551_v62, %v551_v62  ;;  %vm570_vm0 = vnez %v550_v10 }
 0x179   :  { %v9041_v20 = vsel %vm9034_vm4, %v498_v16, -1e+30  ;;  %14982 = vst [vmem:[#allocation25_spill] sm:$0xff] %v9045_v23  ;;  %v553_v18 = vpack.c.b16 %v524_v14, %v524_v14 }
 0x17a   :  { %653 = vmax.xlane.f32.xlu1 %v9041_v20  ;;  %1334 = vmax.xlane.f32.xlu0 %v9045_v23  ;;  %vm571_vm5 = vnez %v552_v11 }
 0x17b   :  { %v554_v29 = vpack.c.b8 %v553_v18, %v553_v18  ;;  %v15007_v18 = vmov 0 }
 0x17d   :  { %v1267_v25 = vpop.f32.mrf.mxu2  ;;  %vm572_vm6 = vnez %v554_v29 }
 0x17e   :  { %v1297_v26 = vmul.f32 0.25, %v1267_v25  ;;  %v471_v27 = vpop.f32.mrf.mxu0  ;;  %v588_v51 = vsel %vm572_vm6, 16843009, %v14549_v22 }
 0x17f   :  { %v499_v40 = vmul.f32 0.25, %v471_v27  ;;  %v587_v27 = vsel %vm571_vm5, 16843009, %v14549_v22 }
 0x180   :  { %v9054_v33 = vsel %vm9034_vm4, %v1297_v26, -1e+30  ;;  %v586_v26 = vsel %vm570_vm0, 16843009, %v14549_v22  ;;  %v603_v35 = vunpack.c.0.s8 %v587_v27 }
 0x181   :  { %1336 = vmax.xlane.f32.xlu2 %v9054_v33  ;;  %v9074_v55 = vsel %vm9057_vm13, %v499_v40, -1e+30  ;;  %v602_v30 = vunpack.c.0.s8 %v586_v26  ;;  %v14998_v40 = vmov 0 }
 0x182   :  { %14990 = vst [vmem:[#allocation29_spill] sm:$0xff] %v9074_v55  ;;  %vm9108_vm10 = vcmp.ne.s32.totalorder %v603_v35, 0 }
 0x183   :  { %vm9104_vm9 = vcmp.ne.s32.totalorder %v602_v30, 0 }
 0x184   :  { %v14999_v40 = vsel %vm9104_vm9, 4294967295, %v14998_v40 }
 0x185   :  { %v1270_v41 = vpop.f32.mrf.mxu2  ;;  %15000 = vst [vmem:[#allocation35_spill] sm:$0xff] %v14999_v40 }
 0x186   :  { %v1298_v44 = vmul.f32 0.25, %v1270_v41  ;;  %v473_v45 = vpop.f32.mrf.mxu0  ;;  %v525_v41 = vunpack.c.2.s8 %v510_v43 }
 0x187   :  { %v500_v48 = vmul.f32 0.25, %v473_v45 }
 0x188   :  { %v9070_v54 = vsel %vm9057_vm13, %v1298_v44, -1e+30 }
 0x189   :  { %14989 = vst [vmem:[#allocation28_spill] sm:$0xff] %v9070_v54  ;;  %1338 = vmax.xlane.f32.xlu1 %v9070_v54  ;;  %655 = vmax.xlane.f32.xlu2 %v9074_v55  ;;  %v9080_v57 = vsel %vm9062_vm14, %v500_v48, -1e+30  ;;  %v15001_v48 = vmov 0  ;;  %v7410_v55 = vld [vmem:[#allocation8 + $0x78] sm:$0xf0] }
 0x18a   :  { %14991 = vst [vmem:[#allocation30_spill] sm:$0xff] %v9080_v57  ;;  %657 = vmax.xlane.f32.xlu0 %v9080_v57  ;;  %v15002_v48 = vsel %vm9108_vm10, 4294967295, %v15001_v48 }
 0x18b   :  { %15003 = vst [vmem:[#allocation36_spill] sm:$0xff] %v15002_v48 }
 0x18d   :  { %v1272_v63 = vpop.f32.mrf.mxu2 }
 0x18e   :  { %v1299_v1 = vmul.f32 0.25, %v1272_v63  ;;  %v476_v4 = vpop.f32.mrf.mxu0  ;;  %v555_v63 = vpack.c.b16 %v525_v41, %v525_v41  ;;  %v14547_v41 = vmov 1  }
 0x18f   :  { %v501_v8 = vmul.f32 0.25, %v476_v4  ;;  %v557_v4 = vpack.c.b16 %v526_v60, %v526_v60  ;;  %7887 = vset.pattern.permute.xlu2 %v14547_v41 }
 0x190   :  { %v9089_v16 = vsel %vm9062_vm14, %v1299_v1, -1e+30  ;;  %v604_v1 = vunpack.c.0.s8 %v588_v51  ;;  %v556_v10 = vpack.c.b8 %v555_v63, %v555_v63  ;;  %v15014_v51 = vmov 0 }
 0x191   :  { %14995 = vst [vmem:[#allocation32_spill] sm:$0xff] %v9089_v16  ;;  %v9093_v17 = vsel %vm9083_vm15, %v501_v8, -1e+30 }
 0x192   :  { %14996 = vst [vmem:[#allocation33_spill] sm:$0xff] %v9093_v17  ;;  %1340 = vmax.xlane.f32.xlu0 %v9089_v16  ;;  %659 = vmax.xlane.f32.xlu1 %v9093_v17  ;;  %vm9128_vm0 = vcmp.ne.s32.totalorder %v604_v1, 0  ;;  %vm573_vm5 = vnez %v556_v10  ;;  %v15018_v10 = vmov 0  ;;  %v7789_v16 = vld [vmem:[#allocation8 + $0x6c] sm:$0xf] }
 0x193   :  { %v15008_v18 = vsel %vm9128_vm0, 4294967295, %v15007_v18  ;;  %v589_v26 = vsel %vm573_vm5, 16843009, %v14549_v22 }
 0x194   :  { %15009 = vst [vmem:[#allocation40_spill] sm:$0xff] %v15008_v18  ;;  %v605_v35 = vunpack.c.0.s8 %v589_v26  ;;  %v15027_v18 = vmov 0  }
 0x195   :  { %v1275_v19 = vpop.f32.mrf.mxu2 }
 0x196   :  { %v1300_v24 = vmul.f32 0.25, %v1275_v19  ;;  %v478_v25 = vpop.f32.mrf.mxu0  ;;  %v558_v19 = vpack.c.b8 %v557_v4, %v557_v4  ;;  %vm9152_vm5 = vcmp.ne.s32.totalorder %v605_v35, 0 }
 0x197   :  { %v502_v36 = vmul.f32 0.25, %v478_v25  ;;  %v15015_v51 = vsel %vm9152_vm5, 4294967295, %v15014_v51 }
 0x198   :  { %v9101_v28 = vsel %vm9083_vm15, %v1300_v24, -1e+30  ;;  %vm574_vm6 = vnez %v558_v19  ;;  %15016 = vst [vmem:[#allocation45_spill] sm:$0xff] %v15015_v51 }
 0x199   :  { %14997 = vst [vmem:[#allocation34_spill] sm:$0xff] %v9101_v28  ;;  %1342 = vmax.xlane.f32.xlu2 %v9101_v28  ;;  %v9119_v53 = vsel %vm9104_vm9, %v502_v36, -1e+30  ;;  %v590_v36 = vsel %vm574_vm6, 16843009, %v14549_v22 }
 0x19a   :  { %15005 = vst [vmem:[#allocation38_spill] sm:$0xff] %v9119_v53 }
 0x19d   :  { %v1277_v37 = vpop.f32.mrf.mxu2 }
 0x19e   :  { %v1301_v44 = vmul.f32 0.25, %v1277_v37  ;;  %v481_v45 = vpop.f32.mrf.mxu0 }
 0x19f   :  { %v503_v50 = vmul.f32 0.25, %v481_v45  ;;  %v606_v45 = vunpack.c.0.s8 %v590_v36  ;;  %v9190_v36 = vld [vmem:[#allocation3 + $0x8] sm:$0xff] }
 0x1a0   :  { %v9115_v56 = vsel %vm9104_vm9, %v1301_v44, -1e+30  ;;  %15024 = vst [vmem:[#allocation51_spill] sm:$0xff] %v9190_v36 }
 0x1a1   :  { %15004 = vst [vmem:[#allocation37_spill] sm:$0xff] %v9115_v56  ;;  %1344 = vmax.xlane.f32.xlu1 %v9115_v56  ;;  %661 = vmax.xlane.f32.xlu2 %v9119_v53  ;;  %v9125_v62 = vsel %vm9108_vm10, %v503_v50, -1e+30  ;;  %v9150_v50 = vld [vmem:[#allocation3] sm:$0xff]  ;;  %vm9165_vm6 = vcmp.ne.s32.totalorder %v606_v45, 0 }
 0x1a2   :  { %15006 = vst [vmem:[#allocation39_spill] sm:$0xff] %v9125_v62  ;;  %663 = vmax.xlane.f32.xlu0 %v9125_v62  ;;  %v15019_v10 = vsel %vm9165_vm6, 4294967295, %v15018_v10 }
 0x1a3   :  { %15013 = vst [vmem:[#allocation44_spill] sm:$0xff] %v9150_v50 }
 0x1a4   :  { %15020 = vst [vmem:[#allocation47_spill] sm:$0xff] %v15019_v10 }
 0x1a5   :  { %v1280_v8 = vpop.f32.mrf.mxu2 }
 0x1a6   :  { %v1302_v11 = vmul.f32 0.25, %v1280_v8  ;;  %v483_v14 = vpop.f32.mrf.mxu0 }
 0x1a7   :  { %v504_v43 = vmul.f32 0.25, %v483_v14 }
 0x1a8   :  { %v9138_v25 = vsel %vm9108_vm10, %v1302_v11, -1e+30  ;;  %vm14624_vm10 = vcmask 7168  }
 0x1a9   :  { %v9134_v24 = vsel %vm9128_vm0, %v504_v43, -1e+30  ;;  %15011 = vst [vmem:[#allocation42_spill] sm:$0xff] %v9138_v25 }
 0x1aa   :  { %15010 = vst [vmem:[#allocation41_spill] sm:$0xff] %v9134_v24  ;;  %665 = vmax.xlane.f32.xlu1 %v9134_v24  ;;  %1346 = vmax.xlane.f32.xlu0 %v9138_v25 }
 0x1ad   :  { %v1282_v27 = vpop.f32.mrf.mxu2 }
 0x1ae   :  { %v1303_v29 = vmul.f32 0.25, %v1282_v27  ;;  %v486_v30 = vpop.f32.mrf.mxu0 }
 0x1af   :  { %v505_v44 = vmul.f32 0.25, %v486_v30  ;;  %v9188_v30 = vld [vmem:[#allocation3 + $0x10] sm:$0xff] }
 0x1b0   :  { %v9146_v37 = vsel %vm9128_vm0, %v1303_v29, -1e+30  ;;  %vm14635_vm0 = vcmask 15368   ;;  %15023 = vst [vmem:[#allocation50_spill] sm:$0xff] %v9188_v30 }
 0x1b1   :  { %15012 = vst [vmem:[#allocation43_spill] sm:$0xff] %v9146_v37  ;;  %1348 = vmax.xlane.f32.xlu2 %v9146_v37  ;;  %v9163_v8 = vsel %vm9152_vm5, %v505_v44, -1e+30 }
 0x1b2   :  { %15017 = vst [vmem:[#allocation46_spill] sm:$0xff] %v9163_v8 }
 0x1b5   :  { %v640_v60 = vpop.xlane.xlu0 %639  ;;  %v9156_v63 = vpop.f32.mrf.mxu2 }
 0x1b6   :  { %v9159_v1 = vmax.f32 %v9150_v50, %v640_v60  ;;  %v488_v4 = vpop.f32.mrf.mxu0 }
 0x1b7   :  { %v506_v11 = vmul.f32 0.25, %v488_v4 }
 0x1b8   :  { %1161 = vst.msk [vmem:[#allocation3] sm:$0xff] %vm14624_vm10, %v9159_v1 }
 0x1b9   :  { %667 = vmax.xlane.f32.xlu2 %v9163_v8  ;;  %v9174_v14 = vsel %vm9165_vm6, %v506_v11, -1e+30 }
 0x1ba   :  { %15021 = vst [vmem:[#allocation48_spill] sm:$0xff] %v9174_v14  ;;  %669 = vmax.xlane.f32.xlu0 %v9174_v14 }
 0x1bd   :  { %v1323_v43 = vpop.xlane.xlu0 %1322  ;;  %v1287_v19 = vpop.f32.mrf.mxu2 }
 0x1be   :  { %v9178_v26 = vmax.f32 %v9150_v50, %v1323_v43  ;;  %v1305_v27 = vmul.f32 0.25, %v1287_v19 }
 0x1c0   :  { %1844 = vst.msk [vmem:[#allocation3] sm:$0xff] %vm14635_vm0, %v9178_v26  ;;  %v9184_v29 = vsel %vm9165_vm6, %v1305_v27, -1e+30  ;;  %vm15076_vm6 = vcmask 15368  }
 0x1c1   :  { %15022 = vst [vmem:[#allocation49_spill] sm:$0xff] %v9184_v29 }
 0x1c2   :  { %1352 = vmax.xlane.f32.xlu0 %v9184_v29 }
 0x1c3   :  { %689 = vperm.xlu1 %7886, %v9159_v1  }
 0x1c4   :  { %v1325_v35 = vpop.xlane.xlu2 %1324 }
 0x1c5   :  { %v644_v44 = vpop.xlane.xlu1 %643  ;;  %v642_v45 = vpop.xlane.xlu0 %641  ;;  %v9195_v11 = vmax.f32 %v9190_v36, %v1325_v35  ;;  %v9207_v35 = vld [vmem:[#allocation3 + $0x18] sm:$0xff] }
 0x1c6   :  { %v673_v60 = vmax.f32 %v9188_v30, %v644_v44  ;;  %v672_v4 = vmax.f32 %v9190_v36, %v642_v45  ;;  %v9205_v44 = vld [vmem:[#allocation3 + $0x20] sm:$0xff]  ;;  %15026 = vst [vmem:[#allocation53_spill] sm:$0xff] %v9207_v35 }
 0x1c7   :  { %15025 = vst [vmem:[#allocation52_spill] sm:$0xff] %v9205_v44  ;;  %v1515_v14 = vsub.f32 %v9190_v36, %v9195_v11 }
 0x1c8   :  { %1163 = vst.msk [vmem:[#allocation3 + $0x10] sm:$0xff] %vm14624_vm10, %v673_v60  ;;  %v832_v27 = vsub.f32 %v9190_v36, %v672_v4  ;;  %v833_v48 = vsub.f32 %v9188_v30, %v673_v60 }
 0x1c9   :  { %1162 = vst.msk [vmem:[#allocation3 + $0x8] sm:$0xff] %vm14624_vm10, %v672_v4 }
 0x1ca   :  { %1845 = vst.msk [vmem:[#allocation3 + $0x8] sm:$0xff] %vm14635_vm0, %v9195_v11 }
 0x1cd   :  { %v1327_v43 = vpop.xlane.xlu1 %1326 }
 0x1ce   :  { %v1356_v19 = vmax.f32 %v9188_v30, %v1327_v43  ;;  %v849_v43 = vmul.f32 1.442695, %v832_v27 }
 0x1d0   :  { %1846 = vst.msk [vmem:[#allocation3 + $0x10] sm:$0xff] %vm14635_vm0, %v1356_v19  ;;  %7932 = vpow2.f32 %v849_v43 }
 0x1d1   :  { %1372 = vperm.xlu2 %7887, %v9178_v26  }
 0x1d4   :  { %v1329_v45 = vpop.xlane.xlu0 %1328 }
 0x1d5   :  { %v646_v41 = vpop.xlane.xlu1 %645  ;;  %v648_v22 = vpop.xlane.xlu2 %647  ;;  %v1357_v8 = vmax.f32 %v9207_v35, %v1329_v45  ;;  %v15028_v45 = vmov 1  }
 0x1d6   :  { %v9210_v10 = vmax.f32 %v9207_v35, %v646_v41  ;;  %v9213_v29 = vmax.f32 %v9205_v44, %v648_v22  ;;  %699 = vperm.xlu0 %7890, %v673_v60   ;;  %v1532_v22 = vmul.f32 1.442695, %v1515_v14  ;;  %v9230_v36 = vpop.eup %7932  ;;  %v9236_v14 = vld [vmem:[#allocation3 + $0x28] sm:$0xff] }
 0x1d7   :  { %15029 = vst [vmem:[#allocation54_spill] sm:$0xff] %v9230_v36 }
 0x1d8   :  { %1164 = vst.msk [vmem:[#allocation3 + $0x18] sm:$0xff] %vm14624_vm10, %v9210_v10  ;;  %7934 = vpow2.f32 %v1532_v22  ;;  %v1304_v22 = vmul.f32 0.25, %v9156_v63  ;;  %v1516_v63 = vsub.f32 %v9188_v30, %v1356_v19 }
 0x1d9   :  { %1847 = vst.msk [vmem:[#allocation3 + $0x18] sm:$0xff] %vm14635_vm0, %v1357_v8  ;;  %7888 = vset.pattern.permute.xlu2 %v15027_v18 }
 0x1da   :  { %1165 = vst.msk [vmem:[#allocation3 + $0x20] sm:$0xff] %vm14624_vm10, %v9213_v29  ;;  %694 = vperm.xlu2 %7888, %v672_v4   ;;  %v9234_v4 = vld [vmem:[#allocation3 + $0x30] sm:$0xff] }
 0x1db   :  { %15030 = vst [vmem:[#allocation55_spill] sm:$0xff] %v9234_v4 }
 0x1dc   :  { %15031 = vst [vmem:[#allocation56_spill] sm:$0xff] %v9236_v14 }
 0x1dd   :  { %v1331_v41 = vpop.xlane.xlu2 %1330 }
 0x1de   :  { %v9225_v27 = vmax.f32 %v9205_v44, %v1331_v41  ;;  %7891 = vset.pattern.permute.xlu0 %v15028_v45  ;;  %v851_v41 = vmul.f32 1.442695, %v833_v48  ;;  %v9238_v62 = vpop.eup %7934  ;;  %v1517_v48 = vsub.f32 %v9207_v35, %v1357_v8 }
 0x1df   :  { %1382 = vperm.xlu0 %7891, %v1356_v19   ;;  %15032 = vst [vmem:[#allocation57_spill] sm:$0xff] %v9238_v62  ;;  %v835_v19 = vsub.f32 %v9205_v44, %v9213_v29 }
 0x1e0   :  { %1848 = vst.msk [vmem:[#allocation3 + $0x20] sm:$0xff] %vm14635_vm0, %v9225_v27  ;;  %7936 = vpow2.f32 %v851_v41 }
 0x1e2   :  { %983 = vperm.xlu2 %7888, %v9230_v36  }
 0x1e4   :  { %v1333_v43 = vpop.xlane.xlu1 %1332 }
 0x1e5   :  { %v650_v25 = vpop.xlane.xlu2 %649  ;;  %v652_v37 = vpop.xlane.xlu0 %651  ;;  %v9248_v60 = vmax.f32 %v9236_v14, %v1333_v43 }
 0x1e6   :  { %v9242_v40 = vmax.f32 %v9236_v14, %v650_v25  ;;  %v9245_v5 = vmax.f32 %v9234_v4, %v652_v37  ;;  %v9261_v25 = vsel %vm9152_vm5, %v1304_v22, -1e+30  ;;  %v9263_v37 = vld [vmem:[#allocation3 + $0x38] sm:$0xff]  ;;  %v9273_v56 = vpop.eup %7936  ;;  %v1534_v22 = vmul.f32 1.442695, %v1516_v63 }
 0x1e7   :  { %1666 = vperm.xlu0 %7891, %v9238_v62   ;;  %15033 = vst [vmem:[#allocation58_spill] sm:$0xff] %v9261_v25  ;;  %v1536_v62 = vmul.f32 1.442695, %v1517_v48  ;;  %v831_v63 = vsub.f32 %v9150_v50, %v9159_v1 }
 0x1e8   :  { %1166 = vst.msk [vmem:[#allocation3 + $0x28] sm:$0xff] %vm14624_vm10, %v9242_v40 }
 0x1e9   :  { %1849 = vst.msk [vmem:[#allocation3 + $0x28] sm:$0xff] %vm14635_vm0, %v9248_v60  ;;  %7938 = vpow2.f32 %v1536_v62 }
 0x1ea   :  { %1167 = vst.msk [vmem:[#allocation3 + $0x30] sm:$0xff] %vm14624_vm10, %v9245_v5  ;;  %704 = vperm.xlu2 %7888, %v9210_v10   ;;  %7940 = vpow2.f32 %v1534_v22  ;;  %v847_v22 = vmul.f32 1.442695, %v831_v63 }
 0x1eb   :  { %15034 = vst [vmem:[#allocation59_spill] sm:$0xff] %v9263_v37 }
 0x1ec   :  { %15035 = vst [vmem:[#allocation60_spill] sm:$0xff] %v9273_v56 }
 0x1ed   :  { %v654_v43 = vpop.xlane.xlu1 %653  ;;  %1350 = vmax.xlane.f32.xlu1 %v9261_v25  ;;  %v1335_v41 = vpop.xlane.xlu0 %1334  ;;  %v7805_v25 = vld [vmem:[#allocation8 + $0xec] sm:$0xf] }
 0x1ee   :  { %v9268_v36 = vmax.f32 %v9263_v37, %v654_v43  ;;  %v9271_v24 = vmax.f32 %v9234_v4, %v1335_v41  ;;  %v855_v41 = vmul.f32 1.442695, %v835_v19 }
 0x1ef   :  { %7892 = vset.pattern.permute.xlu0 %v15027_v18  ;;  %v9291_v30 = vpop.eup %7938 }
 0x1f0   :  { %1168 = vst.msk [vmem:[#allocation3 + $0x38] sm:$0xff] %vm14624_vm10, %v9268_v36  ;;  %988 = vperm.xlu0 %7892, %v9273_v56   ;;  %v9295_v62 = vpop.eup %7940  ;;  %7942 = vpow2.f32 %v855_v41  ;;  %v1520_v1 = vsub.f32 %v9234_v4, %v9271_v24  ;;  %v7426_v56 = vld [vmem:[#allocation8 + $0xf8] sm:$0xf0] }
 0x1f1   :  { %1850 = vst.msk [vmem:[#allocation3 + $0x30] sm:$0xff] %vm14635_vm0, %v9271_v24  ;;  %v9310_v63 = vor.u32 %v7805_v25, %v7426_v56  ;;  %7944 = vpow2.f32 %v847_v22  ;;  %v9328_v56 = vld [vmem:[#allocation3 + $0x50] sm:$0xff]  ;;  %v838_v25 = vsub.f32 %v9263_v37, %v9268_v36 }
 0x1f2   :  { %7893 = vset.pattern.permute.xlu2 %v15028_v45  ;;  %15036 = vst [vmem:[#allocation61_spill] sm:$0xff] %v9291_v30 }
 0x1f3   :  { %1387 = vperm.xlu2 %7893, %v1357_v8   ;;  %15037 = vst [vmem:[#allocation62_spill] sm:$0xff] %v9295_v62  ;;  %v9297_v8 = vld [vmem:[#allocation3 + $0x40] sm:$0xff]  ;;  %2639 = vmatpush.bf16.xpose.msrb.mxu0 %v9310_v63  ;;  %v861_v17 = vmul.f32 1.442695, %v838_v25 }
 0x1f4   :  { %v1337_v48 = vpop.xlane.xlu2 %1336  ;;  %15038 = vst [vmem:[#allocation63_spill] sm:$0xff] %v9297_v8  ;;  %3161 = vmatpush.bf16.msrb.mxu2 %v9310_v63 }
 0x1f5   :  { %v9285_v43 = vmax.f32 %v9263_v37, %v1337_v48  ;;  %v9300_v48 = vld [vmem:[#allocation3 + $0x48] sm:$0xff]  ;;  %15040 = vst [vmem:[#allocation65_spill] sm:$0xff] %v9310_v63 }
 0x1f6   :  { %15039 = vst [vmem:[#allocation64_spill] sm:$0xff] %v9300_v48 }
 0x1f7   :  { %1851 = vst.msk [vmem:[#allocation3 + $0x38] sm:$0xff] %vm14635_vm0, %v9285_v43 }
 0x1f8   :  { %7897 = vset.pattern.permute.xlu0 %v15028_v45  ;;  %15042 = vst [vmem:[#allocation67_spill] sm:$0xff] %v9328_v56 }
 0x1f9   :  { %1676 = vperm.xlu0 %7897, %v9291_v30  }
 0x1fb   :  { %1671 = vperm.xlu2 %7893, %v9295_v62   ;;  %v1542_v62 = vmul.f32 1.442695, %v1520_v1 }
 0x1fc   :  { %v1339_v19 = vpop.xlane.xlu1 %1338  ;;  %v656_v51 = vpop.xlane.xlu2 %655 }
 0x1fd   :  { %v9305_v28 = vmax.f32 %v9297_v8, %v1339_v19  ;;  %v9308_v30 = vmax.f32 %v9297_v8, %v656_v51  ;;  %v658_v53 = vpop.xlane.xlu0 %657  ;;  %v9321_v51 = vpop.eup %7942  ;;  %7946 = vpow2.f32 %v1542_v62  ;;  %v836_v62 = vsub.f32 %v9236_v14, %v9242_v40 }
 0x1fe   :  { %v9313_v41 = vmax.f32 %v9300_v48, %v658_v53  ;;  %15041 = vst [vmem:[#allocation66_spill] sm:$0xff] %v9321_v51  ;;  %v9331_v53 = vpop.eup %7944  ;;  %7948 = vpow2.f32 %v861_v17 }
 0x1ff   :  { %1169 = vst.msk [vmem:[#allocation3 + $0x40] sm:$0xff] %vm14624_vm10, %v9308_v30 }
 0x200   :  { %1852 = vst.msk [vmem:[#allocation3 + $0x40] sm:$0xff] %vm14635_vm0, %v9305_v28 }
 0x201   :  { %1170 = vst.msk [vmem:[#allocation3 + $0x48] sm:$0xff] %vm14624_vm10, %v9313_v41  ;;  %7898 = vset.pattern.permute.xlu0 %v15027_v18 }
 0x202   :  { %998 = vperm.xlu0 %7898, %v9321_v51   ;;  %15043 = vst [vmem:[#allocation68_spill] sm:$0xff] %v9331_v53  ;;  %v1514_v51 = vsub.f32 %v9150_v50, %v9178_v26 }
 0x203   :  { %7896 = vset.pattern.permute.xlu2 %v15027_v18 }
 0x204   :  { %714 = vperm.xlu2 %7896, %v9242_v40   ;;  %v1530_v40 = vmul.f32 1.442695, %v1514_v51 }
 0x205   :  { %v1341_v22 = vpop.xlane.xlu0 %1340  ;;  %v660_v1 = vpop.xlane.xlu1 %659 }
 0x206   :  { %v9336_v19 = vmax.f32 %v9300_v48, %v1341_v22  ;;  %v9339_v63 = vmax.f32 %v9328_v56, %v660_v1  ;;  %978 = vperm.xlu1 %7886, %v9331_v53   ;;  %v9350_v22 = vpop.eup %7946  ;;  %v857_v1 = vmul.f32 1.442695, %v836_v62  ;;  %v7801_v53 = vld [vmem:[#allocation8 + $0xcc] sm:$0xf] }
 0x207   :  { %15044 = vst [vmem:[#allocation69_spill] sm:$0xff] %v9350_v22  ;;  %v9355_v26 = vor.u32 %v7801_v53, %v7422_v46  ;;  %v9367_v46 = vld [vmem:[#allocation3 + $0x58] sm:$0xff]  ;;  %v9369_v17 = vpop.eup %7948 }
 0x208   :  { %1853 = vst.msk [vmem:[#allocation3 + $0x48] sm:$0xff] %vm14635_vm0, %v9336_v19  ;;  %7950 = vpow2.f32 %v857_v1 }
 0x209   :  { %1171 = vst.msk [vmem:[#allocation3 + $0x50] sm:$0xff] %vm14624_vm10, %v9339_v63  ;;  %2640 = vmatpush.bf16.xpose.msrb.mxu0 %v9355_v26  ;;  %3162 = vmatpush.bf16.msrb.mxu2 %v9355_v26  ;;  %7952 = vpow2.f32 %v1530_v40 }
 0x20a   :  { %7905 = vset.pattern.permute.xlu0 %v15028_v45  ;;  %15045 = vst [vmem:[#allocation70_spill] sm:$0xff] %v9355_v26 }
 0x20b   :  { %1691 = vperm.xlu0 %7905, %v9350_v22   ;;  %15046 = vst [vmem:[#allocation71_spill] sm:$0xff] %v9367_v46 }
 0x20c   :  { %v1343_v42 = vpop.xlane.xlu2 %1342  ;;  %7899 = vset.pattern.permute.xlu2 %v15028_v45  ;;  %15047 = vst [vmem:[#allocation72_spill] sm:$0xff] %v9369_v17 }
 0x20d   :  { %v9358_v25 = vmax.f32 %v9328_v56, %v1343_v42  ;;  %1397 = vperm.xlu2 %7899, %v9248_v60   ;;  %v9372_v42 = vld [vmem:[#allocation3 + $0x60] sm:$0xff] }
 0x20e   :  { %7889 = vset.pattern.permute.xlu1 %v15028_v45  ;;  %15048 = vst [vmem:[#allocation73_spill] sm:$0xff] %v9372_v42  ;;  %v9375_v62 = vpop.eup %7950 }
 0x20f   :  { %1854 = vst.msk [vmem:[#allocation3 + $0x50] sm:$0xff] %vm14635_vm0, %v9358_v25  ;;  %1377 = vperm.xlu1 %7889, %v9195_v11   ;;  %v9384_v50 = vpop.eup %7952 }
 0x210   :  { %15049 = vst [vmem:[#allocation74_spill] sm:$0xff] %v9375_v62 }
 0x211   :  { %15050 = vst [vmem:[#allocation75_spill] sm:$0xff] %v9384_v50 }
 0x213   :  { %7906 = vset.pattern.permute.xlu0 %v15027_v18 }
 0x214   :  { %v1345_v51 = vpop.xlane.xlu1 %1344  ;;  %v662_v53 = vpop.xlane.xlu2 %661  ;;  %1013 = vperm.xlu0 %7906, %v9369_v17   ;;  %v7797_v17 = vld [vmem:[#allocation8 + $0xac] sm:$0xf] }
 0x215   :  { %v9378_v1 = vmax.f32 %v9367_v46, %v1345_v51  ;;  %v9381_v11 = vmax.f32 %v9367_v46, %v662_v53  ;;  %7902 = vset.pattern.permute.xlu2 %v15027_v18  ;;  %v664_v40 = vpop.xlane.xlu0 %663  ;;  %v1519_v51 = vsub.f32 %v9236_v14, %v9248_v60  ;;  %v834_v53 = vsub.f32 %v9207_v35, %v9210_v10 }
 0x216   :  { %1003 = vperm.xlu2 %7902, %v9375_v62   ;;  %v9388_v22 = vmax.f32 %v9372_v42, %v664_v40  ;;  %v7418_v40 = vld [vmem:[#allocation8 + $0xb8] sm:$0xf0]  ;;  %v9401_v62 = vld [vmem:[#allocation3 + $0x68] sm:$0xff]  ;;  %v1523_v10 = vsub.f32 %v9300_v48, %v9336_v19 }
 0x217   :  { %1172 = vst.msk [vmem:[#allocation3 + $0x58] sm:$0xff] %vm14624_vm10, %v9381_v11  ;;  %1661 = vperm.xlu1 %7889, %v9384_v50   ;;  %v9403_v26 = vor.u32 %v7797_v17, %v7418_v40  ;;  %v1540_v54 = vmul.f32 1.442695, %v1519_v51  ;;  %v853_v50 = vmul.f32 1.442695, %v834_v53 }
 0x218   :  { %1855 = vst.msk [vmem:[#allocation3 + $0x58] sm:$0xff] %vm14635_vm0, %v9378_v1  ;;  %v1548_v51 = vmul.f32 1.442695, %v1523_v10  ;;  %v9445_v10 = vld [vmem:[#allocation3 + $0x70] sm:$0xff] }
 0x219   :  { %1173 = vst.msk [vmem:[#allocation3 + $0x60] sm:$0xff] %vm14624_vm10, %v9388_v22  ;;  %2641 = vmatpush.bf16.xpose.msrb.mxu0 %v9403_v26  ;;  %3163 = vmatpush.bf16.msrb.mxu2 %v9403_v26  ;;  %7954 = vpow2.f32 %v1540_v54  ;;  %v7414_v54 = vld [vmem:[#allocation8 + $0x98] sm:$0xf0] }
 0x21a   :  { %15051 = vst [vmem:[#allocation76_spill] sm:$0xff] %v9401_v62  ;;  %7956 = vpow2.f32 %v853_v50 }
 0x21b   :  { %15052 = vst [vmem:[#allocation77_spill] sm:$0xff] %v9403_v26  ;;  %7958 = vpow2.f32 %v1548_v51 }
 0x21c   :  { %734 = vperm.xlu0 %7906, %v9313_v41   ;;  %15056 = vst [vmem:[#allocation81_spill] sm:$0xff] %v9445_v10 }
 0x21d   :  { %v666_v60 = vpop.xlane.xlu1 %665  ;;  %v1347_v14 = vpop.xlane.xlu0 %1346 }
 0x21e   :  { %v9411_v35 = vmax.f32 %v9401_v62, %v666_v60  ;;  %724 = vperm.xlu2 %7902, %v9268_v36   ;;  %v9415_v17 = vmax.f32 %v9372_v42, %v1347_v14  ;;  %v7793_v14 = vld [vmem:[#allocation8 + $0x8c] sm:$0xf]  ;;  %v841_v60 = vsub.f32 %v9328_v56, %v9339_v63 }
 0x21f   :  { %7894 = vset.pattern.permute.xlu1 %v15027_v18  ;;  %v9428_v40 = vpop.eup %7954  ;;  %v9431_v50 = vor.u32 %v7793_v14, %v7414_v54 }
 0x220   :  { %1174 = vst.msk [vmem:[#allocation3 + $0x68] sm:$0xff] %vm14624_vm10, %v9411_v35  ;;  %709 = vperm.xlu1 %7894, %v9213_v29   ;;  %v9433_v29 = vpop.eup %7956  ;;  %v867_v51 = vmul.f32 1.442695, %v841_v60 }
 0x221   :  { %1856 = vst.msk [vmem:[#allocation3 + $0x60] sm:$0xff] %vm14635_vm0, %v9415_v17  ;;  %2642 = vmatpush.bf16.xpose.msrb.mxu0 %v9431_v50  ;;  %3164 = vmatpush.bf16.msrb.mxu2 %v9431_v50  ;;  %v9449_v14 = vpop.eup %7958 }
 0x222   :  { %15053 = vst [vmem:[#allocation78_spill] sm:$0xff] %v9428_v40  ;;  %7960 = vpow2.f32 %v867_v51  ;;  %v7785_v51 = vld [vmem:[#allocation8 + $0x4c] sm:$0xf] }
 0x223   :  { %15054 = vst [vmem:[#allocation79_spill] sm:$0xff] %v9431_v50  ;;  %v9458_v50 = vor.u32 %v7789_v16, %v7410_v55  ;;  %v1518_v55 = vsub.f32 %v9205_v44, %v9225_v27 }
 0x224   :  { %v1349_v53 = vpop.xlane.xlu2 %1348  ;;  %7909 = vset.pattern.permute.xlu0 %v15028_v45  ;;  %15055 = vst [vmem:[#allocation80_spill] sm:$0xff] %v9433_v29 }
 0x225   :  { %v9425_v36 = vmax.f32 %v9401_v62, %v1349_v53  ;;  %1417 = vperm.xlu0 %7909, %v9336_v19   ;;  %v839_v19 = vsub.f32 %v9297_v8, %v9308_v30  ;;  %v9447_v53 = vld [vmem:[#allocation3 + $0x78] sm:$0xff]  ;;  %15058 = vst [vmem:[#allocation83_spill] sm:$0xff] %v9449_v14  ;;  %3165 = vmatpush.bf16.msrb.mxu2 %v9458_v50 }
 0x226   :  { %7903 = vset.pattern.permute.xlu2 %v15028_v45  ;;  %15057 = vst [vmem:[#allocation82_spill] sm:$0xff] %v9447_v53 }
 0x227   :  { %1857 = vst.msk [vmem:[#allocation3 + $0x68] sm:$0xff] %vm14635_vm0, %v9425_v36  ;;  %1686 = vperm.xlu2 %7903, %v9428_v40   ;;  %v863_v26 = vmul.f32 1.442695, %v839_v19 }
 0x228   :  { %993 = vperm.xlu1 %7894, %v9433_v29   ;;  %15059 = vst [vmem:[#allocation84_spill] sm:$0xff] %v9458_v50 }
 0x229   :  { %2643 = vmatpush.bf16.xpose.msrb.mxu0 %v9458_v50  ;;  %7962 = vpow2.f32 %v863_v26 }
 0x22c   :  { %v668_v54 = vpop.xlane.xlu2 %667 }
 0x22d   :  { %v9452_v40 = vmax.f32 %v9445_v10, %v668_v54  ;;  %1706 = vperm.xlu0 %7909, %v9449_v14   ;;  %v670_v29 = vpop.xlane.xlu0 %669  ;;  %v7406_v54 = vld [vmem:[#allocation8 + $0x58] sm:$0xf0] }
 0x22e   :  { %v9456_v57 = vmax.f32 %v9447_v53, %v670_v29  ;;  %v9473_v29 = vpop.eup %7960  ;;  %v9480_v14 = vor.u32 %v7785_v51, %v7406_v54  ;;  %v7402_v54 = vld [vmem:[#allocation8 + $0x38] sm:$0xf0] }
 0x22f   :  { %1175 = vst.msk [vmem:[#allocation3 + $0x70] sm:$0xff] %vm14624_vm10, %v9452_v40  ;;  %1407 = vperm.xlu2 %7903, %v9285_v43   ;;  %v9482_v50 = vpop.eup %7962 }
 0x230   :  { %1176 = vst.msk [vmem:[#allocation3 + $0x78] sm:$0xff] %vm14624_vm10, %v9456_v57  ;;  %7895 = vset.pattern.permute.xlu1 %v15028_v45  ;;  %3166 = vmatpush.bf16.msrb.mxu2 %v9480_v14  ;;  %vm9526_vm10 = vmpackc.low %vm8944_vm7, %vm8926_vm3 }
 0x231   :  { %1392 = vperm.xlu1 %7895, %v9225_v27   ;;  %15060 = vst [vmem:[#allocation85_spill] sm:$0xff] %v9473_v29  ;;  %v1538_v27 = vmul.f32 1.442695, %v1518_v55  ;;  %2644 = vmatpush.bf16.xpose.msrb.mxu0 %v9480_v14 }
 0x232   :  { %15061 = vst [vmem:[#allocation86_spill] sm:$0xff] %v9480_v14  ;;  %v1526_v14 = vsub.f32 %v9372_v42, %v9415_v17 }
 0x233   :  { %15062 = vst [vmem:[#allocation87_spill] sm:$0xff] %v9482_v50  ;;  %7964 = vpow2.f32 %v1538_v27 }
 0x234   :  { %v9471_v16 = vpop.permute.xlu2 %1372 }
 0x235   :  { %v690_v60 = vpop.permute.xlu1 %689  ;;  %7912 = vset.pattern.permute.xlu0 %v15027_v18  ;;  %v1353_v19 = vpop.xlane.xlu0 %1352 }
 0x236   :  { %1028 = vperm.xlu0 %7912, %v9473_v29   ;;  %v9478_v26 = vmax.f32 %v9447_v53, %v1353_v19  ;;  %v767_v44 = vsub.f32 %v8933_v52, %v690_v60  ;;  %v1522_v19 = vsub.f32 %v9297_v8, %v9305_v28  ;;  %v7781_v60 = vld [vmem:[#allocation8 + $0x2c] sm:$0xf] }
 0x237   :  { %7908 = vset.pattern.permute.xlu2 %v15027_v18 }
 0x238   :  { %1018 = vperm.xlu2 %7908, %v9482_v50   ;;  %1859 = vst.msk [vmem:[#allocation3 + $0x78] sm:$0xff] %vm14635_vm0, %v9478_v26  ;;  %v783_v55 = vmul.f32 1.442695, %v767_v44  ;;  %v1546_v29 = vmul.f32 1.442695, %v1522_v19  ;;  %v9497_v50 = vor.u32 %v7781_v60, %v7402_v54  ;;  %v837_v19 = vsub.f32 %v9234_v4, %v9245_v5  ;;  %vm9564_vm0 = vmpackc.low %vm8974_vm11, %vm8948_vm8 }
 0x239   :  { %7900 = vset.pattern.permute.xlu1 %v15027_v18  ;;  %v1554_v44 = vmul.f32 1.442695, %v1526_v14 }
 0x23a   :  { %719 = vperm.xlu1 %7900, %v9245_v5   ;;  %15063 = vst [vmem:[#allocation88_spill] sm:$0xff] %v9497_v50  ;;  %7966 = vpow2.f32 %v783_v55  ;;  %2645 = vmatpush.bf16.xpose.msrb.mxu0 %v9497_v50  ;;  %v7777_v55 = vld [vmem:[#allocation8 + $0xc] sm:$0xf]  ;;  %v15066_v5 = vmov 0 }
 0x23b   :  { %3167 = vmatpush.bf16.msrb.mxu2 %v9497_v50  ;;  %v15067_v5 = vsel %vm9526_vm10, 4294967295, %v15066_v5  ;;  %v7366_v50 = vld [vmem:[#allocation11 + $0x18] sm:$0xf0] }
 0x23c   :  { %v695_v51 = vpop.permute.xlu2 %694  ;;  %15068 = vst [vmem:[#allocation91_spill] sm:$0xff] %v15067_v5  ;;  %v7803_v5 = vld [vmem:[#allocation8 + $0xd4] sm:$0xf0] }
 0x23d   :  { %v768_v52 = vsub.f32 %v8963_v13, %v695_v51  ;;  %v9504_v13 = vpop.eup %7964 }
 0x23e   :  { %749 = vperm.xlu0 %7912, %v9388_v22   ;;  %15064 = vst [vmem:[#allocation89_spill] sm:$0xff] %v9504_v13 }
 0x23f   :  { %v785_v23 = vmul.f32 1.442695, %v768_v52 }
 0x240   :  { %739 = vperm.xlu2 %7908, %v9339_v63   ;;  %v7398_v63 = vld [vmem:[#allocation8 + $0x18] sm:$0xf0]  ;;  %v9512_v51 = vpop.eup %7966 }
 0x241   :  { %7968 = vpow2.f32 %v785_v23  ;;  %v9515_v23 = vor.u32 %v7777_v55, %v7398_v63 }
 0x242   :  { %7970 = vpow2.f32 %v1546_v29  ;;  %7901 = vset.pattern.permute.xlu1 %v15028_v45  ;;  %v844_v29 = vsub.f32 %v9401_v62, %v9411_v35 }
 0x243   :  { %1681 = vperm.xlu1 %7901, %v9504_v13   ;;  %15065 = vst [vmem:[#allocation90_spill] sm:$0xff] %v9515_v23  ;;  %7972 = vpow2.f32 %v1554_v44  ;;  %2646 = vmatpush.bf16.xpose.msrb.mxu0 %v9515_v23  ;;  %v842_v44 = vsub.f32 %v9367_v46, %v9381_v11  ;;  %v7745_v13 = vld [vmem:[#allocation11 + $0xc] sm:$0xf] }
 0x244   :  { %v9508_v27 = vpop.permute.xlu2 %983  ;;  %3168 = vmatpush.bf16.msrb.mxu2 %v9515_v23  ;;  %v873_v63 = vmul.f32 1.442695, %v844_v29  ;;  %v1525_v29 = vsub.f32 %v9367_v46, %v9378_v1  ;;  %v1529_v46 = vsub.f32 %v9447_v53, %v9478_v26 }
 0x246   :  { %7915 = vset.pattern.permute.xlu0 %v15028_v45 }
 0x247   :  { %v9517_v52 = vpop.eup %7968  ;;  %1432 = vperm.xlu0 %7915, %v9415_v17   ;;  %v859_v17 = vmul.f32 1.442695, %v837_v19 }
 0x248   :  { %v9530_v14 = vpop.eup %7970  ;;  %7910 = vset.pattern.permute.xlu2 %v15028_v45  ;;  %v700_v60 = vpop.permute.xlu0 %699  ;;  %v7167_v54 = vpack.c.bf16 %v9517_v52, %v9512_v51 }
 0x249   :  { %15069 = vst [vmem:[#allocation92_spill] sm:$0xff] %v9530_v14  ;;  %1701 = vperm.xlu2 %7910, %v9530_v14   ;;  %v769_v55 = vsub.f32 %v8959_v12, %v700_v60  ;;  %7974 = vpow2.f32 %v859_v17  ;;  %v7369_v14 = vor.u32 %v7745_v13, %v7366_v50  ;;  %v9545_v12 = vpop.eup %7972  ;;  %v869_v60 = vmul.f32 1.442695, %v842_v44  ;;  %v7370_v17 = vld [vmem:[#allocation11 + $0x38] sm:$0xf0] }
 0x24a   :  { %7168 = vmatmul.msk.bf16.vlgmr.msra.gmra.mxu1 %vm9526_vm10, %v7167_v54  ;;  %15070 = vst [vmem:[#allocation93_spill] sm:$0xff] %v9545_v12  ;;  %7976 = vpow2.f32 %v873_v63  ;;  %v7749_v54 = vld [vmem:[#allocation11 + $0x2c] sm:$0xf]  ;;  %v1521_v44 = vsub.f32 %v9263_v37, %v9285_v43  ;;  %v1552_v63 = vmul.f32 1.442695, %v1525_v29  ;;  %v840_v29 = vsub.f32 %v9300_v48, %v9313_v41 }
 0x24b   :  { %1402 = vperm.xlu1 %7901, %v9271_v24   ;;  %v787_v8 = vmul.f32 1.442695, %v769_v55  ;;  %2647 = vmatmul.bf16.vlgmr.msrb.gmra.mxu0 %v7369_v14  ;;  %v7373_v55 = vor.u32 %v7749_v54, %v7370_v17 }
 0x24c   :  { %v705_v4 = vpop.permute.xlu2 %704  ;;  %v865_v54 = vmul.f32 1.442695, %v840_v29 }
 0x24d   :  { %v770_v19 = vsub.f32 %v8989_v38, %v705_v4  ;;  %7978 = vpow2.f32 %v787_v8  ;;  %v15072_v8 = vmov 0 }
 0x24e   :  { %v15073_v8 = vsel %vm9564_vm0, 4294967295, %v15072_v8 }
 0x24f   :  { %v789_v23 = vmul.f32 1.442695, %v770_v19  ;;  %1721 = vperm.xlu0 %7915, %v9545_v12   ;;  %v9549_v24 = vpop.eup %7974  ;;  %15074 = vst [vmem:[#allocation95_spill] sm:$0xff] %v15073_v8 }
 0x250   :  { %v9553_v38 = vpop.eup %7976 }
 0x251   :  { %7980 = vpow2.f32 %v789_v23  ;;  %1422 = vperm.xlu2 %7910, %v9358_v25   ;;  %15071 = vst [vmem:[#allocation94_spill] sm:$0xff] %v9553_v38  ;;  %v9579_v14 = vpop.permute.xlu0 %1382 }
 0x252   :  { %7982 = vpow2.f32 %v869_v60 }
 0x253   :  { %7904 = vset.pattern.permute.xlu1 %v15027_v18  ;;  %v9555_v4 = vpop.eup %7978  ;;  %7984 = vpow2.f32 %v1552_v63  ;;  %v7374_v63 = vld [vmem:[#allocation11 + $0x58] sm:$0xf0] }
 0x254   :  { %1008 = vperm.xlu1 %7904, %v9549_v24   ;;  %v1388_v17 = vpop.permute.xlu2 %1387 }
 0x257   :  { %v9557_v50 = vpop.eup %7980  ;;  %7918 = vset.pattern.permute.xlu0 %v15027_v18 }
 0x258   :  { %1043 = vperm.xlu0 %7918, %v9553_v38   ;;  %v7170_v13 = vpack.c.bf16 %v9557_v50, %v9555_v4  ;;  %v9571_v23 = vpop.eup %7982 }
 0x259   :  { %15075 = vst [vmem:[#allocation96_spill] sm:$0xff] %v9571_v23  ;;  %7914 = vset.pattern.permute.xlu2 %v15027_v18  ;;  %v9595_v43 = vpop.permute.xlu0 %1666 }
 0x25a   :  { %1033 = vperm.xlu2 %7914, %v9571_v23   ;;  %7171 = vmatmul.msk.bf16.gmra.mxu1 %vm9564_vm0, %v7170_v13  ;;  %v1544_v13 = vmul.f32 1.442695, %v1521_v44  ;;  %v7753_v44 = vld [vmem:[#allocation11 + $0x4c] sm:$0xf]  ;;  %v7791_v23 = vld [vmem:[#allocation8 + $0x74] sm:$0xf0] }
 0x25b   :  { %2652 = vmatmul.bf16.gmra.mxu0 %v7373_v55 }
 0x25c   :  { %729 = vperm.xlu1 %7904, %v9308_v30   ;;  %7986 = vpow2.f32 %v1544_v13  ;;  %v1560_v30 = vmul.f32 1.442695, %v1529_v46  ;;  %v845_v46 = vsub.f32 %v9445_v10, %v9452_v40  ;;  %v9618_v13 = vpop.permute.xlu2 %1671 }
 0x25e   :  { %7988 = vpow2.f32 %v1560_v30  ;;  %v875_v55 = vmul.f32 1.442695, %v845_v46  ;;  %v7377_v30 = vor.u32 %v7753_v44, %v7374_v63  ;;  %v1524_v44 = vsub.f32 %v9328_v56, %v9358_v25 }
 0x25f   :  { %7990 = vpow2.f32 %v865_v54 }
 0x260   :  { %764 = vperm.xlu0 %7918, %v9456_v57   ;;  %v1351_v19 = vpop.xlane.xlu1 %1350  ;;  %7992 = vpow2.f32 %v875_v55  ;;  %v1450_v55 = vsub.f32 %v8941_v61, %v9471_v16  ;;  %v843_v61 = vsub.f32 %v9372_v42, %v9388_v22  ;;  %v15091_v42 = vld [vmem:[#allocation30_spill] sm:$0xff] }
 0x261   :  { %v9586_v60 = vmax.f32 %v9445_v10, %v1351_v19 }
 0x262   :  { %754 = vperm.xlu2 %7914, %v9411_v35   ;;  %v9601_v35 = vpop.eup %7984  ;;  %v1466_v63 = vmul.f32 1.442695, %v1450_v55  ;;  %v871_v55 = vmul.f32 1.442695, %v843_v61 }
 0x263   :  { %1858 = vst.msk [vmem:[#allocation3 + $0x70] sm:$0xff] %vm15076_vm6, %v9586_v60  ;;  %vm9688_vm6 = vmpackc.low %vm9008_vm1, %vm8978_vm12 }
 0x264   :  { %7907 = vset.pattern.permute.xlu1 %v15028_v45  ;;  %15077 = vst [vmem:[#allocation97_spill] sm:$0xff] %v9601_v35  ;;  %v715_v48 = vpop.permute.xlu2 %714  ;;  %7994 = vpow2.f32 %v1466_v63 }
 0x265   :  { %1412 = vperm.xlu1 %7907, %v9305_v28   ;;  %v9605_v28 = vpop.eup %7986  ;;  %v772_v22 = vsub.f32 %v9026_v2, %v715_v48 }
 0x266   :  { %v9610_v41 = vpop.eup %7988 }
 0x267   :  { %15078 = vst [vmem:[#allocation98_spill] sm:$0xff] %v9610_v41  ;;  %v9616_v19 = vpop.eup %7990 }
 0x268   :  { %7921 = vset.pattern.permute.xlu0 %v15028_v45  ;;  %v9626_v46 = vpop.eup %7992 }
 0x269   :  { %1447 = vperm.xlu0 %7921, %v9478_v26   ;;  %v9612_v26 = vpop.permute.xlu0 %988  ;;  %15079 = vst [vmem:[#allocation99_spill] sm:$0xff] %v9626_v46 }
 0x26a   :  { %7916 = vset.pattern.permute.xlu2 %v15028_v45 }
 0x26b   :  { %1716 = vperm.xlu2 %7916, %v9601_v35   ;;  %2657 = vmatmul.bf16.gmra.mxu0 %v7377_v30 }
 0x26c   :  { %v1398_v25 = vpop.permute.xlu2 %1397 }
 0x26d   :  { %1696 = vperm.xlu1 %7907, %v9605_v28  }
 0x271   :  { %1736 = vperm.xlu0 %7921, %v9610_v41   ;;  %v9624_v54 = vpop.permute.xlu0 %1676  ;;  %v1550_v41 = vmul.f32 1.442695, %v1524_v44 }
 0x273   :  { %1437 = vperm.xlu2 %7916, %v9425_v36  }
 0x275   :  { %7911 = vset.pattern.permute.xlu1 %v15027_v18 }
 0x276   :  { %1023 = vperm.xlu1 %7911, %v9616_v19  }
 0x278   :  { %v9622_v29 = vpop.permute.xlu1 %978 }
 0x279   :  { %v9636_v12 = vpop.permute.xlu0 %998 }
 0x27b   :  { %7920 = vset.pattern.permute.xlu2 %v15027_v18 }
 0x27c   :  { %1048 = vperm.xlu2 %7920, %v9626_v46   ;;  %v15092_v46 = vld [vmem:[#allocation29_spill] sm:$0xff] }
 0x27e   :  { %744 = vperm.xlu1 %7911, %v9381_v11  }
 0x281   :  { %v1378_v30 = vpop.permute.xlu1 %1377  ;;  %v9657_v44 = vpop.permute.xlu0 %1691 }
 0x282   :  { %v1451_v37 = vsub.f32 %v8954_v9, %v1378_v30  ;;  %v9645_v9 = vpop.eup %7994 }
 0x284   :  { %v1468_v38 = vmul.f32 1.442695, %v1451_v37  ;;  %7922 = vset.pattern.permute.xlu2 %v15028_v45  ;;  %v1453_v37 = vsub.f32 %v8984_v34, %v1388_v17  ;;  %v793_v17 = vmul.f32 1.442695, %v772_v22  ;;  %v7757_v22 = vld [vmem:[#allocation11 + $0x6c] sm:$0xf] }
 0x286   :  { %7996 = vpow2.f32 %v1468_v38  ;;  %7913 = vset.pattern.permute.xlu1 %v15028_v45  ;;  %v1452_v38 = vsub.f32 %v8971_v21, %v9579_v14  ;;  %v1472_v63 = vmul.f32 1.442695, %v1453_v37  ;;  %v9662_v21 = vpop.permute.xlu2 %1003  ;;  %v1455_v37 = vsub.f32 %v9020_v0, %v1398_v25 }
 0x287   :  { %1427 = vperm.xlu1 %7913, %v9378_v1   ;;  %7998 = vpow2.f32 %v1550_v41  ;;  %v15081_v25 = vmov 0 }
 0x288   :  { %8000 = vpow2.f32 %v871_v55  ;;  %v1470_v34 = vmul.f32 1.442695, %v1452_v38  ;;  %v15082_v25 = vsel %vm9688_vm6, 4294967295, %v15081_v25 }
 0x289   :  { %v9643_v11 = vpop.permute.xlu1 %1661  ;;  %8002 = vpow2.f32 %v1472_v63  ;;  %v9668_v48 = vpop.permute.xlu0 %1013  ;;  %v7378_v63 = vld [vmem:[#allocation11 + $0x78] sm:$0xf0]  ;;  %15083 = vst [vmem:[#allocation101_spill] sm:$0xff] %v15082_v25  ;;  %v7336_v25 = vld [vmem:[#allocation8 + $0xc8] sm:$0xf] }
 0x28a   :  { %8004 = vpow2.f32 %v1470_v34 }
 0x28b   :  { %8006 = vpow2.f32 %v793_v17  ;;  %v7381_v17 = vor.u32 %v7757_v22, %v7378_v63 }
 0x28c   :  { %v9647_v16 = vpop.eup %7996 }
 0x28d   :  { %v7255_v1 = vpack.c.bf16 %v9647_v16, %v9645_v9  ;;  %v9654_v41 = vpop.eup %7998  ;;  %2662 = vmatmul.bf16.gmra.mxu0 %v7381_v17 }
 0x28e   :  { %15080 = vst [vmem:[#allocation100_spill] sm:$0xff] %v9654_v41  ;;  %v9665_v2 = vpop.eup %8000 }
 0x28f   :  { %7256 = vmatmul.msk.bf16.vlgmr.msra.gmra.mxu3 %vm9526_vm10, %v7255_v1  ;;  %1711 = vperm.xlu1 %7913, %v9654_v41   ;;  %v9672_v55 = vpop.eup %8002 }
 0x290   :  { %v8005_v1 = vpop.eup %8004 }
 0x291   :  { %v9679_v34 = vpop.eup %8006  ;;  %v7258_v0 = vpack.c.bf16 %v9672_v55, %v8005_v1  ;;  %v1500_v22 = vsel %vm8948_vm8, %v8005_v1, 0.0 }
 0x292   :  { %v710_v30 = vpop.permute.xlu1 %709 }
 0x293   :  { %v771_v14 = vsub.f32 %v8993_v39, %v710_v30  ;;  %v817_v39 = vsel %vm8948_vm8, %v9555_v4, 0.0 }
 0x295   :  { %v791_v61 = vmul.f32 1.442695, %v771_v14  ;;  %v1476_v14 = vmul.f32 1.442695, %v1455_v37  ;;  %v1527_v37 = vsub.f32 %v9401_v62, %v9425_v36 }
 0x297   :  { %8008 = vpow2.f32 %v791_v61  ;;  %7917 = vset.pattern.permute.xlu1 %v15027_v18  ;;  %v725_v61 = vpop.permute.xlu2 %724 }
 0x298   :  { %1038 = vperm.xlu1 %7917, %v9665_v2   ;;  %8010 = vpow2.f32 %v1476_v14  ;;  %v774_v36 = vsub.f32 %v9041_v20, %v725_v61  ;;  %v1528_v20 = vsub.f32 %v9445_v10, %v9586_v60 }
 0x29a   :  { %v9674_v38 = vpop.permute.xlu1 %993 }
 0x29b   :  { %899 = vadd.xlane.f32.xlu0 %v817_v39  ;;  %v9701_v39 = vpop.permute.xlu0 %734 }
 0x29d   :  { %v9681_v30 = vpop.eup %8008 }
 0x29e   :  { %v7173_v4 = vpack.c.bf16 %v9679_v34, %v9681_v30  ;;  %v8011_v14 = vpop.eup %8010 }
 0x29f   :  { %7259 = vmatmul.msk.bf16.gmra.mxu3 %vm9564_vm0, %v7258_v0  ;;  %v1556_v0 = vmul.f32 1.442695, %v1527_v37  ;;  %v9709_v8 = vpop.permute.xlu2 %1686  ;;  %vm9741_vm0 = vmpackc.low %vm9034_vm4, %vm9012_vm2 }
 0x2a0   :  { %759 = vperm.xlu1 %7917, %v9452_v40   ;;  %7174 = vmatmul.msk.bf16.gmra.mxu1 %vm9688_vm6, %v7173_v4  ;;  %v815_v40 = vsel %vm8926_vm3, %v9512_v51, 0.0  ;;  %v846_v51 = vsub.f32 %v9447_v53, %v9456_v57 }
 0x2a3   :  { %v1393_v63 = vpop.permute.xlu1 %1392  ;;  %1582 = vadd.xlane.f32.xlu0 %v1500_v22  ;;  %v9718_v1 = vpop.permute.xlu0 %1417  ;;  %v797_v22 = vmul.f32 1.442695, %v774_v36 }
 0x2a4   :  { %v1454_v17 = vsub.f32 %v9002_v49, %v1393_v63  ;;  %v1503_v49 = vsel %vm9008_vm1, %v8011_v14, 0.0 }
 0x2a5   :  { %895 = vadd.xlane.f32.xlu2 %v815_v40 }
 0x2a6   :  { %v1474_v4 = vmul.f32 1.442695, %v1454_v17 }
 0x2a7   :  { %v1408_v57 = vpop.permute.xlu2 %1407 }
 0x2a8   :  { %8012 = vpow2.f32 %v1474_v4  ;;  %7919 = vset.pattern.permute.xlu1 %v15028_v45  ;;  %v877_v45 = vmul.f32 1.442695, %v846_v51  ;;  %v1558_v4 = vmul.f32 1.442695, %v1528_v20  ;;  %v1457_v20 = vsub.f32 %v9054_v33, %v1408_v57  ;;  %v15090_v57 = vld [vmem:[#allocation25_spill] sm:$0xff] }
 0x2a9   :  { %1442 = vperm.xlu1 %7919, %v9586_v60   ;;  %8014 = vpow2.f32 %v1556_v0 }
 0x2aa   :  { %8016 = vpow2.f32 %v797_v22  ;;  %v1480_v33 = vmul.f32 1.442695, %v1457_v20 }
 0x2ab   :  { %1588 = vadd.xlane.f32.xlu0 %v1503_v49  ;;  %v9733_v60 = vpop.permute.xlu0 %1706  ;;  %v7807_v49 = vld [vmem:[#allocation8 + $0xf4] sm:$0xf0] }
 0x2ac   :  { %v720_v37 = vpop.permute.xlu1 %719 }
 0x2ad   :  { %v773_v63 = vsub.f32 %v9030_v3, %v720_v37  ;;  %v15085_v37 = vmov 0 }
 0x2ae   :  { %v9721_v17 = vpop.eup %8012  ;;  %v15086_v37 = vsel %vm9741_vm0, 4294967295, %v15085_v37 }
 0x2af   :  { %v795_v61 = vmul.f32 1.442695, %v773_v63  ;;  %v7261_v40 = vpack.c.bf16 %v8011_v14, %v9721_v17  ;;  %v9726_v0 = vpop.eup %8014  ;;  %v7340_v14 = vld [vmem:[#allocation8 + $0xe8] sm:$0xf]  ;;  %15087 = vst [vmem:[#allocation103_spill] sm:$0xff] %v15086_v37 }
 0x2b0   :  { %15084 = vst [vmem:[#allocation102_spill] sm:$0xff] %v9726_v0  ;;  %v9735_v36 = vpop.eup %8016  ;;  %v7341_v22 = vor.u32 %v7807_v49, %v7340_v14 }
 0x2b1   :  { %1726 = vperm.xlu1 %7919, %v9726_v0   ;;  %7262 = vmatmul.msk.bf16.gmra.mxu3 %vm9688_vm6, %v7261_v40  ;;  %8018 = vpow2.f32 %v795_v61  ;;  %v9753_v40 = vpop.permute.xlu2 %1018 }
 0x2b2   :  { %8020 = vpow2.f32 %v877_v45  ;;  %2478 = vmatpush.bf16.msrb.mxu3 %v7341_v22  ;;  %1956 = vmatpush.bf16.xpose.msrb.mxu1 %v7341_v22 }
 0x2b3   :  { %8022 = vpow2.f32 %v1558_v4  ;;  %v9761_v49 = vpop.permute.xlu0 %1028 }
 0x2b4   :  { %8024 = vpow2.f32 %v1480_v33 }
 0x2b5   :  { %v9731_v3 = vpop.permute.xlu1 %1681 }
 0x2b7   :  { %v8019_v51 = vpop.eup %8018 }
 0x2b8   :  { %v9745_v63 = vpop.eup %8020  ;;  %v821_v45 = vsel %vm9012_vm2, %v8019_v51, 0.0  ;;  %v7176_v61 = vpack.c.bf16 %v9735_v36, %v8019_v51 }
 0x2b9   :  { %15088 = vst [vmem:[#allocation104_spill] sm:$0xff] %v9745_v63  ;;  %7923 = vset.pattern.permute.xlu1 %v15027_v18  ;;  %907 = vadd.xlane.f32.xlu0 %v821_v45  ;;  %v9757_v4 = vpop.eup %8022  ;;  %v960_v45 = vld [vmem:[#allocation2 + $0xb0] sm:$0xff]  ;;  %v9763_v10 = vpop.permute.xlu2 %739 }
 0x2ba   :  { %1053 = vperm.xlu1 %7923, %v9745_v63   ;;  %7177 = vmatmul.msk.bf16.gmra.mxu1 %vm9741_vm0, %v7176_v61  ;;  %15089 = vst [vmem:[#allocation105_spill] sm:$0xff] %v9757_v4  ;;  %v7337_v61 = vor.u32 %v7803_v5, %v7336_v25  ;;  %v1056_v53 = vmul.f32 %v9622_v29, %v960_v45  ;;  %v9768_v20 = vpop.eup %8024  ;;  %v961_v45 = vld [vmem:[#allocation2 + $0x50] sm:$0xff] }
 0x2bb   :  { %v776_v5 = vsub.f32 %v15091_v42, %v9701_v39  ;;  %v9776_v25 = vpop.permute.xlu0 %749  ;;  %v962_v39 = vld [vmem:[#allocation2 + $0x180] sm:$0xff] }
 0x2bc   :  { %1957 = vmatpush.bf16.xpose.msrb.mxu1 %v7337_v61  ;;  %2479 = vmatpush.bf16.msrb.mxu3 %v7337_v61  ;;  %v1057_v61 = vmul.f32 %v9508_v27, %v961_v45  ;;  %v1058_v27 = vmul.f32 %v9612_v26, %v962_v39  ;;  %v15097_v26 = vmov 0 }
 0x2bd   :  { %1731 = vperm.xlu2 %7922, %v9757_v4   ;;  %v1403_v18 = vpop.permute.xlu1 %1402 }
 0x2be   :  { %v1456_v14 = vsub.f32 %v15090_v57, %v1403_v18 }
 0x2c0   :  { %v1478_v51 = vmul.f32 1.442695, %v1456_v14  ;;  %v7761_v14 = vld [vmem:[#allocation11 + $0x8c] sm:$0xf] }
 0x2c1   :  { %v9781_v56 = vpop.permute.xlu2 %1701 }
 0x2c2   :  { %8026 = vpow2.f32 %v1478_v51  ;;  %v7382_v51 = vld [vmem:[#allocation11 + $0x98] sm:$0xf0] }
 0x2c3   :  { %v7385_v29 = vor.u32 %v7761_v14, %v7382_v51  ;;  %v7332_v51 = vld [vmem:[#allocation8 + $0xa8] sm:$0xf] }
 0x2c5   :  { %2667 = vmatmul.bf16.gmra.mxu0 %v7385_v29  ;;  %v7799_v29 = vld [vmem:[#allocation8 + $0xb4] sm:$0xf0] }
 0x2c6   :  { %v9766_v22 = vpop.permute.xlu1 %1008 }
 0x2c7   :  { %v1089_v62 = vpop.f32.mrf.mxu1 }
 0x2c8   :  { %v9770_v18 = vpop.eup %8026  ;;  %v1129_v57 = vadd.f32 %v1089_v62, %v1056_v53  ;;  %v801_v62 = vmul.f32 1.442695, %v776_v5  ;;  %v9789_v5 = vpop.f32.mrf.mxu0 }
 0x2c9   :  { %v7264_v33 = vpack.c.bf16 %v9768_v20, %v9770_v18 }
 0x2ca   :  { %1145 = vst [vmem:[#allocation2 + $0xb0] sm:$0xff] %v1129_v57  ;;  %8028 = vpow2.f32 %v801_v62  ;;  %v15093_v57 = vld [vmem:[#allocation32_spill] sm:$0xff] }
 0x2cb   :  { %7265 = vmatmul.msk.bf16.gmra.mxu3 %vm9741_vm0, %v7264_v33  ;;  %v1459_v14 = vsub.f32 %v15093_v57, %v9718_v1  ;;  %v9786_v33 = vpop.permute.xlu0 %1432  ;;  %v9794_v1 = vpop.permute.xlu2 %1422  ;;  %vm9800_vm0 = vmpackc.low %vm9062_vm14, %vm9057_vm13 }
 0x2cc   :  { %v15098_v26 = vsel %vm9800_vm0, 4294967295, %v15097_v26 }
 0x2cd   :  { %v1484_v45 = vmul.f32 1.442695, %v1459_v14  ;;  %15099 = vst [vmem:[#allocation25_spill] sm:$0xff] %v15098_v26  ;;  %v963_v14 = vld [vmem:[#allocation2 + $0x120] sm:$0xff]  ;;  %v7324_v26 = vld [vmem:[#allocation8 + $0x68] sm:$0xf] }
 0x2ce   :  { %v730_v53 = vpop.permute.xlu1 %729 }
 0x2cf   :  { %v1091_v4 = vpop.f32.mrf.mxu1  ;;  %v775_v0 = vsub.f32 %v15092_v46, %v730_v53 }
 0x2d0   :  { %v1130_v63 = vadd.f32 %v1091_v4, %v1057_v61  ;;  %v7333_v4 = vor.u32 %v7799_v29, %v7332_v51  ;;  %v1059_v51 = vmul.f32 %v9674_v38, %v963_v14  ;;  %v9812_v35 = vpop.f32.mrf.mxu0  ;;  %v816_v38 = vsel %vm8944_vm7, %v9517_v52, 0.0 }
 0x2d1   :  { %v799_v42 = vmul.f32 1.442695, %v775_v0  ;;  %v8029_v0 = vpop.eup %8028 }
 0x2d2   :  { %1146 = vst [vmem:[#allocation2 + $0x50] sm:$0xff] %v1130_v63  ;;  %v15094_v63 = vld [vmem:[#allocation28_spill] sm:$0xff]  ;;  %1958 = vmatpush.bf16.xpose.msrb.mxu1 %v7333_v4  ;;  %2480 = vmatpush.bf16.msrb.mxu3 %v7333_v4 }
 0x2d3   :  { %8030 = vpow2.f32 %v799_v42  ;;  %v15095_v42 = vld [vmem:[#allocation26_spill] sm:$0xff] }
 0x2d4   :  { %8032 = vpow2.f32 %v1484_v45  ;;  %v7328_v45 = vld [vmem:[#allocation8 + $0x88] sm:$0xf] }
 0x2d7   :  { %v1094_v37 = vpop.f32.mrf.mxu1  ;;  %v1413_v46 = vpop.permute.xlu1 %1412 }
 0x2d8   :  { %v1131_v61 = vadd.f32 %v1094_v37, %v1058_v27  ;;  %v1458_v62 = vsub.f32 %v15094_v63, %v1413_v46  ;;  %v9808_v27 = vpop.permute.xlu0 %1721 }
 0x2d9   :  { %v9792_v53 = vpop.eup %8030  ;;  %15100 = vst [vmem:[#allocation30_spill] sm:$0xff] %v9808_v27  ;;  %v2653_v27 = vpop.f32.mrf.mxu0 }
 0x2da   :  { %1147 = vst [vmem:[#allocation2 + $0x180] sm:$0xff] %v1131_v61  ;;  %v1482_v39 = vmul.f32 1.442695, %v1458_v62  ;;  %v7179_v37 = vpack.c.bf16 %v8029_v0, %v9792_v53  ;;  %v9814_v4 = vpop.eup %8032  ;;  %v7795_v62 = vld [vmem:[#allocation8 + $0x94] sm:$0xf0] }
 0x2dc   :  { %8034 = vpow2.f32 %v1482_v39  ;;  %7180 = vmatmul.msk.bf16.gmra.mxu1 %vm9800_vm0, %v7179_v37  ;;  %v9816_v39 = vpop.permute.xlu2 %1033 }
 0x2df   :  { %v1096_v29 = vpop.f32.mrf.mxu1  ;;  %v9810_v46 = vpop.permute.xlu1 %1696 }
 0x2e0   :  { %v1132_v63 = vadd.f32 %v1096_v29, %v1059_v51  ;;  %v7329_v51 = vor.u32 %v7795_v62, %v7328_v45  ;;  %v1498_v29 = vsel %vm8926_vm3, %v9645_v9, 0.0  ;;  %v824_v45 = vsel %vm9062_vm14, %v8029_v0, 0.0  ;;  %v15102_v9 = vld [vmem:[#allocation33_spill] sm:$0xff] }
 0x2e1   :  { %v777_v62 = vsub.f32 %v15102_v9, %v9763_v10  ;;  %v7325_v10 = vor.u32 %v7791_v23, %v7324_v26  ;;  %v1501_v23 = vsel %vm8974_vm11, %v9672_v55, 0.0  ;;  %v1502_v55 = vsel %vm8978_vm12, %v9721_v17, 0.0  ;;  %v15114_v17 = vld [vmem:[#allocation39_spill] sm:$0xff] }
 0x2e2   :  { %v8035_v61 = vpop.eup %8034  ;;  %1148 = vst [vmem:[#allocation2 + $0x120] sm:$0xff] %v1132_v63  ;;  %1959 = vmatpush.bf16.xpose.msrb.mxu1 %v7329_v51  ;;  %2481 = vmatpush.bf16.msrb.mxu3 %v7329_v51  ;;  %v9829_v63 = vpop.permute.xlu0 %1043 }
 0x2e3   :  { %v1506_v37 = vsel %vm9057_vm13, %v8035_v61, 0.0  ;;  %v7267_v14 = vpack.c.bf16 %v9814_v4, %v8035_v61  ;;  %15101 = vst [vmem:[#allocation29_spill] sm:$0xff] %v9829_v63  ;;  %v1499_v61 = vsel %vm8944_vm7, %v9647_v16, 0.0  ;;  %v803_v51 = vmul.f32 1.442695, %v777_v62  ;;  %v15103_v16 = vld [vmem:[#allocation38_spill] sm:$0xff] }
 0x2e4   :  { %897 = vadd.xlane.f32.xlu1 %v816_v38  ;;  %1594 = vadd.xlane.f32.xlu0 %v1506_v37  ;;  %v755_v38 = vpop.permute.xlu2 %754  ;;  %v818_v37 = vsel %vm8974_vm11, %v9557_v50, 0.0  ;;  %v819_v50 = vsel %vm8978_vm12, %v9681_v30, 0.0  ;;  %v7787_v62 = vld [vmem:[#allocation8 + $0x54] sm:$0xf0] }
 0x2e5   :  { %7268 = vmatmul.msk.bf16.gmra.mxu3 %vm9800_vm0, %v7267_v14  ;;  %v2690_v14 = vmul.f32 0.25, %v2653_v27  ;;  %8036 = vpow2.f32 %v803_v51  ;;  %v15105_v27 = vld [vmem:[#allocation34_spill] sm:$0xff]  ;;  %vm9874_vm0 = vmpackc.low %vm9104_vm9, %vm9083_vm15 }
 0x2e6   :  { %1578 = vadd.xlane.f32.xlu2 %v1498_v29  ;;  %2482 = vmatpush.bf16.msrb.mxu3 %v7325_v10  ;;  %v1460_v9 = vsub.f32 %v15105_v27, %v9794_v1  ;;  %v15108_v1 = vld [vmem:[#allocation41_spill] sm:$0xff] }
 0x2e7   :  { %v9846_v0 = vsel %vm8948_vm8, %v2690_v14, -1e+30  ;;  %vm15131_vm8 = vcmask 7168  }
 0x2e8   :  { %v9831_v52 = vpop.permute.xlu1 %1023  ;;  %15104 = vst [vmem:[#allocation32_spill] sm:$0xff] %v9846_v0  ;;  %v1486_v30 = vmul.f32 1.442695, %v1460_v9  ;;  %v15111_v9 = vmov 0 }
 0x2e9   :  { %v15112_v9 = vsel %vm9874_vm0, 4294967295, %v15111_v9 }
 0x2ea   :  { %1960 = vmatpush.bf16.xpose.msrb.mxu1 %v7325_v10  ;;  %15113 = vst [vmem:[#allocation33_spill] sm:$0xff] %v15112_v9  ;;  %v1643_v9 = vld [vmem:[#allocation2 + $0x1b0] sm:$0xff] }
 0x2eb   :  { %v9861_v51 = vpop.eup %8036 }
 0x2ec   :  { %1580 = vadd.xlane.f32.xlu1 %v1499_v61  ;;  %913 = vadd.xlane.f32.xlu0 %v824_v45  ;;  %v9848_v61 = vpop.permute.xlu0 %764  ;;  %v9859_v26 = vpop.permute.xlu2 %1716 }
 0x2ed   :  { %15106 = vst [vmem:[#allocation28_spill] sm:$0xff] %v9859_v26 }
 0x2ee   :  { %901 = vadd.xlane.f32.xlu2 %v818_v37 }
 0x2ef   :  { %v15239_v59 = vld [vmem:[#allocation32_spill] sm:$0xff] }
 0x2f0   :  { %v745_v29 = vpop.permute.xlu1 %744 }
 0x2f1   :  { %v778_v63 = vsub.f32 %v15103_v16, %v745_v29  ;;  %v15107_v29 = vld [vmem:[#allocation37_spill] sm:$0xff] }
 0x2f3   :  { %v805_v45 = vmul.f32 1.442695, %v778_v63  ;;  %v7320_v63 = vld [vmem:[#allocation8 + $0x48] sm:$0xf] }
 0x2f4   :  { %903 = vadd.xlane.f32.xlu1 %v819_v50  ;;  %2724 = vmax.xlane.f32.xlu0 %v9846_v0  ;;  %v7321_v14 = vor.u32 %v7787_v62, %v7320_v63  ;;  %v15109_v50 = vld [vmem:[#allocation31_spill] sm:$0xff]  ;;  %v779_v62 = vsub.f32 %v15114_v17, %v9776_v25  ;;  %v7783_v0 = vld [vmem:[#allocation8 + $0x34] sm:$0xf0] }
 0x2f5   :  { %8038 = vpow2.f32 %v805_v45  ;;  %v780_v45 = vsub.f32 %v15108_v1, %v755_v38 }
 0x2f6   :  { %1584 = vadd.xlane.f32.xlu2 %v1501_v23  ;;  %1961 = vmatpush.bf16.xpose.msrb.mxu1 %v7321_v14  ;;  %v9878_v23 = vpop.permute.xlu0 %1447  ;;  %8040 = vpow2.f32 %v1486_v30  ;;  %v807_v7 = vmul.f32 1.442695, %v779_v62  ;;  %v1438_v30 = vpop.permute.xlu2 %1437 }
 0x2f7   :  { %2483 = vmatpush.bf16.msrb.mxu3 %v7321_v14  ;;  %v809_v14 = vmul.f32 1.442695, %v780_v45 }
 0x2f9   :  { %v1428_v37 = vpop.permute.xlu1 %1427 }
 0x2fa   :  { %v1461_v16 = vsub.f32 %v15107_v29, %v1428_v37  ;;  %v820_v37 = vsel %vm9008_vm1, %v9679_v34, 0.0  ;;  %v7765_v29 = vld [vmem:[#allocation11 + $0xac] sm:$0xf]  ;;  %v822_v34 = vsel %vm9034_vm4, %v9735_v36, 0.0  ;;  %v15117_v36 = vld [vmem:[#allocation42_spill] sm:$0xff] }
 0x2fb   :  { %v9864_v10 = vpop.eup %8038 }
 0x2fc   :  { %v1488_v63 = vmul.f32 1.442695, %v1461_v16  ;;  %1586 = vadd.xlane.f32.xlu1 %v1502_v55  ;;  %v7182_v38 = vpack.c.bf16 %v9864_v10, %v9861_v51  ;;  %v7386_v16 = vld [vmem:[#allocation11 + $0xb8] sm:$0xf0]  ;;  %v7316_v55 = vld [vmem:[#allocation8 + $0x28] sm:$0xf]  ;;  %v9891_v17 = vpop.eup %8040 }
 0x2fd   :  { %v7389_v1 = vor.u32 %v7765_v29, %v7386_v16  ;;  %v7317_v25 = vor.u32 %v7783_v0, %v7316_v55  ;;  %v1504_v0 = vsel %vm9012_vm2, %v9770_v18, 0.0  ;;  %v1462_v29 = vsub.f32 %v15117_v36, %v9786_v33  ;;  %v7779_v55 = vld [vmem:[#allocation8 + $0x14] sm:$0xf0]  ;;  %v15128_v36 = vld [vmem:[#allocation65_spill] sm:$0xff] }
 0x2fe   :  { %8042 = vpow2.f32 %v1488_v63  ;;  %905 = vadd.xlane.f32.xlu2 %v820_v37  ;;  %7183 = vmatmul.msk.bf16.gmra.mxu1 %vm9874_vm0, %v7182_v38  ;;  %v9896_v63 = vpop.f32.mrf.mxu0  ;;  %v15116_v38 = vld [vmem:[#allocation43_spill] sm:$0xff]  ;;  %v9907_v16 = vpop.permute.xlu0 %1736  ;;  %v1505_v33 = vsel %vm9034_vm4, %v9768_v20, 0.0  ;;  %v823_v20 = vsel %vm9057_vm13, %v9792_v53, 0.0 }
 0x2ff   :  { %2672 = vmatmul.bf16.gmra.mxu0 %v7389_v1  ;;  %8044 = vpow2.f32 %v809_v14  ;;  %1962 = vmatpush.bf16.xpose.msrb.mxu1 %v7317_v25  ;;  %v1463_v37 = vsub.f32 %v15116_v38, %v1438_v30  ;;  %15118 = vst [vmem:[#allocation34_spill] sm:$0xff] %v9907_v16  ;;  %v7312_v1 = vld [vmem:[#allocation8 + $0x8] sm:$0xf]  ;;  %v9942_v41 = vpop.permute.xlu2 %1048 }
 0x300   :  { %2484 = vmatpush.bf16.msrb.mxu3 %v7317_v25  ;;  %8046 = vpow2.f32 %v807_v7  ;;  %v7313_v18 = vor.u32 %v7779_v55, %v7312_v1  ;;  %v1490_v25 = vmul.f32 1.442695, %v1462_v29  ;;  %v15129_v29 = vld [vmem:[#allocation60_spill] sm:$0xff] }
 0x301   :  { %v9889_v26 = vpop.permute.xlu1 %1711  ;;  %v1492_v7 = vmul.f32 1.442695, %v1463_v37  ;;  %v15125_v37 = vmov 0 }
 0x302   :  { %15115 = vst [vmem:[#allocation38_spill] sm:$0xff] %v9889_v26  ;;  %v15133_v26 = vld [vmem:[#allocation46_spill] sm:$0xff] }
 0x303   :  { %8048 = vpow2.f32 %v1492_v7 }
 0x304   :  { %v8043_v45 = vpop.eup %8042  ;;  %909 = vadd.xlane.f32.xlu1 %v822_v34  ;;  %2485 = vmatpush.bf16.msrb.mxu3 %v7313_v18  ;;  %8050 = vpow2.f32 %v1490_v25  ;;  %v15132_v25 = vld [vmem:[#allocation70_spill] sm:$0xff] }
 0x305   :  { %v1509_v62 = vsel %vm9104_vm9, %v8043_v45, 0.0  ;;  %v7270_v14 = vpack.c.bf16 %v8043_v45, %v9891_v17  ;;  %v9911_v30 = vpop.eup %8044  ;;  %v9915_v45 = vld [vmem:[#allocation4 + $0x10] sm:$0xff] }
 0x306   :  { %1590 = vadd.xlane.f32.xlu2 %v1504_v0  ;;  %1600 = vadd.xlane.f32.xlu0 %v1509_v62  ;;  %15120 = vst [vmem:[#allocation41_spill] sm:$0xff] %v9915_v45  ;;  %v8047_v38 = vpop.eup %8046  ;;  %v15121_v0 = vld [vmem:[#allocation36_spill] sm:$0xff]  ;;  %v881_v1 = vmul.f32 %v15129_v29, %v9915_v45  ;;  %v2658_v55 = vpop.f32.mrf.mxu0 }
 0x307   :  { %7271 = vmatmul.msk.bf16.gmra.mxu3 %vm9874_vm0, %v7270_v14  ;;  %vm15122_vm6 = vnez %v15121_v0  ;;  %v15123_v62 = vld [vmem:[#allocation40_spill] sm:$0xff]  ;;  %1963 = vmatpush.bf16.xpose.msrb.mxu1 %v7313_v18  ;;  %v7185_v14 = vpack.c.bf16 %v9911_v30, %v8047_v38  ;;  %v2692_v29 = vmul.f32 0.25, %v2658_v55 }
 0x308   :  { %vm15124_vm0 = vnez %v15123_v62  ;;  %7856 = vmatpush.bf16.msra.mxu3 %v15128_v36  ;;  %v15130_v18 = vld [vmem:[#allocation48_spill] sm:$0xff] }
 0x309   :  { %vm9924_vm10 = vmpackc.low %vm15124_vm0, %vm15122_vm6  ;;  %v782_v7 = vsub.f32 %v15130_v18, %v9848_v61  ;;  %v9947_v61 = vpop.eup %8048 }
 0x30a   :  { %v9913_v34 = vpop.permute.xlu1 %1038  ;;  %v15126_v37 = vsel %vm9924_vm10, 4294967295, %v15125_v37 }
 0x30b   :  { %15119 = vst [vmem:[#allocation37_spill] sm:$0xff] %v9913_v34 }
 0x30c   :  { %15127 = vst [vmem:[#allocation31_spill] sm:$0xff] %v15126_v37  ;;  %1592 = vadd.xlane.f32.xlu1 %v1505_v33  ;;  %v827_v33 = vsel %vm15122_vm6, %v8047_v38, 0.0  ;;  %7857 = vmatpush.bf16.msra.mxu3 %v15132_v25 }
 0x30e   :  { %911 = vadd.xlane.f32.xlu2 %v823_v20  ;;  %7186 = vmatmul.msk.bf16.gmra.mxu1 %vm9924_vm10, %v7185_v14  ;;  %v900_v16 = vpop.xlane.xlu0 %899  ;;  %v813_v20 = vmul.f32 1.442695, %v782_v7  ;;  %v15136_v7 = vld [vmem:[#allocation62_spill] sm:$0xff] }
 0x30f   :  { %7848 = vmatpush.bf16.xpose.msra.mxu1 %v15128_v36  ;;  %919 = vadd.xlane.f32.xlu0 %v827_v33  ;;  %v929_v53 = vadd.f32 %v900_v16, %v881_v1  ;;  %v1739_v36 = vmul.f32 %v9643_v11, %v1643_v9  ;;  %v825_v16 = vsel %vm9083_vm15, %v9861_v51, 0.0  ;;  %v9953_v1 = vpop.eup %8050  ;;  %v9957_v11 = vsel %vm8978_vm12, %v2692_v29, -1e+30  ;;  %v9959_v9 = vld [vmem:[#allocation4] sm:$0xff]  ;;  %v1644_v29 = vld [vmem:[#allocation2 + $0x168] sm:$0xff] }
 0x310   :  { %15134 = vst [vmem:[#allocation35_spill] sm:$0xff] %v9957_v11  ;;  %v1564_v51 = vmul.f32 %v15136_v7, %v9915_v45  ;;  %v7273_v33 = vpack.c.bf16 %v9947_v61, %v9953_v1  ;;  %8052 = vpow2.f32 %v813_v20  ;;  %v964_v7 = vld [vmem:[#allocation2 + $0xe0] sm:$0xff]  ;;  %v2689_v20 = vmul.f32 0.25, %v9812_v35 }
 0x311   :  { %946 = vst.msk [vmem:[#allocation4 + $0x10] sm:$0xff] %vm15131_vm8, %v929_v53  ;;  %v15137_v53 = vld [vmem:[#allocation77_spill] sm:$0xff]  ;;  %vm15140_vm8 = vcmask 15368   ;;  %vm15143_vm12 = vcmask 7168   ;;  %v1060_v35 = vmul.f32 %v9636_v12, %v964_v7  ;;  %v15150_v12 = vmov 0 }
 0x312   :  { %v1772_v18 = vpop.f32.mrf.mxu3  ;;  %v760_v14 = vpop.permute.xlu1 %759  ;;  %15135 = vst [vmem:[#allocation39_spill] sm:$0xff] %v9959_v9  ;;  %7858 = vmatpush.bf16.msra.mxu3 %v15137_v53  ;;  %v1645_v7 = vld [vmem:[#allocation2 + $0x110] sm:$0xff] }
 0x313   :  { %v1812_v34 = vadd.f32 %v1772_v18, %v1739_v36  ;;  %v781_v38 = vsub.f32 %v15133_v26, %v760_v14  ;;  %v1507_v26 = vsel %vm9062_vm14, %v9814_v4, 0.0  ;;  %v15139_v4 = vld [vmem:[#allocation68_spill] sm:$0xff] }
 0x314   :  { %915 = vadd.xlane.f32.xlu1 %v825_v16  ;;  %v879_v14 = vmul.f32 %v15139_v4, %v9959_v9  ;;  %v1740_v16 = vmul.f32 %v9595_v43, %v1644_v29  ;;  %v1508_v43 = vsel %vm9083_vm15, %v9891_v17, 0.0  ;;  %v15144_v29 = vld [vmem:[#allocation58_spill] sm:$0xff] }
 0x315   :  { %1828 = vst [vmem:[#allocation2 + $0x1b0] sm:$0xff] %v1812_v34  ;;  %v811_v55 = vmul.f32 1.442695, %v781_v38 }
 0x316   :  { %1596 = vadd.xlane.f32.xlu2 %v1507_v26  ;;  %v1583_v36 = vpop.xlane.xlu0 %1582 }
 0x317   :  { %7849 = vmatpush.bf16.xpose.msra.mxu1 %v15132_v25  ;;  %v15138_v25 = vld [vmem:[#allocation49_spill] sm:$0xff]  ;;  %8054 = vpow2.f32 %v811_v55  ;;  %2728 = vmax.xlane.f32.xlu0 %v9957_v11  ;;  %v1612_v18 = vadd.f32 %v1583_v36, %v1564_v51  ;;  %v1741_v11 = vmul.f32 %v9618_v13, %v1645_v7  ;;  %v826_v13 = vsel %vm9104_vm9, %v9864_v10, 0.0  ;;  %v15155_v7 = vld [vmem:[#allocation88_spill] sm:$0xff] }
 0x318   :  { %v1465_v34 = vsub.f32 %v15138_v25, %v9878_v23  ;;  %7274 = vmatmul.msk.bf16.gmra.mxu3 %vm9924_vm10, %v7273_v33  ;;  %v896_v38 = vpop.xlane.xlu2 %895  ;;  %v15141_v23 = vld [vmem:[#allocation79_spill] sm:$0xff]  ;;  %v9981_v25 = vld [vmem:[#allocation4 + $0x28] sm:$0xff]  ;;  %v9987_v33 = vpop.eup %8052  ;;  %vm15165_vm10 = vcmask 15368  }
 0x319   :  { %1629 = vst.msk [vmem:[#allocation4 + $0x10] sm:$0xff] %vm15140_vm8, %v1612_v18  ;;  %v927_v26 = vadd.f32 %v896_v38, %v879_v14  ;;  %7859 = vmatpush.bf16.msra.mxu3 %v15141_v23  ;;  %v9996_v38 = vsel %vm8944_vm7, %v2689_v20, -1e+30  ;;  %v7280_v10 = vld [vmem:[#allocation11 + $0x8] sm:$0xf] }
 0x31a   :  { %v1774_v55 = vpop.f32.mrf.mxu3  ;;  %15142 = vst [vmem:[#allocation43_spill] sm:$0xff] %v9981_v25  ;;  %v1496_v51 = vmul.f32 1.442695, %v1465_v34 }
 0x31b   :  { %944 = vst.msk [vmem:[#allocation4] sm:$0xff] %vm15143_vm12, %v927_v26  ;;  %v1813_v36 = vadd.f32 %v1774_v55, %v1740_v16  ;;  %v1443_v4 = vpop.permute.xlu1 %1442  ;;  %v15146_v16 = vld [vmem:[#allocation78_spill] sm:$0xff]  ;;  %v15147_v26 = vld [vmem:[#allocation45_spill] sm:$0xff]  ;;  %v15148_v55 = vld [vmem:[#allocation47_spill] sm:$0xff] }
 0x31c   :  { %v1464_v18 = vsub.f32 %v15144_v29, %v1443_v4  ;;  %1598 = vadd.xlane.f32.xlu1 %v1508_v43  ;;  %15145 = vst [vmem:[#allocation42_spill] sm:$0xff] %v9996_v38  ;;  %v1567_v17 = vmul.f32 %v15146_v16, %v9981_v25  ;;  %vm15149_vm12 = vnez %v15148_v55  ;;  %8056 = vpow2.f32 %v1496_v51 }
 0x31d   :  { %v9992_v14 = vpop.eup %8054  ;;  %1829 = vst [vmem:[#allocation2 + $0x168] sm:$0xff] %v1813_v36  ;;  %v1099_v34 = vpop.f32.mrf.mxu1  ;;  %vm10004_vm8 = vmpackc.low %vm15149_vm12, %vm9152_vm5  ;;  %v2688_v29 = vmul.f32 0.25, %v9789_v5 }
 0x31e   :  { %v15151_v12 = vsel %vm10004_vm8, 4294967295, %v15150_v12  ;;  %v1494_v36 = vmul.f32 1.442695, %v1464_v18  ;;  %v1133_v4 = vadd.f32 %v1099_v34, %v1060_v35  ;;  %2722 = vmax.xlane.f32.xlu2 %v9996_v38  ;;  %v1589_v20 = vpop.xlane.xlu0 %1588  ;;  %v7188_v43 = vpack.c.bf16 %v9987_v33, %v9992_v14  ;;  %v965_v18 = vld [vmem:[#allocation2 + $0x80] sm:$0xff]  ;;  %v15153_v35 = vld [vmem:[#allocation86_spill] sm:$0xff] }
 0x31f   :  { %7850 = vmatpush.bf16.xpose.msra.mxu1 %v15137_v53  ;;  %v15152_v53 = vld [vmem:[#allocation84_spill] sm:$0xff]  ;;  %v10013_v16 = vadd.f32 %v1589_v20, %v1567_v17  ;;  %v10021_v37 = vsel %vm8926_vm3, %v2688_v29, -1e+30  ;;  %v1061_v5 = vmul.f32 %v9662_v21, %v965_v18  ;;  %v15157_v18 = vld [vmem:[#allocation90_spill] sm:$0xff] }
 0x320   :  { %7860 = vmatpush.bf16.msra.mxu3 %v15152_v53  ;;  %8058 = vpow2.f32 %v1494_v36  ;;  %1149 = vst [vmem:[#allocation2 + $0xe0] sm:$0xff] %v1133_v4  ;;  %7189 = vmatmul.msk.bf16.gmra.mxu1 %vm10004_vm8, %v7188_v43  ;;  %v1646_v36 = vld [vmem:[#allocation2 + $0x150] sm:$0xff]  ;;  %v7747_v43 = vld [vmem:[#allocation11 + $0x14] sm:$0xf0] }
 0x321   :  { %15154 = vst [vmem:[#allocation36_spill] sm:$0xff] %v10021_v37 }
 0x322   :  { %v1777_v34 = vpop.f32.mrf.mxu3  ;;  %v10026_v51 = vpop.eup %8056 }
 0x323   :  { %v1814_v38 = vadd.f32 %v1777_v34, %v1741_v11 }
 0x324   :  { %7861 = vmatpush.bf16.msra.mxu3 %v15153_v35  ;;  %2720 = vmax.xlane.f32.xlu1 %v10021_v37 }
 0x325   :  { %1830 = vst [vmem:[#allocation2 + $0x110] sm:$0xff] %v1814_v38  ;;  %v1101_v17 = vpop.f32.mrf.mxu1  ;;  %v10038_v38 = vld [vmem:[#allocation4 + $0x30] sm:$0xff] }
 0x326   :  { %v8059_v11 = vpop.eup %8058  ;;  %v1134_v4 = vadd.f32 %v1101_v17, %v1061_v5  ;;  %917 = vadd.xlane.f32.xlu2 %v826_v13  ;;  %15156 = vst [vmem:[#allocation40_spill] sm:$0xff] %v10038_v38  ;;  %v828_v5 = vsel %vm15124_vm0, %v9911_v30, 0.0  ;;  %v885_v17 = vmul.f32 %v9549_v24, %v10038_v38  ;;  %v830_v30 = vsel %vm15149_vm12, %v9987_v33, 0.0 }
 0x327   :  { %7851 = vmatpush.bf16.xpose.msra.mxu1 %v15141_v23  ;;  %v1512_v21 = vsel %vm9152_vm5, %v8059_v11, 0.0  ;;  %v7276_v20 = vpack.c.bf16 %v10026_v51, %v8059_v11  ;;  %v1742_v23 = vmul.f32 %v9624_v54, %v1646_v36  ;;  %v7281_v54 = vor.u32 %v7747_v43, %v7280_v10  ;;  %v2660_v36 = vpop.f32.mrf.mxu0 }
 0x328   :  { %7862 = vmatpush.bf16.msra.mxu3 %v15155_v7  ;;  %1150 = vst [vmem:[#allocation2 + $0x80] sm:$0xff] %v1134_v4  ;;  %1606 = vadd.xlane.f32.xlu0 %v1512_v21  ;;  %v1510_v11 = vsel %vm15122_vm6, %v9953_v1, 0.0  ;;  %v1647_v21 = vld [vmem:[#allocation2 + $0x188] sm:$0xff]  ;;  %v829_v33 = vsel %vm9152_vm5, %v9992_v14, 0.0  ;;  %v2691_v43 = vmul.f32 0.25, %v9896_v63  ;;  %v967_v14 = vld [vmem:[#allocation2 + $0x1e0] sm:$0xff] }
 0x329   :  { %7277 = vmatmul.msk.bf16.gmra.mxu3 %vm10004_vm8, %v7276_v20  ;;  %vm15158_vm8 = vcmask 7168   ;;  %v1743_v24 = vmul.f32 %v9731_v3, %v1647_v21  ;;  %v966_v20 = vld [vmem:[#allocation2 + $0x1e8] sm:$0xff] }
 0x32a   :  { %v1779_v29 = vpop.f32.mrf.mxu3  ;;  %v1062_v10 = vmul.f32 %v9766_v22, %v966_v20  ;;  %vm15170_vm5 = vmmov %vm15158_vm8 }
 0x32b   :  { %v1815_v34 = vadd.f32 %v1779_v29, %v1742_v23  ;;  %v1648_v29 = vld [vmem:[#allocation2 + $0x1a8] sm:$0xff] }
 0x32c   :  { %7863 = vmatpush.bf16.msra.mxu3 %v15157_v18  ;;  %921 = vadd.xlane.f32.xlu1 %v828_v5  ;;  %v908_v13 = vpop.xlane.xlu0 %907  ;;  %v7284_v5 = vld [vmem:[#allocation11 + $0x28] sm:$0xf] }
 0x32d   :  { %1831 = vst [vmem:[#allocation2 + $0x150] sm:$0xff] %v1815_v34  ;;  %v933_v4 = vadd.f32 %v908_v13, %v885_v17  ;;  %v7751_v17 = vld [vmem:[#allocation11 + $0x34] sm:$0xf0] }
 0x32e   :  { %1602 = vadd.xlane.f32.xlu2 %v1510_v11  ;;  %v7285_v13 = vor.u32 %v7751_v17, %v7284_v5  ;;  %v1513_v11 = vsel %vm15149_vm12, %v10026_v51, 0.0  ;;  %v10101_v17 = vpop.permute.xlu2 %1731 }
 0x32f   :  { %7852 = vmatpush.bf16.xpose.msra.mxu1 %v15152_v53  ;;  %950 = vst.msk [vmem:[#allocation4 + $0x30] sm:$0xff] %vm15158_vm8, %v933_v4  ;;  %v1511_v53 = vsel %vm15124_vm0, %v9947_v61, 0.0  ;;  %v2663_v3 = vpop.f32.mrf.mxu0  ;;  %v2693_v4 = vmul.f32 0.25, %v2660_v36  ;;  %v7288_v36 = vld [vmem:[#allocation11 + $0x48] sm:$0xf] }
 0x330   :  { %1964 = vmatmul.bf16.vlgmr.msrb.gmra.mxu1 %v7281_v54  ;;  %925 = vadd.xlane.f32.xlu0 %v830_v30  ;;  %v1744_v54 = vmul.f32 %v9709_v8, %v1648_v29  ;;  %v1063_v8 = vmul.f32 %v9668_v48, %v967_v14  ;;  %v2694_v30 = vmul.f32 0.25, %v2663_v3  ;;  %v10085_v48 = vpop.permute.xlu1 %1726  ;;  %v968_v14 = vld [vmem:[#allocation2 + $0x148] sm:$0xff] }
 0x331   :  { %v10077_v20 = vsel %vm9008_vm1, %v2693_v4, -1e+30 }
 0x332   :  { %15159 = vst [vmem:[#allocation65_spill] sm:$0xff] %v10077_v20 }
 0x334   :  { %1604 = vadd.xlane.f32.xlu1 %v1511_v53  ;;  %v1782_v1 = vpop.f32.mrf.mxu3 }
 0x335   :  { %v1816_v23 = vadd.f32 %v1782_v1, %v1743_v24  ;;  %v7755_v1 = vld [vmem:[#allocation11 + $0x54] sm:$0xf0] }
 0x336   :  { %923 = vadd.xlane.f32.xlu2 %v829_v33  ;;  %v1649_v33 = vld [vmem:[#allocation2 + $0xf8] sm:$0xff]  ;;  %v7289_v3 = vor.u32 %v7755_v1, %v7288_v36 }
 0x337   :  { %7853 = vmatpush.bf16.xpose.msra.mxu1 %v15153_v35  ;;  %1832 = vst [vmem:[#allocation2 + $0x188] sm:$0xff] %v1816_v23  ;;  %v1104_v34 = vpop.f32.mrf.mxu1  ;;  %v10067_v35 = vsel %vm8974_vm11, %v2691_v43, -1e+30  ;;  %v2665_v53 = vpop.f32.mrf.mxu0  ;;  %v1745_v29 = vmul.f32 %v9657_v44, %v1649_v33 }
 0x338   :  { %v1135_v61 = vadd.f32 %v1104_v34, %v1062_v10  ;;  %v2695_v51 = vmul.f32 0.25, %v2665_v53  ;;  %v15163_v53 = vld [vmem:[#allocation75_spill] sm:$0xff] }
 0x33a   :  { %1151 = vst [vmem:[#allocation2 + $0x1e8] sm:$0xff] %v1135_v61  ;;  %v10090_v43 = vsel %vm9034_vm4, %v2695_v51, -1e+30  ;;  %v10099_v61 = vpop.permute.xlu1 %1053  ;;  %v1562_v51 = vmul.f32 %v15163_v53, %v9959_v9 }
 0x33c   :  { %2726 = vmax.xlane.f32.xlu1 %v10067_v35  ;;  %v1784_v22 = vpop.f32.mrf.mxu3 }
 0x33d   :  { %v1817_v63 = vadd.f32 %v1784_v22, %v1744_v54  ;;  %v1650_v54 = vld [vmem:[#allocation2] sm:$0xff] }
 0x33e   :  { %1608 = vadd.xlane.f32.xlu2 %v1513_v11  ;;  %v1746_v22 = vmul.f32 %v9810_v46, %v1650_v54  ;;  %v15162_v11 = vld [vmem:[#allocation54_spill] sm:$0xff]  ;;  %v7292_v46 = vld [vmem:[#allocation11 + $0x68] sm:$0xf] }
 0x33f   :  { %7854 = vmatpush.bf16.xpose.msra.mxu1 %v15155_v7  ;;  %1833 = vst [vmem:[#allocation2 + $0x1a8] sm:$0xff] %v1817_v63  ;;  %v1106_v21 = vpop.f32.mrf.mxu1  ;;  %v10081_v7 = vsel %vm9012_vm2, %v2694_v30, -1e+30 }
 0x340   :  { %1969 = vmatmul.bf16.gmra.mxu1 %v7285_v13  ;;  %v1136_v24 = vadd.f32 %v1106_v21, %v1063_v8  ;;  %v10104_v13 = vld [vmem:[#allocation4 + $0x8] sm:$0xff]  ;;  %v1064_v21 = vmul.f32 %v9753_v40, %v968_v14  ;;  %v15166_v40 = vld [vmem:[#allocation57_spill] sm:$0xff] }
 0x341   :  { %15161 = vst [vmem:[#allocation48_spill] sm:$0xff] %v10104_v13  ;;  %v880_v44 = vmul.f32 %v15162_v11, %v10104_v13 }
 0x342   :  { %1152 = vst [vmem:[#allocation2 + $0x1e0] sm:$0xff] %v1136_v24  ;;  %v2668_v23 = vpop.f32.mrf.mxu0 }
 0x343   :  { %v2696_v10 = vmul.f32 0.25, %v2668_v23  ;;  %v7759_v23 = vld [vmem:[#allocation11 + $0x74] sm:$0xf0] }
 0x344   :  { %2730 = vmax.xlane.f32.xlu1 %v10077_v20 }
 0x346   :  { %2732 = vmax.xlane.f32.xlu2 %v10081_v7 }
 0x347   :  { %7855 = vmatpush.bf16.xpose.msra.mxu1 %v15157_v18  ;;  %v10095_v18 = vsel %vm9057_vm13, %v2696_v10, -1e+30 }
 0x348   :  { %15160 = vst [vmem:[#allocation60_spill] sm:$0xff] %v10095_v18 }
 0x34c   :  { %2734 = vmax.xlane.f32.xlu1 %v10090_v43 }
 0x34e   :  { %v1787_v34 = vpop.f32.mrf.mxu3  ;;  %2736 = vmax.xlane.f32.xlu2 %v10095_v18 }
 0x34f   :  { %v1818_v5 = vadd.f32 %v1787_v34, %v1745_v29  ;;  %v7293_v29 = vor.u32 %v7759_v23, %v7292_v46  ;;  %v969_v34 = vld [vmem:[#allocation2 + $0x40] sm:$0xff]  ;;  %v15171_v23 = vld [vmem:[#allocation66_spill] sm:$0xff] }
 0x350   :  { %1974 = vmatmul.bf16.gmra.mxu1 %v7289_v3  ;;  %v10114_v3 = vld [vmem:[#allocation4 + $0x48] sm:$0xff]  ;;  %v1065_v11 = vmul.f32 %v9831_v52, %v969_v34  ;;  %v2670_v52 = vpop.f32.mrf.mxu0 }
 0x351   :  { %1834 = vst [vmem:[#allocation2 + $0xf8] sm:$0xff] %v1818_v5  ;;  %v1563_v5 = vmul.f32 %v15166_v40, %v10104_v13  ;;  %v888_v54 = vmul.f32 %v9616_v19, %v10114_v3  ;;  %v10128_v19 = vld [vmem:[#allocation4 + $0x20] sm:$0xff]  ;;  %v2697_v46 = vmul.f32 0.25, %v2670_v52 }
 0x352   :  { %15164 = vst [vmem:[#allocation70_spill] sm:$0xff] %v10114_v3 }
 0x353   :  { %15169 = vst [vmem:[#allocation62_spill] sm:$0xff] %v10128_v19  ;;  %v10136_v34 = vsel %vm9062_vm14, %v2697_v46, -1e+30 }
 0x354   :  { %15172 = vst [vmem:[#allocation77_spill] sm:$0xff] %v10136_v34  ;;  %2738 = vmax.xlane.f32.xlu0 %v10136_v34 }
 0x356   :  { %v1789_v63 = vpop.f32.mrf.mxu3 }
 0x357   :  { %v1819_v8 = vadd.f32 %v1789_v63, %v1746_v22  ;;  %v898_v4 = vpop.xlane.xlu1 %897  ;;  %v10108_v30 = vpop.xlane.xlu0 %1594  ;;  %v10121_v63 = vld [vmem:[#allocation4 + $0x18] sm:$0xff] }
 0x358   :  { %v928_v24 = vadd.f32 %v898_v4, %v880_v44  ;;  %15167 = vst [vmem:[#allocation46_spill] sm:$0xff] %v10121_v63  ;;  %v15168_v4 = vld [vmem:[#allocation80_spill] sm:$0xff] }
 0x359   :  { %1835 = vst [vmem:[#allocation2] sm:$0xff] %v1819_v8  ;;  %v1579_v36 = vpop.xlane.xlu2 %1578  ;;  %v1109_v1 = vpop.f32.mrf.mxu1 }
 0x35a   :  { %945 = vst.msk [vmem:[#allocation4 + $0x8] sm:$0xff] %vm15158_vm8, %v928_v24  ;;  %v1610_v33 = vadd.f32 %v1579_v36, %v1562_v51  ;;  %v1137_v10 = vadd.f32 %v1109_v1, %v1064_v21  ;;  %v882_v21 = vmul.f32 %v15168_v4, %v10121_v63  ;;  %v1651_v1 = vld [vmem:[#allocation2 + $0x1d0] sm:$0xff] }
 0x35c   :  { %1627 = vst.msk [vmem:[#allocation4] sm:$0xff] %vm15165_vm10, %v1610_v33  ;;  %v883_v33 = vmul.f32 %v15171_v23, %v10128_v19  ;;  %v15175_v23 = vld [vmem:[#allocation74_spill] sm:$0xff] }
 0x35d   :  { %1153 = vst [vmem:[#allocation2 + $0x148] sm:$0xff] %v1137_v10  ;;  %v1747_v10 = vmul.f32 %v9781_v56, %v1651_v1  ;;  %v1652_v56 = vld [vmem:[#allocation2 + $0x1f8] sm:$0xff] }
 0x35f   :  { %v1581_v14 = vpop.xlane.xlu1 %1580  ;;  %v914_v22 = vpop.xlane.xlu0 %913 }
 0x360   :  { %v1611_v44 = vadd.f32 %v1581_v14, %v1563_v5  ;;  %v936_v8 = vadd.f32 %v914_v22, %v888_v54  ;;  %1979 = vmatmul.bf16.gmra.mxu1 %v7293_v29  ;;  %v15173_v5 = vld [vmem:[#allocation61_spill] sm:$0xff] }
 0x361   :  { %v902_v24 = vpop.xlane.xlu2 %901  ;;  %v1111_v53 = vpop.f32.mrf.mxu1  ;;  %v1565_v54 = vmul.f32 %v15173_v5, %v10121_v63  ;;  %v8700_v63 = vmov 2  }
 0x362   :  { %1628 = vst.msk [vmem:[#allocation4 + $0x8] sm:$0xff] %vm15165_vm10, %v1611_v44  ;;  %v930_v51 = vadd.f32 %v902_v24, %v882_v21  ;;  %v1138_v36 = vadd.f32 %v1111_v53, %v1065_v11  ;;  %v7296_v44 = vld [vmem:[#allocation11 + $0x88] sm:$0xf]  ;;  %v14707_v24 = vmov 3   ;;  %v15174_v53 = vld [vmem:[#allocation89_spill] sm:$0xff]  ;;  %7928 = vset.pattern.permute.xlu1 %v8700_v63 }
 0x363   :  { %953 = vst.msk [vmem:[#allocation4 + $0x48] sm:$0xff] %vm15158_vm8, %v936_v8  ;;  %v7763_v8 = vld [vmem:[#allocation11 + $0x94] sm:$0xf0]  ;;  %7925 = vset.pattern.permute.xlu2 %v14707_v24  ;;  %7924 = vset.pattern.permute.xlu0 %v14707_v24  ;;  %vm15176_vm8 = vmmov %vm15165_vm10 }
 0x364   :  { %947 = vst.msk [vmem:[#allocation4 + $0x18] sm:$0xff] %vm15170_vm5, %v930_v51  ;;  %v7297_v21 = vor.u32 %v7763_v8, %v7296_v44  ;;  %v1566_v51 = vmul.f32 %v15174_v53, %v10128_v19  ;;  %v15180_v8 = vld [vmem:[#allocation69_spill] sm:$0xff]  ;;  %v7300_v53 = vld [vmem:[#allocation11 + $0xa8] sm:$0xf] }
 0x365   :  { %1154 = vst [vmem:[#allocation2 + $0x40] sm:$0xff] %v1138_v36  ;;  %v1748_v36 = vmul.f32 %v9733_v60, %v1652_v56  ;;  %v15179_v60 = vld [vmem:[#allocation72_spill] sm:$0xff] }
 0x367   :  { %v904_v29 = vpop.xlane.xlu1 %903  ;;  %v10148_v52 = vpop.xlane.xlu0 %2724 }
 0x368   :  { %v931_v40 = vadd.f32 %v904_v29, %v883_v33  ;;  %v1792_v14 = vpop.f32.mrf.mxu3  ;;  %v884_v33 = vmul.f32 %v15175_v23, %v9981_v25 }
 0x369   :  { %v1585_v22 = vpop.xlane.xlu2 %1584  ;;  %v1820_v11 = vadd.f32 %v1792_v14, %v1747_v10 }
 0x36a   :  { %948 = vst.msk [vmem:[#allocation4 + $0x20] sm:$0xff] %vm15170_vm5, %v931_v40  ;;  %v1613_v4 = vadd.f32 %v1585_v22, %v1565_v54  ;;  %v10153_v54 = vld [vmem:[#allocation4 + $0x38] sm:$0xff]  ;;  %v970_v22 = vld [vmem:[#allocation2 + $0x1a0] sm:$0xff] }
 0x36b   :  { %1836 = vst [vmem:[#allocation2 + $0x1d0] sm:$0xff] %v1820_v11  ;;  %v886_v14 = vmul.f32 %v15179_v60, %v10153_v54 }
 0x36c   :  { %1630 = vst.msk [vmem:[#allocation4 + $0x18] sm:$0xff] %vm15165_vm10, %v1613_v4  ;;  %vm15178_vm10 = vmmov %vm15176_vm8  ;;  %v1568_v4 = vmul.f32 %v15180_v8, %v10038_v38  ;;  %v10225_v38 = vld [vmem:[#allocation4 + $0x68] sm:$0xff] }
 0x36d   :  { %15177 = vst [vmem:[#allocation49_spill] sm:$0xff] %v10153_v54 }
 0x36e   :  { %15209 = vst [vmem:[#allocation90_spill] sm:$0xff] %v10225_v38 }
 0x36f   :  { %v1587_v1 = vpop.xlane.xlu1 %1586 }
 0x370   :  { %v1614_v46 = vadd.f32 %v1587_v1, %v1566_v51  ;;  %v1794_v10 = vpop.f32.mrf.mxu3  ;;  %1984 = vmatmul.bf16.gmra.mxu1 %v7297_v21  ;;  %v7767_v51 = vld [vmem:[#allocation11 + $0xb4] sm:$0xf0] }
 0x371   :  { %v906_v29 = vpop.xlane.xlu2 %905  ;;  %v1821_v40 = vadd.f32 %v1794_v10, %v1748_v36  ;;  %v1066_v36 = vmul.f32 %v9761_v49, %v970_v22  ;;  %v7301_v23 = vor.u32 %v7767_v51, %v7300_v53  ;;  %v1569_v10 = vmul.f32 %v9605_v28, %v10153_v54 }
 0x372   :  { %1631 = vst.msk [vmem:[#allocation4 + $0x20] sm:$0xff] %vm15176_vm8, %v1614_v46  ;;  %v932_v5 = vadd.f32 %v906_v29, %v884_v33  ;;  %vm15181_vm8 = vmmov %vm15170_vm5  ;;  %v10167_v33 = vld [vmem:[#allocation4 + $0x40] sm:$0xff] }
 0x373   :  { %1837 = vst [vmem:[#allocation2 + $0x1f8] sm:$0xff] %v1821_v40  ;;  %v10171_v29 = vld [vmem:[#allocation4 + $0x60] sm:$0xff]  ;;  %v971_v40 = vld [vmem:[#allocation2 + $0x70] sm:$0xff]  ;;  %vm15189_vm13 = vmmov %vm15181_vm8 }
 0x374   :  { %949 = vst.msk [vmem:[#allocation4 + $0x28] sm:$0xff] %vm15170_vm5, %v932_v5  ;;  %vm15182_vm5 = vmmov %vm15178_vm10  ;;  %v1067_v28 = vmul.f32 %v9816_v39, %v971_v40 }
 0x375   :  { %1632 = vst.msk [vmem:[#allocation4 + $0x28] sm:$0xff] %vm15178_vm10, %v10013_v16  ;;  %vm15187_vm10 = vmmov %vm15182_vm5 }
 0x376   :  { %15183 = vst [vmem:[#allocation68_spill] sm:$0xff] %v10167_v33 }
 0x377   :  { %v910_v11 = vpop.xlane.xlu1 %909  ;;  %15184 = vst [vmem:[#allocation79_spill] sm:$0xff] %v10171_v29 }
 0x378   :  { %v934_v44 = vadd.f32 %v910_v11, %v886_v14  ;;  %v15185_v14 = vld [vmem:[#allocation87_spill] sm:$0xff]  ;;  %v15186_v11 = vld [vmem:[#allocation92_spill] sm:$0xff] }
 0x379   :  { %v1591_v56 = vpop.xlane.xlu2 %1590  ;;  %v10162_v21 = vpop.xlane.xlu0 %1600  ;;  %v887_v22 = vmul.f32 %v15185_v14, %v10167_v33 }
 0x37a   :  { %951 = vst.msk [vmem:[#allocation4 + $0x38] sm:$0xff] %vm15181_vm8, %v934_v44  ;;  %v1616_v1 = vadd.f32 %v1591_v56, %v1568_v4  ;;  %v1570_v44 = vmul.f32 %v15186_v11, %v10167_v33  ;;  %v891_v4 = vmul.f32 %v9665_v2, %v10171_v29  ;;  %v15190_v2 = vld [vmem:[#allocation85_spill] sm:$0xff]  ;;  %v15192_v11 = vld [vmem:[#allocation38_spill] sm:$0xff] }
 0x37b   :  { %v1114_v16 = vpop.f32.mrf.mxu1 }
 0x37c   :  { %1633 = vst.msk [vmem:[#allocation4 + $0x30] sm:$0xff] %vm15182_vm5, %v1616_v1  ;;  %v1139_v46 = vadd.f32 %v1114_v16, %v1066_v36  ;;  %v10173_v60 = vpop.f32.mrf.mxu0  ;;  %v1618_v51 = vadd.f32 %v10108_v30, %v1570_v44  ;;  %v10184_v16 = vld [vmem:[#allocation4 + $0x50] sm:$0xff] }
 0x37d   :  { %15188 = vst [vmem:[#allocation58_spill] sm:$0xff] %v10184_v16  ;;  %v889_v39 = vmul.f32 %v15190_v2, %v10184_v16  ;;  %v15196_v2 = vld [vmem:[#allocation52_spill] sm:$0xff] }
 0x37e   :  { %1155 = vst [vmem:[#allocation2 + $0x1a0] sm:$0xff] %v1139_v46 }
 0x37f   :  { %v1593_v5 = vpop.xlane.xlu1 %1592 }
 0x380   :  { %v1617_v49 = vadd.f32 %v1593_v5, %v1569_v10  ;;  %1989 = vmatmul.bf16.gmra.mxu1 %v7301_v23  ;;  %v1653_v23 = vld [vmem:[#allocation2 + $0x1f0] sm:$0xff]  ;;  %v972_v10 = vld [vmem:[#allocation2 + $0xb8] sm:$0xff] }
 0x381   :  { %v912_v8 = vpop.xlane.xlu2 %911  ;;  %v1749_v44 = vmul.f32 %v15192_v11, %v1653_v23 }
 0x382   :  { %1634 = vst.msk [vmem:[#allocation4 + $0x38] sm:$0xff] %vm15187_vm10, %v1617_v49  ;;  %v935_v56 = vadd.f32 %v912_v8, %v887_v22  ;;  %v920_v53 = vpop.xlane.xlu0 %919  ;;  %v15191_v49 = vld [vmem:[#allocation83_spill] sm:$0xff]  ;;  %vm15198_vm10 = vmmov %vm15182_vm5 }
 0x383   :  { %v939_v36 = vadd.f32 %v920_v53, %v891_v4  ;;  %v1116_v1 = vpop.f32.mrf.mxu1  ;;  %v1571_v14 = vmul.f32 %v15191_v49, %v10114_v3  ;;  %v7304_v4 = vld [vmem:[#allocation11 + $0xc8] sm:$0xf] }
 0x384   :  { %952 = vst.msk [vmem:[#allocation4 + $0x40] sm:$0xff] %vm15181_vm8, %v935_v56  ;;  %v1140_v46 = vadd.f32 %v1116_v1, %v1067_v28  ;;  %v2675_v5 = vpop.f32.mrf.mxu0  ;;  %v7771_v28 = vld [vmem:[#allocation11 + $0xd4] sm:$0xf0]  ;;  %v15193_v56 = vld [vmem:[#allocation37_spill] sm:$0xff]  ;;  %v15199_v49 = vld [vmem:[#allocation100_spill] sm:$0xff] }
 0x385   :  { %1635 = vst.msk [vmem:[#allocation4 + $0x40] sm:$0xff] %vm15182_vm5, %v1618_v51  ;;  %v2699_v22 = vmul.f32 0.25, %v2675_v5  ;;  %v1068_v53 = vmul.f32 %v15193_v56, %v972_v10  ;;  %v7305_v10 = vor.u32 %v7771_v28, %v7304_v4 }
 0x386   :  { %956 = vst.msk [vmem:[#allocation4 + $0x60] sm:$0xff] %vm15189_vm13, %v939_v36  ;;  %vm15194_vm13 = vmmov %vm15181_vm8 }
 0x387   :  { %1156 = vst [vmem:[#allocation2 + $0x70] sm:$0xff] %v1140_v46  ;;  %v916_v40 = vpop.xlane.xlu1 %915  ;;  %v10198_v46 = vsel %vm9104_vm9, %v2699_v22, -1e+30  ;;  %v973_v22 = vld [vmem:[#allocation2 + $0x170] sm:$0xff]  ;;  %vm15202_vm8 = vmmov %vm15182_vm5 }
 0x388   :  { %v937_v30 = vadd.f32 %v916_v40, %v889_v39  ;;  %15195 = vst [vmem:[#allocation78_spill] sm:$0xff] %v10198_v46  ;;  %2742 = vmax.xlane.f32.xlu1 %v10198_v46  ;;  %vm15210_vm5 = vmmov %vm15194_vm13 }
 0x389   :  { %v1597_v8 = vpop.xlane.xlu2 %1596 }
 0x38a   :  { %954 = vst.msk [vmem:[#allocation4 + $0x50] sm:$0xff] %vm15194_vm13, %v937_v30  ;;  %v1619_v51 = vadd.f32 %v1597_v8, %v1571_v14  ;;  %v2729_v36 = vpop.xlane.xlu0 %2728  ;;  %v1797_v1 = vpop.f32.mrf.mxu3  ;;  %v1654_v30 = vld [vmem:[#allocation2 + $0x90] sm:$0xff]  ;;  %v1572_v14 = vmul.f32 %v15199_v49, %v10184_v16  ;;  %vm15211_vm13 = vmmov %vm15202_vm8 }
 0x38b   :  { %v10201_v39 = vmax.f32 %v15196_v2, %v2729_v36  ;;  %v1822_v40 = vadd.f32 %v1797_v1, %v1749_v44  ;;  %v1119_v5 = vpop.f32.mrf.mxu1  ;;  %v15200_v44 = vld [vmem:[#allocation28_spill] sm:$0xff]  ;;  %v15201_v1 = vld [vmem:[#allocation29_spill] sm:$0xff] }
 0x38c   :  { %1636 = vst.msk [vmem:[#allocation4 + $0x48] sm:$0xff] %vm15198_vm10, %v1619_v51  ;;  %v1141_v23 = vadd.f32 %v1119_v5, %v1068_v53  ;;  %v1750_v56 = vmul.f32 %v15200_v44, %v1654_v30  ;;  %v1069_v51 = vmul.f32 %v15201_v1, %v973_v22  ;;  %v10213_v5 = vld [vmem:[#allocation4 + $0x58] sm:$0xff]  ;;  %v15206_v30 = vld [vmem:[#allocation96_spill] sm:$0xff]  ;;  %vm15217_vm10 = vmmov %vm15210_vm5 }
 0x38d   :  { %15197 = vst [vmem:[#allocation84_spill] sm:$0xff] %v10201_v39  ;;  %2790 = vperm.xlu2 %7925, %v10201_v39   ;;  %v15207_v44 = vld [vmem:[#allocation30_spill] sm:$0xff] }
 0x38e   :  { %1838 = vst [vmem:[#allocation2 + $0x1f0] sm:$0xff] %v1822_v40  ;;  %v974_v1 = vld [vmem:[#allocation2 + $0x198] sm:$0xff] }
 0x38f   :  { %1157 = vst [vmem:[#allocation2 + $0xb8] sm:$0xff] %v1141_v23  ;;  %v1599_v11 = vpop.xlane.xlu1 %1598  ;;  %v1655_v23 = vld [vmem:[#allocation2 + $0x88] sm:$0xff] }
 0x390   :  { %v1620_v8 = vadd.f32 %v1599_v11, %v1572_v14  ;;  %1994 = vmatmul.bf16.gmra.mxu1 %v7305_v10  ;;  %15203 = vst [vmem:[#allocation86_spill] sm:$0xff] %v10213_v5  ;;  %v15204_v14 = vld [vmem:[#allocation44_spill] sm:$0xff]  ;;  %v890_v11 = vmul.f32 %v15206_v30, %v10213_v5  ;;  %v1751_v22 = vmul.f32 %v15207_v44, %v1655_v23 }
 0x391   :  { %v10209_v36 = vpop.xlane.xlu2 %2722  ;;  %v1070_v30 = vmul.f32 %v9942_v41, %v974_v1 }
 0x392   :  { %1637 = vst.msk [vmem:[#allocation4 + $0x50] sm:$0xff] %vm15202_vm8, %v1620_v8  ;;  %v1799_v4 = vpop.f32.mrf.mxu3  ;;  %v15208_v8 = vld [vmem:[#allocation97_spill] sm:$0xff] }
 0x393   :  { %v1823_v28 = vadd.f32 %v1799_v4, %v1750_v56  ;;  %v1121_v53 = vpop.f32.mrf.mxu1  ;;  %v1573_v56 = vmul.f32 %v15208_v8, %v10213_v5  ;;  %v1656_v8 = vld [vmem:[#allocation2 + $0x178] sm:$0xff] }
 0x394   :  { %v1142_v40 = vadd.f32 %v1121_v53, %v1069_v51  ;;  %v7308_v51 = vld [vmem:[#allocation11 + $0xe8] sm:$0xf]  ;;  %v7775_v53 = vld [vmem:[#allocation11 + $0xf4] sm:$0xf0] }
 0x395   :  { %1839 = vst [vmem:[#allocation2 + $0x90] sm:$0xff] %v1823_v28  ;;  %v7309_v23 = vor.u32 %v7775_v53, %v7308_v51  ;;  %v1752_v51 = vmul.f32 %v10085_v48, %v1656_v8  ;;  %v975_v53 = vld [vmem:[#allocation2 + $0x158] sm:$0xff]  ;;  %7926 = vset.pattern.permute.xlu2 %v8700_v63 }
 0x396   :  { %1158 = vst [vmem:[#allocation2 + $0x170] sm:$0xff] %v1142_v40  ;;  %v1621_v40 = vadd.f32 %v10162_v21, %v1573_v56  ;;  %v10232_v21 = vld [vmem:[#allocation4 + $0x78] sm:$0xff] }
 0x397   :  { %v2721_v49 = vpop.xlane.xlu1 %2720  ;;  %15213 = vst [vmem:[#allocation54_spill] sm:$0xff] %v10232_v21 }
 0x398   :  { %v10216_v10 = vmax.f32 %v15204_v14, %v2721_v49 }
 0x399   :  { %v918_v4 = vpop.xlane.xlu2 %917 }
 0x39a   :  { %15205 = vst [vmem:[#allocation88_spill] sm:$0xff] %v10216_v10  ;;  %v938_v24 = vadd.f32 %v918_v4, %v890_v11  ;;  %2770 = vperm.xlu0 %7924, %v10216_v10   ;;  %v15212_v4 = vld [vmem:[#allocation94_spill] sm:$0xff] }
 0x39b   :  { %v1802_v28 = vpop.f32.mrf.mxu3  ;;  %v1607_v3 = vpop.xlane.xlu0 %1606  ;;  %v892_v5 = vmul.f32 %v15212_v4, %v10225_v38  ;;  %v15220_v4 = vld [vmem:[#allocation102_spill] sm:$0xff] }
 0x39c   :  { %v1824_v49 = vadd.f32 %v1802_v28, %v1751_v22  ;;  %955 = vst.msk [vmem:[#allocation4 + $0x58] sm:$0xff] %vm15210_vm5, %v938_v24  ;;  %v15214_v22 = vld [vmem:[#allocation50_spill] sm:$0xff]  ;;  %v15216_v24 = vld [vmem:[#allocation93_spill] sm:$0xff] }
 0x39d   :  { %1638 = vst.msk [vmem:[#allocation4 + $0x58] sm:$0xff] %vm15211_vm13, %v1621_v40  ;;  %v1124_v44 = vpop.f32.mrf.mxu1  ;;  %v10236_v56 = vmax.f32 %v15214_v22, %v10148_v52  ;;  %v1574_v1 = vmul.f32 %v15216_v24, %v10171_v29  ;;  %vm15223_vm13 = vmmov %vm15202_vm8  ;;  %v15236_v29 = vld [vmem:[#allocation59_spill] sm:$0xff] }
 0x39e   :  { %1840 = vst [vmem:[#allocation2 + $0x88] sm:$0xff] %v1824_v49  ;;  %v1143_v11 = vadd.f32 %v1124_v44, %v1070_v30  ;;  %v15218_v30 = vld [vmem:[#allocation104_spill] sm:$0xff] }
 0x39f   :  { %v922_v33 = vpop.xlane.xlu1 %921  ;;  %15215 = vst [vmem:[#allocation75_spill] sm:$0xff] %v10236_v56  ;;  %v894_v52 = vmul.f32 %v15218_v30, %v10232_v21 }
 0x3a0   :  { %1159 = vst [vmem:[#allocation2 + $0x198] sm:$0xff] %v1143_v11  ;;  %v940_v41 = vadd.f32 %v922_v33, %v892_v5  ;;  %1999 = vmatmul.bf16.gmra.mxu1 %v7309_v23  ;;  %v1071_v33 = vmul.f32 %v10099_v61, %v975_v53  ;;  %v10247_v23 = vld [vmem:[#allocation4 + $0x70] sm:$0xff] }
 0x3a1   :  { %v1603_v28 = vpop.xlane.xlu2 %1602  ;;  %15219 = vst [vmem:[#allocation57_spill] sm:$0xff] %v10247_v23  ;;  %v15222_v53 = vld [vmem:[#allocation105_spill] sm:$0xff] }
 0x3a2   :  { %957 = vst.msk [vmem:[#allocation4 + $0x68] sm:$0xff] %vm15217_vm10, %v940_v41  ;;  %v1622_v40 = vadd.f32 %v1603_v28, %v1574_v1  ;;  %2780 = vperm.xlu0 %7924, %v10236_v56   ;;  %v1575_v41 = vmul.f32 %v15220_v4, %v10225_v38  ;;  %v1657_v1 = vld [vmem:[#allocation2 + $0x38] sm:$0xff]  ;;  %v15221_v28 = vld [vmem:[#allocation99_spill] sm:$0xff]  ;;  %vm15224_vm10 = vmmov %vm15210_vm5 }
 0x3a3   :  { %v1804_v49 = vpop.f32.mrf.mxu3  ;;  %v926_v11 = vpop.xlane.xlu0 %925  ;;  %v893_v61 = vmul.f32 %v15221_v28, %v10247_v23 }
 0x3a4   :  { %v1825_v44 = vadd.f32 %v1804_v49, %v1752_v51  ;;  %1639 = vst.msk [vmem:[#allocation4 + $0x60] sm:$0xff] %vm15202_vm8, %v1622_v40  ;;  %v942_v5 = vadd.f32 %v926_v11, %v894_v52  ;;  %v1576_v40 = vmul.f32 %v15222_v53, %v10247_v23  ;;  %v1753_v52 = vmul.f32 %v10101_v17, %v1657_v1 }
 0x3a5   :  { %v1126_v48 = vpop.f32.mrf.mxu1 }
 0x3a6   :  { %1841 = vst [vmem:[#allocation2 + $0x178] sm:$0xff] %v1825_v44  ;;  %v1144_v8 = vadd.f32 %v1126_v48, %v1071_v33  ;;  %v1624_v44 = vadd.f32 %v1607_v3, %v1576_v40 }
 0x3a7   :  { %959 = vst.msk [vmem:[#allocation4 + $0x78] sm:$0xff] %vm15210_vm5, %v942_v5  ;;  %v1605_v24 = vpop.xlane.xlu1 %1604  ;;  %vm15230_vm5 = vmmov %vm15202_vm8 }
 0x3a8   :  { %1160 = vst [vmem:[#allocation2 + $0x158] sm:$0xff] %v1144_v8  ;;  %v1623_v51 = vadd.f32 %v1605_v24, %v1575_v41  ;;  %v2698_v8 = vmul.f32 0.25, %v10173_v60  ;;  %v1658_v41 = vld [vmem:[#allocation2 + $0x10] sm:$0xff]  ;;  %v15228_v60 = vld [vmem:[#allocation34_spill] sm:$0xff] }
 0x3a9   :  { %v924_v49 = vpop.xlane.xlu2 %923  ;;  %v15225_v24 = vld [vmem:[#allocation53_spill] sm:$0xff]  ;;  %v1754_v53 = vmul.f32 %v15228_v60, %v1658_v41 }
 0x3aa   :  { %1640 = vst.msk [vmem:[#allocation4 + $0x68] sm:$0xff] %vm15223_vm13, %v1623_v51  ;;  %v941_v30 = vadd.f32 %v924_v49, %v893_v61  ;;  %v15227_v51 = vld [vmem:[#allocation98_spill] sm:$0xff]  ;;  %v10275_v40 = vsel %vm9083_vm15, %v2698_v8, -1e+30  ;;  %vm15233_vm13 = vnez %v14972_v32 }
 0x3ab   :  { %v1577_v17 = vmul.f32 %v15227_v51, %v10232_v21  ;;  %15229 = vst [vmem:[#allocation66_spill] sm:$0xff] %v10275_v40 }
 0x3ac   :  { %958 = vst.msk [vmem:[#allocation4 + $0x70] sm:$0xff] %vm15224_vm10, %v941_v30  ;;  %v1807_v11 = vpop.f32.mrf.mxu3 }
 0x3ad   :  { %1641 = vst.msk [vmem:[#allocation4 + $0x70] sm:$0xff] %vm15202_vm8, %v1624_v44  ;;  %v1826_v33 = vadd.f32 %v1807_v11, %v1753_v52  ;;  %v1965_v5 = vpop.f32.mrf.mxu1  ;;  %vm14784_vm8 = vcmask 23568  }
 0x3ae   :  { %v2005_v48 = vmul.f32 0.25, %v1965_v5 }
 0x3af   :  { %1842 = vst [vmem:[#allocation2 + $0x38] sm:$0xff] %v1826_v33  ;;  %v2727_v4 = vpop.xlane.xlu1 %2726  ;;  %v15231_v33 = vld [vmem:[#allocation55_spill] sm:$0xff] }
 0x3b0   :  { %v10262_v28 = vmax.f32 %v15225_v24, %v2727_v4  ;;  %v10268_v3 = vsel %vm8926_vm3, %v2005_v48, -1e+30 }
 0x3b1   :  { %v1609_v1 = vpop.xlane.xlu2 %1608  ;;  %2037 = vmax.xlane.f32.xlu1 %v10268_v3 }
 0x3b2   :  { %15226 = vst [vmem:[#allocation80_spill] sm:$0xff] %v10262_v28  ;;  %v1625_v61 = vadd.f32 %v1609_v1, %v1577_v17  ;;  %2785 = vperm.xlu0 %7924, %v10262_v28   ;;  %v15351_v31 = vld [vmem:[#allocation66_spill] sm:$0xff] }
 0x3b4   :  { %1642 = vst.msk [vmem:[#allocation4 + $0x78] sm:$0xff] %vm15230_vm5, %v1625_v61  ;;  %v1809_v49 = vpop.f32.mrf.mxu3  ;;  %vm14789_vm5 = vcmask 31768  }
 0x3b5   :  { %v1827_v30 = vadd.f32 %v1809_v49, %v1754_v53  ;;  %v1967_v52 = vpop.f32.mrf.mxu1 }
 0x3b6   :  { %2740 = vmax.xlane.f32.xlu2 %v10275_v40  ;;  %v2006_v44 = vmul.f32 0.25, %v1967_v52 }
 0x3b7   :  { %1843 = vst [vmem:[#allocation2 + $0x10] sm:$0xff] %v1827_v30 }
 0x3b8   :  { %v10284_v48 = vsel %vm8944_vm7, %v2006_v44, -1e+30  ;;  %v15234_v44 = vld [vmem:[#allocation21_spill] sm:$0xff] }
 0x3b9   :  { %v2733_v11 = vpop.xlane.xlu2 %2732  ;;  %vm15235_vm10 = vnez %v15234_v44 }
 0x3ba   :  { %v10280_v5 = vmax.f32 %v15231_v33, %v2733_v11 }
 0x3bc   :  { %15232 = vst [vmem:[#allocation61_spill] sm:$0xff] %v10280_v5  ;;  %2800 = vperm.xlu0 %7924, %v10280_v5  }
 0x3bd   :  { %v1970_v8 = vpop.f32.mrf.mxu1 }
 0x3be   :  { %2039 = vmax.xlane.f32.xlu2 %v10284_v48  ;;  %v2007_v30 = vmul.f32 0.25, %v1970_v8  ;;  %v10313_v8 = vpop.xlane.xlu1 %2730 }
 0x3c0   :  { %v10305_v11 = vsel %vm15235_vm10, %v2007_v30, -1e+30 }
 0x3c1   :  { %v10338_v18 = vpop.xlane.xlu2 %2736 }
 0x3c5   :  { %v1972_v4 = vpop.f32.mrf.mxu1 }
 0x3c6   :  { %v2008_v41 = vmul.f32 0.25, %v1972_v4 }
 0x3c7   :  { %v10329_v40 = vpop.xlane.xlu0 %2738 }
 0x3c8   :  { %v10290_v51 = vsel %vm8974_vm11, %v2008_v41, -1e+30 }
 0x3c9   :  { %2043 = vmax.xlane.f32.xlu1 %v10290_v51 }
 0x3cd   :  { %v1975_v17 = vpop.f32.mrf.mxu1 }
 0x3ce   :  { %v2009_v1 = vmul.f32 0.25, %v1975_v17 }
 0x3d0   :  { %v10295_v61 = vsel %vm15233_vm13, %v2009_v1, -1e+30 }
 0x3d1   :  { %2045 = vmax.xlane.f32.xlu2 %v10295_v61 }
 0x3d5   :  { %v1977_v60 = vpop.f32.mrf.mxu1 }
 0x3d6   :  { %v2010_v57 = vmul.f32 0.25, %v1977_v60 }
 0x3d8   :  { %v10352_v25 = vsel %vm9008_vm1, %v2010_v57, -1e+30 }
 0x3dd   :  { %v1980_v53 = vpop.f32.mrf.mxu1 }
 0x3de   :  { %v2011_v49 = vmul.f32 0.25, %v1980_v53  ;;  %v2735_v53 = vpop.xlane.xlu1 %2734 }
 0x3df   :  { %v10316_v23 = vmax.f32 %v15236_v29, %v2735_v53 }
 0x3e0   :  { %v10300_v52 = vsel %vm9012_vm2, %v2011_v49, -1e+30  ;;  %vm15246_vm2 = vnez %v15147_v26 }
 0x3e1   :  { %2049 = vmax.xlane.f32.xlu1 %v10300_v52  ;;  %15237 = vst [vmem:[#allocation89_spill] sm:$0xff] %v10316_v23 }
 0x3e5   :  { %v1982_v4 = vpop.f32.mrf.mxu1 }
 0x3e6   :  { %v2012_v41 = vmul.f32 0.25, %v1982_v4  ;;  %2041 = vmax.xlane.f32.xlu0 %v10305_v11 }
 0x3e8   :  { %v10310_v17 = vsel %vm9034_vm4, %v2012_v41, -1e+30 }
 0x3e9   :  { %2051 = vmax.xlane.f32.xlu2 %v10310_v17 }
 0x3ed   :  { %v1985_v1 = vpop.f32.mrf.mxu1 }
 0x3f5   :  { %v1987_v49 = vpop.f32.mrf.mxu1 }
 0x3f6   :  { %v2014_v21 = vmul.f32 0.25, %v1987_v49 }
 0x3f8   :  { %v10320_v30 = vsel %vm9062_vm14, %v2014_v21, -1e+30  ;;  %vm15241_vm14 = vnez %v15095_v42 }
 0x3f9   :  { %2055 = vmax.xlane.f32.xlu1 %v10320_v30 }
 0x3fa   :  { %2805 = vperm.xlu0 %7924, %v10316_v23  }
 0x3fd   :  { %v1990_v4 = vpop.f32.mrf.mxu1 }
 0x3fe   :  { %v2015_v41 = vmul.f32 0.25, %v1990_v4 }
 0x400   :  { %v10326_v46 = vsel %vm9083_vm15, %v2015_v41, -1e+30 }
 0x401   :  { %2057 = vmax.xlane.f32.xlu2 %v10326_v46 }
 0x402   :  { %7927 = vset.pattern.permute.xlu0 %v8700_v63 }
 0x405   :  { %v1992_v49 = vpop.f32.mrf.mxu1 }
 0x40c   :  { %v10336_v16 = vpop.permute.xlu0 %2770 }
 0x40d   :  { %v1995_v53 = vpop.f32.mrf.mxu1  ;;  %15238 = vst [vmem:[#allocation74_spill] sm:$0xff] %v10336_v16 }
 0x40e   :  { %v2017_v38 = vmul.f32 0.25, %v1995_v53  ;;  %v10345_v53 = vpop.xlane.xlu1 %2742 }
 0x410   :  { %v10333_v21 = vsel %vm15122_vm6, %v2017_v38, -1e+30 }
 0x411   :  { %2061 = vmax.xlane.f32.xlu1 %v10333_v21 }
 0x414   :  { %v2781_v38 = vpop.permute.xlu0 %2780 }
 0x415   :  { %v1997_v4 = vpop.f32.mrf.mxu1  ;;  %v2850_v20 = vsub.f32 %v15239_v59, %v2781_v38  ;;  %v2013_v59 = vmul.f32 0.25, %v1985_v1 }
 0x416   :  { %v2018_v34 = vmul.f32 0.25, %v1997_v4  ;;  %v10348_v4 = vpop.permute.xlu2 %2790 }
 0x417   :  { %15240 = vst [vmem:[#allocation72_spill] sm:$0xff] %v10348_v4  ;;  %v10369_v1 = vsel %vm15241_vm14, %v2013_v59, -1e+30 }
 0x418   :  { %v10342_v41 = vsel %vm15124_vm0, %v2018_v34, -1e+30  ;;  %v2868_v34 = vmul.f32 1.442695, %v2850_v20 }
 0x419   :  { %2063 = vmax.xlane.f32.xlu2 %v10342_v41 }
 0x41a   :  { %8060 = vpow2.f32 %v2868_v34 }
 0x41d   :  { %v2000_v54 = vpop.f32.mrf.mxu1 }
 0x420   :  { %v10372_v34 = vpop.eup %8060 }
 0x421   :  { %15242 = vst [vmem:[#allocation69_spill] sm:$0xff] %v10372_v34 }
 0x424   :  { %2047 = vmax.xlane.f32.xlu0 %v10352_v25  ;;  %v2038_v37 = vpop.xlane.xlu1 %2037  ;;  %v2786_v16 = vpop.permute.xlu0 %2785 }
 0x425   :  { %v2069_v63 = vmax.f32 %v15204_v14, %v2038_v37  ;;  %v2851_v19 = vsub.f32 %v10067_v35, %v2786_v16  ;;  %v2002_v60 = vpop.f32.mrf.mxu1  ;;  %v7769_v37 = vld [vmem:[#allocation11 + $0xcc] sm:$0xf]  ;;  %v7390_v35 = vld [vmem:[#allocation11 + $0xd8] sm:$0xf0] }
 0x426   :  { %v2020_v13 = vmul.f32 0.25, %v2002_v60  ;;  %v7393_v16 = vor.u32 %v7769_v37, %v7390_v35  ;;  %v7773_v60 = vld [vmem:[#allocation11 + $0xec] sm:$0xf]  ;;  %v15244_v35 = vld [vmem:[#allocation51_spill] sm:$0xff] }
 0x427   :  { %2559 = vst.msk [vmem:[#allocation3] sm:$0xff] %vm14784_vm8, %v2069_v63  ;;  %v2870_v38 = vmul.f32 1.442695, %v2851_v19  ;;  %v2016_v19 = vmul.f32 0.25, %v1992_v49  ;;  %v10385_v49 = vmax.f32 %v15244_v35, %v10209_v36 }
 0x428   :  { %3242 = vst.msk [vmem:[#allocation3] sm:$0xff] %vm14789_vm5, %v10216_v10  ;;  %v10362_v57 = vsel %vm15149_vm12, %v2020_v13, -1e+30  ;;  %2677 = vmatmul.bf16.gmra.mxu0 %v7393_v16  ;;  %v2019_v10 = vmul.f32 0.25, %v2000_v54 }
 0x429   :  { %8062 = vpow2.f32 %v2870_v38  ;;  %v10364_v20 = vpop.xlane.xlu2 %2740  ;;  %2067 = vmax.xlane.f32.xlu1 %v10362_v57  ;;  %v7394_v38 = vld [vmem:[#allocation11 + $0xf8] sm:$0xf0]  ;;  %v10380_v37 = vsel %vm9104_vm9, %v2016_v19, -1e+30  ;;  %15245 = vst [vmem:[#allocation92_spill] sm:$0xff] %v10385_v49 }
 0x42a   :  { %v7397_v59 = vor.u32 %v7773_v60, %v7394_v38 }
 0x42c   :  { %2053 = vmax.xlane.f32.xlu0 %v10369_v1  ;;  %2682 = vmatmul.bf16.vlgmr.msra.gmra.mxu1 %v7397_v59 }
 0x42f   :  { %v10374_v13 = vpop.eup %8062 }
 0x430   :  { %15243 = vst [vmem:[#allocation87_spill] sm:$0xff] %v10374_v13  ;;  %v2801_v13 = vpop.permute.xlu0 %2800 }
 0x431   :  { %v2040_v4 = vpop.xlane.xlu2 %2039  ;;  %2087 = vperm.xlu2 %7926, %v2069_v63  }
 0x432   :  { %v2070_v42 = vmax.f32 %v15244_v35, %v2040_v4  ;;  %v10394_v4 = vsel %vm15246_vm2, %v2019_v10, -1e+30  ;;  %v2229_v10 = vsub.f32 %v15204_v14, %v2069_v63 }
 0x434   :  { %v2230_v16 = vsub.f32 %v15244_v35, %v2070_v42  ;;  %2560 = vst.msk [vmem:[#allocation3 + $0x8] sm:$0xff] %vm14784_vm8, %v2070_v42  ;;  %2059 = vmax.xlane.f32.xlu0 %v10380_v37 }
 0x435   :  { %3243 = vst.msk [vmem:[#allocation3 + $0x8] sm:$0xff] %vm14789_vm5, %v10385_v49 }
 0x436   :  { %v2247_v19 = vmul.f32 1.442695, %v2230_v16 }
 0x438   :  { %8064 = vpow2.f32 %v2247_v19 }
 0x43c   :  { %2065 = vmax.xlane.f32.xlu0 %v10394_v4  ;;  %v2044_v36 = vpop.xlane.xlu1 %2043 }
 0x43d   :  { %v2072_v60 = vmax.f32 %v15225_v24, %v2044_v36  ;;  %v2245_v36 = vmul.f32 1.442695, %v2229_v10 }
 0x43e   :  { %v10398_v38 = vpop.eup %8064 }
 0x43f   :  { %2562 = vst.msk [vmem:[#allocation3 + $0x18] sm:$0xff] %vm14784_vm8, %v2072_v60  ;;  %2381 = vperm.xlu2 %7926, %v10398_v38   ;;  %v2232_v35 = vsub.f32 %v15225_v24, %v2072_v60 }
 0x440   :  { %3245 = vst.msk [vmem:[#allocation3 + $0x18] sm:$0xff] %vm14789_vm5, %v10262_v28 }
 0x444   :  { %v2046_v54 = vpop.xlane.xlu2 %2045 }
 0x445   :  { %v2073_v59 = vmax.f32 %v15196_v2, %v2046_v54  ;;  %v2251_v54 = vmul.f32 1.442695, %v2232_v35 }
 0x447   :  { %v2233_v16 = vsub.f32 %v15196_v2, %v2073_v59  ;;  %2563 = vst.msk [vmem:[#allocation3 + $0x20] sm:$0xff] %vm14784_vm8, %v2073_v59  ;;  %2102 = vperm.xlu2 %7926, %v2072_v60  }
 0x448   :  { %3246 = vst.msk [vmem:[#allocation3 + $0x20] sm:$0xff] %vm14789_vm5, %v10201_v39 }
 0x449   :  { %v2253_v19 = vmul.f32 1.442695, %v2233_v16 }
 0x44b   :  { %8066 = vpow2.f32 %v2253_v19 }
 0x44c   :  { %8068 = vpow2.f32 %v2245_v36 }
 0x44d   :  { %8070 = vpow2.f32 %v2251_v54 }
 0x44f   :  { %2107 = vperm.xlu2 %7926, %v2073_v59  }
 0x450   :  { %2092 = vperm.xlu0 %7927, %v2070_v42  }
 0x451   :  { %v10411_v28 = vpop.eup %8066 }
 0x452   :  { %v10413_v2 = vpop.eup %8068 }
 0x453   :  { %v10427_v10 = vpop.eup %8070 }
 0x454   :  { %v2050_v63 = vpop.xlane.xlu1 %2049  ;;  %15247 = vst [vmem:[#allocation85_spill] sm:$0xff] %v10427_v10 }
 0x455   :  { %v10416_v14 = vmax.f32 %v15231_v33, %v2050_v63 }
 0x457   :  { %2565 = vst.msk [vmem:[#allocation3 + $0x30] sm:$0xff] %vm14784_vm8, %v10416_v14  ;;  %2396 = vperm.xlu2 %7926, %v10411_v28  }
 0x458   :  { %3248 = vst.msk [vmem:[#allocation3 + $0x30] sm:$0xff] %vm14789_vm5, %v10280_v5  ;;  %2376 = vperm.xlu0 %7927, %v10413_v2  }
 0x459   :  { %v2042_v42 = vpop.xlane.xlu0 %2041 }
 0x45a   :  { %v2071_v35 = vmax.f32 %v15214_v22, %v2042_v42  ;;  %v2854_v42 = vsub.f32 %v10081_v7, %v2801_v13  ;;  %v15250_v7 = vld [vmem:[#allocation67_spill] sm:$0xff] }
 0x45c   :  { %v2231_v60 = vsub.f32 %v15214_v22, %v2071_v35  ;;  %2561 = vst.msk [vmem:[#allocation3 + $0x10] sm:$0xff] %vm14784_vm8, %v2071_v35  ;;  %2097 = vperm.xlu1 %7928, %v2071_v35   ;;  %v2052_v59 = vpop.xlane.xlu2 %2051 }
 0x45d   :  { %3244 = vst.msk [vmem:[#allocation3 + $0x10] sm:$0xff] %vm14789_vm5, %v10236_v56  ;;  %v10432_v16 = vmax.f32 %v15236_v29, %v2052_v59 }
 0x45e   :  { %v2249_v19 = vmul.f32 1.442695, %v2231_v60  ;;  %v2876_v60 = vmul.f32 1.442695, %v2854_v42 }
 0x45f   :  { %v2236_v36 = vsub.f32 %v15236_v29, %v10432_v16  ;;  %2566 = vst.msk [vmem:[#allocation3 + $0x38] sm:$0xff] %vm14784_vm8, %v10432_v16  ;;  %2117 = vperm.xlu2 %7926, %v10416_v14  }
 0x460   :  { %8072 = vpow2.f32 %v2249_v19  ;;  %3249 = vst.msk [vmem:[#allocation3 + $0x38] sm:$0xff] %vm14789_vm5, %v10316_v23  ;;  %2391 = vperm.xlu0 %7927, %v10427_v10   ;;  %v15249_v23 = vld [vmem:[#allocation64_spill] sm:$0xff] }
 0x461   :  { %v2259_v54 = vmul.f32 1.442695, %v2236_v36  ;;  %v10455_v36 = vmax.f32 %v15249_v23, %v10329_v40 }
 0x463   :  { %8074 = vpow2.f32 %v2259_v54 }
 0x464   :  { %8076 = vpow2.f32 %v2876_v60 }
 0x466   :  { %v10442_v63 = vpop.eup %8072 }
 0x467   :  { %2386 = vperm.xlu1 %7928, %v10442_v63  }
 0x469   :  { %v10446_v35 = vpop.eup %8074 }
 0x46a   :  { %15248 = vst [vmem:[#allocation83_spill] sm:$0xff] %v10446_v35  ;;  %2411 = vperm.xlu2 %7926, %v10446_v35   ;;  %v10469_v40 = vpop.eup %8076 }
 0x46b   :  { %15251 = vst [vmem:[#allocation38_spill] sm:$0xff] %v10469_v40 }
 0x46c   :  { %v2806_v59 = vpop.permute.xlu0 %2805  ;;  %v2056_v19 = vpop.xlane.xlu1 %2055 }
 0x46d   :  { %v2855_v29 = vsub.f32 %v10090_v43, %v2806_v59  ;;  %v10451_v5 = vmax.f32 %v15249_v23, %v2056_v19  ;;  %v10464_v43 = vmax.f32 %v15250_v7, %v10364_v20 }
 0x46f   :  { %v2878_v54 = vmul.f32 1.442695, %v2855_v29  ;;  %2568 = vst.msk [vmem:[#allocation3 + $0x48] sm:$0xff] %vm14784_vm8, %v10451_v5 }
 0x470   :  { %3251 = vst.msk [vmem:[#allocation3 + $0x48] sm:$0xff] %vm14789_vm5, %v10455_v36 }
 0x471   :  { %8078 = vpow2.f32 %v2878_v54 }
 0x472   :  { %2132 = vperm.xlu2 %7926, %v10451_v5  }
 0x474   :  { %v2058_v13 = vpop.xlane.xlu2 %2057 }
 0x475   :  { %v10467_v42 = vmax.f32 %v15250_v7, %v2058_v13  ;;  %v15254_v13 = vld [vmem:[#allocation73_spill] sm:$0xff] }
 0x477   :  { %v10471_v29 = vpop.eup %8078  ;;  %v2239_v60 = vsub.f32 %v15250_v7, %v10467_v42  ;;  %2569 = vst.msk [vmem:[#allocation3 + $0x50] sm:$0xff] %vm14784_vm8, %v10467_v42  ;;  %v15255_v7 = vld [vmem:[#allocation76_spill] sm:$0xff] }
 0x478   :  { %15252 = vst [vmem:[#allocation37_spill] sm:$0xff] %v10471_v29 }
 0x479   :  { %3252 = vst.msk [vmem:[#allocation3 + $0x50] sm:$0xff] %vm14789_vm5, %v10464_v43  ;;  %v2265_v59 = vmul.f32 1.442695, %v2239_v60 }
 0x47b   :  { %8080 = vpow2.f32 %v2265_v59 }
 0x481   :  { %v10481_v19 = vpop.eup %8080 }
 0x482   :  { %15253 = vst [vmem:[#allocation100_spill] sm:$0xff] %v10481_v19  ;;  %2426 = vperm.xlu2 %7926, %v10481_v19  }
 0x484   :  { %v2062_v54 = vpop.xlane.xlu1 %2061 }
 0x485   :  { %v10485_v10 = vmax.f32 %v15254_v13, %v2062_v54  ;;  %v15256_v54 = vld [vmem:[#allocation56_spill] sm:$0xff] }
 0x486   :  { %v10502_v29 = vmax.f32 %v15256_v54, %v10313_v8 }
 0x487   :  { %2571 = vst.msk [vmem:[#allocation3 + $0x60] sm:$0xff] %vm14784_vm8, %v10485_v10 }
 0x488   :  { %15258 = vst [vmem:[#allocation29_spill] sm:$0xff] %v10502_v29 }
 0x48a   :  { %2147 = vperm.xlu2 %7926, %v10485_v10  }
 0x48c   :  { %v2064_v35 = vpop.xlane.xlu2 %2063 }
 0x48d   :  { %v10491_v39 = vmax.f32 %v15255_v7, %v2064_v35  ;;  %v2235_v35 = vsub.f32 %v15231_v33, %v10416_v14 }
 0x48f   :  { %v2242_v60 = vsub.f32 %v15255_v7, %v10491_v39  ;;  %2572 = vst.msk [vmem:[#allocation3 + $0x68] sm:$0xff] %vm14784_vm8, %v10491_v39  ;;  %v2257_v56 = vmul.f32 1.442695, %v2235_v35 }
 0x491   :  { %v2271_v59 = vmul.f32 1.442695, %v2242_v60 }
 0x493   :  { %8082 = vpow2.f32 %v2271_v59  ;;  %v15259_v59 = vld [vmem:[#allocation82_spill] sm:$0xff] }
 0x497   :  { %v2048_v20 = vpop.xlane.xlu0 %2047 }
 0x498   :  { %v2074_v19 = vmax.f32 %v15256_v54, %v2048_v20 }
 0x499   :  { %v10498_v40 = vpop.eup %8082 }
 0x49a   :  { %15257 = vst [vmem:[#allocation28_spill] sm:$0xff] %v10498_v40  ;;  %v2234_v24 = vsub.f32 %v15256_v54, %v2074_v19  ;;  %2112 = vperm.xlu1 %7928, %v2074_v19   ;;  %2441 = vperm.xlu2 %7926, %v10498_v40   ;;  %v15260_v54 = vld [vmem:[#allocation63_spill] sm:$0xff] }
 0x49b   :  { %2564 = vst.msk [vmem:[#allocation3 + $0x28] sm:$0xff] %vm14784_vm8, %v2074_v19  ;;  %v10517_v19 = vmax.f32 %v15260_v54, %v10338_v18 }
 0x49c   :  { %3247 = vst.msk [vmem:[#allocation3 + $0x28] sm:$0xff] %vm14789_vm5, %v10502_v29  ;;  %v2255_v20 = vmul.f32 1.442695, %v2234_v24  ;;  %v2068_v60 = vpop.xlane.xlu1 %2067 }
 0x49d   :  { %v2084_v22 = vmax.f32 %v15259_v59, %v2068_v60  ;;  %15261 = vst [vmem:[#allocation96_spill] sm:$0xff] %v10517_v19  ;;  %v15264_v60 = vld [vmem:[#allocation71_spill] sm:$0xff] }
 0x49e   :  { %8084 = vpow2.f32 %v2255_v20 }
 0x49f   :  { %v2244_v8 = vsub.f32 %v15259_v59, %v2084_v22  ;;  %2574 = vst.msk [vmem:[#allocation3 + $0x78] sm:$0xff] %vm14784_vm8, %v2084_v22  ;;  %v2054_v14 = vpop.xlane.xlu0 %2053  ;;  %8086 = vpow2.f32 %v2257_v56 }
 0x4a0   :  { %v2077_v33 = vmax.f32 %v15260_v54, %v2054_v14 }
 0x4a1   :  { %v2275_v40 = vmul.f32 1.442695, %v2244_v8 }
 0x4a2   :  { %2567 = vst.msk [vmem:[#allocation3 + $0x40] sm:$0xff] %vm14784_vm8, %v2077_v33  ;;  %2122 = vperm.xlu1 %7928, %v10432_v16   ;;  %2162 = vperm.xlu2 %7926, %v2084_v22   ;;  %v2237_v35 = vsub.f32 %v15260_v54, %v2077_v33  ;;  %v10534_v22 = vmax.f32 %v15264_v60, %v10345_v53  ;;  %v15267_v54 = vld [vmem:[#allocation81_spill] sm:$0xff] }
 0x4a3   :  { %8088 = vpow2.f32 %v2275_v40  ;;  %3250 = vst.msk [vmem:[#allocation3 + $0x40] sm:$0xff] %vm14789_vm5, %v10517_v19  ;;  %v2238_v40 = vsub.f32 %v15249_v23, %v10451_v5 }
 0x4a4   :  { %v10523_v24 = vpop.eup %8084  ;;  %15266 = vst [vmem:[#allocation93_spill] sm:$0xff] %v10534_v22  ;;  %v2261_v16 = vmul.f32 1.442695, %v2237_v35  ;;  %v15268_v35 = vmov 3  }
 0x4a5   :  { %15262 = vst [vmem:[#allocation30_spill] sm:$0xff] %v10523_v24  ;;  %2401 = vperm.xlu0 %7927, %v10523_v24   ;;  %v10527_v18 = vpop.eup %8086  ;;  %v2263_v14 = vmul.f32 1.442695, %v2238_v40 }
 0x4a6   :  { %15263 = vst [vmem:[#allocation97_spill] sm:$0xff] %v10527_v18  ;;  %8090 = vpow2.f32 %v2261_v16 }
 0x4a7   :  { %v2060_v20 = vpop.xlane.xlu0 %2059  ;;  %8092 = vpow2.f32 %v2263_v14 }
 0x4a8   :  { %v2080_v56 = vmax.f32 %v15264_v60, %v2060_v20 }
 0x4a9   :  { %v10530_v8 = vpop.eup %8088 }
 0x4aa   :  { %15265 = vst [vmem:[#allocation94_spill] sm:$0xff] %v10530_v8  ;;  %2406 = vperm.xlu1 %7928, %v10527_v18   ;;  %2451 = vperm.xlu2 %7926, %v10530_v8   ;;  %v2240_v5 = vsub.f32 %v15264_v60, %v2080_v56  ;;  %v2088_v18 = vpop.permute.xlu2 %2087 }
 0x4ab   :  { %2570 = vst.msk [vmem:[#allocation3 + $0x58] sm:$0xff] %vm14784_vm8, %v2080_v56  ;;  %v2165_v40 = vsub.f32 %v10268_v3, %v2088_v18  ;;  %v2683_v3 = vpop.f32.mrf.mxu1 }
 0x4ac   :  { %3253 = vst.msk [vmem:[#allocation3 + $0x58] sm:$0xff] %vm14789_vm5, %v10534_v22  ;;  %v10547_v8 = vpop.eup %8090  ;;  %v2267_v16 = vmul.f32 1.442695, %v2240_v5 }
 0x4ad   :  { %2127 = vperm.xlu0 %7927, %v2077_v33   ;;  %15269 = vst [vmem:[#allocation104_spill] sm:$0xff] %v10547_v8  ;;  %v10551_v33 = vpop.eup %8092  ;;  %v2181_v23 = vmul.f32 1.442695, %v2165_v40 }
 0x4ae   :  { %15270 = vst [vmem:[#allocation102_spill] sm:$0xff] %v10551_v33  ;;  %8094 = vpow2.f32 %v2267_v16 }
 0x4af   :  { %v2066_v20 = vpop.xlane.xlu0 %2065 }
 0x4b0   :  { %v2083_v53 = vmax.f32 %v15267_v54, %v2066_v20  ;;  %v2678_v20 = vpop.f32.mrf.mxu0 }
 0x4b2   :  { %2137 = vperm.xlu1 %7928, %v10467_v42   ;;  %2573 = vst.msk [vmem:[#allocation3 + $0x70] sm:$0xff] %vm14784_vm8, %v2083_v53  ;;  %7930 = vset.pattern.permute.xlu2 %v15268_v35  ;;  %v2241_v42 = vsub.f32 %v15254_v13, %v10485_v10  ;;  %v10557_v24 = vpop.permute.xlu2 %2381 }
 0x4b4   :  { %v2269_v14 = vmul.f32 1.442695, %v2241_v42 }
 0x4b5   :  { %2416 = vperm.xlu0 %7927, %v10547_v8   ;;  %v10561_v8 = vpop.eup %8094 }
 0x4b6   :  { %8096 = vpow2.f32 %v2269_v14  ;;  %15271 = vst [vmem:[#allocation99_spill] sm:$0xff] %v10561_v8 }
 0x4b7   :  { %8098 = vpow2.f32 %v2181_v23 }
 0x4b8   :  { %v2680_v16 = vpop.f32.mrf.mxu0 }
 0x4ba   :  { %2421 = vperm.xlu1 %7928, %v10551_v33   ;;  %v2243_v33 = vsub.f32 %v15267_v54, %v2083_v53  ;;  %v2103_v42 = vpop.permute.xlu2 %2102 }
 0x4bc   :  { %v2273_v18 = vmul.f32 1.442695, %v2243_v33 }
 0x4bd   :  { %2142 = vperm.xlu0 %7927, %v2080_v56   ;;  %v10565_v56 = vpop.eup %8096 }
 0x4be   :  { %15272 = vst [vmem:[#allocation105_spill] sm:$0xff] %v10565_v56 }
 0x4c2   :  { %2152 = vperm.xlu1 %7928, %v10491_v39   ;;  %v2093_v60 = vpop.permute.xlu0 %2092  ;;  %v8099_v39 = vpop.eup %8098 }
 0x4c3   :  { %v2166_v5 = vsub.f32 %v10284_v48, %v2093_v60  ;;  %v2701_v48 = vmul.f32 0.25, %v2680_v16 }
 0x4c5   :  { %v2183_v10 = vmul.f32 1.442695, %v2166_v5  ;;  %2431 = vperm.xlu0 %7927, %v10561_v8   ;;  %v2168_v5 = vsub.f32 %v10290_v51, %v2103_v42  ;;  %v10574_v33 = vsel %vm15124_vm0, %v2701_v48, -1e+30  ;;  %v2685_v8 = vpop.f32.mrf.mxu1  ;;  %v15278_v48 = vld [vmem:[#allocation95_spill] sm:$0xff] }
 0x4c6   :  { %15275 = vst [vmem:[#allocation98_spill] sm:$0xff] %v10574_v33  ;;  %vm15279_vm5 = vnez %v15278_v48 }
 0x4c7   :  { %8100 = vpow2.f32 %v2183_v10  ;;  %v15273_v10 = vld [vmem:[#allocation91_spill] sm:$0xff] }
 0x4c8   :  { %8102 = vpow2.f32 %v2273_v18  ;;  %vm15274_vm8 = vnez %v15273_v10  ;;  %v2703_v18 = vmul.f32 0.25, %v2685_v8 }
 0x4ca   :  { %2436 = vperm.xlu1 %7928, %v10565_v56   ;;  %v10583_v51 = vsel %vm15149_vm12, %v2703_v18, -1e+30 }
 0x4cb   :  { %15277 = vst [vmem:[#allocation21_spill] sm:$0xff] %v10583_v51 }
 0x4cd   :  { %v8101_v60 = vpop.eup %8100  ;;  %2157 = vperm.xlu0 %7927, %v2083_v53   ;;  %v2187_v53 = vmul.f32 1.442695, %v2168_v5  ;;  %v2702_v5 = vmul.f32 0.25, %v2683_v3 }
 0x4ce   :  { %v2098_v40 = vpop.permute.xlu1 %2097  ;;  %v7343_v14 = vpack.c.bf16 %v8101_v60, %v8099_v39  ;;  %v10576_v34 = vpop.eup %8102  ;;  %v2214_v18 = vsel %vm8944_vm7, %v8101_v60, 0.0 }
 0x4cf   :  { %v2167_v23 = vsub.f32 %v10305_v11, %v2098_v40  ;;  %15276 = vst [vmem:[#allocation34_spill] sm:$0xff] %v10576_v34 }
 0x4d0   :  { %7344 = vmatmul.msk.bf16.vlgmr.msrb.gmra.mxu3 %vm15274_vm8, %v7343_v14  ;;  %v2213_v14 = vsel %vm8926_vm3, %v8099_v39, 0.0 }
 0x4d1   :  { %v2185_v56 = vmul.f32 1.442695, %v2167_v23 }
 0x4d2   :  { %7929 = vset.pattern.permute.xlu1 %v15268_v35 }
 0x4d3   :  { %2746 = vmax.xlane.f32.xlu2 %v10574_v33  ;;  %8104 = vpow2.f32 %v2185_v56  ;;  %v2108_v56 = vpop.permute.xlu2 %2107 }
 0x4d4   :  { %8106 = vpow2.f32 %v2187_v53  ;;  %v2169_v53 = vsub.f32 %v10295_v61, %v2108_v56 }
 0x4d5   :  { %2446 = vperm.xlu0 %7927, %v10576_v34  }
 0x4d9   :  { %v8105_v11 = vpop.eup %8104  ;;  %v10608_v3 = vpop.permute.xlu1 %2386 }
 0x4da   :  { %v10586_v16 = vpop.eup %8106  ;;  %v2215_v8 = vsel %vm15235_vm10, %v8105_v11, 0.0 }
 0x4db   :  { %2750 = vmax.xlane.f32.xlu2 %v10583_v51  ;;  %v7346_v42 = vpack.c.bf16 %v10586_v16, %v8105_v11  ;;  %v10594_v40 = vpop.permute.xlu2 %2396  ;;  %v2700_v11 = vmul.f32 0.25, %v2678_v20  ;;  %v15282_v51 = vld [vmem:[#allocation101_spill] sm:$0xff] }
 0x4dc   :  { %vm15283_vm12 = vnez %v15282_v51  ;;  %v15332_v51 = vld [vmem:[#allocation67_spill] sm:$0xff] }
 0x4dd   :  { %7931 = vset.pattern.permute.xlu0 %v15268_v35  ;;  %v10600_v35 = vsel %vm15246_vm2, %v2702_v5, -1e+30  ;;  %v10612_v39 = vsel %vm15122_vm6, %v2700_v11, -1e+30 }
 0x4de   :  { %15280 = vst [vmem:[#allocation32_spill] sm:$0xff] %v10600_v35 }
 0x4df   :  { %15281 = vst [vmem:[#allocation73_spill] sm:$0xff] %v10612_v39 }
 0x4e0   :  { %7347 = vmatmul.msk.bf16.gmra.mxu3 %vm15279_vm5, %v7346_v42  ;;  %v2189_v42 = vmul.f32 1.442695, %v2169_v53 }
 0x4e2   :  { %8108 = vpow2.f32 %v2189_v42 }
 0x4e3   :  { %2297 = vadd.xlane.f32.xlu2 %v2215_v8  ;;  %v2118_v23 = vpop.permute.xlu2 %2117 }
 0x4e8   :  { %v8109_v61 = vpop.eup %8108 }
 0x4e9   :  { %v2217_v56 = vsel %vm15233_vm13, %v8109_v61, 0.0 }
 0x4eb   :  { %v10614_v8 = vpop.permute.xlu2 %2411 }
 0x4f4   :  { %2293 = vadd.xlane.f32.xlu1 %v2213_v14  ;;  %v10616_v14 = vpop.permute.xlu0 %2376 }
 0x4fb   :  { %2815 = vperm.xlu2 %7930, %v10455_v36  }
 0x4fc   :  { %2748 = vmax.xlane.f32.xlu1 %v10600_v35  ;;  %v10622_v5 = vpop.permute.xlu0 %2391 }
 0x4ff   :  { %2295 = vadd.xlane.f32.xlu0 %v2214_v18  ;;  %v2133_v18 = vpop.permute.xlu2 %2132 }
 0x503   :  { %2825 = vperm.xlu2 %7930, %v10534_v22  }
 0x507   :  { %2744 = vmax.xlane.f32.xlu0 %v10612_v39  ;;  %v10628_v35 = vpop.permute.xlu2 %2426 }
 0x50c   :  { %v2113_v60 = vpop.permute.xlu1 %2112 }
 0x50d   :  { %v2170_v20 = vsub.f32 %v10352_v25, %v2113_v60  ;;  %v2171_v60 = vsub.f32 %v10300_v52, %v2118_v23  ;;  %v2174_v23 = vsub.f32 %v10320_v30, %v2133_v18 }
 0x50f   :  { %v2191_v53 = vmul.f32 1.442695, %v2170_v20  ;;  %2301 = vadd.xlane.f32.xlu0 %v2217_v56  ;;  %v2193_v56 = vmul.f32 1.442695, %v2171_v60  ;;  %v2148_v39 = vpop.permute.xlu2 %2147  ;;  %v2199_v33 = vmul.f32 1.442695, %v2174_v23 }
 0x511   :  { %8110 = vpow2.f32 %v2191_v53 }
 0x514   :  { %v2123_v11 = vpop.permute.xlu1 %2122 }
 0x515   :  { %2775 = vperm.xlu1 %7929, %v10385_v49   ;;  %v2172_v34 = vsub.f32 %v10310_v17, %v2123_v11 }
 0x517   :  { %v8111_v42 = vpop.eup %8110  ;;  %v10626_v22 = vpop.permute.xlu0 %2401  ;;  %v2195_v20 = vmul.f32 1.442695, %v2172_v34 }
 0x518   :  { %v7349_v25 = vpack.c.bf16 %v8111_v42, %v8109_v61 }
 0x519   :  { %8112 = vpow2.f32 %v2195_v20  ;;  %v15285_v20 = vld [vmem:[#allocation103_spill] sm:$0xff] }
 0x51a   :  { %7350 = vmatmul.msk.bf16.gmra.mxu3 %vm15283_vm12, %v7349_v25  ;;  %8114 = vpow2.f32 %v2193_v56  ;;  %v10643_v25 = vpop.permute.xlu2 %2441  ;;  %vm15286_vm3 = vnez %v15285_v20 }
 0x51b   :  { %15284 = vst [vmem:[#allocation76_spill] sm:$0xff] %v10643_v25 }
 0x51c   :  { %v10636_v11 = vpop.permute.xlu1 %2406 }
 0x51d   :  { %2795 = vperm.xlu1 %7929, %v10502_v29  }
 0x51f   :  { %v2128_v53 = vpop.permute.xlu0 %2127  ;;  %v8113_v17 = vpop.eup %8112 }
 0x520   :  { %v10638_v61 = vpop.eup %8114  ;;  %v2173_v52 = vsub.f32 %v10369_v1, %v2128_v53 }
 0x521   :  { %v7352_v34 = vpack.c.bf16 %v8113_v17, %v10638_v61 }
 0x522   :  { %v2197_v56 = vmul.f32 1.442695, %v2173_v52  ;;  %v2163_v1 = vpop.permute.xlu2 %2162 }
 0x523   :  { %2820 = vperm.xlu0 %7931, %v10464_v43  }
 0x524   :  { %8116 = vpow2.f32 %v2197_v56  ;;  %v2138_v29 = vpop.permute.xlu1 %2137 }
 0x525   :  { %2810 = vperm.xlu1 %7929, %v10517_v19   ;;  %v2218_v19 = vsel %vm9008_vm1, %v8111_v42, 0.0  ;;  %8118 = vpow2.f32 %v2199_v33  ;;  %v2175_v52 = vsub.f32 %v10326_v46, %v2138_v29 }
 0x527   :  { %v10645_v60 = vpop.permute.xlu0 %2416  ;;  %v2201_v33 = vmul.f32 1.442695, %v2175_v52  ;;  %v15291_v52 = vld [vmem:[#allocation33_spill] sm:$0xff] }
 0x52a   :  { %7353 = vmatmul.msk.bf16.gmra.mxu3 %vm15286_vm3, %v7352_v34  ;;  %v10651_v49 = vpop.eup %8116  ;;  %v10663_v23 = vpop.permute.xlu2 %2451  ;;  %vm15292_vm3 = vnez %v15291_v52 }
 0x52b   :  { %v10653_v30 = vpop.eup %8118  ;;  %15289 = vst [vmem:[#allocation82_spill] sm:$0xff] %v10663_v23 }
 0x52c   :  { %2303 = vadd.xlane.f32.xlu2 %v2218_v19  ;;  %v7355_v34 = vpack.c.bf16 %v10653_v30, %v10651_v49  ;;  %v10659_v58 = vpop.permute.xlu1 %2421  ;;  %v15287_v19 = vld [vmem:[#allocation25_spill] sm:$0xff] }
 0x52d   :  { %vm15288_vm1 = vnez %v15287_v19 }
 0x52f   :  { %v2143_v53 = vpop.permute.xlu0 %2142 }
 0x530   :  { %v2176_v18 = vsub.f32 %v10380_v37, %v2143_v53 }
 0x532   :  { %v2203_v42 = vmul.f32 1.442695, %v2176_v18 }
 0x534   :  { %8120 = vpow2.f32 %v2203_v42  ;;  %v2153_v56 = vpop.permute.xlu1 %2152 }
 0x535   :  { %8122 = vpow2.f32 %v2201_v33  ;;  %v2178_v55 = vsub.f32 %v10342_v41, %v2153_v56  ;;  %v2220_v41 = vsel %vm9034_vm4, %v8113_v17, 0.0 }
 0x537   :  { %v10676_v18 = vpop.permute.xlu0 %2431  ;;  %v2207_v42 = vmul.f32 1.442695, %v2178_v55 }
 0x539   :  { %8124 = vpow2.f32 %v2207_v42  ;;  %v2279_v42 = vmul.f32 %v10442_v63, %v9915_v45 }
 0x53a   :  { %7356 = vmatmul.msk.bf16.gmra.mxu3 %vm15288_vm1, %v7355_v34  ;;  %v10665_v25 = vpop.eup %8120  ;;  %v2177_v34 = vsub.f32 %v10333_v21, %v2148_v39  ;;  %vm15290_vm1 = vcmask 31768   ;;  %v2216_v21 = vsel %vm8974_vm11, %v10586_v16, 0.0  ;;  %v2358_v39 = vld [vmem:[#allocation2 + $0xd8] sm:$0xff] }
 0x53b   :  { %v8123_v53 = vpop.eup %8122  ;;  %v2454_v55 = vmul.f32 %v10616_v14, %v2358_v39  ;;  %v2180_v39 = vsub.f32 %v10362_v57, %v2163_v1 }
 0x53c   :  { %v7358_v29 = vpack.c.bf16 %v10665_v25, %v8123_v53  ;;  %v2205_v33 = vmul.f32 1.442695, %v2177_v34  ;;  %v2223_v16 = vsel %vm9083_vm15, %v8123_v53, 0.0 }
 0x53d   :  { %v2211_v45 = vmul.f32 1.442695, %v2180_v39 }
 0x53e   :  { %8126 = vpow2.f32 %v2205_v33 }
 0x546   :  { %v2747_v37 = vpop.xlane.xlu2 %2746 }
 0x547   :  { %v10669_v46 = vmax.f32 %v15255_v7, %v2747_v37 }
 0x549   :  { %3255 = vst.msk [vmem:[#allocation3 + $0x68] sm:$0xff] %vm15290_vm1, %v10669_v46  ;;  %2835 = vperm.xlu2 %7930, %v10669_v46  }
 0x54a   :  { %7359 = vmatmul.msk.bf16.gmra.mxu3 %vm15292_vm3, %v7358_v29  ;;  %v2158_v29 = vpop.permute.xlu0 %2157 }
 0x54b   :  { %v2179_v15 = vsub.f32 %v10394_v4, %v2158_v29  ;;  %v2360_v4 = vld [vmem:[#allocation2 + $0x118] sm:$0xff]  ;;  %v10707_v29 = vpop.permute.xlu1 %2436 }
 0x54c   :  { %v2456_v57 = vmul.f32 %v10608_v3, %v2360_v4 }
 0x54d   :  { %2307 = vadd.xlane.f32.xlu0 %v2220_v41  ;;  %v8125_v41 = vpop.eup %8124  ;;  %v2209_v63 = vmul.f32 1.442695, %v2179_v15  ;;  %v2277_v15 = vmul.f32 %v10413_v2, %v9959_v9  ;;  %v15314_v9 = vld [vmem:[#allocation50_spill] sm:$0xff] }
 0x54e   :  { %v2751_v56 = vpop.xlane.xlu2 %2750 }
 0x54f   :  { %v10686_v37 = vmax.f32 %v15259_v59, %v2751_v56  ;;  %2299 = vadd.xlane.f32.xlu1 %v2216_v21  ;;  %v10696_v56 = vpop.eup %8126  ;;  %v2359_v21 = vld [vmem:[#allocation2 + $0x130] sm:$0xff]  ;;  %8128 = vpow2.f32 %v2209_v63 }
 0x550   :  { %v7361_v14 = vpack.c.bf16 %v8125_v41, %v10696_v56  ;;  %v2455_v53 = vmul.f32 %v10557_v24, %v2359_v21  ;;  %8130 = vpow2.f32 %v2211_v45 }
 0x551   :  { %3257 = vst.msk [vmem:[#allocation3 + $0x78] sm:$0xff] %vm15290_vm1, %v10686_v37  ;;  %2845 = vperm.xlu2 %7930, %v10686_v37   ;;  %vm15293_vm1 = vcmask 23568  }
 0x552   :  { %vm15299_vm4 = vmmov %vm15293_vm1 }
 0x553   :  { %v2487_v17 = vpop.f32.mrf.mxu3 }
 0x554   :  { %v2527_v34 = vadd.f32 %v2487_v17, %v2454_v55  ;;  %v15294_v55 = vld [vmem:[#allocation31_spill] sm:$0xff] }
 0x555   :  { %2313 = vadd.xlane.f32.xlu0 %v2223_v16  ;;  %vm15295_vm15 = vnez %v15294_v55  ;;  %v2226_v16 = vsel %vm15124_vm0, %v8125_v41, 0.0  ;;  %v2361_v41 = vld [vmem:[#allocation2 + $0x108] sm:$0xff]  ;;  %vm15296_vm0 = vnez %v15151_v12 }
 0x556   :  { %2543 = vst [vmem:[#allocation2 + $0xd8] sm:$0xff] %v2527_v34  ;;  %v2298_v33 = vpop.xlane.xlu2 %2297  ;;  %v2457_v39 = vmul.f32 %v10622_v5, %v2361_v41  ;;  %v2224_v41 = vsel %vm9104_vm9, %v10665_v25, 0.0 }
 0x557   :  { %v2327_v23 = vadd.f32 %v2298_v33, %v2279_v42 }
 0x559   :  { %2344 = vst.msk [vmem:[#allocation4 + $0x10] sm:$0xff] %vm15293_vm1, %v2327_v23  ;;  %v8129_v23 = vpop.eup %8128 }
 0x55a   :  { %7362 = vmatmul.msk.bf16.gmra.mxu3 %vm15295_vm15, %v7361_v14  ;;  %v10712_v42 = vpop.eup %8130  ;;  %vm15298_vm15 = vcmask 31768  }
 0x55b   :  { %v2489_v17 = vpop.f32.mrf.mxu3  ;;  %v7364_v14 = vpack.c.bf16 %v10712_v42, %v8129_v23 }
 0x55c   :  { %v2528_v34 = vadd.f32 %v2489_v17, %v2455_v53  ;;  %v10716_v53 = vpop.permute.xlu0 %2446  ;;  %v15297_v17 = vld [vmem:[#allocation48_spill] sm:$0xff] }
 0x55d   :  { %2319 = vadd.xlane.f32.xlu0 %v2226_v16 }
 0x55e   :  { %2544 = vst [vmem:[#allocation2 + $0x130] sm:$0xff] %v2528_v34  ;;  %v2278_v34 = vmul.f32 %v10398_v38, %v15297_v17  ;;  %v15302_v38 = vld [vmem:[#allocation62_spill] sm:$0xff] }
 0x563   :  { %v2492_v24 = vpop.f32.mrf.mxu3 }
 0x564   :  { %v2529_v1 = vadd.f32 %v2492_v24, %v2456_v57  ;;  %v2221_v57 = vsel %vm15241_vm14, %v10651_v49, 0.0  ;;  %v15303_v49 = vld [vmem:[#allocation74_spill] sm:$0xff] }
 0x566   :  { %2545 = vst [vmem:[#allocation2 + $0x118] sm:$0xff] %v2529_v1 }
 0x567   :  { %v2294_v33 = vpop.xlane.xlu1 %2293 }
 0x568   :  { %v2325_v21 = vadd.f32 %v2294_v33, %v2277_v15  ;;  %v2281_v15 = vmul.f32 %v10411_v28, %v15302_v38  ;;  %v2227_v28 = vsel %vm15246_vm2, %v8129_v23, 0.0 }
 0x56a   :  { %2342 = vst.msk [vmem:[#allocation4] sm:$0xff] %vm15293_vm1, %v2325_v21  ;;  %7365 = vmatmul.msk.bf16.gmra.mxu3 %vm15296_vm0, %v7364_v14  ;;  %vm15301_vm1 = vmmov %vm15298_vm15  ;;  %v15304_v21 = vld [vmem:[#allocation36_spill] sm:$0xff] }
 0x56b   :  { %v2494_v45 = vpop.f32.mrf.mxu3  ;;  %v2848_v14 = vsub.f32 %v15304_v21, %v15303_v49 }
 0x56c   :  { %v2530_v3 = vadd.f32 %v2494_v45, %v2457_v39 }
 0x56d   :  { %v2864_v45 = vmul.f32 1.442695, %v2848_v14 }
 0x56e   :  { %2546 = vst [vmem:[#allocation2 + $0x108] sm:$0xff] %v2530_v3 }
 0x56f   :  { %v2749_v2 = vpop.xlane.xlu1 %2748  ;;  %8132 = vpow2.f32 %v2864_v45 }
 0x570   :  { %v10722_v63 = vmax.f32 %v15267_v54, %v2749_v2  ;;  %v15305_v2 = vld [vmem:[#allocation42_spill] sm:$0xff] }
 0x572   :  { %v2296_v16 = vpop.xlane.xlu0 %2295  ;;  %3256 = vst.msk [vmem:[#allocation3 + $0x70] sm:$0xff] %vm15298_vm15, %v10722_v63 }
 0x573   :  { %v2326_v5 = vadd.f32 %v2296_v16, %v2278_v34  ;;  %v15306_v16 = vld [vmem:[#allocation72_spill] sm:$0xff] }
 0x575   :  { %2343 = vst.msk [vmem:[#allocation4 + $0x8] sm:$0xff] %vm15299_vm4, %v2326_v5  ;;  %v15307_v5 = vld [vmem:[#allocation35_spill] sm:$0xff] }
 0x576   :  { %v2852_v25 = vsub.f32 %v15307_v5, %v15306_v16 }
 0x57a   :  { %v2745_v24 = vpop.xlane.xlu0 %2744  ;;  %2309 = vadd.xlane.f32.xlu2 %v2221_v57 }
 0x57b   :  { %v10733_v1 = vmax.f32 %v15254_v13, %v2745_v24  ;;  %v10752_v24 = vpop.permute.xlu2 %2815 }
 0x57d   :  { %3254 = vst.msk [vmem:[#allocation3 + $0x60] sm:$0xff] %vm15301_vm1, %v10733_v1  ;;  %2830 = vperm.xlu1 %7929, %v10733_v1   ;;  %vm15348_vm1 = vmmov %vm15299_vm4 }
 0x582   :  { %v2302_v33 = vpop.xlane.xlu0 %2301  ;;  %2315 = vadd.xlane.f32.xlu2 %v2224_v41  ;;  %v10754_v41 = vpop.eup %8132 }
 0x583   :  { %v2329_v39 = vadd.f32 %v2302_v33, %v2281_v15  ;;  %v2872_v15 = vmul.f32 1.442695, %v2852_v25  ;;  %v15308_v33 = vld [vmem:[#allocation69_spill] sm:$0xff]  ;;  %v15311_v25 = vld [vmem:[#allocation43_spill] sm:$0xff] }
 0x584   :  { %v2898_v49 = vsel %vm15235_vm10, %v15308_v33, 0.0  ;;  %vm15340_vm10 = vmmov %vm15299_vm4 }
 0x585   :  { %2346 = vst.msk [vmem:[#allocation4 + $0x20] sm:$0xff] %vm15299_vm4, %v2329_v39  ;;  %2840 = vperm.xlu1 %7929, %v10722_v63   ;;  %v10764_v39 = vpop.permute.xlu2 %2825 }
 0x587   :  { %v2776_v3 = vpop.permute.xlu1 %2775 }
 0x588   :  { %v2849_v34 = vsub.f32 %v15305_v2, %v2776_v3  ;;  %v2362_v3 = vld [vmem:[#allocation2 + $0x138] sm:$0xff]  ;;  %v15309_v2 = vld [vmem:[#allocation88_spill] sm:$0xff] }
 0x589   :  { %v2458_v16 = vmul.f32 %v10594_v40, %v2362_v3  ;;  %v15317_v40 = vld [vmem:[#allocation80_spill] sm:$0xff]  ;;  %v15318_v3 = vld [vmem:[#allocation53_spill] sm:$0xff] }
 0x58a   :  { %v2866_v57 = vmul.f32 1.442695, %v2849_v34  ;;  %2321 = vadd.xlane.f32.xlu2 %v2227_v28  ;;  %v15310_v34 = vld [vmem:[#allocation44_spill] sm:$0xff] }
 0x58b   :  { %v2912_v44 = vsub.f32 %v15310_v34, %v15309_v2  ;;  %v2363_v2 = vld [vmem:[#allocation2 + $0x1b8] sm:$0xff]  ;;  %v15315_v34 = vld [vmem:[#allocation65_spill] sm:$0xff] }
 0x58c   :  { %8134 = vpow2.f32 %v2866_v57  ;;  %v15312_v57 = vld [vmem:[#allocation30_spill] sm:$0xff] }
 0x58d   :  { %8136 = vpow2.f32 %v2872_v15  ;;  %v2282_v15 = vmul.f32 %v15312_v57, %v15311_v25  ;;  %v2928_v10 = vmul.f32 1.442695, %v2912_v44  ;;  %v15319_v57 = vld [vmem:[#allocation87_spill] sm:$0xff] }
 0x58f   :  { %8138 = vpow2.f32 %v2928_v10  ;;  %v15321_v10 = vld [vmem:[#allocation84_spill] sm:$0xff] }
 0x592   :  { %v8135_v21 = vpop.eup %8134  ;;  %2980 = vadd.xlane.f32.xlu2 %v2898_v49  ;;  %v2796_v49 = vpop.permute.xlu1 %2795 }
 0x593   :  { %v2897_v23 = vsel %vm8944_vm7, %v8135_v21, 0.0  ;;  %v7431_v14 = vpack.c.bf16 %v8135_v21, %v10754_v41  ;;  %v8137_v45 = vpop.eup %8136  ;;  %v2853_v32 = vsub.f32 %v15315_v34, %v2796_v49  ;;  %vm15316_vm7 = vmmov %vm15299_vm4  ;;  %v2364_v34 = vld [vmem:[#allocation2 + $0x160] sm:$0xff] }
 0x594   :  { %2978 = vadd.xlane.f32.xlu0 %v2897_v23  ;;  %v2900_v28 = vsel %vm15233_vm13, %v8137_v45, 0.0  ;;  %v2460_v48 = vmul.f32 %v10636_v11, %v2364_v34  ;;  %v15327_v11 = vld [vmem:[#allocation89_spill] sm:$0xff] }
 0x595   :  { %7432 = vmatmul.msk.bf16.vlgmr.msrb.gmra.mxu2 %vm15274_vm8, %v7431_v14  ;;  %v15313_v14 = vld [vmem:[#allocation75_spill] sm:$0xff]  ;;  %v10785_v49 = vpop.eup %8138  ;;  %vm15344_vm8 = vnez %v15285_v20 }
 0x596   :  { %v2914_v26 = vsub.f32 %v15314_v9, %v15313_v14  ;;  %v2874_v9 = vmul.f32 1.442695, %v2853_v32 }
 0x59c   :  { %2984 = vadd.xlane.f32.xlu0 %v2900_v28  ;;  %v2915_v28 = vsub.f32 %v15318_v3, %v15317_v40  ;;  %v15325_v3 = vld [vmem:[#allocation23_spill] sm:$0xff] }
 0x59d   :  { %v2497_v6 = vpop.f32.mrf.mxu3  ;;  %vm15326_vm15 = vnez %v15325_v3 }
 0x59e   :  { %v2531_v5 = vadd.f32 %v2497_v6, %v2458_v16  ;;  %v2459_v16 = vmul.f32 %v10626_v22, %v2363_v2  ;;  %v2932_v6 = vmul.f32 1.442695, %v2914_v26  ;;  %v15323_v26 = vld [vmem:[#allocation61_spill] sm:$0xff]  ;;  %v15324_v22 = vld [vmem:[#allocation55_spill] sm:$0xff] }
 0x59f   :  { %v2304_v21 = vpop.xlane.xlu2 %2303 }
 0x5a0   :  { %2547 = vst [vmem:[#allocation2 + $0x138] sm:$0xff] %v2531_v5  ;;  %v2330_v23 = vadd.f32 %v2304_v21, %v2282_v15  ;;  %v15320_v5 = vpack.c.bf16 %v15319_v57, %v15308_v33  ;;  %v2934_v21 = vmul.f32 1.442695, %v2915_v28  ;;  %8140 = vpow2.f32 %v2932_v6 }
 0x5a1   :  { %8142 = vpow2.f32 %v2874_v9  ;;  %v2918_v33 = vsub.f32 %v15324_v22, %v15323_v26  ;;  %v2219_v28 = vsel %vm15326_vm15, %v10638_v61, 0.0  ;;  %v15328_v9 = vld [vmem:[#allocation59_spill] sm:$0xff]  ;;  %v15329_v61 = vld [vmem:[#allocation64_spill] sm:$0xff] }
 0x5a2   :  { %2347 = vst.msk [vmem:[#allocation4 + $0x28] sm:$0xff] %vm15316_vm7, %v2330_v23  ;;  %v15322_v23 = vld [vmem:[#allocation52_spill] sm:$0xff]  ;;  %8144 = vpow2.f32 %v2934_v21  ;;  %v2365_v21 = vld [vmem:[#allocation2 + $0xf0] sm:$0xff] }
 0x5a3   :  { %v2916_v14 = vsub.f32 %v15322_v23, %v15321_v10  ;;  %v2940_v6 = vmul.f32 1.442695, %v2918_v33  ;;  %v2921_v10 = vsub.f32 %v15329_v61, %v10455_v36  ;;  %v15330_v33 = vld [vmem:[#allocation27_spill] sm:$0xff] }
 0x5a4   :  { %vm15331_vm13 = vnez %v15330_v33  ;;  %v15404_v33 = vld [vmem:[#allocation94_spill] sm:$0xff] }
 0x5a5   :  { %v2499_v44 = vpop.f32.mrf.mxu3  ;;  %7435 = vmatmul.msk.bf16.gmra.mxu2 %vm15279_vm5, %v15320_v5  ;;  %v2936_v2 = vmul.f32 1.442695, %v2916_v14  ;;  %v2461_v14 = vmul.f32 %v10614_v8, %v2365_v21  ;;  %v2922_v8 = vsub.f32 %v15332_v51, %v10464_v43  ;;  %v2225_v21 = vsel %vm15122_vm6, %v10696_v56, 0.0  ;;  %v15335_v56 = vld [vmem:[#allocation46_spill] sm:$0xff] }
 0x5a6   :  { %v2532_v15 = vadd.f32 %v2499_v44, %v2459_v16  ;;  %v10796_v16 = vpop.eup %8140  ;;  %vm15345_vm5 = vnez %v14963_v47 }
 0x5a7   :  { %v10798_v44 = vpop.eup %8142  ;;  %8146 = vpow2.f32 %v2936_v2 }
 0x5a8   :  { %2548 = vst [vmem:[#allocation2 + $0x1b8] sm:$0xff] %v2532_v15  ;;  %v10801_v5 = vpop.eup %8144  ;;  %v2919_v15 = vsub.f32 %v15328_v9, %v15327_v11  ;;  %8148 = vpow2.f32 %v2940_v6  ;;  %v7437_v23 = vpack.c.bf16 %v10798_v44, %v8137_v45  ;;  %v2366_v45 = vld [vmem:[#allocation2 + $0x100] sm:$0xff]  ;;  %v2948_v11 = vmul.f32 1.442695, %v2922_v8 }
 0x5a9   :  { %v2462_v6 = vmul.f32 %v10645_v60, %v2366_v45  ;;  %v2367_v60 = vld [vmem:[#allocation2 + $0x20] sm:$0xff]  ;;  %v2927_v45 = vsub.f32 %v15259_v59, %v10686_v37 }
 0x5aa   :  { %3059 = vperm.xlu2 %7930, %v10785_v49   ;;  %v2942_v34 = vmul.f32 1.442695, %v2919_v15 }
 0x5ac   :  { %8150 = vpow2.f32 %v2942_v34  ;;  %v2925_v34 = vsub.f32 %v15255_v7, %v10669_v46  ;;  %v15339_v7 = vld [vmem:[#allocation77_spill] sm:$0xff] }
 0x5ad   :  { %v2502_v32 = vpop.f32.mrf.mxu3  ;;  %v10815_v2 = vpop.eup %8146  ;;  %v2857_v46 = vsub.f32 %v15339_v7, %v10752_v24  ;;  %v15346_v24 = vld [vmem:[#allocation58_spill] sm:$0xff] }
 0x5ae   :  { %v2533_v40 = vadd.f32 %v2502_v32, %v2460_v48  ;;  %v2222_v48 = vsel %vm15331_vm13, %v10653_v30, 0.0  ;;  %v2946_v32 = vmul.f32 1.442695, %v2921_v10  ;;  %v10820_v36 = vpop.eup %8148  ;;  %v2924_v30 = vsub.f32 %v15254_v13, %v10733_v1  ;;  %v15333_v10 = vld [vmem:[#allocation49_spill] sm:$0xff] }
 0x5af   :  { %2305 = vadd.xlane.f32.xlu1 %v2219_v28  ;;  %v2811_v28 = vpop.permute.xlu1 %2810 }
 0x5b0   :  { %2549 = vst [vmem:[#allocation2 + $0x160] sm:$0xff] %v2533_v40  ;;  %3069 = vperm.xlu0 %7931, %v10796_v16   ;;  %v10817_v40 = vpop.permute.xlu0 %2820  ;;  %8152 = vpow2.f32 %v2946_v32  ;;  %v2952_v43 = vmul.f32 1.442695, %v2924_v30  ;;  %v15337_v32 = vld [vmem:[#allocation60_spill] sm:$0xff] }
 0x5b1   :  { %8154 = vpow2.f32 %v2948_v11  ;;  %v2856_v51 = vsub.f32 %v15337_v32, %v2811_v28  ;;  %v2954_v11 = vmul.f32 1.442695, %v2925_v34  ;;  %v15341_v28 = vld [vmem:[#allocation37_spill] sm:$0xff]  ;;  %v2899_v32 = vsel %vm8974_vm11, %v15319_v57, 0.0  ;;  %vm15352_vm11 = vmmov %vm15348_vm1 }
 0x5b2   :  { %3074 = vperm.xlu2 %7930, %v10801_v5   ;;  %v10831_v61 = vpop.eup %8150  ;;  %8156 = vpow2.f32 %v2952_v43  ;;  %v2896_v43 = vsel %vm15345_vm5, %v10754_v41, 0.0  ;;  %v2858_v57 = vsub.f32 %v15351_v31, %v10817_v40  ;;  %v15355_v40 = vld [vmem:[#allocation47_spill] sm:$0xff]  ;;  %vm15383_vm5 = vnez %v15294_v55 }
 0x5b3   :  { %v2880_v59 = vmul.f32 1.442695, %v2856_v51  ;;  %8158 = vpow2.f32 %v2954_v11  ;;  %vm15356_vm7 = vnez %v15355_v40 }
 0x5b5   :  { %v2504_v26 = vpop.f32.mrf.mxu3  ;;  %7438 = vmatmul.msk.bf16.gmra.mxu2 %vm15283_vm12, %v7437_v23  ;;  %v15334_v23 = vld [vmem:[#allocation83_spill] sm:$0xff]  ;;  %vm15338_vm12 = vmmov %vm15299_vm4  ;;  %8160 = vpow2.f32 %v2880_v59  ;;  %vm15354_vm4 = vnez %v15287_v19  ;;  %v15357_v19 = vld [vmem:[#allocation92_spill] sm:$0xff] }
 0x5b6   :  { %v2534_v22 = vadd.f32 %v2504_v26, %v2461_v14  ;;  %v2284_v14 = vmul.f32 %v15334_v23, %v15333_v10  ;;  %v10836_v1 = vpop.eup %8152  ;;  %v2958_v23 = vmul.f32 1.442695, %v2927_v45  ;;  %v15350_v45 = vld [vmem:[#allocation28_spill] sm:$0xff] }
 0x5b7   :  { %2311 = vadd.xlane.f32.xlu1 %v2222_v48 }
 0x5b8   :  { %2550 = vst [vmem:[#allocation2 + $0xf0] sm:$0xff] %v2534_v22  ;;  %3079 = vperm.xlu0 %7931, %v10815_v2   ;;  %v15336_v22 = vld [vmem:[#allocation85_spill] sm:$0xff]  ;;  %8162 = vpow2.f32 %v2958_v23 }
 0x5b9   :  { %v2280_v48 = vmul.f32 %v15336_v22, %v15335_v56 }
 0x5ba   :  { %3089 = vperm.xlu2 %7930, %v10820_v36  }
 0x5bd   :  { %v2507_v9 = vpop.f32.mrf.mxu3 }
 0x5be   :  { %v2535_v15 = vadd.f32 %v2507_v9, %v2462_v6  ;;  %v2463_v6 = vmul.f32 %v10659_v58, %v2367_v60  ;;  %v10859_v58 = vpop.eup %8154  ;;  %v2882_v60 = vmul.f32 1.442695, %v2857_v46  ;;  %v2369_v46 = vld [vmem:[#allocation2 + $0x1d8] sm:$0xff] }
 0x5bf   :  { %2317 = vadd.xlane.f32.xlu1 %v2225_v21  ;;  %v10864_v20 = vpop.eup %8156  ;;  %v2465_v59 = vmul.f32 %v10676_v18, %v2369_v46 }
 0x5c0   :  { %2551 = vst [vmem:[#allocation2 + $0x100] sm:$0xff] %v2535_v15  ;;  %3094 = vperm.xlu0 %7931, %v10831_v61   ;;  %v2308_v13 = vpop.xlane.xlu0 %2307  ;;  %v15342_v15 = vld [vmem:[#allocation38_spill] sm:$0xff]  ;;  %8164 = vpow2.f32 %v2882_v60  ;;  %v10872_v51 = vpop.eup %8158  ;;  %v2228_v60 = vsel %vm15356_vm7, %v10712_v42, 0.0 }
 0x5c1   :  { %v2332_v26 = vadd.f32 %v2308_v13, %v2284_v14  ;;  %v15343_v21 = vpack.c.bf16 %v15341_v28, %v15342_v15  ;;  %v15347_v14 = vld [vmem:[#allocation100_spill] sm:$0xff] }
 0x5c2   :  { %v2300_v8 = vpop.xlane.xlu1 %2299  ;;  %3104 = vperm.xlu2 %7930, %v10836_v1   ;;  %v2287_v13 = vmul.f32 %v15347_v14, %v15346_v24  ;;  %v2884_v14 = vmul.f32 1.442695, %v2858_v57 }
 0x5c3   :  { %2349 = vst.msk [vmem:[#allocation4 + $0x38] sm:$0xff] %vm15338_vm12, %v2332_v26  ;;  %v2328_v30 = vadd.f32 %v2300_v8, %v2280_v48  ;;  %v2368_v26 = vld [vmem:[#allocation2 + $0xe8] sm:$0xff]  ;;  %v15349_v8 = vld [vmem:[#allocation90_spill] sm:$0xff]  ;;  %vm15376_vm12 = vmmov %vm15348_vm1 }
 0x5c4   :  { %v2464_v47 = vmul.f32 %v10628_v35, %v2368_v26  ;;  %v2370_v26 = vld [vmem:[#allocation2 + $0xa8] sm:$0xff]  ;;  %8166 = vpow2.f32 %v2884_v14 }
 0x5c5   :  { %2345 = vst.msk [vmem:[#allocation4 + $0x18] sm:$0xff] %vm15340_vm10, %v2328_v30  ;;  %v2509_v9 = vpop.f32.mrf.mxu3  ;;  %7441 = vmatmul.msk.bf16.gmra.mxu2 %vm15344_vm8, %v15343_v21  ;;  %v2290_v30 = vmul.f32 %v15350_v45, %v15349_v8  ;;  %v2466_v18 = vmul.f32 %v10707_v29, %v2370_v26  ;;  %v2371_v45 = vld [vmem:[#allocation2 + $0x68] sm:$0xff] }
 0x5c6   :  { %v2536_v37 = vadd.f32 %v2509_v9, %v2463_v6  ;;  %v10876_v6 = vpop.eup %8160 }
 0x5c7   :  { %2976 = vadd.xlane.f32.xlu1 %v2896_v43  ;;  %v10879_v35 = vpop.eup %8162 }
 0x5c8   :  { %2552 = vst [vmem:[#allocation2 + $0x20] sm:$0xff] %v2536_v37  ;;  %3109 = vperm.xlu0 %7931, %v10859_v58   ;;  %v2314_v34 = vpop.xlane.xlu0 %2313  ;;  %v10881_v9 = vpop.eup %8164  ;;  %v15353_v37 = vld [vmem:[#allocation78_spill] sm:$0xff] }
 0x5c9   :  { %v2335_v22 = vadd.f32 %v2314_v34, %v2287_v13  ;;  %v7443_v21 = vpack.c.bf16 %v10881_v9, %v10876_v6  ;;  %v2859_v43 = vsub.f32 %v15353_v37, %v10764_v39 }
 0x5ca   :  { %3119 = vperm.xlu2 %7930, %v10864_v20  }
 0x5cb   :  { %2352 = vst.msk [vmem:[#allocation4 + $0x50] sm:$0xff] %vm15348_vm1, %v2335_v22  ;;  %v2886_v34 = vmul.f32 1.442695, %v2859_v43  ;;  %v2836_v22 = vpop.permute.xlu2 %2835  ;;  %v2372_v43 = vld [vmem:[#allocation2 + $0xc0] sm:$0xff] }
 0x5cd   :  { %v2512_v41 = vpop.f32.mrf.mxu3  ;;  %8168 = vpow2.f32 %v2886_v34  ;;  %v15364_v34 = vld [vmem:[#allocation104_spill] sm:$0xff] }
 0x5ce   :  { %v2537_v48 = vadd.f32 %v2512_v41, %v2464_v47  ;;  %v10898_v41 = vpop.eup %8166 }
 0x5cf   :  { %2982 = vadd.xlane.f32.xlu1 %v2899_v32 }
 0x5d0   :  { %2553 = vst [vmem:[#allocation2 + $0xe8] sm:$0xff] %v2537_v48  ;;  %3124 = vperm.xlu0 %7931, %v10872_v51   ;;  %v2320_v7 = vpop.xlane.xlu0 %2319  ;;  %v15358_v48 = vld [vmem:[#allocation51_spill] sm:$0xff] }
 0x5d1   :  { %v2338_v11 = vadd.f32 %v2320_v7, %v2290_v30  ;;  %v2913_v32 = vsub.f32 %v15358_v48, %v15357_v19  ;;  %v15359_v7 = vld [vmem:[#allocation76_spill] sm:$0xff] }
 0x5d2   :  { %3134 = vperm.xlu2 %7930, %v10879_v35   ;;  %v2467_v46 = vmul.f32 %v15359_v7, %v2371_v45 }
 0x5d3   :  { %2355 = vst.msk [vmem:[#allocation4 + $0x68] sm:$0xff] %vm15352_vm11, %v2338_v11  ;;  %v10902_v30 = vpop.eup %8168  ;;  %v2930_v11 = vmul.f32 1.442695, %v2913_v32  ;;  %v2846_v31 = vpop.permute.xlu2 %2845  ;;  %vm15384_vm11 = vnez %v15109_v50 }
 0x5d4   :  { %v7446_v42 = vpack.c.bf16 %v10902_v30, %v10898_v41 }
 0x5d5   :  { %v2514_v23 = vpop.f32.mrf.mxu3  ;;  %7444 = vmatmul.msk.bf16.gmra.mxu2 %vm15354_vm4, %v7443_v21  ;;  %8170 = vpow2.f32 %v2930_v11  ;;  %v15360_v21 = vld [vmem:[#allocation29_spill] sm:$0xff] }
 0x5d6   :  { %v2538_v13 = vadd.f32 %v2514_v23, %v2465_v59  ;;  %v15361_v59 = vld [vmem:[#allocation56_spill] sm:$0xff]  ;;  %v15362_v23 = vld [vmem:[#allocation98_spill] sm:$0xff] }
 0x5d7   :  { %2323 = vadd.xlane.f32.xlu1 %v2228_v60  ;;  %v2917_v37 = vsub.f32 %v15361_v59, %v15360_v21  ;;  %v2861_v14 = vsub.f32 %v15362_v23, %v2836_v22  ;;  %v15363_v60 = vld [vmem:[#allocation68_spill] sm:$0xff]  ;;  %v15367_v22 = vld [vmem:[#allocation63_spill] sm:$0xff]  ;;  %v15370_v59 = vld [vmem:[#allocation82_spill] sm:$0xff] }
 0x5d8   :  { %2554 = vst [vmem:[#allocation2 + $0x1d8] sm:$0xff] %v2538_v13  ;;  %v2468_v13 = vmul.f32 %v10716_v53, %v2372_v43  ;;  %v2285_v26 = vmul.f32 %v15364_v34, %v15363_v60  ;;  %v2373_v53 = vld [vmem:[#allocation2 + $0x58] sm:$0xff]  ;;  %v15372_v23 = vld [vmem:[#allocation99_spill] sm:$0xff] }
 0x5d9   :  { %v2890_v32 = vmul.f32 1.442695, %v2861_v14  ;;  %v15371_v43 = vld [vmem:[#allocation86_spill] sm:$0xff] }
 0x5da   :  { %v2288_v14 = vmul.f32 %v15372_v23, %v15371_v43  ;;  %v15382_v23 = vld [vmem:[#allocation34_spill] sm:$0xff] }
 0x5db   :  { %v8171_v48 = vpop.eup %8170 }
 0x5dc   :  { %v2961_v4 = vmul.f32 %v8171_v48, %v15297_v17  ;;  %v2964_v17 = vmul.f32 %v10815_v2, %v15302_v38  ;;  %v15391_v38 = vld [vmem:[#allocation40_spill] sm:$0xff]  ;;  %v15392_v2 = vld [vmem:[#allocation97_spill] sm:$0xff] }
 0x5dd   :  { %v2517_v39 = vpop.f32.mrf.mxu3 }
 0x5de   :  { %v2539_v47 = vadd.f32 %v2517_v39, %v2466_v18  ;;  %v2938_v18 = vmul.f32 1.442695, %v2917_v37  ;;  %v2469_v37 = vmul.f32 %v15370_v59, %v2373_v53 }
 0x5e0   :  { %2555 = vst [vmem:[#allocation2 + $0xa8] sm:$0xff] %v2539_v47  ;;  %8172 = vpow2.f32 %v2938_v18 }
 0x5e1   :  { %8174 = vpow2.f32 %v2890_v32 }
 0x5e5   :  { %v2519_v29 = vpop.f32.mrf.mxu3  ;;  %7447 = vmatmul.msk.bf16.gmra.mxu2 %vm15292_vm3, %v7446_v42  ;;  %v15365_v42 = vld [vmem:[#allocation73_spill] sm:$0xff]  ;;  %vm15368_vm3 = vmmov %vm15348_vm1 }
 0x5e6   :  { %v2540_v57 = vadd.f32 %v2519_v29, %v2467_v46  ;;  %v15366_v46 = vld [vmem:[#allocation96_spill] sm:$0xff] }
 0x5e7   :  { %v2920_v11 = vsub.f32 %v15367_v22, %v15366_v46  ;;  %v15377_v22 = vld [vmem:[#allocation22_spill] sm:$0xff] }
 0x5e8   :  { %2556 = vst [vmem:[#allocation2 + $0x68] sm:$0xff] %v2540_v57  ;;  %v15369_v57 = vld [vmem:[#allocation21_spill] sm:$0xff]  ;;  %vm15378_vm10 = vnez %v15377_v22 }
 0x5e9   :  { %v2863_v21 = vsub.f32 %v15369_v57, %v2846_v31  ;;  %v15379_v57 = vld [vmem:[#allocation24_spill] sm:$0xff] }
 0x5ea   :  { %vm15380_vm8 = vnez %v15379_v57 }
 0x5ed   :  { %v2522_v39 = vpop.f32.mrf.mxu3  ;;  %v2310_v47 = vpop.xlane.xlu2 %2309 }
 0x5ee   :  { %v2541_v19 = vadd.f32 %v2522_v39, %v2468_v13  ;;  %v2333_v52 = vadd.f32 %v2310_v47, %v2285_v26  ;;  %v2944_v13 = vmul.f32 1.442695, %v2920_v11  ;;  %v10923_v47 = vpop.eup %8172  ;;  %v2901_v11 = vsel %vm15378_vm10, %v10798_v44, 0.0 }
 0x5ef   :  { %v2831_v45 = vpop.permute.xlu1 %2830  ;;  %v8175_v31 = vpop.eup %8174 }
 0x5f0   :  { %2557 = vst [vmem:[#allocation2 + $0xc0] sm:$0xff] %v2541_v19  ;;  %v2860_v7 = vsub.f32 %v15365_v42, %v2831_v45  ;;  %3064 = vperm.xlu1 %7929, %v8171_v48   ;;  %v2894_v19 = vmul.f32 1.442695, %v2863_v21  ;;  %v15374_v42 = vld [vmem:[#allocation93_spill] sm:$0xff]  ;;  %v2903_v21 = vsel %vm15380_vm8, %v15341_v28, 0.0 }
 0x5f1   :  { %2350 = vst.msk [vmem:[#allocation4 + $0x40] sm:$0xff] %vm15368_vm3, %v2333_v52  ;;  %v15373_v52 = vld [vmem:[#allocation32_spill] sm:$0xff]  ;;  %vm15393_vm3 = vmmov %vm15348_vm1 }
 0x5f2   :  { %v2888_v29 = vmul.f32 1.442695, %v2860_v7  ;;  %v15375_v7 = vld [vmem:[#allocation71_spill] sm:$0xff] }
 0x5f3   :  { %v2923_v46 = vsub.f32 %v15375_v7, %v15374_v42 }
 0x5f4   :  { %8176 = vpow2.f32 %v2888_v29 }
 0x5f5   :  { %v2524_v34 = vpop.f32.mrf.mxu3  ;;  %v2316_v26 = vpop.xlane.xlu2 %2315  ;;  %8178 = vpow2.f32 %v2944_v13  ;;  %v2950_v13 = vmul.f32 1.442695, %v2923_v46 }
 0x5f6   :  { %v2542_v18 = vadd.f32 %v2524_v34, %v2469_v37  ;;  %v2336_v39 = vadd.f32 %v2316_v26, %v2288_v14  ;;  %8180 = vpow2.f32 %v2894_v19  ;;  %v15381_v37 = vld [vmem:[#allocation57_spill] sm:$0xff]  ;;  %v2906_v19 = vsel %vm15384_vm11, %v10898_v41, 0.0 }
 0x5f7   :  { %v2841_v45 = vpop.permute.xlu1 %2840  ;;  %v2291_v14 = vmul.f32 %v15382_v23, %v15381_v37 }
 0x5f8   :  { %2558 = vst [vmem:[#allocation2 + $0x58] sm:$0xff] %v2542_v18  ;;  %v2862_v32 = vsub.f32 %v15373_v52, %v2841_v45  ;;  %3084 = vperm.xlu1 %7929, %v10923_v47   ;;  %v2926_v18 = vsub.f32 %v15267_v54, %v10722_v63  ;;  %v15385_v52 = vld [vmem:[#allocation41_spill] sm:$0xff] }
 0x5f9   :  { %2353 = vst.msk [vmem:[#allocation4 + $0x58] sm:$0xff] %vm15376_vm12, %v2336_v39  ;;  %v2904_v39 = vsel %vm15241_vm14, %v10876_v6, 0.0  ;;  %vm15386_vm14 = vcmask 31768   ;;  %vm15399_vm12 = vmmov %vm15348_vm1 }
 0x5fa   :  { %v10933_v53 = vpop.eup %8176  ;;  %v2892_v29 = vmul.f32 1.442695, %v2862_v32  ;;  %2986 = vadd.xlane.f32.xlu0 %v2901_v11  ;;  %v2962_v32 = vmul.f32 %v10796_v16, %v15385_v52  ;;  %v2956_v42 = vmul.f32 1.442695, %v2926_v18  ;;  %v2907_v16 = vsel %vm9104_vm9, %v10902_v30, 0.0  ;;  %vm15387_vm4 = vmmov %vm15386_vm14  ;;  %v3041_v30 = vld [vmem:[#allocation2 + $0x18] sm:$0xff] }
 0x5fb   :  { %2990 = vadd.xlane.f32.xlu2 %v2903_v21  ;;  %v7449_v59 = vpack.c.bf16 %v8175_v31, %v10933_v53  ;;  %v10943_v26 = vpop.eup %8178  ;;  %vm15390_vm9 = vmmov %vm15387_vm4  ;;  %v2283_v21 = vmul.f32 %v15392_v2, %v15391_v38 }
 0x5fc   :  { %8182 = vpow2.f32 %v2892_v29  ;;  %v10947_v28 = vpop.eup %8180  ;;  %vm15401_vm10 = vmmov %vm15387_vm4 }
 0x5fd   :  { %7450 = vmatmul.msk.bf16.gmra.mxu2 %vm15383_vm5, %v7449_v59  ;;  %v2322_v44 = vpop.xlane.xlu2 %2321  ;;  %8184 = vpow2.f32 %v2950_v13  ;;  %vm15408_vm8 = vmmov %vm15387_vm4 }
 0x5fe   :  { %v2339_v34 = vadd.f32 %v2322_v44, %v2291_v14  ;;  %8186 = vpow2.f32 %v2956_v42  ;;  %v3043_v14 = vld [vmem:[#allocation2 + $0x98] sm:$0xff]  ;;  %vm15409_vm5 = vmmov %vm15387_vm4 }
 0x600   :  { %2356 = vst.msk [vmem:[#allocation4 + $0x70] sm:$0xff] %vm15348_vm1, %v2339_v34  ;;  %3099 = vperm.xlu1 %7929, %v10943_v26  }
 0x602   :  { %v8183_v55 = vpop.eup %8182  ;;  %2992 = vadd.xlane.f32.xlu0 %v2904_v39  ;;  %v15394_v39 = vld [vmem:[#allocation70_spill] sm:$0xff] }
 0x603   :  { %v7452_v45 = vpack.c.bf16 %v10947_v28, %v8183_v55  ;;  %2996 = vadd.xlane.f32.xlu2 %v2906_v19  ;;  %v10963_v6 = vpop.eup %8184  ;;  %v2910_v27 = vsel %vm15246_vm2, %v8183_v55, 0.0  ;;  %v15395_v55 = vld [vmem:[#allocation102_spill] sm:$0xff]  ;;  %vm15396_vm2 = vmmov %vm15348_vm1 }
 0x604   :  { %v10975_v41 = vpop.eup %8186  ;;  %v2286_v19 = vmul.f32 %v15395_v55, %v15394_v39  ;;  %v15403_v55 = vld [vmem:[#allocation54_spill] sm:$0xff] }
 0x605   :  { %7453 = vmatmul.msk.bf16.vlgmr.msra.gmra.mxu3 %vm15296_vm0, %v7452_v45  ;;  %v2981_v54 = vpop.xlane.xlu2 %2980  ;;  %vm15388_vm0 = vnez %v15123_v62 }
 0x606   :  { %v3010_v63 = vadd.f32 %v2981_v54, %v2962_v32  ;;  %v2909_v12 = vsel %vm15388_vm0, %v8175_v31, 0.0  ;;  %v3044_v32 = vld [vmem:[#allocation2 + $0x60] sm:$0xff] }
 0x607   :  { %v2979_v7 = vpop.xlane.xlu0 %2978 }
 0x608   :  { %3027 = vst.msk [vmem:[#allocation4 + $0x10] sm:$0xff] %vm15386_vm14, %v3010_v63  ;;  %v3009_v50 = vadd.f32 %v2979_v7, %v2961_v4  ;;  %3114 = vperm.xlu1 %7929, %v10963_v6   ;;  %v15397_v7 = vld [vmem:[#allocation79_spill] sm:$0xff] }
 0x60a   :  { %3026 = vst.msk [vmem:[#allocation4 + $0x8] sm:$0xff] %vm15387_vm4, %v3009_v50  ;;  %2998 = vadd.xlane.f32.xlu0 %v2907_v16  ;;  %v15398_v50 = vld [vmem:[#allocation105_spill] sm:$0xff] }
 0x60b   :  { %3002 = vadd.xlane.f32.xlu2 %v2909_v12  ;;  %v2289_v16 = vmul.f32 %v15398_v50, %v15397_v7 }
 0x60d   :  { %v3060_v11 = vpop.permute.xlu2 %3059 }
 0x60e   :  { %v3137_v62 = vmul.f32 %v3060_v11, %v3041_v30  ;;  %v2902_v11 = vsel %vm15326_vm15, %v15342_v15, 0.0  ;;  %vm15402_vm15 = vmmov %vm15387_vm4 }
 0x60f   :  { %v2985_v48 = vpop.xlane.xlu0 %2984 }
 0x610   :  { %v3012_v46 = vadd.f32 %v2985_v48, %v2964_v17  ;;  %3129 = vperm.xlu1 %7929, %v10975_v41   ;;  %v3045_v48 = vld [vmem:[#allocation2 + $0x140] sm:$0xff] }
 0x612   :  { %3029 = vst.msk [vmem:[#allocation4 + $0x20] sm:$0xff] %vm15390_vm9, %v3012_v46  ;;  %3004 = vadd.xlane.f32.xlu0 %v2910_v27 }
 0x615   :  { %v3075_v42 = vpop.permute.xlu2 %3074 }
 0x616   :  { %v3140_v54 = vmul.f32 %v3075_v42, %v3044_v32 }
 0x618   :  { %v3170_v31 = vpop.f32.mrf.mxu2 }
 0x619   :  { %v3210_v29 = vadd.f32 %v3170_v31, %v3137_v62  ;;  %v15400_v62 = vld [vmem:[#allocation39_spill] sm:$0xff] }
 0x61a   :  { %v2960_v31 = vmul.f32 %v10785_v49, %v15400_v62 }
 0x61b   :  { %3226 = vst [vmem:[#allocation2 + $0x18] sm:$0xff] %v3210_v29 }
 0x620   :  { %v10981_v57 = vpop.f32.mrf.mxu2 }
 0x622   :  { %v2306_v59 = vpop.xlane.xlu1 %2305  ;;  %v3070_v13 = vpop.permute.xlu0 %3069 }
 0x623   :  { %v2331_v23 = vadd.f32 %v2306_v59, %v2283_v21  ;;  %v3139_v44 = vmul.f32 %v3070_v13, %v3043_v14  ;;  %v2905_v59 = vsel %vm15331_vm13, %v10881_v9, 0.0  ;;  %v3047_v14 = vld [vmem:[#allocation2 + $0x30] sm:$0xff]  ;;  %v3090_v13 = vpop.permute.xlu2 %3089  ;;  %v2292_v9 = vmul.f32 %v15404_v33, %v15403_v55  ;;  %vm15405_vm13 = vmmov %vm15348_vm1 }
 0x624   :  { %v3143_v49 = vmul.f32 %v3090_v13, %v3047_v14  ;;  %v2967_v14 = vmul.f32 %v10831_v61, %v15333_v10  ;;  %v2968_v33 = vmul.f32 %v10943_v26, %v15363_v60  ;;  %v2971_v60 = vmul.f32 %v10963_v6, %v15371_v43  ;;  %vm15410_vm1 = vmmov %vm15387_vm4 }
 0x625   :  { %2348 = vst.msk [vmem:[#allocation4 + $0x30] sm:$0xff] %vm15393_vm3, %v2331_v23  ;;  %v2963_v23 = vmul.f32 %v10801_v5, %v15335_v56  ;;  %v3048_v56 = vld [vmem:[#allocation2 + $0x8] sm:$0xff]  ;;  %vm15411_vm11 = vmmov %vm15410_vm1  ;;  %v2974_v6 = vmul.f32 %v10975_v41, %v15381_v37  ;;  %v2966_v37 = vmul.f32 %v10820_v36, %v15391_v38  ;;  %v2975_v36 = vmul.f32 %v10879_v35, %v15403_v55 }
 0x626   :  { %vm15412_vm14 = vmmov %vm15410_vm1 }
 0x627   :  { %vm15414_vm0 = vmmov %vm15410_vm1 }
 0x628   :  { %v3175_v34 = vpop.f32.mrf.mxu2  ;;  %vm15415_vm9 = vmmov %vm15414_vm0 }
 0x629   :  { %v3212_v18 = vadd.f32 %v3175_v34, %v3139_v44  ;;  %vm15416_vm3 = vmmov %vm15414_vm0 }
 0x62a   :  { %v2312_v45 = vpop.xlane.xlu1 %2311  ;;  %v3080_v46 = vpop.permute.xlu0 %3079 }
 0x62b   :  { %3228 = vst [vmem:[#allocation2 + $0x98] sm:$0xff] %v3212_v18  ;;  %v2334_v52 = vadd.f32 %v2312_v45, %v2286_v19  ;;  %v3141_v22 = vmul.f32 %v3080_v46, %v3045_v48  ;;  %v2908_v18 = vsel %vm15122_vm6, %v10933_v53, 0.0  ;;  %v3105_v0 = vpop.permute.xlu2 %3104  ;;  %vm15406_vm6 = vmmov %vm15387_vm4 }
 0x62d   :  { %2351 = vst.msk [vmem:[#allocation4 + $0x48] sm:$0xff] %vm15396_vm2, %v2334_v52 }
 0x630   :  { %v3177_v63 = vpop.f32.mrf.mxu2 }
 0x631   :  { %v3213_v4 = vadd.f32 %v3177_v63, %v3140_v54  ;;  %v2911_v54 = vsel %vm15356_vm7, %v10947_v28, 0.0  ;;  %vm15407_vm7 = vmmov %vm15387_vm4 }
 0x632   :  { %v2318_v12 = vpop.xlane.xlu1 %2317  ;;  %v3095_v45 = vpop.permute.xlu0 %3094  ;;  %vm15413_vm4 = vmmov %vm15410_vm1 }
 0x633   :  { %3229 = vst [vmem:[#allocation2 + $0x60] sm:$0xff] %v3213_v4  ;;  %v2337_v17 = vadd.f32 %v2318_v12, %v2289_v16  ;;  %v3144_v52 = vmul.f32 %v3095_v45, %v3048_v56  ;;  %v3050_v4 = vld [vmem:[#allocation2 + $0x128] sm:$0xff]  ;;  %v3120_v50 = vpop.permute.xlu2 %3119 }
 0x634   :  { %v3146_v16 = vmul.f32 %v3105_v0, %v3050_v4  ;;  %v3054_v4 = vld [vmem:[#allocation2 + $0x190] sm:$0xff] }
 0x635   :  { %2354 = vst.msk [vmem:[#allocation4 + $0x60] sm:$0xff] %vm15399_vm12, %v2337_v17  ;;  %v3042_v17 = vld [vmem:[#allocation2 + $0x48] sm:$0xff] }
 0x638   :  { %v3180_v27 = vpop.f32.mrf.mxu2 }
 0x639   :  { %v3214_v30 = vadd.f32 %v3180_v27, %v3141_v22  ;;  %v3051_v27 = vld [vmem:[#allocation2 + $0x78] sm:$0xff] }
 0x63a   :  { %2988 = vadd.xlane.f32.xlu1 %v2902_v11  ;;  %v2977_v29 = vpop.xlane.xlu1 %2976  ;;  %v3110_v63 = vpop.permute.xlu0 %3109 }
 0x63b   :  { %3230 = vst [vmem:[#allocation2 + $0x140] sm:$0xff] %v3214_v30  ;;  %v3008_v2 = vadd.f32 %v2977_v29, %v2960_v31  ;;  %v11014_v40 = vpop.permute.xlu2 %3134  ;;  %v3147_v28 = vmul.f32 %v3110_v63, %v3051_v27  ;;  %v3046_v31 = vld [vmem:[#allocation2 + $0x28] sm:$0xff]  ;;  %v3056_v27 = vld [vmem:[#allocation2 + $0xa0] sm:$0xff] }
 0x63d   :  { %3025 = vst.msk [vmem:[#allocation4] sm:$0xff] %vm15401_vm10, %v3008_v2 }
 0x640   :  { %v3182_v21 = vpop.f32.mrf.mxu2 }
 0x642   :  { %2994 = vadd.xlane.f32.xlu1 %v2905_v59  ;;  %v2983_v3 = vpop.xlane.xlu1 %2982  ;;  %v3125_v30 = vpop.permute.xlu0 %3124 }
 0x643   :  { %v3011_v15 = vadd.f32 %v2983_v3, %v2963_v23  ;;  %v2965_v23 = vmul.f32 %v10923_v47, %v15311_v25 }
 0x645   :  { %3028 = vst.msk [vmem:[#allocation4 + $0x18] sm:$0xff] %vm15402_vm15, %v3011_v15 }
 0x648   :  { %v3185_v44 = vpop.f32.mrf.mxu2 }
 0x649   :  { %v3216_v34 = vadd.f32 %v3185_v44, %v3143_v49  ;;  %v3049_v44 = vld [vmem:[#allocation2 + $0xc8] sm:$0xff] }
 0x64a   :  { %3000 = vadd.xlane.f32.xlu1 %v2908_v18  ;;  %v2324_v19 = vpop.xlane.xlu1 %2323 }
 0x64b   :  { %3232 = vst [vmem:[#allocation2 + $0x30] sm:$0xff] %v3216_v34  ;;  %v2340_v5 = vadd.f32 %v2324_v19, %v2292_v9 }
 0x64d   :  { %2357 = vst.msk [vmem:[#allocation4 + $0x78] sm:$0xff] %vm15405_vm13, %v2340_v5  ;;  %v3052_v5 = vld [vmem:[#allocation2 + $0xd0] sm:$0xff] }
 0x650   :  { %v3187_v32 = vpop.f32.mrf.mxu2 }
 0x651   :  { %v3217_v42 = vadd.f32 %v3187_v32, %v3144_v52  ;;  %v3053_v52 = vld [vmem:[#allocation2 + $0x1c8] sm:$0xff] }
 0x652   :  { %3006 = vadd.xlane.f32.xlu1 %v2911_v54  ;;  %v3149_v54 = vmul.f32 %v3120_v50, %v3053_v52 }
 0x653   :  { %3233 = vst [vmem:[#allocation2 + $0x8] sm:$0xff] %v3217_v42 }
 0x658   :  { %v3190_v53 = vpop.f32.mrf.mxu2 }
 0x660   :  { %v3192_v12 = vpop.f32.mrf.mxu2 }
 0x661   :  { %v3219_v48 = vadd.f32 %v3192_v12, %v3146_v16  ;;  %v3055_v16 = vld [vmem:[#allocation2 + $0x1c0] sm:$0xff] }
 0x662   :  { %v3065_v46 = vpop.permute.xlu1 %3064 }
 0x663   :  { %3235 = vst [vmem:[#allocation2 + $0x128] sm:$0xff] %v3219_v48  ;;  %v3138_v22 = vmul.f32 %v3065_v46, %v3042_v17 }
 0x665   :  { %v3211_v11 = vadd.f32 %v10981_v57, %v3138_v22 }
 0x667   :  { %3227 = vst [vmem:[#allocation2 + $0x48] sm:$0xff] %v3211_v11  ;;  %v3152_v11 = vmul.f32 %v11014_v40, %v3056_v27  ;;  %v2972_v40 = vmul.f32 %v10864_v20, %v15397_v7 }
 0x668   :  { %v3195_v62 = vpop.f32.mrf.mxu2 }
 0x669   :  { %v3220_v29 = vadd.f32 %v3195_v62, %v3147_v28 }
 0x66a   :  { %v3085_v2 = vpop.permute.xlu1 %3084 }
 0x66b   :  { %3236 = vst [vmem:[#allocation2 + $0x78] sm:$0xff] %v3220_v29  ;;  %v3142_v59 = vmul.f32 %v3085_v2, %v3046_v31  ;;  %v2969_v31 = vmul.f32 %v10836_v1, %v15394_v39 }
 0x66d   :  { %v3215_v3 = vadd.f32 %v3182_v21, %v3142_v59  ;;  %v2987_v15 = vpop.xlane.xlu0 %2986  ;;  %v2970_v21 = vmul.f32 %v10859_v58, %v15346_v24  ;;  %v2973_v58 = vmul.f32 %v10872_v51, %v15349_v8  ;;  %v3150_v8 = vmul.f32 %v3125_v30, %v3054_v4 }
 0x66e   :  { %v3013_v13 = vadd.f32 %v2987_v15, %v2965_v23  ;;  %v2991_v57 = vpop.xlane.xlu2 %2990 }
 0x66f   :  { %3231 = vst [vmem:[#allocation2 + $0x28] sm:$0xff] %v3215_v3  ;;  %v3015_v49 = vadd.f32 %v2991_v57, %v2967_v14 }
 0x670   :  { %3030 = vst.msk [vmem:[#allocation4 + $0x28] sm:$0xff] %vm15406_vm6, %v3013_v13  ;;  %v3197_v19 = vpop.f32.mrf.mxu2 }
 0x671   :  { %3032 = vst.msk [vmem:[#allocation4 + $0x38] sm:$0xff] %vm15407_vm7, %v3015_v49 }
 0x672   :  { %v3100_v34 = vpop.permute.xlu1 %3099 }
 0x673   :  { %v3145_v18 = vmul.f32 %v3100_v34, %v3049_v44 }
 0x675   :  { %v3218_v25 = vadd.f32 %v3190_v53, %v3145_v18  ;;  %v2993_v47 = vpop.xlane.xlu0 %2992 }
 0x676   :  { %v3016_v61 = vadd.f32 %v2993_v47, %v2968_v33  ;;  %v2997_v10 = vpop.xlane.xlu2 %2996 }
 0x677   :  { %3234 = vst [vmem:[#allocation2 + $0xc8] sm:$0xff] %v3218_v25  ;;  %v3018_v9 = vadd.f32 %v2997_v10, %v2970_v21 }
 0x678   :  { %3033 = vst.msk [vmem:[#allocation4 + $0x40] sm:$0xff] %vm15408_vm8, %v3016_v61 }
 0x679   :  { %3035 = vst.msk [vmem:[#allocation4 + $0x50] sm:$0xff] %vm15409_vm5, %v3018_v9 }
 0x67a   :  { %v3115_v56 = vpop.permute.xlu1 %3114 }
 0x67b   :  { %v3148_v45 = vmul.f32 %v3115_v56, %v3052_v5 }
 0x67d   :  { %v3221_v26 = vadd.f32 %v3197_v19, %v3148_v45  ;;  %v2999_v32 = vpop.xlane.xlu0 %2998 }
 0x67e   :  { %v3019_v24 = vadd.f32 %v2999_v32, %v2971_v60  ;;  %v3003_v42 = vpop.xlane.xlu2 %3002 }
 0x67f   :  { %3237 = vst [vmem:[#allocation2 + $0xd0] sm:$0xff] %v3221_v26  ;;  %v3021_v0 = vadd.f32 %v3003_v42, %v2973_v58 }
 0x680   :  { %3036 = vst.msk [vmem:[#allocation4 + $0x58] sm:$0xff] %vm15410_vm1, %v3019_v24  ;;  %v3200_v53 = vpop.f32.mrf.mxu2 }
 0x681   :  { %3038 = vst.msk [vmem:[#allocation4 + $0x68] sm:$0xff] %vm15411_vm11, %v3021_v0  ;;  %v3222_v63 = vadd.f32 %v3200_v53, %v3149_v54 }
 0x682   :  { %v3130_v43 = vpop.permute.xlu1 %3129 }
 0x683   :  { %3238 = vst [vmem:[#allocation2 + $0x1c8] sm:$0xff] %v3222_v63  ;;  %v3151_v17 = vmul.f32 %v3130_v43, %v3055_v16 }
 0x685   :  { %v3005_v12 = vpop.xlane.xlu0 %3004 }
 0x686   :  { %v3022_v51 = vadd.f32 %v3005_v12, %v2974_v6 }
 0x688   :  { %3039 = vst.msk [vmem:[#allocation4 + $0x70] sm:$0xff] %vm15412_vm14, %v3022_v51  ;;  %v3202_v50 = vpop.f32.mrf.mxu2  ;;  %v3205_v48 = vpop.f32.mrf.mxu3 }
 0x689   :  { %v3223_v46 = vadd.f32 %v3202_v50, %v3150_v8  ;;  %v3224_v22 = vadd.f32 %v3205_v48, %v3151_v17 }
 0x68b   :  { %3239 = vst [vmem:[#allocation2 + $0x190] sm:$0xff] %v3223_v46 }
 0x68c   :  { %3240 = vst [vmem:[#allocation2 + $0x1c0] sm:$0xff] %v3224_v22 }
 0x690   :  { %v3207_v28 = vpop.f32.mrf.mxu3 }
 0x691   :  { %v3225_v62 = vadd.f32 %v3207_v28, %v3152_v11 }
 0x693   :  { %3241 = vst [vmem:[#allocation2 + $0xa0] sm:$0xff] %v3225_v62 }
 0x6ad   :  { %v2989_v41 = vpop.xlane.xlu1 %2988 }
 0x6ae   :  { %v3014_v30 = vadd.f32 %v2989_v41, %v2966_v37 }
 0x6b0   :  { %3031 = vst.msk [vmem:[#allocation4 + $0x30] sm:$0xff] %vm15413_vm4, %v3014_v30 }
 0x6b5   :  { %v2995_v29 = vpop.xlane.xlu1 %2994 }
 0x6b6   :  { %v3017_v2 = vadd.f32 %v2995_v29, %v2969_v31 }
 0x6b8   :  { %3034 = vst.msk [vmem:[#allocation4 + $0x48] sm:$0xff] %vm15414_vm0, %v3017_v2 }
 0x6bd   :  { %v3001_v59 = vpop.xlane.xlu1 %3000 }
 0x6be   :  { %v3020_v23 = vadd.f32 %v3001_v59, %v2972_v40 }
 0x6c0   :  { %3037 = vst.msk [vmem:[#allocation4 + $0x60] sm:$0xff] %vm15415_vm9, %v3020_v23 }
 0x6c5   :  { %v3007_v38 = vpop.xlane.xlu1 %3006 }
 0x6c6   :  { %v3023_v3 = vadd.f32 %v3007_v38, %v2975_v36 }
 0x6c8   :  { %3040 = vst.msk [vmem:[#allocation4 + $0x78] sm:$0xff] %vm15416_vm3, %v3023_v3 }
 0x6c9 PF:  { %v3277_v1 = vld [vmem:[%s14536_s6] sm:$0xff]  ;;  %v3278_v20 = vld [vmem:[%s14536_s6 + $0x8] sm:$0xff]  ;;  %v14813_v13 = vmov 0   ;;  %v3803_v35 = vld [vmem:[#allocation4 + $0x10] sm:$0xff]  ;;  %vm3384_vm2 = vcmask 1043456   ;;  %vm3359_vm13 = vcmask 64512  }
 0x6ca   :  { %v3343_v39 = vunpack.c.l.b16 %v3277_v1  ;;  %v3344_v7 = vunpack.c.h.b16 %v3277_v1  ;;  %v3345_v15 = vunpack.c.l.b16 %v3278_v20  ;;  %v3346_v14 = vunpack.c.h.b16 %v3278_v20  ;;  %8189 = vset.pattern.permute.xlu1 %v14813_v13  ;;  %8188 = vset.pattern.permute.xlu0 %v14813_v13  ;;  %v3801_v55 = vld [vmem:[#allocation4] sm:$0xff]  ;;  %v3804_v33 = vld [vmem:[#allocation4 + $0x18] sm:$0xff]  ;;  %v3802_v61 = vld [vmem:[#allocation4 + $0x8] sm:$0xff]  ;;  %s7074_s14 = sshll.u32 %s14542_s12, 4  ;;  %s8707_s15 = smov 128   ;;  %s7075_s14 = int_to_ptr.hbm [resolvable:$true] %s7074_s14 }
 0x6cb   :  { %v3805_v57 = vld [vmem:[#allocation4 + $0x20] sm:$0xff]  ;;  %vm3819_vm12 = vcmp.gt.f32.partialorder %v3803_v35, 0.0  ;;  %vm3817_vm10 = vcmp.gt.f32.partialorder %v3801_v55, 0.0  ;;  %8190 = vset.pattern.permute.xlu2 %v14813_v13  ;;  %v3806_v45 = vld [vmem:[#allocation4 + $0x28] sm:$0xff]  ;;  %vm3820_vm6 = vcmp.gt.f32.partialorder %v3804_v33, 0.0  ;;  %vm3818_vm7 = vcmp.gt.f32.partialorder %v3802_v61, 0.0 }
 0x6cc   :  { %vm3821_vm15 = vcmp.gt.f32.partialorder %v3805_v57, 0.0  ;;  %v3351_v49 = vpack.c.b16 %v3343_v39, %v3343_v39  ;;  %v3352_v44 = vpack.c.b16 %v3344_v7, %v3344_v7  ;;  %v3353_v34 = vpack.c.b16 %v3345_v15, %v3345_v15  ;;  %v11066_v56 = vld [vmem:[%s14535_s5] sm:$0xff]  ;;  %v11084_v53 = vld [vmem:[%s14535_s5 + $0x8] sm:$0xff]  ;;  %v11101_v16 = vld [vmem:[%s14535_s5 + $0x10] sm:$0xff]  ;;  %s8708_s17 = smov 8  }
 0x6cd   :  { %v3354_v18 = vpack.c.b16 %v3346_v14, %v3346_v14  ;;  %v3835_v25 = vsel %vm3819_vm12, %v3803_v35, 1.0  ;;  %v3833_v47 = vsel %vm3817_vm10, %v3801_v55, 1.0  ;;  %v3837_v21 = vsel %vm3821_vm15, %v3805_v57, 1.0  ;;  %v3809_v43 = vld [vmem:[#allocation4 + $0x40] sm:$0xff]  ;;  %v11121_v8 = vld [vmem:[%s14535_s5 + $0x18] sm:$0xff]  ;;  %v3810_v46 = vld [vmem:[#allocation4 + $0x48] sm:$0xff] }
 0x6ce   :  { %v3386_v10 = vsel %vm3384_vm2, %v3351_v49, 0  ;;  %v3389_v9 = vsel %vm3384_vm2, %v3352_v44, 0  ;;  %v3392_v19 = vsel %vm3384_vm2, %v3353_v34, 0  ;;  %8229 = vrcp.f32 %v3835_v25  ;;  %v11141_v17 = vld [vmem:[%s14535_s5 + $0x20] sm:$0xff]  ;;  %v3808_v50 = vld [vmem:[#allocation4 + $0x38] sm:$0xff]  ;;  %v11180_v2 = vld [vmem:[%s14535_s5 + $0x28] sm:$0xff] }
 0x6cf   :  { %v3395_v5 = vsel %vm3384_vm2, %v3354_v18, 0  ;;  %3416 = vmatpush.bf16.msra.mxu0 %v3386_v10  ;;  %3465 = vmatpush.bf16.msra.mxu1 %v3389_v9  ;;  %8231 = vrcp.f32 %v3833_v47  ;;  %vm3822_vm8 = vcmp.gt.f32.partialorder %v3806_v45, 0.0  ;;  %v3836_v52 = vsel %vm3820_vm6, %v3804_v33, 1.0  ;;  %v3869_v28 = vld [vmem:[#allocation2 + $0xe0] sm:$0xff]  ;;  %v4105_v29 = vld [vmem:[#allocation2 + $0xd8] sm:$0xff]  ;;  %v3865_v36 = vld [vmem:[#allocation2 + $0xb0] sm:$0xff] }
 0x6d0   :  { %3514 = vmatpush.bf16.msra.mxu2 %v3392_v19  ;;  %3563 = vmatpush.bf16.msra.mxu3 %v3395_v5  ;;  %8233 = vrcp.f32 %v3837_v21  ;;  %v3834_v60 = vsel %vm3818_vm7, %v3802_v61, 1.0  ;;  %v3838_v26 = vsel %vm3822_vm8, %v3806_v45, 1.0  ;;  %v14815_v63 = vmov 1   ;;  %v3870_v41 = vld [vmem:[#allocation2 + $0x80] sm:$0xff]  ;;  %v4217_v39 = vld [vmem:[#allocation2 + $0x18] sm:$0xff]  ;;  %v3866_v35 = vld [vmem:[#allocation2 + $0x50] sm:$0xff] }
 0x6d1   :  { %8235 = vrcp.f32 %v3836_v52  ;;  %v14811_v4 = vmov 2   ;;  %v14817_v6 = vmov 3   ;;  %vm3825_vm5 = vcmp.gt.f32.partialorder %v3809_v43, 0.0  ;;  %v3867_v23 = vld [vmem:[#allocation2 + $0x180] sm:$0xff]  ;;  %v11198_v33 = vld [vmem:[%s14535_s5 + $0x30] sm:$0xff] }
 0x6d2   :  { %7486 = vmatmul.msk.bf16.vlgmr.msra.gmra.mxu0 %vm3359_vm13, %v11066_v56  ;;  %7494 = vmatmul.msk.bf16.vlgmr.msra.gmra.mxu1 %vm3359_vm13, %v11066_v56  ;;  %8237 = vrcp.f32 %v3834_v60  ;;  %v3841_v12 = vsel %vm3825_vm5, %v3809_v43, 1.0  ;;  %vm3824_vm1 = vcmp.gt.f32.partialorder %v3808_v50, 0.0  ;;  %vm3826_vm11 = vcmp.gt.f32.partialorder %v3810_v46, 0.0  ;;  %v3868_v14 = vld [vmem:[#allocation2 + $0x120] sm:$0xff]  ;;  %v3996_v61 = vld [vmem:[#allocation2 + $0x150] sm:$0xff] }
 0x6d3   :  { %7502 = vmatmul.msk.bf16.vlgmr.msra.gmra.mxu2 %vm3359_vm13, %v11066_v56  ;;  %7510 = vmatmul.msk.bf16.vlgmr.msra.gmra.mxu3 %vm3359_vm13, %v11066_v56  ;;  %8239 = vrcp.f32 %v3838_v26  ;;  %v3840_v48 = vsel %vm3824_vm1, %v3808_v50, 1.0  ;;  %v3842_v27 = vsel %vm3826_vm11, %v3810_v46, 1.0  ;;  %v3281_v49 = vld [vmem:[#allocation13] sm:$0xff] }
 0x6d4   :  { %v8230_v32 = vpop.eup %8229  ;;  %8241 = vrcp.f32 %v3841_v12  ;;  %v11201_v47 = vperm.slane %v3281_v49, 0  ;;  %v11203_v21 = vperm.slane %v3281_v49, 2  ;;  %v11209_v10 = vperm.slane %v3281_v49, 3 }
 0x6d5   :  { %v8232_v58 = vpop.eup %8231  ;;  %3893 = vperm.xlu1 %8189, %v8230_v32   ;;  %8243 = vrcp.f32 %v3840_v48  ;;  %v11215_v9 = vperm.slane %v3281_v49, 1  ;;  %v4218_v49 = vld [vmem:[#allocation2 + $0x48] sm:$0xff] }
 0x6d6   :  { %v11076_v24 = vpop.eup %8233  ;;  %3883 = vperm.xlu0 %8188, %v8232_v58   ;;  %8245 = vrcp.f32 %v3842_v27  ;;  %15420 = vst [vmem:[#allocation109_spill] sm:$0xff] %v11201_v47 }
 0x6d7   :  { %3903 = vperm.xlu2 %8190, %v11076_v24   ;;  %v8236_v42 = vpop.eup %8235  ;;  %15421 = vst [vmem:[#allocation110_spill] sm:$0xff] %v11203_v21 }
 0x6d8   :  { %v8238_v54 = vpop.eup %8237  ;;  %15422 = vst [vmem:[#allocation111_spill] sm:$0xff] %v11209_v10 }
 0x6d9   :  { %v11079_v0 = vpop.eup %8239  ;;  %15423 = vst [vmem:[#allocation112_spill] sm:$0xff] %v11215_v9 }
 0x6da   :  { %v11116_v51 = vpop.eup %8241 }
 0x6db   :  { %15417 = vst [vmem:[#allocation106_spill] sm:$0xff] %v11116_v51  ;;  %v11159_v22 = vpop.eup %8243 }
 0x6dc   :  { %15418 = vst [vmem:[#allocation107_spill] sm:$0xff] %v11159_v22  ;;  %v11164_v11 = vpop.eup %8245 }
 0x6dd   :  { %3898 = vperm.xlu1 %8189, %v8236_v42   ;;  %15419 = vst [vmem:[#allocation108_spill] sm:$0xff] %v11164_v11 }
 0x6de   :  { %3888 = vperm.xlu0 %8188, %v8238_v54  }
 0x6df   :  { %3908 = vperm.xlu2 %8190, %v11079_v0  }
 0x6e2   :  { %7487 = vmatmul.msk.bf16.gmra.mxu0 %vm3359_vm13, %v11084_v53  ;;  %7495 = vmatmul.msk.bf16.gmra.mxu1 %vm3359_vm13, %v11084_v53 }
 0x6e3   :  { %7503 = vmatmul.msk.bf16.gmra.mxu2 %vm3359_vm13, %v11084_v53  ;;  %7511 = vmatmul.msk.bf16.gmra.mxu3 %vm3359_vm13, %v11084_v53 }
 0x6e5   :  { %8192 = vset.pattern.permute.xlu1 %v14815_v63 }
 0x6e6   :  { %8191 = vset.pattern.permute.xlu0 %v14815_v63  ;;  %4014 = vperm.xlu1 %8192, %v8238_v54  }
 0x6e7   :  { %4010 = vperm.xlu0 %8191, %v8232_v58   ;;  %8193 = vset.pattern.permute.xlu2 %v14811_v4 }
 0x6e8   :  { %4122 = vperm.xlu2 %8193, %v8232_v58  }
 0x6ee   :  { %8194 = vset.pattern.permute.xlu1 %v14811_v4 }
 0x6ef   :  { %8196 = vset.pattern.permute.xlu0 %v14817_v6  ;;  %4126 = vperm.xlu1 %8194, %v8238_v54  }
 0x6f0   :  { %4238 = vperm.xlu0 %8196, %v8238_v54   ;;  %8195 = vset.pattern.permute.xlu2 %v14817_v6 }
 0x6f1   :  { %4234 = vperm.xlu2 %8195, %v8232_v58  }
 0x6f2   :  { %7488 = vmatmul.msk.bf16.gmra.mxu0 %vm3359_vm13, %v11101_v16  ;;  %7496 = vmatmul.msk.bf16.gmra.mxu1 %vm3359_vm13, %v11101_v16 }
 0x6f3   :  { %7512 = vmatmul.msk.bf16.gmra.mxu3 %vm3359_vm13, %v11101_v16  ;;  %7504 = vmatmul.msk.bf16.gmra.mxu2 %vm3359_vm13, %v11101_v16 }
 0x6f7   :  { %8197 = vset.pattern.permute.xlu1 %v14815_v63 }
 0x6f8   :  { %4242 = vperm.xlu0 %8196, %v8230_v32   ;;  %4018 = vperm.xlu1 %8197, %v8230_v32  }
 0x6f9   :  { %8198 = vset.pattern.permute.xlu2 %v14815_v63 }
 0x6fa   :  { %4022 = vperm.xlu2 %8198, %v8236_v42  }
 0x700   :  { %4266 = vperm.xlu0 %8196, %v11116_v51   ;;  %8199 = vset.pattern.permute.xlu1 %v14811_v4 }
 0x701   :  { %4130 = vperm.xlu1 %8199, %v8230_v32   ;;  %v3994_v32 = vld [vmem:[#allocation2 + $0x168] sm:$0xff] }
 0x702   :  { %7489 = vmatmul.msk.bf16.gmra.mxu0 %vm3359_vm13, %v11121_v8  ;;  %8200 = vset.pattern.permute.xlu2 %v14811_v4 }
 0x703   :  { %7513 = vmatmul.msk.bf16.gmra.mxu3 %vm3359_vm13, %v11121_v8  ;;  %4134 = vperm.xlu2 %8200, %v8236_v42  }
 0x704   :  { %7505 = vmatmul.msk.bf16.gmra.mxu2 %vm3359_vm13, %v11121_v8  ;;  %7497 = vmatmul.msk.bf16.gmra.mxu1 %vm3359_vm13, %v11121_v8 }
 0x708   :  { %8210 = vset.pattern.permute.xlu0 %v14811_v4 }
 0x709   :  { %8201 = vset.pattern.permute.xlu1 %v14817_v6 }
 0x70a   :  { %4246 = vperm.xlu1 %8201, %v8236_v42  }
 0x70b   :  { %8202 = vset.pattern.permute.xlu2 %v14815_v63 }
 0x70c   :  { %4026 = vperm.xlu2 %8202, %v11076_v24  }
 0x712   :  { %7490 = vmatmul.msk.bf16.gmra.mxu0 %vm3359_vm13, %v11141_v17  ;;  %8203 = vset.pattern.permute.xlu1 %v14811_v4 }
 0x713   :  { %7514 = vmatmul.msk.bf16.gmra.mxu3 %vm3359_vm13, %v11141_v17  ;;  %4138 = vperm.xlu1 %8203, %v11076_v24  }
 0x714   :  { %7506 = vmatmul.msk.bf16.gmra.mxu2 %vm3359_vm13, %v11141_v17  ;;  %8204 = vset.pattern.permute.xlu2 %v14811_v4 }
 0x715   :  { %7498 = vmatmul.msk.bf16.gmra.mxu1 %vm3359_vm13, %v11141_v17  ;;  %4142 = vperm.xlu2 %8204, %v11079_v0  }
 0x71b   :  { %8205 = vset.pattern.permute.xlu1 %v14817_v6 }
 0x71c   :  { %4250 = vperm.xlu1 %8205, %v11076_v24   ;;  %v3993_v24 = vld [vmem:[#allocation2 + $0x1b0] sm:$0xff] }
 0x71d   :  { %8206 = vset.pattern.permute.xlu2 %v14817_v6 }
 0x71e   :  { %4254 = vperm.xlu2 %8206, %v11079_v0  }
 0x722   :  { %7491 = vmatmul.msk.bf16.gmra.mxu0 %vm3359_vm13, %v11180_v2 }
 0x723   :  { %7515 = vmatmul.msk.bf16.gmra.mxu3 %vm3359_vm13, %v11180_v2 }
 0x724   :  { %8207 = vset.pattern.permute.xlu1 %v14815_v63  ;;  %7507 = vmatmul.msk.bf16.gmra.mxu2 %vm3359_vm13, %v11180_v2 }
 0x725   :  { %4038 = vperm.xlu1 %8207, %v11159_v22   ;;  %7499 = vmatmul.msk.bf16.gmra.mxu1 %vm3359_vm13, %v11180_v2 }
 0x726   :  { %4262 = vperm.xlu2 %8206, %v11159_v22  }
 0x72d   :  { %8208 = vset.pattern.permute.xlu1 %v14811_v4 }
 0x72e   :  { %4158 = vperm.xlu1 %8208, %v11164_v11   ;;  %4270 = vperm.xlu2 %8206, %v11164_v11  }
 0x731   :  { %v3904_v62 = vpop.permute.xlu2 %3903 }
 0x732   :  { %v11169_v37 = vmul.f32 %v3904_v62, %v3869_v28  ;;  %7492 = vmatmul.msk.bf16.gmra.mxu0 %vm3359_vm13, %v11198_v33 }
 0x733   :  { %7516 = vmatmul.msk.bf16.gmra.mxu3 %vm3359_vm13, %v11198_v33 }
 0x734   :  { %3981 = vst [vmem:[#allocation2 + $0xe0] sm:$0xff] %v11169_v37  ;;  %7508 = vmatmul.msk.bf16.gmra.mxu2 %vm3359_vm13, %v11198_v33 }
 0x735   :  { %7500 = vmatmul.msk.bf16.gmra.mxu1 %vm3359_vm13, %v11198_v33 }
 0x736   :  { %8211 = vset.pattern.permute.xlu1 %v14817_v6  ;;  %8209 = vset.pattern.permute.xlu2 %v14811_v4 }
 0x739   :  { %v3909_v30 = vpop.permute.xlu2 %3908 }
 0x73a   :  { %v11174_v31 = vmul.f32 %v3909_v30, %v3870_v41 }
 0x73c   :  { %3982 = vst [vmem:[#allocation2 + $0x80] sm:$0xff] %v11174_v31 }
 0x742   :  { %v4123_v40 = vpop.permute.xlu2 %4122 }
 0x743   :  { %v4185_v59 = vmul.f32 %v4123_v40, %v4105_v29  ;;  %v4108_v29 = vld [vmem:[#allocation2 + $0x108] sm:$0xff] }
 0x745   :  { %4201 = vst [vmem:[#allocation2 + $0xd8] sm:$0xff] %v4185_v59 }
 0x747   :  { %v3894_v38 = vpop.permute.xlu1 %3893 }
 0x748   :  { %v11190_v3 = vmul.f32 %v3894_v38, %v3867_v23  ;;  %v3884_v1 = vpop.permute.xlu0 %3883 }
 0x749   :  { %v3961_v20 = vmul.f32 %v3884_v1, %v3865_v36 }
 0x74a   :  { %3979 = vst [vmem:[#allocation2 + $0x180] sm:$0xff] %v11190_v3 }
 0x74b   :  { %3977 = vst [vmem:[#allocation2 + $0xb0] sm:$0xff] %v3961_v20  ;;  %v4235_v7 = vpop.permute.xlu2 %4234 }
 0x74c   :  { %v4297_v15 = vmul.f32 %v4235_v7, %v4217_v39 }
 0x74e   :  { %4313 = vst [vmem:[#allocation2 + $0x18] sm:$0xff] %v4297_v15 }
 0x74f   :  { %v3418_v55 = vpop.f32.mrf.mxu0  ;;  %v3899_v57 = vpop.permute.xlu1 %3898 }
 0x750   :  { %v3467_v44 = vpop.f32.mrf.mxu1  ;;  %v11193_v34 = vmul.f32 %v3899_v57, %v3868_v14  ;;  %v3889_v18 = vpop.permute.xlu0 %3888  ;;  %v3419_v60 = vadd.f32 %v3418_v55, %v11201_v47 }
 0x751   :  { %v3962_v25 = vmul.f32 %v3889_v18, %v3866_v35  ;;  %v3468_v42 = vadd.f32 %v3467_v44, %v11215_v9 }
 0x752   :  { %3980 = vst [vmem:[#allocation2 + $0x120] sm:$0xff] %v11193_v34  ;;  %v11224_v46 = vadd.f32 %v3961_v20, %v3419_v60 }
 0x753   :  { %3978 = vst [vmem:[#allocation2 + $0x50] sm:$0xff] %v3962_v25 }
 0x754   :  { %v4023_v19 = vpop.permute.xlu2 %4022  ;;  %v4560_v36 = vmul.f32 %v11224_v46, %v11224_v46 }
 0x755   :  { %v11217_v52 = vmul.f32 %v4023_v19, %v3996_v61  ;;  %v11255_v61 = vld [vmem:[%s14535_s5 + $0x38] sm:$0xff] }
 0x756   :  { %v3516_v5 = vpop.f32.mrf.mxu2  ;;  %v3565_v45 = vpop.f32.mrf.mxu3  ;;  %7509 = vmatmul.msk.bf16.gmra.mxu2 %vm3359_vm13, %v11255_v61  ;;  %7517 = vmatmul.msk.bf16.gmra.mxu3 %vm3359_vm13, %v11255_v61 }
 0x757   :  { %v3517_v26 = vadd.f32 %v3516_v5, %v11203_v21  ;;  %v3566_v58 = vadd.f32 %v3565_v45, %v11209_v10  ;;  %4092 = vst [vmem:[#allocation2 + $0x150] sm:$0xff] %v11217_v52  ;;  %v3420_v43 = vpop.f32.mrf.mxu0  ;;  %7493 = vmatmul.msk.bf16.gmra.mxu0 %vm3359_vm13, %v11255_v61  ;;  %7501 = vmatmul.msk.bf16.gmra.mxu1 %vm3359_vm13, %v11255_v61 }
 0x758   :  { %v4015_v54 = vpop.permute.xlu1 %4014  ;;  %v3469_v48 = vpop.f32.mrf.mxu1  ;;  %v3421_v41 = vadd.f32 %v3420_v43, %v11201_v47 }
 0x759   :  { %v4074_v12 = vmul.f32 %v4015_v54, %v3994_v32  ;;  %v4011_v50 = vpop.permute.xlu0 %4010  ;;  %v11226_v27 = vadd.f32 %v4185_v59, %v3517_v26  ;;  %v11228_v62 = vadd.f32 %v4297_v15, %v3566_v58  ;;  %v3470_v30 = vadd.f32 %v3469_v48, %v11215_v9  ;;  %v4106_v15 = vld [vmem:[#allocation2 + $0x130] sm:$0xff]  ;;  %v3997_v58 = vld [vmem:[#allocation2 + $0x188] sm:$0xff] }
 0x75a   :  { %v4073_v28 = vmul.f32 %v4011_v50, %v3993_v24  ;;  %v11242_v7 = vadd.f32 %v3962_v25, %v3421_v41 }
 0x75b   :  { %4090 = vst [vmem:[#allocation2 + $0x168] sm:$0xff] %v4074_v12  ;;  %v4562_v39 = vmul.f32 %v11226_v27, %v11226_v27  ;;  %v4563_v35 = vmul.f32 %v11228_v62, %v11228_v62  ;;  %v11248_v55 = vadd.f32 %v4074_v12, %v3470_v30 }
 0x75c   :  { %4089 = vst [vmem:[#allocation2 + $0x1b0] sm:$0xff] %v4073_v28  ;;  %v11232_v40 = vadd.f32 %v4073_v28, %v3468_v42  ;;  %v4564_v30 = vmul.f32 %v11242_v7, %v11242_v7 }
 0x75d   :  { %v4135_v1 = vpop.permute.xlu2 %4134  ;;  %v4462_v54 = vadd.f32 %v11248_v55, %v11242_v7 }
 0x75e   :  { %v3567_v23 = vpop.f32.mrf.mxu3  ;;  %v3518_v38 = vpop.f32.mrf.mxu2  ;;  %v4457_v59 = vadd.f32 %v11232_v40, %v11224_v46  ;;  %v4561_v20 = vmul.f32 %v11232_v40, %v11232_v40  ;;  %v11244_v14 = vmul.f32 %v4135_v1, %v4108_v29  ;;  %v4565_v29 = vmul.f32 %v11248_v55, %v11248_v55  ;;  %v3995_v1 = vld [vmem:[#allocation2 + $0x110] sm:$0xff] }
 0x75f   :  { %v3519_v57 = vadd.f32 %v3518_v38, %v11203_v21  ;;  %v3568_v25 = vadd.f32 %v3567_v23, %v11209_v10  ;;  %v3423_v43 = vpop.f32.mrf.mxu0  ;;  %v4219_v38 = vld [vmem:[#allocation2 + $0x98] sm:$0xff] }
 0x760   :  { %v4458_v44 = vadd.f32 %v4457_v59, %v11226_v27  ;;  %v4624_v18 = vadd.f32 %v4561_v20, %v4560_v36  ;;  %4204 = vst [vmem:[#allocation2 + $0x108] sm:$0xff] %v11244_v14  ;;  %v3472_v48 = vpop.f32.mrf.mxu1 }
 0x761   :  { %v4127_v19 = vpop.permute.xlu1 %4126 }
 0x762   :  { %v4186_v5 = vmul.f32 %v4127_v19, %v4106_v15  ;;  %v4239_v45 = vpop.permute.xlu0 %4238  ;;  %v4459_v60 = vadd.f32 %v4458_v44, %v11228_v62  ;;  %v4625_v26 = vadd.f32 %v4624_v18, %v4562_v39  ;;  %v3280_v39 = vld [vmem:[%s14536_s6 + $0x18] sm:$0xff]  ;;  %v3473_v18 = vadd.f32 %v3472_v48, %v11215_v9  ;;  %v3279_v48 = vld [vmem:[%s14536_s6 + $0x10] sm:$0xff] }
 0x763   :  { %v4298_v32 = vmul.f32 %v4239_v45, %v4218_v49  ;;  %v3349_v49 = vunpack.c.l.b16 %v3280_v39  ;;  %v3350_v44 = vunpack.c.h.b16 %v3280_v39 }
 0x764   :  { %4202 = vst [vmem:[#allocation2 + $0x130] sm:$0xff] %v4186_v5  ;;  %4460 = vadd.xlane.f32.xlu1 %v4459_v60  ;;  %v4626_v24 = vadd.f32 %v4625_v26, %v4563_v35  ;;  %v11268_v42 = vadd.f32 %v4186_v5, %v3519_v57  ;;  %v4629_v57 = vadd.f32 %v4565_v29, %v4564_v30 }
 0x765   :  { %4314 = vst [vmem:[#allocation2 + $0x48] sm:$0xff] %v4298_v32  ;;  %v11272_v50 = vadd.f32 %v4298_v32, %v3568_v25  ;;  %v3357_v60 = vpack.c.b16 %v3349_v49, %v3349_v49  ;;  %v3358_v26 = vpack.c.b16 %v3350_v44, %v3350_v44  ;;  %v3424_v32 = vadd.f32 %v3423_v43, %v11201_v47 }
 0x766   :  { %v3570_v12 = vpop.f32.mrf.mxu3  ;;  %v4027_v28 = vpop.permute.xlu2 %4026  ;;  %4627 = vadd.xlane.f32.xlu0 %v4626_v24  ;;  %v4463_v41 = vadd.f32 %v4462_v54, %v11268_v42  ;;  %v4566_v20 = vmul.f32 %v11268_v42, %v11268_v42 }
 0x767   :  { %v11279_v23 = vmul.f32 %v4027_v28, %v3997_v58  ;;  %v3521_v36 = vpop.f32.mrf.mxu2  ;;  %v4567_v5 = vmul.f32 %v11272_v50, %v11272_v50  ;;  %v3404_v24 = vsel %vm3384_vm2, %v3357_v60, 0  ;;  %v3425_v54 = vpop.f32.mrf.mxu0  ;;  %v11300_v43 = vadd.f32 %v11190_v3, %v3424_v32 }
 0x768   :  { %v4464_v59 = vadd.f32 %v4463_v41, %v11272_v50  ;;  %v4630_v45 = vadd.f32 %v4629_v57, %v4566_v20  ;;  %3710 = vmatpush.bf16.msrb.mxu2 %v3404_v24  ;;  %v3474_v28 = vpop.f32.mrf.mxu1  ;;  %v4225_v41 = vld [vmem:[#allocation2 + $0xc8] sm:$0xff]  ;;  %v3348_v20 = vunpack.c.h.b16 %v3279_v48  ;;  %v3522_v39 = vadd.f32 %v3521_v36, %v11203_v21 }
 0x769   :  { %4093 = vst [vmem:[#allocation2 + $0x188] sm:$0xff] %v11279_v23  ;;  %v3475_v44 = vadd.f32 %v3474_v28, %v11215_v9 }
 0x76a   :  { %v4243_v15 = vpop.permute.xlu0 %4242  ;;  %v4019_v35 = vpop.permute.xlu1 %4018  ;;  %4465 = vadd.xlane.f32.xlu2 %v4464_v59  ;;  %v4631_v30 = vadd.f32 %v4630_v45, %v4567_v5  ;;  %v4107_v59 = vld [vmem:[#allocation2 + $0x118] sm:$0xff]  ;;  %v3356_v5 = vpack.c.b16 %v3348_v20, %v3348_v20 }
 0x76b   :  { %v4299_v25 = vmul.f32 %v4243_v15, %v4219_v38  ;;  %v4075_v19 = vmul.f32 %v4019_v35, %v3995_v1  ;;  %v3407_v38 = vsel %vm3384_vm2, %v3358_v26, 0  ;;  %v3347_v1 = vunpack.c.l.b16 %v3279_v48  ;;  %7534 = vmatmul.msk.bf16.vlgmr.msrb.gmra.mxu2 %vm3359_vm13, %v11066_v56 }
 0x76c   :  { %3759 = vmatpush.bf16.msrb.mxu3 %v3407_v38  ;;  %v3571_v15 = vadd.f32 %v3570_v12, %v11209_v10  ;;  %v3426_v35 = vadd.f32 %v3425_v54, %v11201_v47  ;;  %v4568_v12 = vmul.f32 %v11300_v43, %v11300_v43  ;;  %v3401_v24 = vsel %vm3384_vm2, %v3356_v5, 0 }
 0x76d   :  { %4315 = vst [vmem:[#allocation2 + $0x98] sm:$0xff] %v4299_v25  ;;  %v11296_v29 = vadd.f32 %v4075_v19, %v3473_v18  ;;  %3661 = vmatpush.bf16.msrb.mxu1 %v3401_v24 }
 0x76e   :  { %v3572_v58 = vpop.f32.mrf.mxu3  ;;  %4091 = vst [vmem:[#allocation2 + $0x110] sm:$0xff] %v4075_v19  ;;  %v3355_v19 = vpack.c.b16 %v3347_v1, %v3347_v1  ;;  %v11324_v48 = vadd.f32 %v4299_v25, %v3571_v15 }
 0x76f   :  { %v3523_v57 = vpop.f32.mrf.mxu2  ;;  %v4569_v36 = vmul.f32 %v11296_v29, %v11296_v29  ;;  %7542 = vmatmul.msk.bf16.vlgmr.msrb.gmra.mxu3 %vm3359_vm13, %v11066_v56  ;;  %v4467_v28 = vadd.f32 %v11296_v29, %v11300_v43 }
 0x770   :  { %v3524_v60 = vadd.f32 %v3523_v57, %v11203_v21  ;;  %v3398_v32 = vsel %vm3384_vm2, %v3355_v19, 0  ;;  %7526 = vmatmul.msk.bf16.vlgmr.msrb.gmra.mxu1 %vm3359_vm13, %v11066_v56 }
 0x771   :  { %3612 = vmatpush.bf16.msrb.mxu0 %v3398_v32  ;;  %v4109_v32 = vld [vmem:[#allocation2 + $0x138] sm:$0xff] }
 0x772   :  { %v4267_v49 = vpop.permute.xlu0 %4266  ;;  %4632 = vadd.xlane.f32.xlu2 %v4631_v30  ;;  %v11332_v30 = vadd.f32 %v11217_v52, %v3475_v44  ;;  %v11338_v25 = vadd.f32 %v11244_v14, %v3524_v60  ;;  %v4571_v52 = vmul.f32 %v11324_v48, %v11324_v48 }
 0x773   :  { %v11308_v18 = vmul.f32 %v4267_v49, %v4225_v41  ;;  %v4131_v3 = vpop.permute.xlu1 %4130  ;;  %v11329_v41 = vadd.f32 %v11193_v34, %v3426_v35  ;;  %v4220_v34 = vld [vmem:[#allocation2 + $0x60] sm:$0xff]  ;;  %v3573_v49 = vadd.f32 %v3572_v58, %v11209_v10 }
 0x774   :  { %v4187_v45 = vmul.f32 %v4131_v3, %v4107_v59  ;;  %15425 = vst [vmem:[#allocation114_spill] sm:$0xff] %v11332_v30  ;;  %v4634_v59 = vadd.f32 %v4569_v36, %v4568_v12  ;;  %7518 = vmatmul.msk.bf16.vlgmr.msrb.gmra.mxu0 %vm3359_vm13, %v11066_v56  ;;  %v4573_v14 = vmul.f32 %v11332_v30, %v11332_v30 }
 0x775   :  { %4321 = vst [vmem:[#allocation2 + $0xc8] sm:$0xff] %v11308_v18  ;;  %v4572_v15 = vmul.f32 %v11329_v41, %v11329_v41  ;;  %v4472_v3 = vadd.f32 %v11332_v30, %v11329_v41  ;;  %v4574_v19 = vmul.f32 %v11338_v25, %v11338_v25 }
 0x776   :  { %v11318_v26 = vpop.f32.mrf.mxu3  ;;  %4203 = vst [vmem:[#allocation2 + $0x118] sm:$0xff] %v4187_v45  ;;  %v11322_v54 = vadd.f32 %v4187_v45, %v3522_v39 }
 0x777   :  { %15424 = vst [vmem:[#allocation113_spill] sm:$0xff] %v11329_v41  ;;  %v4473_v45 = vadd.f32 %v4472_v3, %v11338_v25  ;;  %v4639_v36 = vadd.f32 %v4573_v14, %v4572_v15  ;;  %v11387_v3 = vpop.f32.mrf.mxu1 }
 0x778   :  { %v4468_v38 = vadd.f32 %v4467_v28, %v11322_v54  ;;  %v4570_v1 = vmul.f32 %v11322_v54, %v11322_v54  ;;  %15426 = vst [vmem:[#allocation115_spill] sm:$0xff] %v11338_v25 }
 0x779   :  { %v4640_v60 = vadd.f32 %v4639_v36, %v4574_v19 }
 0x77a   :  { %v4469_v20 = vadd.f32 %v4468_v38, %v11324_v48  ;;  %v4635_v39 = vadd.f32 %v4634_v59, %v4570_v1  ;;  %v3807_v59 = vld [vmem:[#allocation4 + $0x30] sm:$0xff] }
 0x77b   :  { %7535 = vmatmul.msk.bf16.gmra.mxu2 %vm3359_vm13, %v11084_v53  ;;  %vm3823_vm14 = vcmp.gt.f32.partialorder %v3807_v59, 0.0 }
 0x77c   :  { %v4247_v35 = vpop.permute.xlu1 %4246  ;;  %4470 = vadd.xlane.f32.xlu1 %v4469_v20  ;;  %v4636_v57 = vadd.f32 %v4635_v39, %v4571_v52  ;;  %v4221_v20 = vld [vmem:[#allocation2 + $0x140] sm:$0xff]  ;;  %v4143_v52 = vpop.permute.xlu2 %4142 }
 0x77d   :  { %v4300_v44 = vmul.f32 %v4247_v35, %v4220_v34  ;;  %v4110_v34 = vld [vmem:[#allocation2 + $0x1b8] sm:$0xff] }
 0x77e   :  { %v11352_v56 = vpop.f32.mrf.mxu3  ;;  %4637 = vadd.xlane.f32.xlu0 %v4636_v57  ;;  %v4190_v15 = vmul.f32 %v4143_v52, %v4110_v34  ;;  %v3811_v57 = vld [vmem:[#allocation4 + $0x50] sm:$0xff]  ;;  %v3526_v34 = vpop.f32.mrf.mxu2 }
 0x77f   :  { %4316 = vst [vmem:[#allocation2 + $0x60] sm:$0xff] %v4300_v44  ;;  %v11358_v5 = vadd.f32 %v4300_v44, %v3573_v49  ;;  %7543 = vmatmul.msk.bf16.gmra.mxu3 %vm3359_vm13, %v11084_v53  ;;  %v11381_v49 = vpop.f32.mrf.mxu0  ;;  %v3839_v44 = vsel %vm3823_vm14, %v3807_v59, 1.0  ;;  %vm3827_vm4 = vcmp.gt.f32.partialorder %v3811_v57, 0.0 }
 0x780   :  { %7527 = vmatmul.msk.bf16.gmra.mxu1 %vm3359_vm13, %v11084_v53  ;;  %4206 = vst [vmem:[#allocation2 + $0x1b8] sm:$0xff] %v4190_v15  ;;  %8247 = vrcp.f32 %v3839_v44 }
 0x781   :  { %15427 = vst [vmem:[#allocation116_spill] sm:$0xff] %v11358_v5  ;;  %v4474_v12 = vadd.f32 %v4473_v45, %v11358_v5  ;;  %v4575_v58 = vmul.f32 %v11358_v5, %v11358_v5 }
 0x783   :  { %4475 = vadd.xlane.f32.xlu2 %v4474_v12  ;;  %v4641_v24 = vadd.f32 %v4640_v60, %v4575_v58  ;;  %v4000_v12 = vld [vmem:[#allocation2] sm:$0xff]  ;;  %v3843_v60 = vsel %vm3827_vm4, %v3811_v57, 1.0 }
 0x784   :  { %7519 = vmatmul.msk.bf16.gmra.mxu0 %vm3359_vm13, %v11084_v53  ;;  %v4222_v53 = vld [vmem:[#allocation2 + $0x28] sm:$0xff]  ;;  %v4255_v19 = vpop.permute.xlu2 %4254  ;;  %8249 = vrcp.f32 %v3843_v60  ;;  %v4114_v57 = vld [vmem:[#allocation2 + $0x20] sm:$0xff] }
 0x785   :  { %v4139_v28 = vpop.permute.xlu1 %4138  ;;  %4642 = vadd.xlane.f32.xlu1 %v4641_v24  ;;  %v4302_v36 = vmul.f32 %v4255_v19, %v4222_v53 }
 0x786   :  { %v11368_v38 = vpop.f32.mrf.mxu3  ;;  %v11370_v1 = vmul.f32 %v4139_v28, %v4109_v32  ;;  %v11399_v59 = vpop.eup %8247 }
 0x787   :  { %15428 = vst [vmem:[#allocation117_spill] sm:$0xff] %v11368_v38  ;;  %v11402_v52 = vpop.f32.mrf.mxu0  ;;  %v11411_v19 = vpop.f32.mrf.mxu2 }
 0x788   :  { %4205 = vst [vmem:[#allocation2 + $0x138] sm:$0xff] %v11370_v1 }
 0x789   :  { %4318 = vst [vmem:[#allocation2 + $0x28] sm:$0xff] %v4302_v36 }
 0x78a   :  { %v11408_v44 = vpop.eup %8249 }
 0x78b   :  { %7536 = vmatmul.msk.bf16.gmra.mxu2 %vm3359_vm13, %v11101_v16  ;;  %15431 = vst [vmem:[#allocation120_spill] sm:$0xff] %v11408_v44 }
 0x78c   :  { %v4263_v15 = vpop.permute.xlu2 %4262 }
 0x78e   :  { %v11377_v39 = vpop.f32.mrf.mxu3  ;;  %v4251_v14 = vpop.permute.xlu1 %4250 }
 0x78f   :  { %15429 = vst [vmem:[#allocation118_spill] sm:$0xff] %v11377_v39  ;;  %v11379_v35 = vmul.f32 %v4251_v14, %v4221_v20  ;;  %7544 = vmatmul.msk.bf16.gmra.mxu3 %vm3359_vm13, %v11101_v16  ;;  %v4224_v20 = vld [vmem:[#allocation2 + $0x8] sm:$0xff] }
 0x790   :  { %7528 = vmatmul.msk.bf16.gmra.mxu1 %vm3359_vm13, %v11101_v16  ;;  %v4304_v14 = vmul.f32 %v4263_v15, %v4224_v20 }
 0x791   :  { %4317 = vst [vmem:[#allocation2 + $0x140] sm:$0xff] %v11379_v35 }
 0x792   :  { %4150 = vperm.xlu0 %8210, %v11159_v22   ;;  %4320 = vst [vmem:[#allocation2 + $0x8] sm:$0xff] %v4304_v14  ;;  %v8705_v14 = vmov 64.0  }
 0x793   :  { %8251 = vrcp.f32 %v8705_v14 }
 0x794   :  { %7520 = vmatmul.msk.bf16.gmra.mxu0 %vm3359_vm13, %v11101_v16 }
 0x796   :  { %v3585_v45 = vpop.f32.mrf.mxu3 }
 0x797   :  { %v3586_v58 = vadd.f32 %v3585_v45, %v11209_v10  ;;  %v4039_v32 = vpop.permute.xlu1 %4038  ;;  %v11415_v45 = vpop.f32.mrf.mxu0 }
 0x798   :  { %v4080_v28 = vmul.f32 %v4039_v32, %v4000_v12  ;;  %15432 = vst [vmem:[#allocation121_spill] sm:$0xff] %v11415_v45  ;;  %v11428_v12 = vpop.f32.mrf.mxu2  ;;  %v4226_v32 = vld [vmem:[#allocation2 + $0x128] sm:$0xff] }
 0x799   :  { %v11393_v24 = vadd.f32 %v11308_v18, %v3586_v58  ;;  %v11405_v18 = vpop.f32.mrf.mxu1  ;;  %15434 = vst [vmem:[#allocation123_spill] sm:$0xff] %v11428_v12 }
 0x79a   :  { %4154 = vperm.xlu0 %8210, %v11116_v51   ;;  %4096 = vst [vmem:[#allocation2] sm:$0xff] %v4080_v28  ;;  %v4271_v28 = vpop.permute.xlu2 %4270 }
 0x79b   :  { %15430 = vst [vmem:[#allocation119_spill] sm:$0xff] %v11393_v24  ;;  %4146 = vperm.xlu2 %8209, %v11399_v59   ;;  %7537 = vmatmul.msk.bf16.gmra.mxu2 %vm3359_vm13, %v11121_v8  ;;  %v4306_v20 = vmul.f32 %v4271_v28, %v4226_v32  ;;  %v3478_v32 = vadd.f32 %v11387_v3, %v11215_v9 }
 0x79c   :  { %v3576_v3 = vadd.f32 %v11318_v26, %v11209_v10 }
 0x79d   :  { %4322 = vst [vmem:[#allocation2 + $0x128] sm:$0xff] %v4306_v20 }
 0x79e   :  { %4258 = vperm.xlu1 %8211, %v11399_v59  }
 0x79f   :  { %7545 = vmatmul.msk.bf16.gmra.mxu3 %vm3359_vm13, %v11121_v8  ;;  %v11430_v58 = vpop.f32.mrf.mxu0 }
 0x7a0   :  { %v4159_v16 = vpop.permute.xlu1 %4158  ;;  %7529 = vmatmul.msk.bf16.gmra.mxu1 %vm3359_vm13, %v11121_v8  ;;  %15435 = vst [vmem:[#allocation124_spill] sm:$0xff] %v11430_v58 }
 0x7a1   :  { %v4194_v53 = vmul.f32 %v4159_v16, %v4114_v57  ;;  %v11420_v36 = vpop.f32.mrf.mxu1  ;;  %v8252_v16 = vpop.eup %8251 }
 0x7a2   :  { %4162 = vperm.xlu0 %8210, %v11408_v44   ;;  %15433 = vst [vmem:[#allocation122_spill] sm:$0xff] %v11420_v36  ;;  %v4538_v14 = vmul.f32 64.0, %v8252_v16  ;;  %vm4542_vm9 = vweird.f32 %v8252_v16 }
 0x7a3   :  { %4210 = vst [vmem:[#allocation2 + $0x20] sm:$0xff] %v4194_v53  ;;  %v3429_v53 = vadd.f32 %v11381_v49, %v11201_v47  ;;  %v11468_v49 = vadd.f32 %v11279_v23, %v3478_v32 }
 0x7a4   :  { %7521 = vmatmul.msk.bf16.gmra.mxu0 %vm3359_vm13, %v11121_v8  ;;  %v11439_v8 = vpop.f32.mrf.mxu2 }
 0x7a5   :  { %15437 = vst [vmem:[#allocation126_spill] sm:$0xff] %v11439_v8  ;;  %v11465_v4 = vadd.f32 %v11169_v37, %v3429_v53  ;;  %v11567_v8 = vpop.f32.mrf.mxu3 }
 0x7a6   :  { %4274 = vperm.xlu1 %8211, %v11408_v44   ;;  %15444 = vst [vmem:[#allocation133_spill] sm:$0xff] %v11468_v49 }
 0x7a7   :  { %15443 = vst [vmem:[#allocation132_spill] sm:$0xff] %v11465_v4  ;;  %v4477_v37 = vadd.f32 %v11468_v49, %v11465_v4  ;;  %v4576_v26 = vmul.f32 %v11465_v4, %v11465_v4  ;;  %v7819_v4 = vld [vmem:[#allocation14 + $0x18] sm:$0xff] }
 0x7a8   :  { %15464 = vst [vmem:[#allocation151_spill] sm:$0xff] %v11567_v8 }
 0x7a9   :  { %v11433_v60 = vpop.f32.mrf.mxu1 }
 0x7aa   :  { %8212 = vset.pattern.permute.xlu0 %v14815_v63  ;;  %15436 = vst [vmem:[#allocation125_spill] sm:$0xff] %v11433_v60  ;;  %v4539_v63 = vsub.f32 1.0, %v4538_v14 }
 0x7ab   :  { %4030 = vperm.xlu0 %8212, %v11079_v0   ;;  %7538 = vmatmul.msk.bf16.gmra.mxu2 %vm3359_vm13, %v11141_v17  ;;  %v11441_v0 = vpop.f32.mrf.mxu0 }
 0x7ac   :  { %15438 = vst [vmem:[#allocation127_spill] sm:$0xff] %v11441_v0  ;;  %v11449_v57 = vpop.f32.mrf.mxu2  ;;  %v7831_v0 = vld [vmem:[#allocation14 + $0x78] sm:$0xff] }
 0x7ad   :  { %15440 = vst [vmem:[#allocation129_spill] sm:$0xff] %v11449_v57  ;;  %6905 = vmatpush.bf16.msra.mxu1 %v7831_v0 }
 0x7ae   :  { %8215 = vset.pattern.permute.xlu1 %v14813_v13 }
 0x7af   :  { %7546 = vmatmul.msk.bf16.gmra.mxu3 %vm3359_vm13, %v11141_v17 }
 0x7b0   :  { %7530 = vmatmul.msk.bf16.gmra.mxu1 %vm3359_vm13, %v11141_v17 }
 0x7b1   :  { %v11447_v15 = vpop.f32.mrf.mxu1 }
 0x7b2   :  { %15439 = vst [vmem:[#allocation128_spill] sm:$0xff] %v11447_v15  ;;  %v7823_v15 = vld [vmem:[#allocation14 + $0x38] sm:$0xff] }
 0x7b3   :  { %v11455_v28 = vpop.f32.mrf.mxu0  ;;  %6856 = vmatpush.bf16.msra.mxu0 %v7823_v15 }
 0x7b4   :  { %7522 = vmatmul.msk.bf16.gmra.mxu0 %vm3359_vm13, %v11141_v17  ;;  %15441 = vst [vmem:[#allocation130_spill] sm:$0xff] %v11455_v28  ;;  %v3527_v17 = vadd.f32 %v3526_v34, %v11203_v21  ;;  %v11480_v34 = vadd.f32 %v11379_v35, %v3576_v3  ;;  %v11484_v23 = vpop.f32.mrf.mxu2  ;;  %v4540_v35 = vmul.f32 %v8252_v16, %v4539_v63  ;;  %v3812_v3 = vld [vmem:[#allocation4 + $0x58] sm:$0xff] }
 0x7b5   :  { %15447 = vst [vmem:[#allocation136_spill] sm:$0xff] %v11484_v23  ;;  %vm3828_vm0 = vcmp.gt.f32.partialorder %v3812_v3, 0.0  ;;  %v7839_v23 = vld [vmem:[#allocation14 + $0xb8] sm:$0xff] }
 0x7b6   :  { %v11473_v13 = vadd.f32 %v11370_v1, %v3527_v17  ;;  %15446 = vst [vmem:[#allocation135_spill] sm:$0xff] %v11480_v34  ;;  %v4577_v1 = vmul.f32 %v11468_v49, %v11468_v49  ;;  %v4579_v6 = vmul.f32 %v11480_v34, %v11480_v34  ;;  %v3844_v28 = vsel %vm3828_vm0, %v3812_v3, 1.0  ;;  %6954 = vmatpush.bf16.msra.mxu2 %v7839_v23  ;;  %v7821_v23 = vld [vmem:[#allocation14 + $0x28] sm:$0xff] }
 0x7b7   :  { %8253 = vrcp.f32 %v3844_v28 }
 0x7b8   :  { %15445 = vst [vmem:[#allocation134_spill] sm:$0xff] %v11473_v13  ;;  %v4478_v53 = vadd.f32 %v4477_v37, %v11473_v13  ;;  %v4541_v37 = vadd.f32 %v8252_v16, %v4540_v35 }
 0x7b9   :  { %v11460_v20 = vpop.f32.mrf.mxu1 }
 0x7ba   :  { %15442 = vst [vmem:[#allocation131_spill] sm:$0xff] %v11460_v20  ;;  %v4479_v17 = vadd.f32 %v4478_v53, %v11480_v34  ;;  %v4644_v20 = vadd.f32 %v4577_v1, %v4576_v26  ;;  %v11506_v53 = vsel %vm4542_vm9, %v8252_v16, %v4541_v37 }
 0x7bb   :  { %7539 = vmatmul.msk.bf16.gmra.mxu2 %vm3359_vm13, %v11180_v2  ;;  %v11491_v32 = vpop.f32.mrf.mxu0  ;;  %15451 = vst [vmem:[#allocation140_spill] sm:$0xff] %v11506_v53 }
 0x7bc   :  { %15448 = vst [vmem:[#allocation137_spill] sm:$0xff] %v11491_v32  ;;  %v11502_v57 = vpop.f32.mrf.mxu2  ;;  %v7830_v32 = vld [vmem:[#allocation14 + $0x70] sm:$0xff] }
 0x7bd   :  { %15450 = vst [vmem:[#allocation139_spill] sm:$0xff] %v11502_v57  ;;  %v11510_v1 = vpop.eup %8253  ;;  %6906 = vmatpush.bf16.msra.mxu1 %v7830_v32 }
 0x7be   :  { %15453 = vst [vmem:[#allocation142_spill] sm:$0xff] %v11510_v1  ;;  %4166 = vperm.xlu2 %8209, %v11510_v1  }
 0x7bf   :  { %7547 = vmatmul.msk.bf16.gmra.mxu3 %vm3359_vm13, %v11180_v2 }
 0x7c0   :  { %7531 = vmatmul.msk.bf16.gmra.mxu1 %vm3359_vm13, %v11180_v2 }
 0x7c1   :  { %v11496_v14 = vpop.f32.mrf.mxu1 }
 0x7c2   :  { %15449 = vst [vmem:[#allocation138_spill] sm:$0xff] %v11496_v14 }
 0x7c3   :  { %v11508_v26 = vpop.f32.mrf.mxu0 }
 0x7c4   :  { %7523 = vmatmul.msk.bf16.gmra.mxu0 %vm3359_vm13, %v11180_v2  ;;  %v4578_v2 = vmul.f32 %v11473_v13, %v11473_v13  ;;  %15452 = vst [vmem:[#allocation141_spill] sm:$0xff] %v11508_v26  ;;  %v11525_v37 = vpop.f32.mrf.mxu2  ;;  %v15457_v26 = vmov 3  }
 0x7c5   :  { %15455 = vst [vmem:[#allocation144_spill] sm:$0xff] %v11525_v37 }
 0x7c6   :  { %v4645_v24 = vadd.f32 %v4644_v20, %v4578_v2  ;;  %8213 = vset.pattern.permute.xlu2 %v15457_v26  ;;  %v7827_v26 = vld [vmem:[#allocation14 + $0x58] sm:$0xff] }
 0x7c7   :  { %4278 = vperm.xlu2 %8213, %v11510_v1  }
 0x7c8   :  { %v4646_v63 = vadd.f32 %v4645_v24, %v4579_v6 }
 0x7c9   :  { %v11515_v2 = vpop.f32.mrf.mxu1 }
 0x7ca   :  { %15454 = vst [vmem:[#allocation143_spill] sm:$0xff] %v11515_v2 }
 0x7cb   :  { %7540 = vmatmul.msk.bf16.gmra.mxu2 %vm3359_vm13, %v11198_v33  ;;  %v11529_v2 = vpop.f32.mrf.mxu0 }
 0x7cc   :  { %15456 = vst [vmem:[#allocation145_spill] sm:$0xff] %v11529_v2  ;;  %v11548_v57 = vpop.f32.mrf.mxu2 }
 0x7cd   :  { %15459 = vst [vmem:[#allocation147_spill] sm:$0xff] %v11548_v57 }
 0x7cf   :  { %7548 = vmatmul.msk.bf16.gmra.mxu3 %vm3359_vm13, %v11198_v33 }
 0x7d0   :  { %4480 = vadd.xlane.f32.xlu1 %v4479_v17  ;;  %7532 = vmatmul.msk.bf16.gmra.mxu1 %vm3359_vm13, %v11198_v33 }
 0x7d3   :  { %v11555_v2 = vpop.f32.mrf.mxu0 }
 0x7d4   :  { %7524 = vmatmul.msk.bf16.gmra.mxu0 %vm3359_vm13, %v11198_v33  ;;  %15460 = vst [vmem:[#allocation148_spill] sm:$0xff] %v11555_v2  ;;  %v7838_v2 = vld [vmem:[#allocation14 + $0xb0] sm:$0xff]  ;;  %v11577_v60 = vpop.f32.mrf.mxu2 }
 0x7d5   :  { %4647 = vadd.xlane.f32.xlu0 %v4646_v63  ;;  %v3813_v63 = vld [vmem:[#allocation4 + $0x60] sm:$0xff]  ;;  %6955 = vmatpush.bf16.msra.mxu2 %v7838_v2  ;;  %15465 = vst [vmem:[#allocation152_spill] sm:$0xff] %v11577_v60 }
 0x7d6   :  { %vm3829_vm3 = vcmp.gt.f32.partialorder %v3813_v63, 0.0 }
 0x7d7   :  { %v4461_v20 = vpop.xlane.xlu1 %4460 }
 0x7d8   :  { %v11513_v28 = vmul.f32 %v11506_v53, %v4461_v20 }
 0x7d9   :  { %v4628_v6 = vpop.xlane.xlu0 %4627 }
 0x7da   :  { %v4704_v24 = vmul.f32 %v4628_v6, %v11506_v53  ;;  %v4720_v16 = vmul.f32 %v11513_v28, %v11513_v28  ;;  %v11537_v6 = vpop.f32.mrf.mxu1 }
 0x7db   :  { %15458 = vst [vmem:[#allocation146_spill] sm:$0xff] %v11537_v6  ;;  %7541 = vmatmul.msk.bf16.gmra.mxu2 %vm3359_vm13, %v11255_v61 }
 0x7dc   :  { %v4736_v35 = vsub.f32 %v4704_v24, %v4720_v16  ;;  %v3845_v16 = vsel %vm3829_vm3, %v3813_v63, 1.0 }
 0x7dd   :  { %v4466_v17 = vpop.xlane.xlu2 %4465 }
 0x7de   :  { %v4752_v3 = vmax.f32 %v4736_v35, 0.0  ;;  %v11535_v33 = vmul.f32 %v11506_v53, %v4466_v17 }
 0x7df   :  { %7549 = vmatmul.msk.bf16.gmra.mxu3 %vm3359_vm13, %v11255_v61 }
 0x7e0   :  { %v11527_v20 = vadd.f32 1e-05, %v4752_v3  ;;  %v4721_v35 = vmul.f32 %v11535_v33, %v11535_v33  ;;  %7533 = vmatmul.msk.bf16.gmra.mxu1 %vm3359_vm13, %v11255_v61  ;;  %v4774_v34 = vsub.f32 %v11268_v42, %v11535_v33 }
 0x7e2   :  { %8255 = vrsqrt.f32 %v11527_v20  ;;  %v11563_v57 = vpop.f32.mrf.mxu1  ;;  %vm4854_vm12 = vweird.f32 %v11527_v20 }
 0x7e3   :  { %8257 = vrcp.f32 %v3845_v16  ;;  %v15461_v16 = vmov 1   ;;  %15462 = vst [vmem:[#allocation149_spill] sm:$0xff] %v11563_v57 }
 0x7e4   :  { %7525 = vmatmul.msk.bf16.gmra.mxu0 %vm3359_vm13, %v11255_v61  ;;  %8214 = vset.pattern.permute.xlu2 %v15461_v16  ;;  %v7846_v61 = vld [vmem:[#allocation14 + $0xf0] sm:$0xff] }
 0x7e5   :  { %v4633_v24 = vpop.xlane.xlu2 %4632 }
 0x7e6   :  { %v4705_v3 = vmul.f32 %v4633_v24, %v11506_v53  ;;  %v7847_v24 = vld [vmem:[#allocation14 + $0xf8] sm:$0xff] }
 0x7e7   :  { %7003 = vmatpush.bf16.msra.mxu3 %v7847_v24  ;;  %v7829_v24 = vld [vmem:[#allocation14 + $0x68] sm:$0xff] }
 0x7e8   :  { %v11546_v37 = vpop.eup %8255  ;;  %v4737_v17 = vsub.f32 %v4705_v3, %v4721_v35  ;;  %6907 = vmatpush.bf16.msra.mxu1 %v7829_v24  ;;  %v4769_v24 = vsub.f32 %v11232_v40, %v11513_v28 }
 0x7e9   :  { %v4849_v6 = vmul.f32 %v11546_v37, %v11527_v20  ;;  %4034 = vperm.xlu0 %8212, %v11399_v59   ;;  %v11565_v39 = vpop.eup %8257  ;;  %vm4855_vm2 = vweird.f32 %v11546_v37  ;;  %v4770_v20 = vsub.f32 %v11226_v27, %v11513_v28 }
 0x7ea   :  { %v4753_v63 = vmax.f32 %v4737_v17, 0.0  ;;  %v7822_v17 = vld [vmem:[#allocation14 + $0x30] sm:$0xff]  ;;  %15463 = vst [vmem:[#allocation150_spill] sm:$0xff] %v11565_v39  ;;  %vm4856_vm10 = vmor %vm4854_vm12, %vm4855_vm2 }
 0x7eb   :  { %v4850_v35 = vmul.f32 %v11546_v37, %v4849_v6  ;;  %6857 = vmatpush.bf16.msra.mxu0 %v7822_v17  ;;  %7004 = vmatpush.bf16.msra.mxu3 %v7846_v61  ;;  %v5072_v61 = vld [vmem:[%s14538_s8] sm:$0xf] }
 0x7ec   :  { %v11561_v3 = vadd.f32 1e-05, %v4753_v63  ;;  %v11616_v51 = vperm.slane %v5072_v61, 1  ;;  %v11620_v27 = vperm.slane %v5072_v61, 2 }
 0x7ed   :  { %v4851_v14 = vmul.f32 0.5, %v4850_v35  ;;  %v7837_v35 = vld [vmem:[#allocation14 + $0xa8] sm:$0xff] }
 0x7ee   :  { %8259 = vrsqrt.f32 %v11561_v3  ;;  %6956 = vmatpush.bf16.msra.mxu2 %v7837_v35  ;;  %15472 = vst [vmem:[#allocation158_spill] sm:$0xff] %v11616_v51  ;;  %vm4864_vm13 = vweird.f32 %v11561_v3 }
 0x7ef   :  { %v4471_v6 = vpop.xlane.xlu1 %4470  ;;  %v4852_v15 = vsub.f32 1.5, %v4851_v14  ;;  %v7845_v14 = vld [vmem:[#allocation14 + $0xe8] sm:$0xff]  ;;  %6858 = vmatpush.bf16.msra.mxu0 %v7821_v23  ;;  %v5146_v23 = vld [vmem:[%s14539_s9] sm:$0xf]  ;;  %15474 = vst [vmem:[#allocation160_spill] sm:$0xff] %v11620_v27 }
 0x7f0   :  { %v11571_v63 = vmul.f32 %v11506_v53, %v4471_v6  ;;  %v11581_v6 = vpop.f32.mrf.mxu0  ;;  %7005 = vmatpush.bf16.msra.mxu3 %v7845_v14  ;;  %v11611_v40 = vperm.slane %v5146_v23, 0  ;;  %v11618_v12 = vperm.slane %v5146_v23, 1  ;;  %v11633_v16 = vperm.slane %v5146_v23, 3 }
 0x7f1   :  { %4058 = vperm.xlu0 %8212, %v11565_v39   ;;  %v4638_v0 = vpop.xlane.xlu0 %4637  ;;  %v4853_v32 = vmul.f32 %v11546_v37, %v4852_v15  ;;  %15466 = vst [vmem:[#allocation153_spill] sm:$0xff] %v11581_v6  ;;  %v11602_v6 = vperm.slane %v5072_v61, 0 }
 0x7f2   :  { %v4706_v57 = vmul.f32 %v4638_v0, %v11506_v53  ;;  %v4722_v8 = vmul.f32 %v11571_v63, %v11571_v63  ;;  %15470 = vst [vmem:[#allocation157_spill] sm:$0xff] %v11611_v40 }
 0x7f3   :  { %15473 = vst [vmem:[#allocation159_spill] sm:$0xff] %v11618_v12 }
 0x7f4   :  { %v8260_v17 = vpop.eup %8259  ;;  %v4738_v2 = vsub.f32 %v4706_v57, %v4722_v8  ;;  %v11591_v8 = vpop.f32.mrf.mxu1  ;;  %v4768_v57 = vsub.f32 %v11224_v46, %v11513_v28  ;;  %15478 = vst [vmem:[#allocation164_spill] sm:$0xff] %v11633_v16 }
 0x7f5   :  { %v4859_v0 = vmul.f32 %v8260_v17, %v11561_v3  ;;  %15467 = vst [vmem:[#allocation154_spill] sm:$0xff] %v11591_v8  ;;  %v11607_v8 = vpop.f32.mrf.mxu3  ;;  %vm4865_vm15 = vweird.f32 %v8260_v17  ;;  %v4772_v3 = vsub.f32 %v11242_v7, %v11535_v33 }
 0x7f6   :  { %v4754_v15 = vmax.f32 %v4738_v2, 0.0  ;;  %v4476_v60 = vpop.xlane.xlu2 %4475  ;;  %v4857_v2 = vsel %vm4856_vm10, %v11546_v37, %v4853_v32  ;;  %15469 = vst [vmem:[#allocation156_spill] sm:$0xff] %v11607_v8  ;;  %v11626_v32 = vperm.slane %v5146_v23, 2  ;;  %v11631_v8 = vpop.f32.mrf.mxu2  ;;  %vm4866_vm6 = vmor %vm4864_vm13, %vm4865_vm15 }
 0x7f7   :  { %v4860_v35 = vmul.f32 %v8260_v17, %v4859_v0  ;;  %v11600_v14 = vmul.f32 %v11506_v53, %v4476_v60  ;;  %v4771_v0 = vsub.f32 %v11228_v62, %v11513_v28  ;;  %v15471_v60 = vmov 0   ;;  %15477 = vst [vmem:[#allocation163_spill] sm:$0xff] %v11631_v8 }
 0x7f8   :  { %v11609_v46 = vadd.f32 1e-05, %v4754_v15  ;;  %v4643_v58 = vpop.xlane.xlu1 %4642  ;;  %15475 = vst [vmem:[#allocation161_spill] sm:$0xff] %v11626_v32  ;;  %v11628_v15 = vperm.slane %v5072_v61, 3  ;;  %v5009_v38 = vmul.f32 %v4857_v2, %v4769_v24  ;;  %v5010_v45 = vmul.f32 %v4857_v2, %v4770_v20  ;;  %v11637_v61 = vpop.f32.mrf.mxu0 }
 0x7f9   :  { %15468 = vst [vmem:[#allocation155_spill] sm:$0xff] %v11600_v14  ;;  %v4861_v1 = vmul.f32 0.5, %v4860_v35  ;;  %8216 = vset.pattern.permute.xlu0 %v15471_v60  ;;  %v4723_v37 = vmul.f32 %v11600_v14, %v11600_v14  ;;  %v4707_v28 = vmul.f32 %v4643_v58, %v11506_v53  ;;  %v5008_v35 = vmul.f32 %v4857_v2, %v4768_v57 }
 0x7fa   :  { %8261 = vrsqrt.f32 %v11609_v46  ;;  %3913 = vperm.xlu0 %8216, %v11399_v59   ;;  %15476 = vst [vmem:[#allocation162_spill] sm:$0xff] %v11628_v15  ;;  %v5011_v36 = vmul.f32 %v4857_v2, %v4771_v0  ;;  %v5084_v58 = vmul.f32 %v11620_v27, %v5010_v45  ;;  %vm4874_vm8 = vweird.f32 %v11609_v46 }
 0x7fb   :  { %v4862_v62 = vsub.f32 1.5, %v4861_v1  ;;  %v4739_v59 = vsub.f32 %v4707_v28, %v4723_v37  ;;  %v5082_v49 = vmul.f32 %v11602_v6, %v5008_v35  ;;  %15479 = vst [vmem:[#allocation165_spill] sm:$0xff] %v11637_v61  ;;  %v5083_v1 = vmul.f32 %v11616_v51, %v5009_v38  ;;  %v4112_v28 = vld [vmem:[#allocation2 + $0xf0] sm:$0xff] }
 0x7fc   :  { %v5085_v57 = vmul.f32 %v11628_v15, %v5011_v36  ;;  %v11651_v0 = vpop.f32.mrf.mxu1  ;;  %v11657_v38 = vadd.f32 %v11626_v32, %v5084_v58  ;;  %v3431_v36 = vadd.f32 %v11402_v52, %v11201_v47  ;;  %v7820_v58 = vld [vmem:[#allocation14 + $0x20] sm:$0xff] }
 0x7fd   :  { %v4863_v60 = vmul.f32 %v8260_v17, %v4862_v62  ;;  %v4755_v20 = vmax.f32 %v4739_v59, 0.0  ;;  %v11645_v23 = vadd.f32 %v11611_v40, %v5082_v49  ;;  %15480 = vst [vmem:[#allocation166_spill] sm:$0xff] %v11651_v0  ;;  %v11654_v37 = vadd.f32 %v11618_v12, %v5083_v1  ;;  %v11671_v62 = vpop.f32.mrf.mxu3  ;;  %6859 = vmatpush.bf16.msra.mxu0 %v7820_v58  ;;  %v7826_v58 = vld [vmem:[#allocation14 + $0x50] sm:$0xff] }
 0x7fe   :  { %15481 = vst [vmem:[#allocation167_spill] sm:$0xff] %v11657_v38  ;;  %v11660_v45 = vadd.f32 %v11633_v16, %v5085_v57  ;;  %v7552_v59 = vmul.f32 -1.442695, %v11657_v38  ;;  %v7828_v57 = vld [vmem:[#allocation14 + $0x60] sm:$0xff]  ;;  %v11682_v47 = vadd.f32 %v11174_v31, %v3431_v36 }
 0x7ff   :  { %v11642_v24 = vsel %vm4866_vm6, %v8260_v17, %v4863_v60  ;;  %v11666_v17 = vadd.f32 1e-05, %v4755_v20  ;;  %v7550_v7 = vmul.f32 -1.442695, %v11645_v23  ;;  %v4773_v60 = vsub.f32 %v11248_v55, %v11535_v33  ;;  %15484 = vst [vmem:[#allocation170_spill] sm:$0xff] %v11671_v62  ;;  %v7836_v20 = vld [vmem:[#allocation14 + $0xa0] sm:$0xff]  ;;  %6908 = vmatpush.bf16.msra.mxu1 %v7828_v57 }
 0x800   :  { %v11647_v2 = vpop.eup %8261  ;;  %15482 = vst [vmem:[#allocation168_spill] sm:$0xff] %v11660_v45  ;;  %v7551_v35 = vmul.f32 -1.442695, %v11654_v37  ;;  %v5012_v1 = vmul.f32 %v11642_v24, %v4772_v3  ;;  %v7553_v52 = vmul.f32 -1.442695, %v11660_v45  ;;  %v7844_v55 = vld [vmem:[#allocation14 + $0xe0] sm:$0xff]  ;;  %6957 = vmatpush.bf16.msra.mxu2 %v7836_v20  ;;  %v11692_v36 = vpop.f32.mrf.mxu0 }
 0x801   :  { %v4869_v49 = vmul.f32 %v11647_v2, %v11609_v46  ;;  %15483 = vst [vmem:[#allocation169_spill] sm:$0xff] %v11666_v17  ;;  %8263 = vrsqrt.f32 %v11666_v17  ;;  %v5013_v62 = vmul.f32 %v11642_v24, %v4773_v60  ;;  %7006 = vmatpush.bf16.msra.mxu3 %v7844_v55  ;;  %6860 = vmatpush.bf16.msra.mxu0 %v7819_v4  ;;  %v7834_v20 = vld [vmem:[#allocation14 + $0x90] sm:$0xff]  ;;  %vm4875_vm7 = vweird.f32 %v11647_v2  ;;  %v4115_v46 = vld [vmem:[#allocation2 + $0xe8] sm:$0xff] }
 0x802   :  { %8265 = vpow2.f32 %v7550_v7  ;;  %v5086_v8 = vmul.f32 %v11602_v6, %v5012_v1  ;;  %15485 = vst [vmem:[#allocation171_spill] sm:$0xff] %v11682_v47  ;;  %v7835_v7 = vld [vmem:[#allocation14 + $0x98] sm:$0xff]  ;;  %v7842_v55 = vld [vmem:[#allocation14 + $0xd0] sm:$0xff]  ;;  %vm4876_vm5 = vmor %vm4874_vm8, %vm4875_vm7 }
 0x803   :  { %v4870_v0 = vmul.f32 %v11647_v2, %v4869_v49  ;;  %8267 = vpow2.f32 %v7551_v35  ;;  %v11686_v49 = vpop.f32.mrf.mxu2  ;;  %v7843_v1 = vld [vmem:[#allocation14 + $0xd8] sm:$0xff]  ;;  %v5087_v31 = vmul.f32 %v11616_v51, %v5013_v62  ;;  %v5014_v35 = vmul.f32 %v11642_v24, %v4774_v34  ;;  %6909 = vmatpush.bf16.msra.mxu1 %v7827_v26 }
 0x804   :  { %v4151_v61 = vpop.permute.xlu0 %4150  ;;  %15486 = vst [vmem:[#allocation172_spill] sm:$0xff] %v11686_v49  ;;  %8269 = vpow2.f32 %v7552_v59  ;;  %v11689_v60 = vadd.f32 %v11611_v40, %v5086_v8  ;;  %v7818_v8 = vld [vmem:[#allocation14 + $0x10] sm:$0xff]  ;;  %v11703_v62 = vadd.f32 %v11352_v56, %v11209_v10  ;;  %6958 = vmatpush.bf16.msra.mxu2 %v7835_v7  ;;  %v11707_v34 = vmul.f32 %v11682_v47, %v11682_v47 }
 0x805   :  { %v4192_v3 = vmul.f32 %v4151_v61, %v4112_v28  ;;  %8271 = vpow2.f32 %v7553_v52  ;;  %v4871_v61 = vmul.f32 0.5, %v4870_v0  ;;  %v11696_v42 = vadd.f32 %v11618_v12, %v5087_v31  ;;  %v4113_v0 = vld [vmem:[#allocation2 + $0x100] sm:$0xff]  ;;  %v3663_v52 = vpop.f32.mrf.mxu1  ;;  %7007 = vmatpush.bf16.msra.mxu3 %v7843_v1  ;;  %v11722_v49 = vpop.f32.mrf.mxu3  ;;  %6861 = vmatpush.bf16.msra.mxu0 %v7818_v8 }
 0x806   :  { %v7554_v28 = vmul.f32 -1.442695, %v11689_v60  ;;  %15487 = vst [vmem:[#allocation173_spill] sm:$0xff] %v11703_v62  ;;  %v11711_v26 = vadd.f32 %v11405_v18, %v11215_v9  ;;  %v4775_v56 = vsub.f32 %v11272_v50, %v11535_v33  ;;  %v11720_v31 = vadd.f32 %v11411_v19, %v11203_v21 }
 0x807   :  { %4208 = vst [vmem:[#allocation2 + $0xf0] sm:$0xff] %v4192_v3  ;;  %v11699_v59 = vpop.eup %8263  ;;  %v7555_v7 = vmul.f32 -1.442695, %v11696_v42  ;;  %v5088_v18 = vmul.f32 %v11620_v27, %v5014_v35  ;;  %6910 = vmatpush.bf16.msra.mxu1 %v7826_v58 }
 0x808   :  { %v8266_v57 = vpop.eup %8265  ;;  %8273 = vpow2.f32 %v7554_v28  ;;  %15488 = vst [vmem:[#allocation174_spill] sm:$0xff] %v11707_v34  ;;  %v4872_v28 = vsub.f32 1.5, %v4871_v61  ;;  %v5015_v50 = vmul.f32 %v11642_v24, %v4775_v56  ;;  %v4879_v33 = vmul.f32 %v11699_v59, %v11666_v17  ;;  %v8551_v61 = vld [vmem:[#allocation13] sm:$0xff]  ;;  %6959 = vmatpush.bf16.msra.mxu2 %v7834_v20  ;;  %v3616_v19 = vpop.f32.mrf.mxu0 }
 0x809   :  { %v8268_v4 = vpop.eup %8267  ;;  %v11715_v3 = vadd.f32 1.0, %v8266_v57  ;;  %15489 = vst [vmem:[#allocation175_spill] sm:$0xff] %v11722_v49  ;;  %v11733_v57 = vperm.slane %v8551_v61, 4  ;;  %7008 = vmatpush.bf16.msra.mxu3 %v7842_v55  ;;  %v11749_v20 = vadd.f32 %v11626_v32, %v5088_v18 }
 0x80a   :  { %v8270_v1 = vpop.eup %8269  ;;  %v11724_v13 = vadd.f32 1.0, %v8268_v4  ;;  %v11735_v4 = vperm.slane %v8551_v61, 5  ;;  %v4873_v58 = vmul.f32 %v11647_v2, %v4872_v28 }
 0x80b   :  { %v8272_v9 = vpop.eup %8271  ;;  %8275 = vrcp.f32 %v11715_v3  ;;  %15490 = vst [vmem:[#allocation176_spill] sm:$0xff] %v11733_v57  ;;  %v11740_v35 = vadd.f32 1.0, %v8270_v1  ;;  %v4880_v1 = vmul.f32 %v11699_v59, %v4879_v33  ;;  %v11776_v33 = vadd.f32 %v3616_v19, %v11733_v57 }
 0x80c   :  { %v4155_v10 = vpop.permute.xlu0 %4154  ;;  %15491 = vst [vmem:[#allocation177_spill] sm:$0xff] %v11735_v4  ;;  %8277 = vrcp.f32 %v11724_v13  ;;  %v11746_v56 = vadd.f32 1.0, %v8272_v9  ;;  %v11761_v9 = vadd.f32 %v11692_v36, %v11733_v57  ;;  %v11764_v28 = vadd.f32 %v3663_v52, %v11735_v4 }
 0x80d   :  { %v4193_v39 = vmul.f32 %v4155_v10, %v4113_v0  ;;  %v11738_v10 = vperm.slane %v8551_v61, 6  ;;  %8279 = vpow2.f32 %v7555_v7  ;;  %v3712_v0 = vpop.f32.mrf.mxu2  ;;  %15493 = vst [vmem:[#allocation179_spill] sm:$0xff] %v11749_v20  ;;  %v3665_v18 = vpop.f32.mrf.mxu1  ;;  %v11773_v7 = vperm.slane %v8551_v61, 7 }
 0x80e   :  { %v8274_v8 = vpop.eup %8273  ;;  %8281 = vrcp.f32 %v11740_v35  ;;  %v11783_v52 = vsel %vm4876_vm5, %v11647_v2, %v4873_v58  ;;  %v7556_v61 = vmul.f32 -1.442695, %v11749_v20  ;;  %v5485_v53 = vand.u32 2147483647, %v11715_v3  ;;  %v11800_v44 = vpop.f32.mrf.mxu3  ;;  %v7833_v20 = vld [vmem:[#allocation14 + $0x88] sm:$0xff] }
 0x80f   :  { %4209 = vst [vmem:[#allocation2 + $0x100] sm:$0xff] %v4193_v39  ;;  %v5089_v39 = vmul.f32 %v11628_v15, %v5015_v50  ;;  %v11771_v50 = vadd.f32 %v3712_v0, %v11738_v10  ;;  %v11778_v36 = vadd.f32 1.0, %v8274_v8  ;;  %8283 = vrcp.f32 %v11746_v56  ;;  %6960 = vmatpush.bf16.msra.mxu2 %v7833_v20 }
 0x810   :  { %15492 = vst [vmem:[#allocation178_spill] sm:$0xff] %v11738_v10  ;;  %v11793_v8 = vadd.f32 %v3665_v18, %v11735_v4  ;;  %v11798_v58 = vmul.f32 0.5, %v4880_v1  ;;  %vm5481_vm1 = vweird.f32 %v11715_v3  ;;  %v5487_v5 = vand.u32 2147483648, %v11715_v3 }
 0x811   :  { %v11766_v24 = vpop.eup %8275  ;;  %15494 = vst [vmem:[#allocation180_spill] sm:$0xff] %v11771_v50  ;;  %v11796_v2 = vadd.f32 %v11633_v16, %v5089_v39  ;;  %8285 = vrcp.f32 %v11778_v36  ;;  %v5500_v18 = vand.u32 2147483647, %v11724_v13  ;;  %v5502_v1 = vand.u32 2147483648, %v11724_v13  ;;  %v7825_v50 = vld [vmem:[#allocation14 + $0x48] sm:$0xff] }
 0x812   :  { %15495 = vst [vmem:[#allocation181_spill] sm:$0xff] %v11773_v7  ;;  %v11780_v55 = vpop.eup %8277  ;;  %v5477_v49 = vmul.f32 %v11766_v24, %v11715_v3  ;;  %vm5482_vm11 = vweird.f32 %v11766_v24  ;;  %vm5496_vm14 = vweird.f32 %v11724_v13  ;;  %8287 = vpow2.f32 %v7556_v61  ;;  %v3998_v61 = vld [vmem:[#allocation2 + $0x1a8] sm:$0xff]  ;;  %6911 = vmatpush.bf16.msra.mxu1 %v7825_v50 }
 0x813   :  { %v8280_v21 = vpop.eup %8279  ;;  %v5492_v19 = vmul.f32 %v11780_v55, %v11724_v13  ;;  %15496 = vst [vmem:[#allocation182_spill] sm:$0xff] %v11798_v58  ;;  %vm11821_vm4 = vcmp.eq.f32.partialorder %v5485_v53, 8.507059e+37  ;;  %vm5497_vm0 = vweird.f32 %v11780_v55  ;;  %vm11827_vm9 = vcmp.eq.f32.partialorder %v5500_v18, 8.507059e+37  ;;  %vm11838_vm3 = vmor %vm5481_vm1, %vm5482_vm11  ;;  %v7817_v58 = vld [vmem:[#allocation14 + $0x8] sm:$0xff]  ;;  %v7832_v50 = vld [vmem:[#allocation14 + $0x80] sm:$0xff] }
 0x814   :  { %v4163_v0 = vpop.permute.xlu0 %4162  ;;  %15497 = vst [vmem:[#allocation183_spill] sm:$0xff] %v11800_v44  ;;  %v5478_v22 = vsub.f32 1.0, %v5477_v49  ;;  %v11803_v57 = vpop.eup %8281  ;;  %v11812_v49 = vadd.f32 1.0, %v8280_v21  ;;  %v5547_v7 = vand.u32 2147483648, %v11778_v36  ;;  %vm11856_vm2 = vmor %vm5496_vm14, %vm5497_vm0  ;;  %vm5511_vm12 = vweird.f32 %v11740_v35  ;;  %6862 = vmatpush.bf16.msra.mxu0 %v7817_v58  ;;  %v7840_v21 = vld [vmem:[#allocation14 + $0xc0] sm:$0xff]  ;;  %6961 = vmatpush.bf16.msra.mxu2 %v7832_v50 }
 0x815   :  { %v4195_v11 = vmul.f32 %v4163_v0, %v4115_v46  ;;  %v5493_v25 = vsub.f32 1.0, %v5492_v19  ;;  %v5507_v44 = vmul.f32 %v11803_v57, %v11740_v35  ;;  %v11817_v0 = vpop.eup %8283  ;;  %v5545_v19 = vand.u32 2147483647, %v11778_v36 }
 0x816   :  { %v5479_v39 = vmul.f32 %v11766_v24, %v5478_v22  ;;  %8289 = vrcp.f32 %v11812_v49  ;;  %v5522_v14 = vmul.f32 %v11817_v0, %v11746_v56  ;;  %vm5512_vm10 = vweird.f32 %v11803_v57  ;;  %v11872_v62 = vpop.f32.mrf.mxu3 }
 0x817   :  { %4211 = vst [vmem:[#allocation2 + $0xe8] sm:$0xff] %v4195_v11  ;;  %v5494_v46 = vmul.f32 %v11780_v55, %v5493_v25  ;;  %v5488_v11 = vor.u32 1.1754944e-38, %v5487_v5  ;;  %v5517_v25 = vand.u32 2147483648, %v11740_v35  ;;  %v11832_v30 = vpop.eup %8285  ;;  %v5508_v18 = vsub.f32 1.0, %v5507_v44  ;;  %v7816_v44 = vld [vmem:[#allocation14] sm:$0xff]  ;;  %vm11927_vm11 = vmor %vm5511_vm12, %vm5512_vm10 }
 0x818   :  { %v5480_v22 = vadd.f32 %v11766_v24, %v5479_v39  ;;  %v5503_v39 = vor.u32 1.1754944e-38, %v5502_v1  ;;  %v5537_v3 = vmul.f32 %v11832_v30, %v11778_v36  ;;  %v8288_v53 = vpop.eup %8287  ;;  %vm5541_vm15 = vweird.f32 %v11778_v36  ;;  %15506 = vst [vmem:[#allocation184_spill] sm:$0xff] %v11872_v62  ;;  %6863 = vmatpush.bf16.msra.mxu0 %v7816_v44 }
 0x819   :  { %v5495_v5 = vadd.f32 %v11780_v55, %v5494_v46  ;;  %v11867_v17 = vor.u32 1.1754944e-38, %v5517_v25  ;;  %v5509_v25 = vmul.f32 %v11803_v57, %v5508_v18  ;;  %vm11881_vm13 = vcmp.eq.f32.partialorder %v5545_v19, 8.507059e+37 }
 0x81a   :  { %v5484_v41 = vsel %vm11838_vm3, %v11766_v24, %v5480_v22  ;;  %v5515_v24 = vand.u32 2147483647, %v11740_v35  ;;  %v5538_v13 = vsub.f32 1.0, %v5537_v3  ;;  %v7841_v3 = vld [vmem:[#allocation14 + $0xc8] sm:$0xff]  ;;  %v5523_v1 = vsub.f32 1.0, %v5522_v14 }
 0x81b   :  { %v5489_v46 = vsel %vm11821_vm4, %v5488_v11, %v5484_v41  ;;  %vm5542_vm6 = vweird.f32 %v11832_v30  ;;  %v5548_v4 = vor.u32 1.1754944e-38, %v5547_v7  ;;  %vm5556_vm7 = vweird.f32 %v11812_v49  ;;  %v3714_v11 = vpop.f32.mrf.mxu2  ;;  %7009 = vmatpush.bf16.msra.mxu3 %v7841_v3 }
 0x81c   :  { %v11870_v34 = vpop.eup %8289  ;;  %v5539_v38 = vmul.f32 %v11832_v30, %v5538_v13  ;;  %v5562_v19 = vand.u32 2147483648, %v11812_v49  ;;  %v6436_v14 = vmul.f32 %v5489_v46, %v11645_v23  ;;  %vm11895_vm8 = vcmp.eq.f32.partialorder %v5515_v24, 8.507059e+37  ;;  %v7824_v13 = vld [vmem:[#allocation14 + $0x40] sm:$0xff]  ;;  %vm5543_vm5 = vmor %vm5541_vm15, %vm5542_vm6 }
 0x81d   :  { %v4031_v45 = vpop.permute.xlu0 %4030  ;;  %v5552_v41 = vmul.f32 %v11870_v34, %v11812_v49  ;;  %v11900_v18 = vadd.f32 1.0, %v8288_v53  ;;  %v5510_v62 = vadd.f32 %v11803_v57, %v5509_v25  ;;  %v7557_v20 = vmul.f32 -1.442695, %v11796_v2  ;;  %6912 = vmatpush.bf16.msra.mxu1 %v7824_v13 }
 0x81e   :  { %v11864_v22 = vmul.f32 %v4031_v45, %v3998_v61  ;;  %v5499_v45 = vsel %vm11856_vm2, %v11780_v55, %v5495_v5  ;;  %v5560_v55 = vand.u32 2147483647, %v11812_v49  ;;  %v5540_v58 = vadd.f32 %v11832_v30, %v5539_v38 }
 0x81f   :  { %v5504_v5 = vsel %vm11827_vm9, %v5503_v39, %v5499_v45  ;;  %v5553_v23 = vsub.f32 1.0, %v5552_v41  ;;  %v15511_v38 = vsub.f32 %v11300_v43, %v11571_v63  ;;  %v5524_v24 = vmul.f32 %v11817_v0, %v5523_v1  ;;  %7010 = vmatpush.bf16.msra.mxu3 %v7840_v21  ;;  %v4351_v21 = vld [vmem:[#allocation2 + $0x1b8] sm:$0xff] }
 0x820   :  { %4094 = vst [vmem:[#allocation2 + $0x1a8] sm:$0xff] %v11864_v22  ;;  %v5544_v46 = vsel %vm5543_vm5, %v11832_v30, %v5540_v58  ;;  %v11915_v53 = vadd.f32 %v3714_v11, %v11738_v10  ;;  %8291 = vrcp.f32 %v11900_v18  ;;  %v6437_v36 = vmul.f32 %v5504_v5, %v11654_v37  ;;  %v11953_v5 = vpop.f32.mrf.mxu3 }
 0x821   :  { %v5016_v39 = vmul.f32 %v11783_v52, %v15511_v38  ;;  %v5549_v45 = vsel %vm11881_vm13, %v5548_v4, %v5544_v46  ;;  %v5554_v25 = vmul.f32 %v11870_v34, %v5553_v23  ;;  %vm5557_vm1 = vweird.f32 %v11870_v34  ;;  %15516 = vst [vmem:[#allocation185_spill] sm:$0xff] %v11953_v5 }
 0x822   :  { %v6440_v30 = vmul.f32 %v5549_v45, %v11689_v60  ;;  %8293 = vpow2.f32 %v7557_v20  ;;  %v15514_v1 = vsub.f32 %v11296_v29, %v11571_v63  ;;  %v6500_v3 = vadd.f32 %v6436_v14, %v11761_v9  ;;  %vm5558_vm14 = vmor %vm5556_vm7, %vm5557_vm1  ;;  %v4352_v45 = vld [vmem:[#allocation2 + $0x28] sm:$0xff] }
 0x823   :  { %v5090_v37 = vmul.f32 %v11602_v6, %v5016_v39  ;;  %v5514_v35 = vsel %vm11927_vm11, %v11803_v57, %v5510_v62  ;;  %v5555_v4 = vadd.f32 %v11870_v34, %v5554_v25  ;;  %v5563_v41 = vor.u32 1.1754944e-38, %v5562_v19 }
 0x824   :  { %v5017_v61 = vmul.f32 %v11783_v52, %v15514_v1  ;;  %v6504_v60 = vadd.f32 %v6440_v30, %v11776_v33  ;;  %v15515_v9 = vsub.f32 %v11322_v54, %v11571_v63  ;;  %v6501_v62 = vadd.f32 %v6437_v36, %v11764_v28  ;;  %v4223_v1 = vld [vmem:[#allocation2 + $0x30] sm:$0xff] }
 0x825   :  { %v11946_v11 = vadd.f32 %v11611_v40, %v5090_v37  ;;  %vm5527_vm4 = vweird.f32 %v11817_v0  ;;  %v5559_v57 = vsel %vm5558_vm14, %v11870_v34, %v5555_v4  ;;  %vm5561_vm0 = vcmp.eq.f32.partialorder %v5560_v55, 8.507059e+37 }
 0x826   :  { %v5091_v29 = vmul.f32 %v11616_v51, %v5017_v61  ;;  %v5018_v14 = vmul.f32 %v11783_v52, %v15515_v9  ;;  %v15517_v33 = vsub.f32 %v11324_v48, %v11571_v63  ;;  %v8292_v19 = vpop.eup %8291  ;;  %v6564_v58 = vpack.c.bf16 %v6504_v60, %v6500_v3  ;;  %v15520_v61 = vld [vmem:[#allocation167_spill] sm:$0xff]  ;;  %v15521_v60 = vld [vmem:[#allocation173_spill] sm:$0xff] }
 0x827   :  { %v5564_v44 = vsel %vm5561_vm0, %v5563_v41, %v5559_v57  ;;  %v7558_v54 = vmul.f32 -1.442695, %v11946_v11  ;;  %v5519_v28 = vsel %vm11895_vm8, %v11867_v17, %v5514_v35  ;;  %vm5526_vm9 = vweird.f32 %v11746_v56  ;;  %v15534_v57 = vld [vmem:[#allocation168_spill] sm:$0xff] }
 0x828   :  { %v5019_v49 = vmul.f32 %v11783_v52, %v15517_v33  ;;  %v11964_v13 = vadd.f32 %v11618_v12, %v5091_v29  ;;  %v6441_v34 = vmul.f32 %v5564_v44, %v11696_v42  ;;  %v5567_v48 = vmul.f32 %v8292_v19, %v11900_v18  ;;  %v8294_v52 = vpop.eup %8293  ;;  %6864 = vmatmul.bf16.vlgmr.msra.gmra.mxu0 %v6564_v58  ;;  %v3761_v35 = vpop.f32.mrf.mxu3  ;;  %vm12015_vm13 = vmor %vm5526_vm9, %vm5527_vm4 }
 0x829   :  { %v5092_v63 = vmul.f32 %v11620_v27, %v5018_v14  ;;  %8295 = vpow2.f32 %v7558_v54  ;;  %v11977_v20 = vadd.f32 %v11864_v22, %v11711_v26  ;;  %v11980_v50 = vadd.f32 1.0, %v8294_v52  ;;  %v4259_v14 = vpop.permute.xlu1 %4258 }
 0x82a   :  { %v7559_v55 = vmul.f32 -1.442695, %v11964_v13  ;;  %v5093_v23 = vmul.f32 %v11628_v15, %v5019_v49  ;;  %v6505_v17 = vadd.f32 %v6441_v34, %v11793_v8  ;;  %v5568_v7 = vsub.f32 1.0, %v5567_v48  ;;  %v15525_v49 = vld [vmem:[#allocation174_spill] sm:$0xff] }
 0x82b   :  { %15518 = vst [vmem:[#allocation186_spill] sm:$0xff] %v11977_v20  ;;  %v11983_v42 = vadd.f32 %v11626_v32, %v5092_v63  ;;  %v5575_v38 = vand.u32 2147483647, %v11900_v18  ;;  %v5577_v39 = vand.u32 2147483648, %v11900_v18  ;;  %vm5572_vm3 = vweird.f32 %v8292_v19 }
 0x82c   :  { %8297 = vpow2.f32 %v7559_v55  ;;  %v11988_v46 = vadd.f32 %v11633_v16, %v5093_v23  ;;  %v6565_v36 = vpack.c.bf16 %v6505_v17, %v6501_v62  ;;  %v5569_v26 = vmul.f32 %v8292_v19, %v5568_v7 }
 0x82d   :  { %8299 = vrcp.f32 %v11980_v50  ;;  %v5525_v8 = vadd.f32 %v11817_v0, %v5524_v24  ;;  %vm5571_vm2 = vweird.f32 %v11900_v18  ;;  %v7560_v22 = vmul.f32 -1.442695, %v11983_v42 }
 0x82e   :  { %v11995_v25 = vadd.f32 %v4351_v21, %v11720_v31  ;;  %vm4885_vm12 = vweird.f32 %v11699_v59  ;;  %v5570_v43 = vadd.f32 %v8292_v19, %v5569_v26  ;;  %6913 = vmatmul.bf16.vlgmr.msra.gmra.mxu1 %v6565_v36  ;;  %v7561_v30 = vmul.f32 -1.442695, %v11988_v46  ;;  %vm5573_vm10 = vmor %vm5571_vm2, %vm5572_vm3  ;;  %v15530_v26 = vld [vmem:[#allocation182_spill] sm:$0xff] }
 0x82f   :  { %v4482_v37 = vadd.f32 %v11977_v20, %v11682_v47  ;;  %v4581_v24 = vmul.f32 %v11977_v20, %v11977_v20  ;;  %v8296_v18 = vpop.eup %8295  ;;  %v6438_v3 = vmul.f32 %v5519_v28, %v15520_v61  ;;  %vm5576_vm15 = vcmp.eq.f32.partialorder %v5575_v38, 8.507059e+37  ;;  %v15526_v28 = vld [vmem:[#allocation179_spill] sm:$0xff] }
 0x830   :  { %15519 = vst [vmem:[#allocation187_spill] sm:$0xff] %v11995_v25  ;;  %v5578_v31 = vor.u32 1.1754944e-38, %v5577_v39  ;;  %8301 = vpow2.f32 %v7560_v22  ;;  %v5574_v4 = vsel %vm5573_vm10, %v8292_v19, %v5570_v43  ;;  %v12005_v41 = vadd.f32 1.0, %v8296_v18 }
 0x831   :  { %v12008_v29 = vadd.f32 %v4352_v45, %v15521_v60  ;;  %v4483_v9 = vadd.f32 %v4482_v37, %v11995_v25  ;;  %8303 = vpow2.f32 %v7561_v30  ;;  %v4649_v19 = vadd.f32 %v4581_v24, %v15525_v49  ;;  %v15533_v60 = vld [vmem:[#allocation181_spill] sm:$0xff] }
 0x832   :  { %v8298_v62 = vpop.eup %8297  ;;  %v5579_v33 = vsel %vm5576_vm15, %v5578_v31, %v5574_v4  ;;  %v12020_v58 = vmul.f32 %v4259_v14, %v4223_v1  ;;  %v5529_v54 = vsel %vm12015_vm13, %v11817_v0, %v5525_v8  ;;  %8305 = vrcp.f32 %v12005_v41  ;;  %v15529_v0 = vld [vmem:[#allocation180_spill] sm:$0xff]  ;;  %v15532_v31 = vld [vmem:[#allocation169_spill] sm:$0xff]  ;;  %v3763_v4 = vpop.f32.mrf.mxu3 }
 0x833   :  { %15522 = vst [vmem:[#allocation167_spill] sm:$0xff] %v12008_v29  ;;  %v8300_v44 = vpop.eup %8299  ;;  %v6442_v34 = vmul.f32 %v5579_v33, %v15526_v28  ;;  %v4582_v48 = vmul.f32 %v11995_v25, %v11995_v25  ;;  %v15527_v63 = vand.u32 2147483647, %v11746_v56  ;;  %v15528_v52 = vand.u32 2147483648, %v11746_v56 }
 0x834   :  { %v5582_v23 = vmul.f32 %v8300_v44, %v11980_v50  ;;  %v12034_v17 = vadd.f32 1.0, %v8298_v62  ;;  %4319 = vst [vmem:[#allocation2 + $0x30] sm:$0xff] %v12020_v58  ;;  %v6502_v7 = vadd.f32 %v6438_v3, %v15529_v0  ;;  %v4484_v38 = vadd.f32 %v4483_v9, %v12008_v29 }
 0x835   :  { %vm5531_vm6 = vcmp.eq.f32.partialorder %v15527_v63, 8.507059e+37  ;;  %v5533_v55 = vor.u32 1.1754944e-38, %v15528_v52  ;;  %v6506_v21 = vadd.f32 %v6442_v34, %v11915_v53  ;;  %v4650_v39 = vadd.f32 %v4649_v19, %v4582_v48  ;;  %v15535_v34 = vld [vmem:[#allocation155_spill] sm:$0xff]  ;;  %v15536_v48 = vld [vmem:[#allocation113_spill] sm:$0xff]  ;;  %v15537_v63 = vld [vmem:[#allocation114_spill] sm:$0xff] }
 0x836   :  { %v8302_v36 = vpop.eup %8301  ;;  %v15531_v8 = vsub.f32 1.5, %v15530_v26  ;;  %v5583_v45 = vsub.f32 1.0, %v5582_v23  ;;  %v4583_v43 = vmul.f32 %v12008_v29, %v12008_v29  ;;  %v5590_v37 = vand.u32 2147483647, %v11980_v50  ;;  %4485 = vadd.xlane.f32.xlu2 %v4484_v38 }
 0x837   :  { %v5534_v56 = vsel %vm5531_vm6, %v5533_v55, %v5529_v54  ;;  %v6566_v30 = vpack.c.bf16 %v6506_v21, %v6502_v7  ;;  %v5592_v24 = vand.u32 2147483648, %v11980_v50  ;;  %v12047_v1 = vadd.f32 1.0, %v8302_v36  ;;  %v8304_v53 = vpop.eup %8303  ;;  %v15538_v7 = vld [vmem:[#allocation115_spill] sm:$0xff] }
 0x838   :  { %v4883_v22 = vmul.f32 %v11699_v59, %v15531_v8  ;;  %v5584_v18 = vmul.f32 %v8300_v44, %v5583_v45  ;;  %vm5587_vm7 = vweird.f32 %v8300_v44  ;;  %8307 = vrcp.f32 %v12034_v17  ;;  %v12050_v3 = vpop.eup %8305 }
 0x839   :  { %v4651_v61 = vadd.f32 %v4650_v39, %v4583_v43  ;;  %vm4884_vm8 = vweird.f32 %v15532_v31  ;;  %6962 = vmatmul.bf16.vlgmr.msra.gmra.mxu2 %v6566_v30  ;;  %8309 = vrcp.f32 %v12047_v1  ;;  %v3762_v9 = vadd.f32 %v3761_v35, %v15533_v60  ;;  %v3619_v30 = vpop.f32.mrf.mxu0 }
 0x83a   :  { %vm4886_vm5 = vmor %vm4884_vm8, %vm4885_vm12  ;;  %v5585_v14 = vadd.f32 %v8300_v44, %v5584_v18  ;;  %vm5586_vm1 = vweird.f32 %v11980_v50  ;;  %v6439_v33 = vmul.f32 %v5534_v56, %v15534_v57  ;;  %v5593_v49 = vor.u32 1.1754944e-38, %v5592_v24  ;;  %v15540_v57 = vld [vmem:[#allocation176_spill] sm:$0xff] }
 0x83b   :  { %4652 = vadd.xlane.f32.xlu1 %v4651_v61  ;;  %v4887_v62 = vsel %vm4886_vm5, %v11699_v59, %v4883_v22  ;;  %vm5588_vm11 = vmor %vm5586_vm1, %vm5587_vm7  ;;  %v12061_v19 = vadd.f32 1.0, %v8304_v53  ;;  %v3764_v54 = vadd.f32 %v3763_v4, %v15533_v60  ;;  %vm5591_vm14 = vcmp.eq.f32.partialorder %v5590_v37, 8.507059e+37 }
 0x83c   :  { %v5589_v28 = vsel %vm5588_vm11, %v8300_v44, %v5585_v14  ;;  %v5597_v35 = vmul.f32 %v12050_v3, %v12005_v41  ;;  %v4780_v50 = vsub.f32 %v15536_v48, %v15535_v34  ;;  %v4781_v59 = vsub.f32 %v15537_v63, %v15535_v34 }
 0x83d   :  { %v5594_v52 = vsel %vm5591_vm14, %v5593_v49, %v5589_v28  ;;  %v4782_v44 = vsub.f32 %v15538_v7, %v15535_v34  ;;  %8311 = vrcp.f32 %v12061_v19  ;;  %v6503_v39 = vadd.f32 %v6439_v33, %v3762_v9  ;;  %v15539_v9 = vld [vmem:[#allocation116_spill] sm:$0xff]  ;;  %v3668_v28 = vpop.f32.mrf.mxu1 }
 0x83e   :  { %v12070_v55 = vpop.eup %8307  ;;  %v6443_v23 = vmul.f32 %v5594_v52, %v11796_v2  ;;  %v5020_v21 = vmul.f32 %v4887_v62, %v4780_v50  ;;  %v5021_v38 = vmul.f32 %v4887_v62, %v4781_v59  ;;  %v5598_v26 = vsub.f32 1.0, %v5597_v35  ;;  %v3717_v35 = vpop.f32.mrf.mxu2 }
 0x83f   :  { %v12073_v0 = vpop.eup %8309  ;;  %v5612_v8 = vmul.f32 %v12070_v55, %v12034_v17  ;;  %v5022_v2 = vmul.f32 %v4887_v62, %v4782_v44  ;;  %v4783_v14 = vsub.f32 %v15539_v9, %v15535_v34  ;;  %v12098_v33 = vadd.f32 %v3619_v30, %v15540_v57  ;;  %v3766_v59 = vpop.f32.mrf.mxu3 }
 0x840   :  { %v6507_v36 = vadd.f32 %v6443_v23, %v3764_v54  ;;  %v5094_v22 = vmul.f32 %v11602_v6, %v5020_v21  ;;  %v5095_v56 = vmul.f32 %v11616_v51, %v5021_v38  ;;  %v5627_v43 = vmul.f32 %v12073_v0, %v12047_v1  ;;  %v15541_v21 = vld [vmem:[#allocation177_spill] sm:$0xff] }
 0x841   :  { %v5599_v18 = vmul.f32 %v12050_v3, %v5598_v26  ;;  %v5613_v61 = vsub.f32 1.0, %v5612_v8  ;;  %v5096_v4 = vmul.f32 %v11620_v27, %v5022_v2  ;;  %v5605_v54 = vand.u32 2147483647, %v12005_v41 }
 0x842   :  { %v6567_v45 = vpack.c.bf16 %v6507_v36, %v6503_v39  ;;  %v12085_v37 = vadd.f32 %v11611_v40, %v5094_v22  ;;  %v12088_v24 = vadd.f32 %v11618_v12, %v5095_v56  ;;  %v5628_v49 = vsub.f32 1.0, %v5627_v43 }
 0x843   :  { %v12090_v53 = vpop.eup %8311  ;;  %v12103_v50 = vadd.f32 %v11626_v32, %v5096_v4  ;;  %vm5602_vm4 = vweird.f32 %v12050_v3  ;;  %v5607_v63 = vand.u32 2147483648, %v12005_v41  ;;  %v5023_v52 = vmul.f32 %v4887_v62, %v4783_v14 }
 0x844   :  { %7011 = vmatmul.bf16.vlgmr.msra.gmra.mxu3 %v6567_v45  ;;  %v7562_v31 = vmul.f32 -1.442695, %v12085_v37  ;;  %v7563_v48 = vmul.f32 -1.442695, %v12088_v24  ;;  %v5642_v34 = vmul.f32 %v12090_v53, %v12061_v19  ;;  %v5600_v23 = vadd.f32 %v12050_v3, %v5599_v18 }
 0x845   :  { %v5614_v7 = vmul.f32 %v12070_v55, %v5613_v61  ;;  %v7564_v44 = vmul.f32 -1.442695, %v12103_v50  ;;  %v12113_v38 = vadd.f32 %v3668_v28, %v15541_v21  ;;  %v12116_v39 = vadd.f32 %v3717_v35, %v11738_v10  ;;  %v15548_v28 = vld [vmem:[#allocation108_spill] sm:$0xff] }
 0x846   :  { %8313 = vpow2.f32 %v7562_v31  ;;  %v5629_v36 = vmul.f32 %v12073_v0, %v5628_v49  ;;  %v5097_v26 = vmul.f32 %v11628_v15, %v5023_v52  ;;  %vm5601_vm0 = vweird.f32 %v12005_v41 }
 0x847   :  { %8315 = vpow2.f32 %v7563_v48  ;;  %v5620_v62 = vand.u32 2147483647, %v12034_v17  ;;  %v12123_v8 = vadd.f32 %v3766_v59, %v15533_v60  ;;  %vm12127_vm9 = vmor %vm5601_vm0, %vm5602_vm4  ;;  %vm12131_vm3 = vcmp.eq.f32.partialorder %v5605_v54, 8.507059e+37 }
 0x848   :  { %8317 = vpow2.f32 %v7564_v44  ;;  %v5608_v2 = vor.u32 1.1754944e-38, %v5607_v63  ;;  %v5643_v45 = vsub.f32 1.0, %v5642_v34  ;;  %v12136_v41 = vadd.f32 %v11633_v16, %v5097_v26  ;;  %v3621_v26 = vpop.f32.mrf.mxu0 }
 0x849   :  { %v5604_v30 = vsel %vm12127_vm9, %v12050_v3, %v5600_v23  ;;  %v5615_v18 = vadd.f32 %v12070_v55, %v5614_v7  ;;  %vm5617_vm2 = vweird.f32 %v12070_v55  ;;  %v5622_v61 = vand.u32 2147483648, %v12034_v17  ;;  %v4275_v7 = vpop.permute.xlu1 %4274 }
 0x84a   :  { %v5630_v31 = vadd.f32 %v12073_v0, %v5629_v36  ;;  %vm5632_vm12 = vweird.f32 %v12073_v0  ;;  %v7565_v9 = vmul.f32 -1.442695, %v12136_v41  ;;  %vm5616_vm10 = vweird.f32 %v12034_v17 }
 0x84b   :  { %vm12150_vm15 = vcmp.eq.f32.partialorder %v5620_v62, 8.507059e+37  ;;  %v5635_v3 = vand.u32 2147483647, %v12047_v1  ;;  %v5637_v54 = vand.u32 2147483648, %v12047_v1  ;;  %v5609_v35 = vsel %vm12131_vm3, %v5608_v2, %v5604_v30  ;;  %vm12159_vm13 = vmor %vm5616_vm10, %vm5617_vm2  ;;  %v3670_v2 = vpop.f32.mrf.mxu1  ;;  %v3719_v30 = vpop.f32.mrf.mxu2 }
 0x84c   :  { %v8314_v43 = vpop.eup %8313  ;;  %vm5631_vm6 = vweird.f32 %v12047_v1  ;;  %v5644_v17 = vmul.f32 %v12090_v53, %v5643_v45  ;;  %v5619_v59 = vsel %vm12159_vm13, %v12070_v55, %v5615_v18  ;;  %v5623_v34 = vor.u32 1.1754944e-38, %v5622_v61  ;;  %v4227_v1 = vld [vmem:[#allocation2 + $0x78] sm:$0xff]  ;;  %v15553_v45 = vld [vmem:[#allocation107_spill] sm:$0xff] }
 0x84d   :  { %v12146_v4 = vadd.f32 1.0, %v8314_v43  ;;  %v8316_v14 = vpop.eup %8315  ;;  %vm12171_vm7 = vmor %vm5631_vm6, %vm5632_vm12  ;;  %v5652_v36 = vand.u32 2147483648, %v12061_v19  ;;  %v4307_v62 = vmul.f32 %v4275_v7, %v4227_v1  ;;  %v6444_v22 = vmul.f32 %v5609_v35, %v11946_v11 }
 0x84e   :  { %4046 = vperm.xlu2 %8214, %v15548_v28   ;;  %v8318_v63 = vpop.eup %8317  ;;  %v12175_v23 = vadd.f32 1.0, %v8316_v14  ;;  %v5634_v44 = vsel %vm12171_vm7, %v12073_v0, %v5630_v31  ;;  %vm5636_vm8 = vcmp.eq.f32.partialorder %v5635_v3, 8.507059e+37  ;;  %v5638_v56 = vor.u32 1.1754944e-38, %v5637_v54 }
 0x84f   :  { %8319 = vrcp.f32 %v12146_v4  ;;  %v12181_v55 = vadd.f32 1.0, %v8318_v63  ;;  %v5624_v43 = vsel %vm12150_vm15, %v5623_v34, %v5619_v59  ;;  %v12189_v0 = vadd.f32 %v12090_v53, %v5644_v17  ;;  %4323 = vst [vmem:[#allocation2 + $0x78] sm:$0xff] %v4307_v62  ;;  %v15556_v59 = vld [vmem:[#allocation120_spill] sm:$0xff] }
 0x850   :  { %8321 = vpow2.f32 %v7565_v9  ;;  %vm5647_vm5 = vweird.f32 %v12090_v53  ;;  %v5639_v11 = vsel %vm5636_vm8, %v5638_v56, %v5634_v44  ;;  %vm5646_vm1 = vweird.f32 %v12061_v19 }
 0x851   :  { %8323 = vrcp.f32 %v12175_v23  ;;  %v12195_v18 = vadd.f32 %v3621_v26, %v15540_v57  ;;  %v5665_v61 = vand.u32 2147483647, %v12146_v4  ;;  %v5650_v9 = vand.u32 2147483647, %v12061_v19  ;;  %vm12213_vm11 = vmor %vm5646_vm1, %vm5647_vm5 }
 0x852   :  { %8325 = vrcp.f32 %v12181_v55  ;;  %v12199_v14 = vor.u32 1.1754944e-38, %v5652_v36  ;;  %v5667_v49 = vand.u32 2147483648, %v12146_v4  ;;  %v12203_v3 = vadd.f32 %v3670_v2, %v15541_v21  ;;  %v4481_v36 = vpop.xlane.xlu1 %4480  ;;  %v12240_v2 = vpop.f32.mrf.mxu3 }
 0x853   :  { %v12206_v35 = vadd.f32 %v6444_v22, %v12098_v33  ;;  %v12209_v48 = vmul.f32 %v5624_v43, %v11964_v13  ;;  %v12219_v63 = vadd.f32 %v3719_v30, %v11738_v10  ;;  %v12223_v34 = vmul.f32 %v5639_v11, %v11983_v42 }
 0x854   :  { %3918 = vperm.xlu1 %8215, %v15553_v45   ;;  %vm5661_vm14 = vweird.f32 %v12146_v4  ;;  %vm12232_vm4 = vcmp.eq.f32.partialorder %v5665_v61, 8.507059e+37  ;;  %v5680_v44 = vand.u32 2147483647, %v12175_v23  ;;  %v5682_v42 = vand.u32 2147483648, %v12175_v23  ;;  %v12243_v45 = vpop.f32.mrf.mxu0  ;;  %v12247_v61 = vpop.f32.mrf.mxu1 }
 0x855   :  { %v8320_v31 = vpop.eup %8319  ;;  %v5668_v62 = vor.u32 1.1754944e-38, %v5667_v49  ;;  %v5695_v56 = vand.u32 2147483647, %v12181_v55  ;;  %v5697_v11 = vand.u32 2147483648, %v12181_v55  ;;  %vm5676_vm9 = vweird.f32 %v12175_v23 }
 0x856   :  { %v8322_v54 = vpop.eup %8321  ;;  %v5657_v19 = vmul.f32 %v8320_v31, %v12146_v4  ;;  %4050 = vperm.xlu2 %8214, %v15556_v59   ;;  %vm5662_vm0 = vweird.f32 %v8320_v31  ;;  %vm5691_vm3 = vweird.f32 %v12181_v55  ;;  %vm12255_vm2 = vcmp.eq.f32.partialorder %v5650_v9, 8.507059e+37 }
 0x857   :  { %v12230_v33 = vadd.f32 1.0, %v8322_v54  ;;  %v8324_v52 = vpop.eup %8323  ;;  %v4648_v54 = vpop.xlane.xlu0 %4647  ;;  %vm12259_vm12 = vcmp.eq.f32.partialorder %v5680_v44, 8.507059e+37  ;;  %v5683_v29 = vor.u32 1.1754944e-38, %v5682_v42  ;;  %vm5663_vm10 = vmor %vm5661_vm14, %vm5662_vm0  ;;  %vm12266_vm13 = vcmp.eq.f32.partialorder %v5695_v56, 8.507059e+37 }
 0x858   :  { %v5658_v1 = vsub.f32 1.0, %v5657_v19  ;;  %v8326_v26 = vpop.eup %8325  ;;  %v5672_v22 = vmul.f32 %v8324_v52, %v12175_v23  ;;  %v15559_v19 = vld [vmem:[#allocation140_spill] sm:$0xff]  ;;  %vm5677_vm15 = vweird.f32 %v8324_v52  ;;  %v5698_v20 = vor.u32 1.1754944e-38, %v5697_v11 }
 0x859   :  { %8327 = vrcp.f32 %v12230_v33  ;;  %v5687_v30 = vmul.f32 %v8326_v26, %v12181_v55  ;;  %v12253_v13 = vmul.f32 %v15559_v19, %v4481_v36  ;;  %v4708_v9 = vmul.f32 %v4648_v54, %v15559_v19  ;;  %vm5678_vm8 = vmor %vm5676_vm9, %vm5677_vm15 }
 0x85a   :  { %v5659_v43 = vmul.f32 %v8320_v31, %v5658_v1  ;;  %v5673_v49 = vsub.f32 1.0, %v5672_v22  ;;  %v3814_v22 = vld [vmem:[#allocation4 + $0x68] sm:$0xff]  ;;  %vm5692_vm6 = vweird.f32 %v8326_v26  ;;  %v5712_v7 = vand.u32 2147483648, %v12230_v33 }
 0x85b   :  { %v5688_v25 = vsub.f32 1.0, %v5687_v30  ;;  %v4724_v4 = vmul.f32 %v12253_v13, %v12253_v13  ;;  %vm3830_vm7 = vcmp.gt.f32.partialorder %v3814_v22, 0.0  ;;  %vm5693_vm5 = vmor %vm5691_vm3, %vm5692_vm6  ;;  %v6509_v28 = vadd.f32 %v12209_v48, %v12113_v38 }
 0x85c   :  { %3933 = vperm.xlu1 %8215, %v15556_v59   ;;  %v5660_v5 = vadd.f32 %v8320_v31, %v5659_v43  ;;  %v5674_v59 = vmul.f32 %v8324_v52, %v5673_v49  ;;  %v3846_v49 = vsel %vm3830_vm7, %v3814_v22, 1.0  ;;  %v12295_v22 = vpop.f32.mrf.mxu0  ;;  %vm5706_vm14 = vweird.f32 %v12230_v33 }
 0x85d   :  { %v5689_v44 = vmul.f32 %v8326_v26, %v5688_v25  ;;  %v5710_v25 = vand.u32 2147483647, %v12230_v33  ;;  %8329 = vrcp.f32 %v3846_v49  ;;  %v3769_v38 = vadd.f32 %v12240_v2, %v15533_v60 }
 0x85e   :  { %v5664_v43 = vsel %vm5663_vm10, %v8320_v31, %v5660_v5  ;;  %v5675_v30 = vadd.f32 %v8324_v52, %v5674_v59  ;;  %v12280_v31 = vpop.f32.mrf.mxu2  ;;  %v15571_v49 = vmov 2  }
 0x85f   :  { %v8328_v47 = vpop.eup %8327  ;;  %v5669_v42 = vsel %vm12232_vm4, %v5668_v62, %v5664_v43  ;;  %v5690_v54 = vadd.f32 %v8326_v26, %v5689_v44  ;;  %v4740_v62 = vsub.f32 %v4708_v9, %v4724_v4  ;;  %v12288_v44 = vpop.f32.mrf.mxu3  ;;  %vm5711_vm4 = vcmp.eq.f32.partialorder %v5710_v25, 8.507059e+37 }
 0x860   :  { %v6448_v56 = vmul.f32 %v5669_v42, %v12085_v37  ;;  %v5702_v5 = vmul.f32 %v8328_v47, %v12230_v33  ;;  %v5679_v11 = vsel %vm5678_vm8, %v8324_v52, %v5675_v30  ;;  %vm5707_vm1 = vweird.f32 %v8328_v47 }
 0x861   :  { %v5684_v23 = vsel %vm12259_vm12, %v5683_v29, %v5679_v11  ;;  %v5694_v59 = vsel %vm5693_vm5, %v8326_v26, %v5690_v54  ;;  %v4756_v55 = vmax.f32 %v4740_v62, 0.0  ;;  %v12297_v29 = vpop.f32.mrf.mxu1  ;;  %v3999_v62 = vld [vmem:[#allocation2 + $0xf8] sm:$0xff] }
 0x862   :  { %v6512_v37 = vadd.f32 %v6448_v56, %v12195_v18  ;;  %v5703_v43 = vsub.f32 1.0, %v5702_v5  ;;  %v6449_v42 = vmul.f32 %v5684_v23, %v12088_v24  ;;  %v5699_v52 = vsel %vm12266_vm13, %v5698_v20, %v5694_v59 }
 0x863   :  { %v6450_v30 = vmul.f32 %v5699_v52, %v12103_v50  ;;  %v15566_v20 = vsel %vm12213_vm11, %v12090_v53, %v12189_v0  ;;  %v4836_v26 = vadd.f32 1e-05, %v4756_v55  ;;  %vm5708_vm11 = vmor %vm5706_vm14, %vm5707_vm1  ;;  %v5713_v53 = vor.u32 1.1754944e-38, %v5712_v7  ;;  %v8330_v17 = vpop.eup %8329  ;;  %v15575_v55 = vld [vmem:[#allocation134_spill] sm:$0xff] }
 0x864   :  { %v5704_v9 = vmul.f32 %v8328_v47, %v5703_v43  ;;  %v6568_v18 = vpack.c.bf16 %v6512_v37, %v12206_v35  ;;  %v5654_v24 = vsel %vm12255_vm2, %v12199_v14, %v15566_v20  ;;  %v6513_v50 = vadd.f32 %v6449_v42, %v12203_v3  ;;  %4062 = vperm.xlu2 %8214, %v8330_v17   ;;  %v12323_v56 = vpop.f32.mrf.mxu0  ;;  %v4035_v37 = vpop.permute.xlu0 %4034  ;;  %v15574_v42 = vld [vmem:[#allocation150_spill] sm:$0xff] }
 0x865   :  { %v6510_v35 = vadd.f32 %v12223_v34, %v12116_v39  ;;  %v6514_v36 = vadd.f32 %v6450_v30, %v12219_v63  ;;  %8331 = vrsqrt.f32 %v4836_v26  ;;  %v6447_v14 = vmul.f32 %v5654_v24, %v11988_v46  ;;  %3948 = vperm.xlu1 %8215, %v8330_v17   ;;  %15567 = vst [vmem:[#allocation173_spill] sm:$0xff] %v12323_v56 }
 0x866   :  { %v5705_v4 = vadd.f32 %v8328_v47, %v5704_v9  ;;  %6869 = vmatmul.bf16.gmra.mxu0 %v6568_v18  ;;  %v6569_v0 = vpack.c.bf16 %v6513_v50, %v6509_v28  ;;  %v12318_v34 = vpop.f32.mrf.mxu2  ;;  %v12333_v23 = vmul.f32 %v4035_v37, %v3999_v62  ;;  %vm4894_vm9 = vweird.f32 %v4836_v26  ;;  %v15576_v18 = vld [vmem:[#allocation135_spill] sm:$0xff] }
 0x867   :  { %v6570_v48 = vpack.c.bf16 %v6514_v36, %v6510_v35  ;;  %v12320_v33 = vpop.f32.mrf.mxu3  ;;  %v6511_v2 = vadd.f32 %v6447_v14, %v12123_v8  ;;  %v4786_v30 = vsub.f32 %v15575_v55, %v12253_v13  ;;  %v4787_v28 = vsub.f32 %v15576_v18, %v12253_v13  ;;  %v4005_v36 = vld [vmem:[#allocation2 + $0x88] sm:$0xff] }
 0x868   :  { %v5709_v3 = vsel %vm5708_vm11, %v8328_v47, %v5705_v4  ;;  %6918 = vmatmul.bf16.gmra.mxu1 %v6569_v0  ;;  %4095 = vst [vmem:[#allocation2 + $0xf8] sm:$0xff] %v12333_v23 }
 0x869   :  { %v5714_v39 = vsel %vm5711_vm4, %v5713_v53, %v5709_v3  ;;  %6967 = vmatmul.bf16.gmra.mxu2 %v6570_v48  ;;  %v12325_v47 = vpop.f32.mrf.mxu1 }
 0x86a   :  { %v6451_v63 = vmul.f32 %v5714_v39, %v12136_v41  ;;  %15568 = vst [vmem:[#allocation174_spill] sm:$0xff] %v12325_v47 }
 0x86b   :  { %v8332_v46 = vpop.eup %8331 }
 0x86c   :  { %v6515_v1 = vadd.f32 %v6451_v63, %v3769_v38  ;;  %v4889_v5 = vmul.f32 %v8332_v46, %v4836_v26  ;;  %8218 = vset.pattern.permute.xlu2 %v15571_v49  ;;  %vm4895_vm0 = vweird.f32 %v8332_v46  ;;  %v12335_v59 = vpop.f32.mrf.mxu0  ;;  %v4059_v26 = vpop.permute.xlu0 %4058  ;;  %v15579_v38 = vmov 3  }
 0x86d   :  { %4174 = vperm.xlu2 %8218, %v8330_v17   ;;  %8217 = vset.pattern.permute.xlu1 %v15571_v49  ;;  %15572 = vst [vmem:[#allocation182_spill] sm:$0xff] %v12335_v59  ;;  %vm4896_vm3 = vmor %vm4894_vm9, %vm4895_vm0  ;;  %v4085_v0 = vmul.f32 %v4059_v26, %v4005_v36  ;;  %v15589_v36 = vmov 1  }
 0x86e   :  { %v6571_v54 = vpack.c.bf16 %v6515_v1, %v6511_v2  ;;  %v4890_v25 = vmul.f32 %v8332_v46, %v4889_v5  ;;  %v12327_v11 = vpop.f32.mrf.mxu2  ;;  %4170 = vperm.xlu1 %8217, %v15574_v42   ;;  %v4111_v2 = vld [vmem:[#allocation2 + $0x160] sm:$0xff]  ;;  %v4147_v1 = vpop.permute.xlu2 %4146  ;;  %v3871_v5 = vld [vmem:[#allocation2 + $0x1e8] sm:$0xff] }
 0x86f   :  { %15569 = vst [vmem:[#allocation179_spill] sm:$0xff] %v12327_v11  ;;  %v12329_v7 = vpop.f32.mrf.mxu3 }
 0x870   :  { %7016 = vmatmul.bf16.gmra.mxu3 %v6571_v54  ;;  %v4891_v41 = vmul.f32 0.5, %v4890_v25  ;;  %15570 = vst [vmem:[#allocation180_spill] sm:$0xff] %v12329_v7  ;;  %v15582_v54 = vld [vmem:[#allocation132_spill] sm:$0xff]  ;;  %v15583_v25 = vld [vmem:[#allocation133_spill] sm:$0xff] }
 0x871   :  { %v12337_v43 = vpop.f32.mrf.mxu1  ;;  %4101 = vst [vmem:[#allocation2 + $0x88] sm:$0xff] %v4085_v0 }
 0x872   :  { %v4892_v8 = vsub.f32 1.5, %v4891_v41  ;;  %15573 = vst [vmem:[#allocation169_spill] sm:$0xff] %v12337_v43  ;;  %v4785_v41 = vsub.f32 %v15583_v25, %v12253_v13  ;;  %v15592_v25 = vld [vmem:[#allocation112_spill] sm:$0xff] }
 0x874   :  { %v4893_v52 = vmul.f32 %v8332_v46, %v4892_v8  ;;  %v12352_v14 = vpop.f32.mrf.mxu0  ;;  %v12374_v8 = vmul.f32 %v4147_v1, %v4111_v2 }
 0x875   :  { %8220 = vset.pattern.permute.xlu2 %v15579_v38  ;;  %15580 = vst [vmem:[#allocation113_spill] sm:$0xff] %v12352_v14 }
 0x876   :  { %v4897_v9 = vsel %vm4896_vm3, %v8332_v46, %v4893_v52  ;;  %v12345_v50 = vpop.f32.mrf.mxu2  ;;  %4286 = vperm.xlu2 %8220, %v8330_v17   ;;  %8219 = vset.pattern.permute.xlu1 %v15579_v38  ;;  %v4784_v17 = vsub.f32 %v15582_v54, %v12253_v13  ;;  %v3914_v52 = vpop.permute.xlu0 %3913  ;;  %4207 = vst [vmem:[#allocation2 + $0x160] sm:$0xff] %v12374_v8 }
 0x877   :  { %v5026_v20 = vmul.f32 %v4897_v9, %v4786_v30  ;;  %v5027_v24 = vmul.f32 %v4897_v9, %v4787_v28  ;;  %15577 = vst [vmem:[#allocation168_spill] sm:$0xff] %v12345_v50  ;;  %v12347_v35 = vpop.f32.mrf.mxu3  ;;  %4282 = vperm.xlu1 %8219, %v15574_v42   ;;  %v3967_v30 = vmul.f32 %v3914_v52, %v3871_v5  ;;  %v4167_v54 = vpop.permute.xlu2 %4166 }
 0x878   :  { %15578 = vst [vmem:[#allocation155_spill] sm:$0xff] %v12347_v35  ;;  %v5024_v55 = vmul.f32 %v4897_v9, %v4784_v17 }
 0x879   :  { %v5100_v4 = vmul.f32 %v11620_v27, %v5026_v20  ;;  %v5101_v53 = vmul.f32 %v11628_v15, %v5027_v24  ;;  %v12354_v3 = vpop.f32.mrf.mxu1  ;;  %v15588_v20 = vmov 0   ;;  %v5025_v24 = vmul.f32 %v4897_v9, %v4785_v41  ;;  %3983 = vst [vmem:[#allocation2 + $0x1e8] sm:$0xff] %v3967_v30  ;;  %v4116_v9 = vld [vmem:[#allocation2 + $0x1d8] sm:$0xff]  ;;  %v15593_v41 = vld [vmem:[#allocation122_spill] sm:$0xff] }
 0x87a   :  { %15581 = vst [vmem:[#allocation114_spill] sm:$0xff] %v12354_v3  ;;  %v5098_v13 = vmul.f32 %v11602_v6, %v5024_v55  ;;  %v3483_v52 = vadd.f32 %v15593_v41, %v15592_v25  ;;  %v15598_v41 = vld [vmem:[#allocation111_spill] sm:$0xff] }
 0x87b   :  { %v12358_v48 = vadd.f32 %v11626_v32, %v5100_v4  ;;  %v12362_v39 = vadd.f32 %v11633_v16, %v5101_v53  ;;  %v5099_v53 = vmul.f32 %v11616_v51, %v5025_v24  ;;  %v4196_v24 = vmul.f32 %v4167_v54, %v4116_v9  ;;  %v4228_v3 = vld [vmem:[#allocation2 + $0xd0] sm:$0xff] }
 0x87c   :  { %v12376_v18 = vpop.f32.mrf.mxu0  ;;  %v12385_v26 = vadd.f32 %v11611_v40, %v5098_v13  ;;  %v15596_v13 = vld [vmem:[#allocation109_spill] sm:$0xff] }
 0x87d   :  { %v7568_v63 = vmul.f32 -1.442695, %v12358_v48  ;;  %v7569_v46 = vmul.f32 -1.442695, %v12362_v39  ;;  %15586 = vst [vmem:[#allocation107_spill] sm:$0xff] %v12376_v18  ;;  %v12397_v5 = vadd.f32 %v11618_v12, %v5099_v53 }
 0x87e   :  { %v12370_v62 = vpop.f32.mrf.mxu2  ;;  %8221 = vset.pattern.permute.xlu2 %v15588_v20  ;;  %v7566_v17 = vmul.f32 -1.442695, %v12385_v26  ;;  %4212 = vst [vmem:[#allocation2 + $0x1d8] sm:$0xff] %v4196_v24  ;;  %v3723_v24 = vadd.f32 %v12280_v31, %v11738_v10 }
 0x87f   :  { %8333 = vpow2.f32 %v7568_v63  ;;  %15584 = vst [vmem:[#allocation115_spill] sm:$0xff] %v12370_v62  ;;  %v12372_v37 = vpop.f32.mrf.mxu3  ;;  %8222 = vset.pattern.permute.xlu1 %v15589_v36 }
 0x880   :  { %8335 = vpow2.f32 %v7569_v46  ;;  %15585 = vst [vmem:[#allocation116_spill] sm:$0xff] %v12372_v37  ;;  %v15599_v37 = vld [vmem:[#allocation117_spill] sm:$0xff] }
 0x881   :  { %v12378_v28 = vpop.f32.mrf.mxu1 }
 0x882   :  { %15587 = vst [vmem:[#allocation120_spill] sm:$0xff] %v12378_v28  ;;  %v12409_v28 = vadd.f32 %v12333_v23, %v3483_v52 }
 0x884   :  { %v12401_v55 = vpop.f32.mrf.mxu0 }
 0x885   :  { %v8334_v4 = vpop.eup %8333  ;;  %15594 = vst [vmem:[#allocation135_spill] sm:$0xff] %v12401_v55  ;;  %v3581_v55 = vadd.f32 %v15599_v37, %v15598_v41 }
 0x886   :  { %v8336_v0 = vpop.eup %8335  ;;  %v5430_v63 = vadd.f32 1.0, %v8334_v4  ;;  %v12390_v1 = vpop.f32.mrf.mxu2  ;;  %v15597_v4 = vld [vmem:[#allocation121_spill] sm:$0xff] }
 0x887   :  { %v12388_v2 = vadd.f32 1.0, %v8336_v0  ;;  %15590 = vst [vmem:[#allocation150_spill] sm:$0xff] %v12390_v1  ;;  %v12392_v46 = vpop.f32.mrf.mxu3  ;;  %v3434_v0 = vadd.f32 %v15597_v4, %v15596_v13  ;;  %v15603_v4 = vld [vmem:[#allocation123_spill] sm:$0xff] }
 0x888   :  { %8337 = vrcp.f32 %v5430_v63  ;;  %15591 = vst [vmem:[#allocation134_spill] sm:$0xff] %v12392_v46  ;;  %v7567_v46 = vmul.f32 -1.442695, %v12397_v5  ;;  %v5757_v14 = vand.u32 2147483648, %v5430_v63  ;;  %v5755_v59 = vand.u32 2147483647, %v5430_v63 }
 0x889   :  { %8339 = vrcp.f32 %v12388_v2  ;;  %v12403_v20 = vpop.f32.mrf.mxu1  ;;  %v12422_v52 = vadd.f32 %v3967_v30, %v3434_v0  ;;  %v5772_v31 = vand.u32 2147483648, %v12388_v2  ;;  %vm5751_vm10 = vweird.f32 %v5430_v63 }
 0x88a   :  { %15595 = vst [vmem:[#allocation132_spill] sm:$0xff] %v12403_v20  ;;  %8341 = vpow2.f32 %v7566_v17  ;;  %v15602_v17 = vld [vmem:[#allocation110_spill] sm:$0xff]  ;;  %vm5766_vm13 = vweird.f32 %v12388_v2  ;;  %vm5756_vm6 = vcmp.eq.f32.partialorder %v5755_v59, 8.507059e+37 }
 0x88b   :  { %8343 = vpow2.f32 %v7567_v46  ;;  %v3532_v62 = vadd.f32 %v15603_v4, %v15602_v17  ;;  %v4279_v46 = vpop.permute.xlu2 %4278 }
 0x88c   :  { %v12424_v37 = vpop.f32.mrf.mxu0 }
 0x88d   :  { %15604 = vst [vmem:[#allocation109_spill] sm:$0xff] %v12424_v37 }
 0x88e   :  { %v8338_v1 = vpop.eup %8337  ;;  %v12414_v9 = vpop.f32.mrf.mxu2 }
 0x88f   :  { %v8340_v53 = vpop.eup %8339  ;;  %v5747_v18 = vmul.f32 %v8338_v1, %v5430_v63  ;;  %15600 = vst [vmem:[#allocation133_spill] sm:$0xff] %v12414_v9  ;;  %v12416_v54 = vpop.f32.mrf.mxu3  ;;  %v4308_v9 = vmul.f32 %v4279_v46, %v4228_v3  ;;  %vm5752_vm2 = vweird.f32 %v8338_v1  ;;  %v4584_v3 = vmul.f32 %v12422_v52, %v12422_v52 }
 0x890   :  { %v5762_v20 = vmul.f32 %v8340_v53, %v12388_v2  ;;  %15601 = vst [vmem:[#allocation122_spill] sm:$0xff] %v12416_v54  ;;  %v4585_v54 = vmul.f32 %v12409_v28, %v12409_v28  ;;  %v8342_v43 = vpop.eup %8341  ;;  %vm5767_vm12 = vweird.f32 %v8340_v53  ;;  %vm5753_vm15 = vmor %vm5751_vm10, %vm5752_vm2 }
 0x891   :  { %v5748_v23 = vsub.f32 1.0, %v5747_v18  ;;  %v12426_v50 = vpop.f32.mrf.mxu1  ;;  %v5770_v18 = vand.u32 2147483647, %v12388_v2  ;;  %4324 = vst [vmem:[#allocation2 + $0xd0] sm:$0xff] %v4308_v9  ;;  %v8344_v0 = vpop.eup %8343  ;;  %vm5768_vm7 = vmor %vm5766_vm13, %vm5767_vm12 }
 0x892   :  { %v5763_v35 = vsub.f32 1.0, %v5762_v20  ;;  %15605 = vst [vmem:[#allocation121_spill] sm:$0xff] %v12426_v50  ;;  %v5428_v20 = vadd.f32 1.0, %v8342_v43  ;;  %v12433_v50 = vadd.f32 %v12374_v8, %v3532_v62  ;;  %v5773_v43 = vor.u32 1.1754944e-38, %v5772_v31 }
 0x893   :  { %v5749_v4 = vmul.f32 %v8338_v1, %v5748_v23  ;;  %v5758_v23 = vor.u32 1.1754944e-38, %v5757_v14  ;;  %v12439_v9 = vadd.f32 1.0, %v8344_v0  ;;  %v3772_v62 = vadd.f32 %v12288_v44, %v15533_v60 }
 0x894   :  { %v5764_v30 = vmul.f32 %v8340_v53, %v5763_v35  ;;  %8345 = vrcp.f32 %v5428_v20  ;;  %vm5771_vm8 = vcmp.eq.f32.partialorder %v5770_v18, 8.507059e+37  ;;  %v4586_v59 = vmul.f32 %v12433_v50, %v12433_v50  ;;  %v12451_v31 = vpop.f32.mrf.mxu0 }
 0x895   :  { %v5750_v37 = vadd.f32 %v8338_v1, %v5749_v4  ;;  %15608 = vst [vmem:[#allocation110_spill] sm:$0xff] %v12451_v31  ;;  %8347 = vrcp.f32 %v12439_v9  ;;  %vm5721_vm1 = vweird.f32 %v5428_v20  ;;  %vm5736_vm0 = vweird.f32 %v12439_v9 }
 0x896   :  { %v5765_v46 = vadd.f32 %v8340_v53, %v5764_v30  ;;  %v12443_v4 = vpop.f32.mrf.mxu2 }
 0x897   :  { %v5754_v35 = vsel %vm5753_vm15, %v8338_v1, %v5750_v37  ;;  %15606 = vst [vmem:[#allocation111_spill] sm:$0xff] %v12443_v4  ;;  %v12445_v14 = vpop.f32.mrf.mxu3  ;;  %v4654_v1 = vadd.f32 %v4585_v54, %v4584_v3  ;;  %v15637_v4 = vld [vmem:[#allocation167_spill] sm:$0xff] }
 0x898   :  { %v5759_v63 = vsel %vm5756_vm6, %v5758_v23, %v5754_v35  ;;  %v5769_v8 = vsel %vm5768_vm7, %v8340_v53, %v5765_v46  ;;  %15607 = vst [vmem:[#allocation117_spill] sm:$0xff] %v12445_v14  ;;  %v12459_v53 = vadd.f32 %v12020_v58, %v3581_v55  ;;  %v5725_v58 = vand.u32 2147483647, %v5428_v20 }
 0x899   :  { %v6454_v2 = vmul.f32 %v5759_v63, %v12358_v48  ;;  %v5774_v30 = vsel %vm5771_vm8, %v5773_v43, %v5769_v8  ;;  %v12453_v0 = vpop.f32.mrf.mxu1  ;;  %v4487_v48 = vadd.f32 %v12409_v28, %v12422_v52  ;;  %v4655_v54 = vadd.f32 %v4654_v1, %v4586_v59 }
 0x89a   :  { %v6455_v37 = vmul.f32 %v5774_v30, %v12362_v39  ;;  %15609 = vst [vmem:[#allocation123_spill] sm:$0xff] %v12453_v0  ;;  %v8346_v18 = vpop.eup %8345  ;;  %v4587_v39 = vmul.f32 %v12459_v53, %v12459_v53  ;;  %v5727_v55 = vand.u32 2147483648, %v5428_v20  ;;  %vm5726_vm11 = vcmp.eq.f32.partialorder %v5725_v58, 8.507059e+37 }
 0x89b   :  { %v12456_v44 = vadd.f32 %v6454_v2, %v3723_v24  ;;  %v5717_v3 = vmul.f32 %v8346_v18, %v5428_v20  ;;  %v4488_v46 = vadd.f32 %v4487_v48, %v12433_v50  ;;  %v8348_v43 = vpop.eup %8347  ;;  %vm5722_vm5 = vweird.f32 %v8346_v18 }
 0x89c   :  { %v12463_v23 = vadd.f32 %v6455_v37, %v3772_v62  ;;  %v4656_v8 = vadd.f32 %v4655_v54, %v4587_v39  ;;  %v5732_v62 = vmul.f32 %v8348_v43, %v12439_v9  ;;  %v12473_v30 = vpop.f32.mrf.mxu0  ;;  %vm5723_vm14 = vmor %vm5721_vm1, %vm5722_vm5  ;;  %v5728_v54 = vor.u32 1.1754944e-38, %v5727_v55 }
 0x89d   :  { %v5718_v35 = vsub.f32 1.0, %v5717_v3  ;;  %15612 = vst [vmem:[#allocation190_spill] sm:$0xff] %v12473_v30  ;;  %v4489_v1 = vadd.f32 %v4488_v46, %v12459_v53  ;;  %v3625_v3 = vadd.f32 %v12243_v45, %v15540_v57  ;;  %vm5737_vm4 = vweird.f32 %v8348_v43 }
 0x89e   :  { %v12468_v24 = vpop.f32.mrf.mxu2  ;;  %v5733_v48 = vsub.f32 1.0, %v5732_v62  ;;  %v5742_v30 = vand.u32 2147483648, %v12439_v9  ;;  %vm5738_vm9 = vmor %vm5736_vm0, %vm5737_vm4 }
 0x89f   :  { %15610 = vst [vmem:[#allocation188_spill] sm:$0xff] %v12468_v24  ;;  %v12470_v63 = vpop.f32.mrf.mxu3  ;;  %v5719_v2 = vmul.f32 %v8346_v18, %v5718_v35  ;;  %4657 = vadd.xlane.f32.xlu2 %v4656_v8  ;;  %v5740_v8 = vand.u32 2147483647, %v12439_v9 }
 0x8a0   :  { %15611 = vst [vmem:[#allocation189_spill] sm:$0xff] %v12470_v63  ;;  %v5734_v35 = vmul.f32 %v8348_v43, %v5733_v48  ;;  %v5743_v62 = vor.u32 1.1754944e-38, %v5742_v30 }
 0x8a1   :  { %v12475_v59 = vpop.f32.mrf.mxu1  ;;  %v5720_v37 = vadd.f32 %v8346_v18, %v5719_v2  ;;  %4490 = vadd.xlane.f32.xlu1 %v4489_v1  ;;  %v3674_v1 = vadd.f32 %v12247_v61, %v15541_v21  ;;  %vm5741_vm3 = vcmp.eq.f32.partialorder %v5740_v8, 8.507059e+37 }
 0x8a2   :  { %15613 = vst [vmem:[#allocation191_spill] sm:$0xff] %v12475_v59  ;;  %v5735_v20 = vadd.f32 %v8348_v43, %v5734_v35 }
 0x8a3   :  { %v5724_v39 = vsel %vm5723_vm14, %v8346_v18, %v5720_v37 }
 0x8a4   :  { %v5729_v63 = vsel %vm5726_vm11, %v5728_v54, %v5724_v39  ;;  %v5739_v55 = vsel %vm5738_vm9, %v8348_v43, %v5735_v20  ;;  %v12495_v37 = vpop.f32.mrf.mxu0  ;;  %v4002_v54 = vld [vmem:[#allocation2 + $0x1f8] sm:$0xff] }
 0x8a5   :  { %v6452_v46 = vmul.f32 %v5729_v63, %v12385_v26  ;;  %15616 = vst [vmem:[#allocation194_spill] sm:$0xff] %v12495_v37  ;;  %v5744_v48 = vsel %vm5741_vm3, %v5743_v62, %v5739_v55 }
 0x8a6   :  { %v12484_v2 = vpop.f32.mrf.mxu2 }
 0x8a7   :  { %15614 = vst [vmem:[#allocation192_spill] sm:$0xff] %v12484_v2  ;;  %v12486_v45 = vpop.f32.mrf.mxu3  ;;  %v12491_v18 = vadd.f32 %v6452_v46, %v3625_v3  ;;  %v6453_v3 = vmul.f32 %v5744_v48, %v12397_v5  ;;  %v12519_v5 = vld [vmem:[%s14541_s11] ss:$0 sm:$0xff] }
 0x8a8   :  { %15615 = vst [vmem:[#allocation193_spill] sm:$0xff] %v12486_v45  ;;  %v3872_v2 = vld [vmem:[#allocation2 + $0x1e0] sm:$0xff] }
 0x8a9   :  { %v4486_v59 = vpop.xlane.xlu2 %4485  ;;  %v12497_v26 = vpop.f32.mrf.mxu1  ;;  %v12503_v30 = vadd.f32 %v6453_v3, %v3674_v1 }
 0x8aa   :  { %v12489_v58 = vmul.f32 %v15559_v19, %v4486_v59  ;;  %15617 = vst [vmem:[#allocation195_spill] sm:$0xff] %v12497_v26 }
 0x8ac   :  { %v4725_v9 = vmul.f32 %v12489_v58, %v12489_v58  ;;  %v12511_v20 = vpop.f32.mrf.mxu0 }
 0x8ad   :  { %15621 = vst [vmem:[#allocation199_spill] sm:$0xff] %v12511_v20  ;;  %v15626_v20 = vld [vmem:[#allocation142_spill] sm:$0xff] }
 0x8ae   :  { %v4653_v63 = vpop.xlane.xlu1 %4652  ;;  %v12505_v61 = vpop.f32.mrf.mxu2 }
 0x8af   :  { %v4709_v59 = vmul.f32 %v4653_v63, %v15559_v19  ;;  %15618 = vst [vmem:[#allocation196_spill] sm:$0xff] %v12505_v61  ;;  %v12507_v35 = vpop.f32.mrf.mxu3 }
 0x8b0   :  { %15619 = vst [vmem:[#allocation197_spill] sm:$0xff] %v12507_v35 }
 0x8b1   :  { %v4741_v43 = vsub.f32 %v4709_v59, %v4725_v9  ;;  %v4047_v39 = vpop.permute.xlu2 %4046  ;;  %v12513_v26 = vpop.f32.mrf.mxu1  ;;  %v15625_v59 = vld [vmem:[#allocation106_spill] sm:$0xff] }
 0x8b2   :  { %v12509_v8 = vmul.f32 %v4047_v39, %v4002_v54  ;;  %15622 = vst [vmem:[#allocation200_spill] sm:$0xff] %v12513_v26 }
 0x8b3   :  { %v4757_v46 = vmax.f32 %v4741_v43, 0.0 }
 0x8b4   :  { %15620 = vst [vmem:[#allocation198_spill] sm:$0xff] %v12509_v8  ;;  %v6865_v9 = vpop.f32.mrf.mxu0 }
 0x8b5   :  { %v4837_v55 = vadd.f32 1e-05, %v4757_v46  ;;  %4098 = vst [vmem:[#allocation2 + $0x1f8] sm:$0xff] %v12509_v8  ;;  %v6866_v48 = vadd.f32 %v12519_v5, %v6865_v9 }
 0x8b6   :  { %v12521_v62 = vpop.f32.mrf.mxu2 }
 0x8b7   :  { %8349 = vrsqrt.f32 %v4837_v55  ;;  %15623 = vst [vmem:[#allocation201_spill] sm:$0xff] %v12521_v62  ;;  %v12523_v1 = vpop.f32.mrf.mxu3  ;;  %3923 = vperm.xlu2 %8221, %v15625_v59   ;;  %vm4904_vm12 = vweird.f32 %v4837_v55 }
 0x8b8   :  { %15624 = vst [vmem:[#allocation202_spill] sm:$0xff] %v12523_v1  ;;  %v4003_v1 = vld [vmem:[#allocation2 + $0x1f0] sm:$0xff] }
 0x8b9   :  { %v6914_v3 = vpop.f32.mrf.mxu1  ;;  %v4051_v45 = vpop.permute.xlu2 %4050 }
 0x8ba   :  { %v6915_v43 = vadd.f32 %v6914_v3, %v6866_v48  ;;  %v12529_v31 = vmul.f32 %v4051_v45, %v4003_v1  ;;  %v4359_v1 = vld [vmem:[#allocation2 + $0xf0] sm:$0xff] }
 0x8bc   :  { %v6867_v61 = vpop.f32.mrf.mxu0  ;;  %4099 = vst [vmem:[#allocation2 + $0x1f0] sm:$0xff] %v12529_v31 }
 0x8bd   :  { %v8350_v63 = vpop.eup %8349  ;;  %v6868_v26 = vadd.f32 %v12519_v5, %v6867_v61 }
 0x8be   :  { %v4899_v54 = vmul.f32 %v8350_v63, %v4837_v55  ;;  %v6963_v39 = vpop.f32.mrf.mxu2  ;;  %vm4905_vm2 = vweird.f32 %v8350_v63 }
 0x8bf   :  { %v6964_v46 = vadd.f32 %v6963_v39, %v6915_v43  ;;  %3938 = vperm.xlu2 %8221, %v15626_v20   ;;  %v15628_v39 = vld [vmem:[#allocation125_spill] sm:$0xff]  ;;  %vm4906_vm10 = vmor %vm4904_vm12, %vm4905_vm2 }
 0x8c0   :  { %v4900_v35 = vmul.f32 %v8350_v63, %v4899_v54 }
 0x8c1   :  { %v6916_v0 = vpop.f32.mrf.mxu1 }
 0x8c2   :  { %v4901_v9 = vmul.f32 0.5, %v4900_v35  ;;  %v6917_v48 = vadd.f32 %v6916_v0, %v6868_v26  ;;  %v3485_v35 = vadd.f32 %v15628_v39, %v15592_v25  ;;  %v3875_v39 = vld [vmem:[#allocation2 + $0x1a0] sm:$0xff] }
 0x8c4   :  { %v4902_v61 = vsub.f32 1.5, %v4901_v9 }
 0x8c6   :  { %v3919_v24 = vpop.permute.xlu1 %3918  ;;  %v6965_v3 = vpop.f32.mrf.mxu2  ;;  %v4903_v0 = vmul.f32 %v8350_v63, %v4902_v61  ;;  %v15634_v61 = vld [vmem:[#allocation171_spill] sm:$0xff] }
 0x8c7   :  { %v7012_v62 = vpop.f32.mrf.mxu3  ;;  %v3968_v14 = vmul.f32 %v3919_v24, %v3872_v2  ;;  %v6966_v54 = vadd.f32 %v6965_v3, %v6917_v48  ;;  %3943 = vperm.xlu2 %8221, %v15574_v42   ;;  %v15629_v24 = vld [vmem:[#allocation126_spill] sm:$0xff]  ;;  %v8552_v48 = vld [vmem:[#allocation2] sm:$0xff] }
 0x8c8   :  { %v7013_v37 = vadd.f32 %v7012_v62, %v6964_v46  ;;  %v15627_v62 = vld [vmem:[#allocation124_spill] sm:$0xff]  ;;  %v3534_v2 = vadd.f32 %v15629_v24, %v15602_v17  ;;  %v15631_v42 = vld [vmem:[#allocation118_spill] sm:$0xff]  ;;  %v12543_v3 = vadd.f32 %v8552_v48, %v3485_v35  ;;  %v15636_v35 = vld [vmem:[#allocation187_spill] sm:$0xff] }
 0x8c9   :  { %3984 = vst [vmem:[#allocation2 + $0x1e0] sm:$0xff] %v3968_v14  ;;  %v3436_v43 = vadd.f32 %v15627_v62, %v15596_v13  ;;  %v3583_v9 = vadd.f32 %v15631_v42, %v15598_v41  ;;  %v4360_v62 = vld [vmem:[#allocation2 + $0x8] sm:$0xff]  ;;  %v4790_v48 = vsub.f32 %v15636_v35, %v12489_v58 }
 0x8ca   :  { %7052 = vst [vmem:[#allocation16] sm:$0xff] %v7013_v37  ;;  %v4063_v37 = vpop.permute.xlu2 %4062  ;;  %v12545_v24 = vadd.f32 %v4359_v1, %v3534_v2 }
 0x8cb   :  { %v12539_v26 = vadd.f32 %v3968_v14, %v3436_v43  ;;  %15632 = vst [vmem:[#allocation142_spill] sm:$0xff] %v12543_v3  ;;  %v4788_v43 = vsub.f32 %v15634_v61, %v12489_v58  ;;  %v12557_v8 = vadd.f32 %v4360_v62, %v3583_v9 }
 0x8cc   :  { %15633 = vst [vmem:[#allocation124_spill] sm:$0xff] %v12545_v24 }
 0x8cd   :  { %15630 = vst [vmem:[#allocation106_spill] sm:$0xff] %v12539_v26  ;;  %v4492_v14 = vadd.f32 %v12543_v3, %v12539_v26  ;;  %v4588_v1 = vmul.f32 %v12539_v26, %v12539_v26 }
 0x8ce   :  { %15638 = vst [vmem:[#allocation125_spill] sm:$0xff] %v12557_v8 }
 0x8cf   :  { %v7014_v46 = vpop.f32.mrf.mxu3  ;;  %v4493_v2 = vadd.f32 %v4492_v14, %v12545_v24  ;;  %v4590_v14 = vmul.f32 %v12545_v24, %v12545_v24 }
 0x8d0   :  { %v7015_v45 = vadd.f32 %v7014_v46, %v6966_v54  ;;  %v4907_v54 = vsel %vm4906_vm10, %v8350_v63, %v4903_v0  ;;  %v3934_v46 = vpop.permute.xlu1 %3933  ;;  %v4791_v63 = vsub.f32 %v15637_v4, %v12489_v58  ;;  %v4006_v0 = vld [vmem:[#allocation2 + $0x178] sm:$0xff]  ;;  %v4589_v4 = vmul.f32 %v12543_v3, %v12543_v3  ;;  %v4117_v3 = vld [vmem:[#allocation2 + $0xa8] sm:$0xff] }
 0x8d1   :  { %v3971_v55 = vmul.f32 %v3934_v46, %v3875_v39  ;;  %v4086_v7 = vmul.f32 %v4063_v37, %v4006_v0  ;;  %v5028_v61 = vmul.f32 %v4907_v54, %v4788_v43  ;;  %v4494_v35 = vadd.f32 %v4493_v2, %v12557_v8  ;;  %v15639_v37 = vld [vmem:[#allocation137_spill] sm:$0xff]  ;;  %v3878_v0 = vld [vmem:[#allocation2 + $0x170] sm:$0xff] }
 0x8d2   :  { %7053 = vst [vmem:[#allocation16 + $0x8] sm:$0xff] %v7015_v45  ;;  %v15635_v45 = vld [vmem:[#allocation186_spill] sm:$0xff]  ;;  %v4175_v47 = vpop.permute.xlu2 %4174  ;;  %v5031_v39 = vmul.f32 %v4907_v54, %v4791_v63  ;;  %v3444_v46 = vadd.f32 %v15639_v37, %v15596_v13  ;;  %v4591_v2 = vmul.f32 %v12557_v8, %v12557_v8 }
 0x8d3   :  { %v4789_v42 = vsub.f32 %v15635_v45, %v12489_v58  ;;  %3987 = vst [vmem:[#allocation2 + $0x1a0] sm:$0xff] %v3971_v55  ;;  %v5030_v45 = vmul.f32 %v4907_v54, %v4790_v48  ;;  %v5102_v58 = vmul.f32 %v11602_v6, %v5028_v61  ;;  %4495 = vadd.xlane.f32.xlu0 %v4494_v35  ;;  %v15640_v48 = vld [vmem:[#allocation138_spill] sm:$0xff] }
 0x8d4   :  { %4102 = vst [vmem:[#allocation2 + $0x178] sm:$0xff] %v4086_v7  ;;  %v5105_v43 = vmul.f32 %v11628_v15, %v5031_v39  ;;  %v3493_v63 = vadd.f32 %v15640_v48, %v15592_v25  ;;  %v12593_v8 = vadd.f32 %v3971_v55, %v3444_v46 }
 0x8d5   :  { %v5029_v11 = vmul.f32 %v4907_v54, %v4789_v42  ;;  %v5104_v62 = vmul.f32 %v11620_v27, %v5030_v45  ;;  %v4659_v54 = vadd.f32 %v4589_v4, %v4588_v1  ;;  %v12574_v7 = vadd.f32 %v11611_v40, %v5102_v58  ;;  %v4118_v58 = vld [vmem:[#allocation2 + $0x68] sm:$0xff] }
 0x8d6   :  { %v12587_v61 = vadd.f32 %v11633_v16, %v5105_v43  ;;  %v4198_v48 = vmul.f32 %v4175_v47, %v4118_v58  ;;  %15641 = vst [vmem:[#allocation126_spill] sm:$0xff] %v12593_v8 }
 0x8d7   :  { %v5103_v9 = vmul.f32 %v11616_v51, %v5029_v11  ;;  %v12580_v11 = vadd.f32 %v11626_v32, %v5104_v62  ;;  %v4660_v45 = vadd.f32 %v4659_v54, %v4590_v14  ;;  %v7570_v35 = vmul.f32 -1.442695, %v12574_v7  ;;  %v4230_v62 = vld [vmem:[#allocation2 + $0x190] sm:$0xff] }
 0x8d8   :  { %v3949_v1 = vpop.permute.xlu1 %3948  ;;  %v7573_v37 = vmul.f32 -1.442695, %v12587_v61  ;;  %v12596_v14 = vadd.f32 %v12529_v31, %v3493_v63  ;;  %4214 = vst [vmem:[#allocation2 + $0x68] sm:$0xff] %v4198_v48 }
 0x8d9   :  { %v12577_v42 = vadd.f32 %v11618_v12, %v5103_v9  ;;  %v7572_v4 = vmul.f32 -1.442695, %v12580_v11  ;;  %v3974_v9 = vmul.f32 %v3949_v1, %v3878_v0  ;;  %v4661_v24 = vadd.f32 %v4660_v45, %v4591_v2  ;;  %v3815_v0 = vld [vmem:[#allocation4 + $0x70] sm:$0xff]  ;;  %v3816_v1 = vld [vmem:[#allocation4 + $0x78] sm:$0xff] }
 0x8da   :  { %8351 = vpow2.f32 %v7570_v35  ;;  %v4287_v43 = vpop.permute.xlu2 %4286  ;;  %15642 = vst [vmem:[#allocation118_spill] sm:$0xff] %v12596_v14  ;;  %vm3831_vm15 = vcmp.gt.f32.partialorder %v3815_v0, 0.0  ;;  %vm3832_vm13 = vcmp.gt.f32.partialorder %v3816_v1, 0.0 }
 0x8db   :  { %v7571_v39 = vmul.f32 -1.442695, %v12577_v42  ;;  %3990 = vst [vmem:[#allocation2 + $0x170] sm:$0xff] %v3974_v9  ;;  %v4310_v54 = vmul.f32 %v4287_v43, %v4230_v62  ;;  %4662 = vadd.xlane.f32.xlu1 %v4661_v24  ;;  %v3847_v63 = vsel %vm3831_vm15, %v3815_v0, 1.0 }
 0x8dd   :  { %8353 = vpow2.f32 %v7571_v39  ;;  %4326 = vst [vmem:[#allocation2 + $0x190] sm:$0xff] %v4310_v54 }
 0x8de   :  { %8355 = vpow2.f32 %v7572_v4  ;;  %v3848_v4 = vsel %vm3832_vm13, %v3816_v1, 1.0  ;;  %v12619_v1 = vadd.f32 %v12295_v22, %v15540_v57 }
 0x8df   :  { %8357 = vpow2.f32 %v7573_v37 }
 0x8e0   :  { %v8352_v47 = vpop.eup %8351  ;;  %v4171_v45 = vpop.permute.xlu1 %4170 }
 0x8e1   :  { %v12598_v46 = vadd.f32 1.0, %v8352_v47  ;;  %v12602_v39 = vmul.f32 %v4171_v45, %v4117_v3  ;;  %v12623_v47 = vadd.f32 %v12297_v29, %v15541_v21 }
 0x8e3   :  { %v6870_v2 = vpop.f32.mrf.mxu0  ;;  %v8354_v55 = vpop.eup %8353  ;;  %8359 = vrcp.f32 %v12598_v46  ;;  %4213 = vst [vmem:[#allocation2 + $0xa8] sm:$0xff] %v12602_v39  ;;  %v5785_v3 = vand.u32 2147483647, %v12598_v46  ;;  %v5787_v43 = vand.u32 2147483648, %v12598_v46  ;;  %vm5781_vm6 = vweird.f32 %v12598_v46 }
 0x8e4   :  { %v8356_v35 = vpop.eup %8355  ;;  %v12600_v31 = vadd.f32 1.0, %v8354_v55  ;;  %v6871_v58 = vadd.f32 %v12519_v5, %v6870_v2  ;;  %v15643_v55 = vld [vmem:[#allocation108_spill] sm:$0xff] }
 0x8e5   :  { %v8358_v24 = vpop.eup %8357  ;;  %v12608_v9 = vadd.f32 1.0, %v8356_v35  ;;  %v6919_v37 = vpop.f32.mrf.mxu1  ;;  %v4229_v35 = vld [vmem:[#allocation2 + $0x1c8] sm:$0xff]  ;;  %vm12639_vm7 = vcmp.eq.f32.partialorder %v5785_v3, 8.507059e+37  ;;  %v5788_v8 = vor.u32 1.1754944e-38, %v5787_v43 }
 0x8e6   :  { %8361 = vrcp.f32 %v12600_v31  ;;  %v12610_v62 = vadd.f32 1.0, %v8358_v24  ;;  %v5800_v54 = vand.u32 2147483647, %v12600_v31  ;;  %v6920_v2 = vadd.f32 %v6919_v37, %v6871_v58 }
 0x8e7   :  { %8363 = vrcp.f32 %v3847_v63  ;;  %3928 = vperm.xlu0 %8216, %v15643_v55   ;;  %v5802_v45 = vand.u32 2147483648, %v12600_v31  ;;  %v12629_v24 = vadd.f32 %v12318_v34, %v11738_v10  ;;  %vm5796_vm8 = vweird.f32 %v12600_v31 }
 0x8e8   :  { %8365 = vrcp.f32 %v3848_v4  ;;  %v12633_v4 = vadd.f32 %v12320_v33, %v15533_v60  ;;  %vm12647_vm5 = vcmp.eq.f32.partialorder %v5800_v54, 8.507059e+37  ;;  %vm5811_vm1 = vweird.f32 %v12608_v9 }
 0x8e9   :  { %8367 = vrcp.f32 %v12608_v9  ;;  %v8360_v0 = vpop.eup %8359  ;;  %v4283_v34 = vpop.permute.xlu1 %4282  ;;  %v5803_v21 = vor.u32 1.1754944e-38, %v5802_v45  ;;  %v5815_v43 = vand.u32 2147483647, %v12608_v9  ;;  %v5817_v25 = vand.u32 2147483648, %v12608_v9 }
 0x8ea   :  { %8369 = vrcp.f32 %v12610_v62  ;;  %v5777_v26 = vmul.f32 %v8360_v0, %v12598_v46  ;;  %v12651_v10 = vmul.f32 %v4283_v34, %v4229_v35  ;;  %vm5782_vm14 = vweird.f32 %v8360_v0 }
 0x8eb   :  { %v6872_v22 = vpop.f32.mrf.mxu0  ;;  %vm5783_vm4 = vmor %vm5781_vm6, %vm5782_vm14  ;;  %vm5826_vm2 = vweird.f32 %v12610_v62  ;;  %vm5816_vm10 = vcmp.eq.f32.partialorder %v5815_v43, 8.507059e+37 }
 0x8ec   :  { %v6968_v48 = vpop.f32.mrf.mxu2  ;;  %v8362_v63 = vpop.eup %8361  ;;  %v5778_v33 = vsub.f32 1.0, %v5777_v26  ;;  %v6873_v3 = vadd.f32 %v12519_v5, %v6872_v22  ;;  %4325 = vst [vmem:[#allocation2 + $0x1c8] sm:$0xff] %v12651_v10 }
 0x8ed   :  { %v12637_v29 = vpop.eup %8363  ;;  %v6969_v58 = vadd.f32 %v6968_v48, %v6920_v2  ;;  %v5792_v55 = vmul.f32 %v8362_v63, %v12600_v31  ;;  %vm5797_vm11 = vweird.f32 %v8362_v63  ;;  %v6921_v45 = vpop.f32.mrf.mxu1 }
 0x8ee   :  { %v12645_v14 = vpop.eup %8365  ;;  %v5779_v16 = vmul.f32 %v8360_v0, %v5778_v33  ;;  %v5830_v33 = vand.u32 2147483647, %v12610_v62  ;;  %v6922_v32 = vadd.f32 %v6921_v45, %v6873_v3  ;;  %vm5798_vm0 = vmor %vm5796_vm8, %vm5797_vm11 }
 0x8ef   :  { %v8368_v48 = vpop.eup %8367  ;;  %v5793_v2 = vsub.f32 1.0, %v5792_v55  ;;  %3958 = vperm.xlu2 %8221, %v12645_v14   ;;  %3953 = vperm.xlu0 %8216, %v12637_v29  }
 0x8f0   :  { %v8370_v56 = vpop.eup %8369  ;;  %v5807_v26 = vmul.f32 %v8368_v48, %v12608_v9  ;;  %v5780_v55 = vadd.f32 %v8360_v0, %v5779_v16  ;;  %vm5812_vm9 = vweird.f32 %v8368_v48  ;;  %vm5831_vm13 = vcmp.eq.f32.partialorder %v5830_v33, 8.507059e+37 }
 0x8f1   :  { %v5794_v35 = vmul.f32 %v8362_v63, %v5793_v2  ;;  %v5822_v5 = vmul.f32 %v8370_v56, %v12610_v62  ;;  %vm5827_vm3 = vweird.f32 %v8370_v56  ;;  %vm12679_vm12 = vmor %vm5811_vm1, %vm5812_vm9 }
 0x8f2   :  { %v5808_v34 = vsub.f32 1.0, %v5807_v26  ;;  %v5784_v2 = vsel %vm5783_vm4, %v8360_v0, %v5780_v55  ;;  %vm5828_vm15 = vmor %vm5826_vm2, %vm5827_vm3 }
 0x8f3   :  { %v7017_v57 = vpop.f32.mrf.mxu3  ;;  %v5795_v15 = vadd.f32 %v8362_v63, %v5794_v35  ;;  %v5789_v3 = vsel %vm12639_vm7, %v5788_v8, %v5784_v2 }
 0x8f4   :  { %v7018_v54 = vadd.f32 %v7017_v57, %v6969_v58  ;;  %v6970_v22 = vpop.f32.mrf.mxu2  ;;  %v5823_v57 = vsub.f32 1.0, %v5822_v5  ;;  %v5832_v58 = vand.u32 2147483648, %v12610_v62  ;;  %v5809_v16 = vmul.f32 %v8368_v48, %v5808_v34  ;;  %4042 = vperm.xlu1 %8222, %v15625_v59  }
 0x8f5   :  { %v6971_v26 = vadd.f32 %v6970_v22, %v6922_v32  ;;  %v5799_v46 = vsel %vm5798_vm0, %v8362_v63, %v5795_v15  ;;  %v6456_v35 = vmul.f32 %v5789_v3, %v12574_v7  ;;  %v5818_v32 = vor.u32 1.1754944e-38, %v5817_v25 }
 0x8f6   :  { %7054 = vst [vmem:[#allocation16 + $0x10] sm:$0xff] %v7018_v54  ;;  %v5824_v54 = vmul.f32 %v8370_v56, %v5823_v57  ;;  %v5804_v5 = vsel %vm12647_vm5, %v5803_v21, %v5799_v46  ;;  %v5810_v45 = vadd.f32 %v8368_v48, %v5809_v16  ;;  %v5833_v7 = vor.u32 1.1754944e-38, %v5832_v58 }
 0x8f7   :  { %v6457_v31 = vmul.f32 %v5804_v5, %v12577_v42  ;;  %8223 = vset.pattern.permute.xlu2 %v15589_v36  ;;  %v6520_v21 = vadd.f32 %v6456_v35, %v12619_v1  ;;  %8226 = vset.pattern.permute.xlu0 %v15579_v38  ;;  %v15654_v5 = vld [vmem:[#allocation145_spill] sm:$0xff] }
 0x8f8   :  { %v5825_v15 = vadd.f32 %v8370_v56, %v5824_v54  ;;  %v5814_v8 = vsel %vm12679_vm12, %v8368_v48, %v5810_v45  ;;  %4070 = vperm.xlu2 %8223, %v12645_v14   ;;  %4290 = vperm.xlu0 %8226, %v12637_v29   ;;  %v3449_v45 = vadd.f32 %v15654_v5, %v15596_v13 }
 0x8f9   :  { %v6521_v25 = vadd.f32 %v6457_v31, %v12623_v47  ;;  %v5819_v9 = vsel %vm5816_vm10, %v5818_v32, %v5814_v8  ;;  %v6572_v59 = vpack.c.bf16 %v6520_v21, %v12491_v18 }
 0x8fa   :  { %v5829_v62 = vsel %vm5828_vm15, %v8370_v56, %v5825_v15  ;;  %v6458_v36 = vmul.f32 %v5819_v9, %v12580_v11 }
 0x8fb   :  { %v7019_v60 = vpop.f32.mrf.mxu3  ;;  %v5834_v63 = vsel %vm5831_vm13, %v5833_v7, %v5829_v62  ;;  %v6573_v1 = vpack.c.bf16 %v6521_v25, %v12503_v30  ;;  %6874 = vmatmul.bf16.gmra.mxu0 %v6572_v59  ;;  %v15650_v30 = vld [vmem:[#allocation147_spill] sm:$0xff] }
 0x8fc   :  { %v7020_v42 = vadd.f32 %v7019_v60, %v6971_v26  ;;  %v6459_v37 = vmul.f32 %v5834_v63, %v12587_v61  ;;  %v6522_v48 = vadd.f32 %v6458_v36, %v12629_v24  ;;  %4054 = vperm.xlu1 %8222, %v15626_v20   ;;  %v3547_v61 = vadd.f32 %v15650_v30, %v15602_v17  ;;  %v3877_v26 = vld [vmem:[#allocation2 + $0xb8] sm:$0xff]  ;;  %v15658_v63 = vld [vmem:[#allocation162_spill] sm:$0xff] }
 0x8fd   :  { %6923 = vmatmul.bf16.gmra.mxu1 %v6573_v1 }
 0x8fe   :  { %7055 = vst [vmem:[#allocation16 + $0x18] sm:$0xff] %v7020_v42  ;;  %v6523_v56 = vadd.f32 %v6459_v37, %v12633_v4  ;;  %v6574_v18 = vpack.c.bf16 %v6522_v48, %v12456_v44  ;;  %v12712_v20 = vadd.f32 %v12602_v39, %v3547_v61  ;;  %v15662_v61 = vld [vmem:[#allocation161_spill] sm:$0xff] }
 0x900   :  { %v6575_v11 = vpack.c.bf16 %v6523_v56, %v12463_v23  ;;  %6972 = vmatmul.bf16.gmra.mxu2 %v6574_v18  ;;  %8225 = vset.pattern.permute.xlu2 %v15571_v49  ;;  %15651 = vst [vmem:[#allocation171_spill] sm:$0xff] %v12712_v20  ;;  %v15661_v18 = vld [vmem:[#allocation127_spill] sm:$0xff] }
 0x901   :  { %4182 = vperm.xlu2 %8225, %v12645_v14  }
 0x902   :  { %7021 = vmatmul.bf16.gmra.mxu3 %v6575_v11  ;;  %v12752_v11 = vadd.f32 %v15661_v18, %v15596_v13  ;;  %v15682_v18 = vld [vmem:[#allocation152_spill] sm:$0xff] }
 0x904   :  { %4066 = vperm.xlu1 %8222, %v12637_v29  }
 0x90c   :  { %8224 = vset.pattern.permute.xlu1 %v15571_v49  ;;  %v3873_v49 = vld [vmem:[#allocation2 + $0x148] sm:$0xff] }
 0x90d   :  { %4178 = vperm.xlu1 %8224, %v12637_v29   ;;  %v15652_v29 = vld [vmem:[#allocation175_spill] sm:$0xff] }
 0x90e   :  { %v3596_v22 = vadd.f32 %v15652_v29, %v15598_v41 }
 0x912   :  { %v4658_v44 = vpop.xlane.xlu2 %4657 }
 0x913   :  { %v4710_v24 = vmul.f32 %v4658_v44, %v15559_v19 }
 0x914   :  { %v4491_v47 = vpop.xlane.xlu1 %4490 }
 0x915   :  { %v4550_v23 = vmul.f32 %v15559_v19, %v4491_v47  ;;  %8227 = vset.pattern.permute.xlu1 %v15579_v38  ;;  %v12722_v38 = vadd.f32 %v12651_v10, %v3596_v22  ;;  %v15664_v47 = vld [vmem:[#allocation112_spill] sm:$0xff] }
 0x916   :  { %4294 = vperm.xlu1 %8227, %v12645_v14   ;;  %v3876_v14 = vld [vmem:[#allocation2 + $0x70] sm:$0xff]  ;;  %v15668_v22 = vld [vmem:[#allocation164_spill] sm:$0xff] }
 0x917   :  { %v4726_v4 = vmul.f32 %v4550_v23, %v4550_v23  ;;  %15653 = vst [vmem:[#allocation186_spill] sm:$0xff] %v12722_v38  ;;  %v4792_v32 = vsub.f32 %v12422_v52, %v4550_v23  ;;  %v4793_v15 = vsub.f32 %v12409_v28, %v4550_v23  ;;  %v4794_v7 = vsub.f32 %v12433_v50, %v4550_v23  ;;  %v15659_v50 = vld [vmem:[#allocation136_spill] sm:$0xff] }
 0x918   :  { %v4795_v42 = vsub.f32 %v12459_v53, %v4550_v23  ;;  %v3539_v37 = vadd.f32 %v15659_v50, %v15602_v17  ;;  %v15660_v53 = vld [vmem:[#allocation151_spill] sm:$0xff]  ;;  %v15665_v23 = vld [vmem:[#allocation128_spill] sm:$0xff] }
 0x919   :  { %v4742_v43 = vsub.f32 %v4710_v24, %v4726_v4  ;;  %v3588_v48 = vadd.f32 %v15660_v53, %v15598_v41  ;;  %v12760_v24 = vadd.f32 %v15665_v23, %v15664_v47  ;;  %v15666_v4 = vld [vmem:[#allocation129_spill] sm:$0xff]  ;;  %v3880_v50 = vld [vmem:[#allocation2 + $0x158] sm:$0xff] }
 0x91a   :  { %v3924_v55 = vpop.permute.xlu2 %3923 }
 0x91b   :  { %v4758_v34 = vmax.f32 %v4742_v43, 0.0  ;;  %v12718_v33 = vmul.f32 %v3924_v55, %v3873_v49  ;;  %v3537_v49 = vadd.f32 %v15666_v4, %v15602_v17  ;;  %v15667_v43 = vld [vmem:[#allocation119_spill] sm:$0xff] }
 0x91c   :  { %v12766_v29 = vmul.f32 %v15667_v43, %v15667_v43 }
 0x91d   :  { %v4838_v57 = vadd.f32 1e-05, %v4758_v34  ;;  %3985 = vst [vmem:[#allocation2 + $0x148] sm:$0xff] %v12718_v33  ;;  %v15670_v34 = vld [vmem:[#allocation130_spill] sm:$0xff] }
 0x91f   :  { %8371 = vrsqrt.f32 %v4838_v57  ;;  %vm4914_vm7 = vweird.f32 %v4838_v57 }
 0x922   :  { %v3939_v39 = vpop.permute.xlu2 %3938 }
 0x923   :  { %v12724_v58 = vmul.f32 %v3939_v39, %v3876_v14  ;;  %v15671_v14 = vld [vmem:[#allocation131_spill] sm:$0xff] }
 0x924   :  { %v12777_v39 = vadd.f32 %v15671_v14, %v15664_v47 }
 0x925   :  { %v8372_v2 = vpop.eup %8371  ;;  %3988 = vst [vmem:[#allocation2 + $0x70] sm:$0xff] %v12724_v58 }
 0x926   :  { %v4909_v16 = vmul.f32 %v8372_v2, %v4838_v57  ;;  %vm4915_vm6 = vweird.f32 %v8372_v2  ;;  %v12773_v57 = vadd.f32 %v15670_v34, %v15596_v13  ;;  %v15683_v34 = vld [vmem:[#allocation183_spill] sm:$0xff] }
 0x927   :  { %vm4916_vm8 = vmor %vm4914_vm7, %vm4915_vm6  ;;  %v12822_v14 = vadd.f32 %v15683_v34, %v15598_v41 }
 0x928   :  { %v4910_v3 = vmul.f32 %v8372_v2, %v4909_v16 }
 0x92a   :  { %v3944_v46 = vpop.permute.xlu2 %3943  ;;  %v4911_v35 = vmul.f32 0.5, %v4910_v3 }
 0x92b   :  { %v3973_v54 = vmul.f32 %v3944_v46, %v3877_v26  ;;  %v15673_v26 = vld [vmem:[#allocation156_spill] sm:$0xff]  ;;  %v8553_v46 = vld [vmem:[#allocation2 + $0x20] sm:$0xff] }
 0x92c   :  { %v4912_v10 = vsub.f32 1.5, %v4911_v35  ;;  %v12783_v3 = vadd.f32 %v15673_v26, %v15598_v41  ;;  %v8554_v35 = vld [vmem:[#allocation2 + $0x128] sm:$0xff] }
 0x92d   :  { %3989 = vst [vmem:[#allocation2 + $0xb8] sm:$0xff] %v3973_v54  ;;  %v12729_v31 = vadd.f32 %v3973_v54, %v3449_v45  ;;  %v12785_v54 = vadd.f32 %v8553_v46, %v3539_v37  ;;  %v12787_v5 = vadd.f32 %v8554_v35, %v3588_v48  ;;  %v15675_v45 = vld [vmem:[#allocation141_spill] sm:$0xff] }
 0x92e   :  { %v4913_v0 = vmul.f32 %v8372_v2, %v4912_v10  ;;  %v12791_v10 = vadd.f32 %v15675_v45, %v15596_v13  ;;  %v15681_v48 = vld [vmem:[#allocation149_spill] sm:$0xff]  ;;  %v15687_v45 = vld [vmem:[#allocation154_spill] sm:$0xff] }
 0x92f   :  { %15655 = vst [vmem:[#allocation187_spill] sm:$0xff] %v12729_v31 }
 0x930   :  { %v4917_v60 = vsel %vm4916_vm8, %v8372_v2, %v4913_v0  ;;  %v15672_v2 = vld [vmem:[#allocation139_spill] sm:$0xff]  ;;  %15674 = vst [vmem:[#allocation147_spill] sm:$0xff] %v12785_v54 }
 0x931   :  { %v5032_v21 = vmul.f32 %v4917_v60, %v4792_v32  ;;  %v5033_v8 = vmul.f32 %v4917_v60, %v4793_v15  ;;  %v5034_v62 = vmul.f32 %v4917_v60, %v4794_v7  ;;  %v5035_v59 = vmul.f32 %v4917_v60, %v4795_v42  ;;  %v15676_v0 = vld [vmem:[#allocation143_spill] sm:$0xff]  ;;  %v15677_v15 = vld [vmem:[#allocation144_spill] sm:$0xff]  ;;  %v4371_v7 = vld [vmem:[#allocation2 + $0xe8] sm:$0xff] }
 0x932   :  { %v3542_v16 = vadd.f32 %v15672_v2, %v15602_v17  ;;  %v12795_v32 = vadd.f32 %v15676_v0, %v15664_v47  ;;  %v12799_v60 = vadd.f32 %v15677_v15, %v15602_v17  ;;  %v15684_v2 = vld [vmem:[#allocation153_spill] sm:$0xff]  ;;  %v12834_v0 = vadd.f32 %v15687_v45, %v15664_v47  ;;  %v15689_v15 = vld [vmem:[#allocation163_spill] sm:$0xff] }
 0x933   :  { %v5106_v25 = vmul.f32 %v11602_v6, %v5032_v21  ;;  %v5107_v9 = vmul.f32 %v11616_v51, %v5033_v8  ;;  %v5108_v28 = vmul.f32 %v11620_v27, %v5034_v62  ;;  %v5109_v1 = vmul.f32 %v15658_v63, %v5035_v59  ;;  %v4363_v8 = vld [vmem:[#allocation2 + $0x100] sm:$0xff]  ;;  %v15679_v62 = vld [vmem:[#allocation146_spill] sm:$0xff] }
 0x934   :  { %v3498_v59 = vadd.f32 %v15679_v62, %v15664_v47  ;;  %v12826_v26 = vadd.f32 %v15684_v2, %v15596_v13  ;;  %v12828_v46 = vadd.f32 %v4363_v8, %v3537_v49  ;;  %v12830_v35 = vadd.f32 %v4371_v7, %v3542_v16  ;;  %15688 = vst [vmem:[#allocation136_spill] sm:$0xff] %v12834_v0  ;;  %v4382_v49 = vld [vmem:[#allocation2 + $0x178] sm:$0xff]  ;;  %v15693_v16 = vld [vmem:[#allocation165_spill] sm:$0xff]  ;;  %v15707_v0 = vld [vmem:[#allocation174_spill] sm:$0xff] }
 0x935   :  { %v12738_v36 = vadd.f32 %v11611_v40, %v5106_v25  ;;  %v12741_v52 = vadd.f32 %v11618_v12, %v5107_v9  ;;  %v12756_v44 = vadd.f32 %v15662_v61, %v5108_v28  ;;  %v12769_v55 = vadd.f32 %v15668_v22, %v5109_v1  ;;  %v15678_v25 = vld [vmem:[#allocation170_spill] sm:$0xff]  ;;  %v15680_v28 = vld [vmem:[#allocation148_spill] sm:$0xff]  ;;  %v15698_v2 = vld [vmem:[#allocation185_spill] sm:$0xff] }
 0x936   :  { %v12804_v9 = vadd.f32 %v15678_v25, %v15598_v41  ;;  %v3451_v1 = vadd.f32 %v15680_v28, %v15596_v13  ;;  %15685 = vst [vmem:[#allocation175_spill] sm:$0xff] %v12826_v26  ;;  %v15691_v25 = vld [vmem:[#allocation184_spill] sm:$0xff]  ;;  %v4381_v28 = vld [vmem:[#allocation2 + $0x170] sm:$0xff]  ;;  %v12847_v7 = vadd.f32 %v15693_v16, %v15596_v13  ;;  %v12865_v13 = vmul.f32 %v12785_v54, %v12785_v54  ;;  %v4383_v26 = vld [vmem:[#allocation2 + $0x68] sm:$0xff] }
 0x937   :  { %15656 = vst [vmem:[#allocation167_spill] sm:$0xff] %v12738_v36  ;;  %v7574_v56 = vmul.f32 -1.442695, %v12738_v36  ;;  %v7575_v30 = vmul.f32 -1.442695, %v12741_v52  ;;  %v12842_v62 = vadd.f32 %v15691_v25, %v15598_v41  ;;  %v4008_v25 = vld [vmem:[#allocation2 + $0x10] sm:$0xff] }
 0x938   :  { %15657 = vst [vmem:[#allocation137_spill] sm:$0xff] %v12741_v52  ;;  %v7576_v42 = vmul.f32 -1.442695, %v12756_v44  ;;  %v7577_v53 = vmul.f32 -1.442695, %v12769_v55  ;;  %v12877_v16 = vadd.f32 %v4381_v28, %v3451_v1  ;;  %v15710_v52 = vld [vmem:[#allocation179_spill] sm:$0xff] }
 0x939   :  { %15663 = vst [vmem:[#allocation138_spill] sm:$0xff] %v12756_v44  ;;  %8373 = vpow2.f32 %v7574_v56  ;;  %v3500_v56 = vadd.f32 %v15681_v48, %v15664_v47  ;;  %v15696_v48 = vld [vmem:[#allocation172_spill] sm:$0xff]  ;;  %v15712_v1 = vld [vmem:[#allocation181_spill] sm:$0xff] }
 0x93a   :  { %15669 = vst [vmem:[#allocation108_spill] sm:$0xff] %v12769_v55  ;;  %8375 = vpow2.f32 %v7575_v30  ;;  %v3549_v30 = vadd.f32 %v15682_v18, %v15602_v17  ;;  %v12855_v18 = vadd.f32 %v15696_v48, %v15602_v17  ;;  %v15703_v48 = vld [vmem:[#allocation176_spill] sm:$0xff] }
 0x93b   :  { %15686 = vst [vmem:[#allocation145_spill] sm:$0xff] %v12830_v35  ;;  %8377 = vpow2.f32 %v7576_v42  ;;  %v12859_v42 = vadd.f32 %v15698_v2, %v15598_v41  ;;  %v4602_v41 = vmul.f32 %v12830_v35, %v12830_v35  ;;  %v15704_v2 = vld [vmem:[#allocation173_spill] sm:$0xff] }
 0x93c   :  { %15692 = vst [vmem:[#allocation127_spill] sm:$0xff] %v12842_v62  ;;  %8379 = vpow2.f32 %v7577_v53  ;;  %v12873_v53 = vmul.f32 %v12828_v46, %v12828_v46 }
 0x93d   :  { %15697 = vst [vmem:[#allocation128_spill] sm:$0xff] %v12855_v18  ;;  %v15709_v18 = vld [vmem:[#allocation178_spill] sm:$0xff] }
 0x93e   :  { %15699 = vst [vmem:[#allocation129_spill] sm:$0xff] %v12859_v42  ;;  %v12883_v42 = vadd.f32 %v15704_v2, %v15703_v48  ;;  %v12894_v36 = vadd.f32 %v15710_v52, %v15709_v18 }
 0x93f   :  { %v8374_v8 = vpop.eup %8373  ;;  %15701 = vst [vmem:[#allocation130_spill] sm:$0xff] %v12877_v16 }
 0x940   :  { %v8376_v34 = vpop.eup %8375  ;;  %15705 = vst [vmem:[#allocation139_spill] sm:$0xff] %v12883_v42  ;;  %v12890_v62 = vadd.f32 1.0, %v8374_v8  ;;  %v15717_v8 = vld [vmem:[#allocation126_spill] sm:$0xff] }
 0x941   :  { %15711 = vst [vmem:[#allocation141_spill] sm:$0xff] %v12894_v36  ;;  %v12902_v42 = vadd.f32 1.0, %v8376_v34  ;;  %v15722_v34 = vld [vmem:[#allocation169_spill] sm:$0xff] }
 0x942   :  { %8381 = vrcp.f32 %v12890_v62  ;;  %vm5841_vm1 = vweird.f32 %v12890_v62 }
 0x943   :  { %8383 = vrcp.f32 %v12902_v42  ;;  %vm5856_vm11 = vweird.f32 %v12902_v42 }
 0x946   :  { %v4496_v21 = vpop.xlane.xlu0 %4495 }
 0x947   :  { %v12816_v23 = vmul.f32 %v15559_v19, %v4496_v21  ;;  %v12838_v21 = vadd.f32 %v15689_v15, %v15602_v17  ;;  %v4378_v15 = vld [vmem:[#allocation2 + $0x88] sm:$0xff] }
 0x948   :  { %v12900_v2 = vadd.f32 %v4378_v15, %v3498_v59  ;;  %v4612_v59 = vmul.f32 %v12877_v16, %v12877_v16 }
 0x949   :  { %v3959_v37 = vpop.permute.xlu2 %3958  ;;  %15690 = vst [vmem:[#allocation151_spill] sm:$0xff] %v12838_v21  ;;  %v4727_v45 = vmul.f32 %v12816_v23, %v12816_v23  ;;  %v15706_v21 = vld [vmem:[#allocation177_spill] sm:$0xff] }
 0x94a   :  { %v12818_v4 = vmul.f32 %v3959_v37, %v3880_v50  ;;  %v15694_v50 = vld [vmem:[#allocation166_spill] sm:$0xff]  ;;  %v12887_v55 = vadd.f32 %v15707_v0, %v15706_v21  ;;  %15715 = vst [vmem:[#allocation144_spill] sm:$0xff] %v12900_v2  ;;  %v8378_v0 = vpop.eup %8377 }
 0x94b   :  { %v12851_v37 = vadd.f32 %v15694_v50, %v15664_v47  ;;  %v12869_v47 = vmul.f32 %v12787_v5, %v12787_v5  ;;  %v12879_v50 = vadd.f32 %v4382_v49, %v3500_v56  ;;  %v15713_v56 = vld [vmem:[#allocation180_spill] sm:$0xff]  ;;  %v8380_v36 = vpop.eup %8379 }
 0x94c   :  { %3992 = vst [vmem:[#allocation2 + $0x158] sm:$0xff] %v12818_v4  ;;  %v12898_v28 = vadd.f32 %v15713_v56, %v15712_v1 }
 0x94d   :  { %15695 = vst [vmem:[#allocation112_spill] sm:$0xff] %v12851_v37  ;;  %v15719_v37 = vld [vmem:[#allocation182_spill] sm:$0xff] }
 0x94e   :  { %15700 = vst [vmem:[#allocation119_spill] sm:$0xff] %v12869_v47  ;;  %v4663_v17 = vpop.xlane.xlu1 %4662  ;;  %v12912_v56 = vadd.f32 %v15719_v37, %v15703_v48 }
 0x94f   :  { %15702 = vst [vmem:[#allocation131_spill] sm:$0xff] %v12879_v50  ;;  %v4711_v44 = vmul.f32 %v4663_v17, %v15559_v19  ;;  %v4600_v17 = vmul.f32 %v15717_v8, %v15717_v8  ;;  %v15718_v19 = vld [vmem:[#allocation118_spill] sm:$0xff] }
 0x950   :  { %15708 = vst [vmem:[#allocation156_spill] sm:$0xff] %v12887_v55  ;;  %v4601_v52 = vmul.f32 %v15718_v19, %v15718_v19  ;;  %v4507_v48 = vadd.f32 %v15718_v19, %v15717_v8  ;;  %v8555_v8 = vld [vmem:[#allocation2 + $0x1d8] sm:$0xff] }
 0x951   :  { %15714 = vst [vmem:[#allocation143_spill] sm:$0xff] %v12898_v28  ;;  %v4743_v55 = vsub.f32 %v4711_v44, %v4727_v45  ;;  %v12914_v28 = vadd.f32 %v4383_v26, %v3549_v30  ;;  %v4613_v44 = vmul.f32 %v12879_v50, %v12879_v50  ;;  %v12922_v45 = vadd.f32 %v15722_v34, %v15706_v21  ;;  %v4384_v30 = vld [vmem:[#allocation2 + $0x190] sm:$0xff]  ;;  %v15724_v26 = vld [vmem:[#allocation168_spill] sm:$0xff] }
 0x952   :  { %v4071_v49 = vpop.permute.xlu2 %4070  ;;  %15720 = vst [vmem:[#allocation146_spill] sm:$0xff] %v12912_v56  ;;  %v12930_v37 = vadd.f32 %v15724_v26, %v15709_v18  ;;  %v12935_v34 = vadd.f32 1.0, %v8378_v0  ;;  %v4609_v21 = vmul.f32 %v12900_v2, %v12900_v2  ;;  %v4674_v56 = vadd.f32 %v4601_v52, %v4600_v17  ;;  %v4120_v18 = vld [vmem:[#allocation2 + $0x58] sm:$0xff]  ;;  %v3874_v52 = vld [vmem:[#allocation2 + $0x40] sm:$0xff] }
 0x953   :  { %v12904_v47 = vmul.f32 %v4071_v49, %v4008_v25  ;;  %15721 = vst [vmem:[#allocation148_spill] sm:$0xff] %v12914_v28  ;;  %v4759_v15 = vmax.f32 %v4743_v55, 0.0  ;;  %v4608_v25 = vmul.f32 %v12729_v31, %v12729_v31  ;;  %v4372_v49 = vld [vmem:[#allocation2 + $0x78] sm:$0xff]  ;;  %v4614_v0 = vmul.f32 %v12914_v28, %v12914_v28 }
 0x954   :  { %15723 = vst [vmem:[#allocation149_spill] sm:$0xff] %v12922_v45  ;;  %v12941_v45 = vadd.f32 1.0, %v8380_v36  ;;  %v4689_v19 = vadd.f32 %v4613_v44, %v4612_v59  ;;  %v4517_v36 = vadd.f32 %v12900_v2, %v12729_v31  ;;  %v4508_v59 = vadd.f32 %v4507_v48, %v12830_v35  ;;  %v15738_v35 = vld [vmem:[#allocation106_spill] sm:$0xff] }
 0x955   :  { %15716 = vst [vmem:[#allocation170_spill] sm:$0xff] %v12904_v47  ;;  %v12937_v55 = vadd.f32 1e-05, %v4759_v15  ;;  %v12954_v15 = vadd.f32 %v4372_v49, %v12783_v3  ;;  %v4684_v17 = vadd.f32 %v4609_v21, %v4608_v25  ;;  %v12966_v3 = vpop.eup %8381  ;;  %v4610_v21 = vmul.f32 %v12712_v20, %v12712_v20 }
 0x956   :  { %4104 = vst [vmem:[#allocation2 + $0x10] sm:$0xff] %v12904_v47  ;;  %v15726_v47 = vld [vmem:[#allocation155_spill] sm:$0xff]  ;;  %v4675_v25 = vadd.f32 %v4674_v56, %v4602_v41  ;;  %v4518_v2 = vadd.f32 %v4517_v36, %v12712_v20  ;;  %vm5842_vm0 = vweird.f32 %v12966_v3  ;;  %vm5871_vm12 = vweird.f32 %v12935_v34 }
 0x957   :  { %15725 = vst [vmem:[#allocation152_spill] sm:$0xff] %v12930_v37  ;;  %v12945_v26 = vadd.f32 %v15726_v47, %v15712_v1  ;;  %v12948_v37 = vadd.f32 %v4384_v30, %v12822_v14  ;;  %8385 = vrsqrt.f32 %v12937_v55  ;;  %v12959_v1 = vadd.f32 %v8555_v8, %v12799_v60  ;;  %v8556_v14 = vld [vmem:[#allocation2 + $0xd0] sm:$0xff]  ;;  %v12973_v60 = vpop.eup %8383  ;;  %vm13122_vm6 = vmor %vm5841_vm1, %vm5842_vm0 }
 0x958   :  { %15729 = vst [vmem:[#allocation154_spill] sm:$0xff] %v12954_v15  ;;  %v12962_v30 = vadd.f32 %v8556_v14, %v12804_v9  ;;  %8387 = vrcp.f32 %v12935_v34  ;;  %v15732_v9 = vld [vmem:[#allocation198_spill] sm:$0xff]  ;;  %v4690_v14 = vadd.f32 %v4689_v19, %v4614_v0  ;;  %v4685_v41 = vadd.f32 %v4684_v17, %v4610_v21 }
 0x959   :  { %15727 = vst [vmem:[#allocation183_spill] sm:$0xff] %v12945_v26  ;;  %8389 = vrcp.f32 %v12941_v45  ;;  %v3929_v8 = vpop.permute.xlu0 %3928  ;;  %v12977_v49 = vadd.f32 %v15732_v9, %v12777_v39  ;;  %v4615_v48 = vmul.f32 %v12948_v37, %v12948_v37  ;;  %v4603_v56 = vmul.f32 %v12954_v15, %v12954_v15 }
 0x95a   :  { %15728 = vst [vmem:[#allocation153_spill] sm:$0xff] %v12948_v37  ;;  %v12989_v39 = vmul.f32 %v12959_v1, %v12959_v1  ;;  %v12993_v9 = vmul.f32 %v12962_v30, %v12962_v30  ;;  %v12996_v19 = vadd.f32 %v4508_v59, %v12954_v15  ;;  %v5837_v0 = vmul.f32 %v12966_v3, %v12890_v62 }
 0x95b   :  { %v4183_v47 = vpop.permute.xlu2 %4182  ;;  %15730 = vst [vmem:[#allocation163_spill] sm:$0xff] %v12959_v1  ;;  %v4611_v17 = vmul.f32 %v12722_v38, %v12722_v38  ;;  %v5852_v21 = vmul.f32 %v12973_v60, %v12902_v42  ;;  %v13016_v20 = vadd.f32 %v4690_v14, %v4615_v48  ;;  %v4796_v26 = vsub.f32 %v15738_v35, %v12816_v23  ;;  %v3879_v14 = vld [vmem:[#allocation2 + $0x198] sm:$0xff] }
 0x95c   :  { %15731 = vst [vmem:[#allocation184_spill] sm:$0xff] %v12962_v30  ;;  %v12968_v44 = vmul.f32 %v4183_v47, %v4120_v18  ;;  %v4522_v18 = vadd.f32 %v12879_v50, %v12877_v16  ;;  %v3970_v47 = vmul.f32 %v3929_v8, %v3874_v52  ;;  %v13007_v8 = vadd.f32 %v4675_v25, %v4603_v56 }
 0x95d   :  { %15733 = vst [vmem:[#allocation165_spill] sm:$0xff] %v12977_v49  ;;  %v8386_v52 = vpop.eup %8385  ;;  %v13014_v16 = vmul.f32 %v12977_v49, %v12977_v49  ;;  %v13026_v25 = vadd.f32 %v4518_v2, %v12722_v38  ;;  %v13028_v56 = vadd.f32 %v4685_v41, %v4611_v17  ;;  %v5838_v37 = vsub.f32 1.0, %v5837_v0  ;;  %v15740_v41 = vld [vmem:[#allocation124_spill] sm:$0xff] }
 0x95e   :  { %4216 = vst [vmem:[#allocation2 + $0x58] sm:$0xff] %v12968_v44  ;;  %v13001_v36 = vadd.f32 %v3970_v47, %v12773_v57  ;;  %v13009_v50 = vpop.eup %8387  ;;  %v4919_v59 = vmul.f32 %v8386_v52, %v12937_v55  ;;  %v13019_v57 = vadd.f32 %v4522_v18, %v12914_v28  ;;  %v5847_v18 = vand.u32 2147483648, %v12890_v62  ;;  %v15739_v28 = vld [vmem:[#allocation142_spill] sm:$0xff] }
 0x95f   :  { %3986 = vst [vmem:[#allocation2 + $0x40] sm:$0xff] %v3970_v47  ;;  %v13021_v47 = vpop.eup %8389  ;;  %v5862_v2 = vand.u32 2147483648, %v12902_v42  ;;  %v4798_v17 = vsub.f32 %v15740_v41, %v12816_v23  ;;  %v5867_v35 = vmul.f32 %v13009_v50, %v12935_v34  ;;  %vm4925_vm5 = vweird.f32 %v8386_v52  ;;  %v4001_v41 = vld [vmem:[#allocation2 + $0x1d0] sm:$0xff] }
 0x960   :  { %15734 = vst [vmem:[#allocation166_spill] sm:$0xff] %v13007_v8  ;;  %v4502_v31 = vadd.f32 %v12977_v49, %v13001_v36  ;;  %v4920_v48 = vmul.f32 %v8386_v52, %v4919_v59  ;;  %v5882_v0 = vmul.f32 %v13021_v47, %v12941_v45  ;;  %v15741_v59 = vld [vmem:[#allocation125_spill] sm:$0xff]  ;;  %vm4924_vm14 = vweird.f32 %v12937_v55 }
 0x961   :  { %15735 = vst [vmem:[#allocation172_spill] sm:$0xff] %v13016_v20  ;;  %v5853_v20 = vsub.f32 1.0, %v5852_v21  ;;  %v3954_v38 = vpop.permute.xlu0 %3953  ;;  %v4799_v8 = vsub.f32 %v15741_v59, %v12816_v23  ;;  %v5860_v21 = vand.u32 2147483647, %v12902_v42  ;;  %vm4926_vm4 = vmor %vm4924_vm14, %vm4925_vm5  ;;  %vm5857_vm9 = vweird.f32 %v12973_v60 }
 0x962   :  { %15736 = vst [vmem:[#allocation185_spill] sm:$0xff] %v13019_v57  ;;  %v4797_v57 = vsub.f32 %v15739_v28, %v12816_v23  ;;  %v4503_v49 = vadd.f32 %v4502_v31, %v12785_v54  ;;  %v4921_v15 = vmul.f32 0.5, %v4920_v48  ;;  %v13046_v28 = vmul.f32 %v3954_v38, %v3879_v14  ;;  %vm13142_vm7 = vmor %vm5856_vm11, %vm5857_vm9 }
 0x963   :  { %15737 = vst [vmem:[#allocation173_spill] sm:$0xff] %v13028_v56  ;;  %v5839_v48 = vmul.f32 %v12966_v3, %v5838_v37  ;;  %v13051_v56 = vor.u32 1.1754944e-38, %v5847_v18  ;;  %v5854_v23 = vmul.f32 %v12973_v60, %v5853_v20  ;;  %v13056_v38 = vor.u32 1.1754944e-38, %v5862_v2  ;;  %v4231_v2 = vld [vmem:[#allocation2 + $0x1c0] sm:$0xff] }
 0x964   :  { %v4504_v31 = vadd.f32 %v4503_v49, %v12787_v5  ;;  %v4922_v54 = vsub.f32 1.5, %v4921_v15  ;;  %3991 = vst [vmem:[#allocation2 + $0x198] sm:$0xff] %v13046_v28  ;;  %v5868_v37 = vsub.f32 1.0, %v5867_v35  ;;  %v5883_v18 = vsub.f32 1.0, %v5882_v0 }
 0x965   :  { %v13065_v20 = vadd.f32 %v12718_v33, %v12752_v11  ;;  %v13072_v55 = vadd.f32 %v12966_v3, %v5839_v48  ;;  %v13079_v11 = vadd.f32 %v12973_v60, %v5854_v23  ;;  %vm5872_vm3 = vweird.f32 %v13009_v50 }
 0x966   :  { %4505 = vadd.xlane.f32.xlu1 %v4504_v31  ;;  %v4923_v15 = vmul.f32 %v8386_v52, %v4922_v54  ;;  %v4043_v59 = vpop.permute.xlu1 %4042  ;;  %v4596_v54 = vmul.f32 %v13001_v36, %v13001_v36  ;;  %v5884_v48 = vmul.f32 %v13021_v47, %v5883_v18  ;;  %vm5887_vm2 = vweird.f32 %v13021_v47  ;;  %vm13175_vm8 = vmor %vm5871_vm12, %vm5872_vm3  ;;  %v15761_v18 = vld [vmem:[#allocation170_spill] sm:$0xff] }
 0x967   :  { %v4081_v31 = vmul.f32 %v4043_v59, %v4001_v41  ;;  %v5869_v41 = vmul.f32 %v13009_v50, %v5868_v37  ;;  %v15742_v23 = vand.u32 2147483647, %v12890_v62  ;;  %vm13101_vm15 = vcmp.eq.f32.partialorder %v5860_v21, 8.507059e+37 }
 0x968   :  { %v4927_v14 = vsel %vm4926_vm4, %v8386_v52, %v4923_v15  ;;  %vm5886_vm13 = vweird.f32 %v12941_v45  ;;  %v13111_v49 = vadd.f32 %v12724_v58, %v12791_v10 }
 0x969   :  { %4097 = vst [vmem:[#allocation2 + $0x1d0] sm:$0xff] %v4081_v31  ;;  %v13076_v35 = vadd.f32 %v4081_v31, %v12760_v24  ;;  %v5036_v0 = vmul.f32 %v4927_v14, %v4796_v26  ;;  %v5037_v33 = vmul.f32 %v4927_v14, %v4797_v57  ;;  %v5038_v52 = vmul.f32 %v4927_v14, %v4798_v17  ;;  %v4004_v17 = vld [vmem:[#allocation2 + $0x90] sm:$0xff]  ;;  %vm13199_vm1 = vmor %vm5886_vm13, %vm5887_vm2 }
 0x96a   :  { %v5039_v15 = vmul.f32 %v4927_v14, %v4799_v8  ;;  %v4592_v24 = vmul.f32 %v13065_v20, %v13065_v20  ;;  %v4669_v8 = vadd.f32 %v13014_v16, %v4596_v54  ;;  %vm13096_vm10 = vcmp.eq.f32.partialorder %v15742_v23, 8.507059e+37  ;;  %v4291_v23 = vpop.permute.xlu0 %4290  ;;  %v15760_v14 = vld [vmem:[#allocation112_spill] sm:$0xff] }
 0x96b   :  { %v4497_v59 = vadd.f32 %v13076_v35, %v13065_v20  ;;  %v4593_v26 = vmul.f32 %v13076_v35, %v13076_v35  ;;  %v5110_v57 = vmul.f32 %v11602_v6, %v5036_v0  ;;  %v5111_v37 = vmul.f32 %v11616_v51, %v5037_v33 }
 0x96c   :  { %v5112_v31 = vmul.f32 %v11620_v27, %v5038_v52  ;;  %v5113_v0 = vmul.f32 %v15658_v63, %v5039_v15  ;;  %v13116_v51 = vmul.f32 %v4291_v23, %v4231_v2  ;;  %v5892_v23 = vand.u32 2147483648, %v12941_v45 }
 0x96d   :  { %v4498_v16 = vadd.f32 %v4497_v59, %v12828_v46  ;;  %v4664_v54 = vadd.f32 %v4593_v26, %v4592_v24  ;;  %v13114_v21 = vadd.f32 %v11611_v40, %v5110_v57  ;;  %v13127_v15 = vadd.f32 %v11618_v12, %v5111_v37  ;;  %v15788_v40 = vld [vmem:[#allocation172_spill] sm:$0xff] }
 0x96e   :  { %v4055_v33 = vpop.permute.xlu1 %4054  ;;  %v13130_v58 = vadd.f32 %v15662_v61, %v5112_v31  ;;  %v13133_v10 = vadd.f32 %v15668_v22, %v5113_v0  ;;  %4327 = vst [vmem:[#allocation2 + $0x1c0] sm:$0xff] %v13116_v51  ;;  %v5844_v57 = vsel %vm13122_vm6, %v12966_v3, %v13072_v55  ;;  %v4670_v3 = vadd.f32 %v4669_v8, %v12865_v13 }
 0x96f   :  { %v4084_v59 = vmul.f32 %v4055_v33, %v4004_v17  ;;  %v4499_v2 = vadd.f32 %v4498_v16, %v15667_v43  ;;  %v4665_v24 = vadd.f32 %v4664_v54, %v12873_v53  ;;  %v7578_v62 = vmul.f32 -1.442695, %v13114_v21 }
 0x970   :  { %v7579_v17 = vmul.f32 -1.442695, %v13127_v15  ;;  %v5859_v53 = vsel %vm13142_vm7, %v12973_v60, %v13079_v11  ;;  %v7580_v42 = vmul.f32 -1.442695, %v13130_v58  ;;  %v7581_v0 = vmul.f32 -1.442695, %v13133_v10 }
 0x971   :  { %4100 = vst [vmem:[#allocation2 + $0x90] sm:$0xff] %v4084_v59  ;;  %4500 = vadd.xlane.f32.xlu2 %v4499_v2  ;;  %v4666_v37 = vadd.f32 %v4665_v24, %v12766_v29  ;;  %v13159_v31 = vadd.f32 %v4084_v59, %v12795_v32  ;;  %8391 = vpow2.f32 %v7578_v62  ;;  %v5870_v55 = vadd.f32 %v13009_v50, %v5869_v41  ;;  %v4007_v11 = vld [vmem:[#allocation2 + $0x38] sm:$0xff] }
 0x972   :  { %8393 = vpow2.f32 %v7579_v17  ;;  %v5885_v16 = vadd.f32 %v13021_v47, %v5884_v48  ;;  %v4604_v29 = vmul.f32 %v13111_v49, %v13111_v49  ;;  %v15753_v41 = vand.u32 2147483647, %v12935_v34 }
 0x973   :  { %4667 = vadd.xlane.f32.xlu0 %v4666_v37  ;;  %v4512_v60 = vadd.f32 %v13159_v31, %v13111_v49  ;;  %v4605_v32 = vmul.f32 %v13159_v31, %v13159_v31  ;;  %8395 = vpow2.f32 %v7580_v42  ;;  %v15756_v8 = vand.u32 2147483648, %v12935_v34  ;;  %v15763_v42 = vld [vmem:[#allocation119_spill] sm:$0xff] }
 0x974   :  { %vm13181_vm5 = vcmp.eq.f32.partialorder %v15753_v41, 8.507059e+37  ;;  %8397 = vpow2.f32 %v7581_v0  ;;  %v5849_v59 = vsel %vm13096_vm10, %v13051_v56, %v5844_v57  ;;  %v5864_v2 = vsel %vm13101_vm15, %v13056_v38, %v5859_v53  ;;  %v15774_v34 = vld [vmem:[#allocation139_spill] sm:$0xff] }
 0x975   :  { %v5878_v54 = vor.u32 1.1754944e-38, %v15756_v8  ;;  %v4513_v33 = vadd.f32 %v4512_v60, %v12959_v1  ;;  %v4679_v52 = vadd.f32 %v4605_v32, %v4604_v29  ;;  %v5874_v26 = vsel %vm13175_vm8, %v13009_v50, %v5870_v55 }
 0x976   :  { %v4067_v62 = vpop.permute.xlu1 %4066  ;;  %v5889_v56 = vsel %vm13199_vm1, %v13021_v47, %v5885_v16  ;;  %v13211_v38 = vadd.f32 %v12818_v4, %v12847_v7  ;;  %v13215_v57 = vadd.f32 %v15761_v18, %v15760_v14  ;;  %v4671_v37 = vadd.f32 %v4670_v3, %v15763_v42  ;;  %v15764_v47 = vld [vmem:[#allocation167_spill] sm:$0xff]  ;;  %v15765_v4 = vld [vmem:[#allocation137_spill] sm:$0xff]  ;;  %v15776_v42 = vld [vmem:[#allocation138_spill] sm:$0xff] }
 0x977   :  { %v8392_v17 = vpop.eup %8391  ;;  %v13217_v53 = vmul.f32 %v4067_v62, %v4007_v11  ;;  %v4514_v0 = vadd.f32 %v4513_v33, %v12962_v30  ;;  %v4680_v50 = vadd.f32 %v4679_v52, %v12989_v39  ;;  %v6460_v16 = vmul.f32 %v5849_v59, %v15764_v47  ;;  %v15772_v59 = vld [vmem:[#allocation127_spill] sm:$0xff]  ;;  %v4119_v18 = vld [vmem:[#allocation2 + $0xc0] sm:$0xff] }
 0x978   :  { %v6875_v24 = vpop.f32.mrf.mxu0  ;;  %15759 = vst [vmem:[#allocation174_spill] sm:$0xff] %v13211_v38  ;;  %v8394_v55 = vpop.eup %8393  ;;  %v13222_v60 = vadd.f32 1.0, %v8392_v17  ;;  %v6461_v7 = vmul.f32 %v5864_v2, %v15765_v4  ;;  %v5893_v29 = vor.u32 1.1754944e-38, %v5892_v23  ;;  %v5879_v39 = vsel %vm13181_vm5, %v5878_v54, %v5874_v26  ;;  %v15767_v23 = vld [vmem:[#allocation128_spill] sm:$0xff] }
 0x979   :  { %15762 = vst [vmem:[#allocation179_spill] sm:$0xff] %v13215_v57  ;;  %v8396_v32 = vpop.eup %8395  ;;  %4672 = vadd.xlane.f32.xlu2 %v4671_v37  ;;  %4515 = vadd.xlane.f32.xlu1 %v4514_v0  ;;  %v4681_v11 = vadd.f32 %v4680_v50, %v12993_v9  ;;  %v13228_v3 = vadd.f32 1.0, %v8394_v55  ;;  %v15766_v13 = vand.u32 2147483647, %v12941_v45  ;;  %v13237_v33 = vadd.f32 %v12968_v44, %v15767_v23  ;;  %v13244_v9 = vld [vmem:[%s14541_s11] ss:$0 sm:$0xff] }
 0x97a   :  { %4103 = vst [vmem:[#allocation2 + $0x38] sm:$0xff] %v13217_v53  ;;  %v8398_v41 = vpop.eup %8397  ;;  %8399 = vrcp.f32 %v13222_v60  ;;  %v4532_v52 = vadd.f32 %v13215_v57, %v13211_v38  ;;  %v6876_v48 = vadd.f32 %v13244_v9, %v6875_v24  ;;  %v15770_v45 = vld [vmem:[#allocation175_spill] sm:$0xff]  ;;  %v13254_v44 = vadd.f32 %v13116_v51, %v15772_v59  ;;  %v6924_v2 = vpop.f32.mrf.mxu1  ;;  %v15775_v26 = vld [vmem:[#allocation156_spill] sm:$0xff] }
 0x97b   :  { %vm5891_vm14 = vcmp.eq.f32.partialorder %v15766_v13, 8.507059e+37  ;;  %15768 = vst [vmem:[#allocation180_spill] sm:$0xff] %v13237_v33  ;;  %4682 = vadd.xlane.f32.xlu0 %v4681_v11  ;;  %8401 = vrcp.f32 %v13228_v3  ;;  %v13250_v54 = vadd.f32 %v13046_v28, %v15770_v45  ;;  %v13257_v62 = vadd.f32 %v6460_v16, %v15774_v34  ;;  %v15777_v51 = vld [vmem:[#allocation108_spill] sm:$0xff] }
 0x97c   :  { %v5894_v8 = vsel %vm5891_vm14, %v5893_v29, %v5889_v56  ;;  %15769 = vst [vmem:[#allocation182_spill] sm:$0xff] %v13244_v9  ;;  %v13260_v56 = vadd.f32 %v6461_v7, %v15775_v26  ;;  %v13262_v14 = vadd.f32 1.0, %v8396_v32  ;;  %v13264_v24 = vadd.f32 1.0, %v8398_v41 }
 0x97d   :  { %15771 = vst [vmem:[#allocation169_spill] sm:$0xff] %v13250_v54  ;;  %v5905_v17 = vand.u32 2147483647, %v13222_v60  ;;  %v5907_v28 = vand.u32 2147483648, %v13222_v60  ;;  %v13269_v37 = vmul.f32 %v5879_v39, %v15776_v42  ;;  %v13272_v0 = vmul.f32 %v5894_v8, %v15777_v51  ;;  %v15783_v51 = vld [vmem:[#allocation173_spill] sm:$0xff] }
 0x97e   :  { %15773 = vst [vmem:[#allocation168_spill] sm:$0xff] %v13254_v44  ;;  %v5920_v50 = vand.u32 2147483647, %v13228_v3  ;;  %v5922_v55 = vand.u32 2147483648, %v13228_v3  ;;  %8403 = vrcp.f32 %v13262_v14  ;;  %v13278_v47 = vadd.f32 %v4532_v52, %v13237_v33 }
 0x97f   :  { %v6925_v16 = vadd.f32 %v6924_v2, %v6876_v48  ;;  %v4179_v4 = vpop.permute.xlu1 %4178  ;;  %8405 = vrcp.f32 %v13264_v24  ;;  %v13283_v7 = vmul.f32 %v13250_v54, %v13250_v54  ;;  %v13287_v29 = vmul.f32 %v13254_v44, %v13254_v44 }
 0x980   :  { %v13289_v32 = vpop.eup %8399  ;;  %v6877_v39 = vpop.f32.mrf.mxu0  ;;  %v4199_v13 = vmul.f32 %v4179_v4, %v4119_v18  ;;  %vm5901_vm11 = vweird.f32 %v13222_v60  ;;  %vm5916_vm4 = vweird.f32 %v13228_v3  ;;  %v5937_v41 = vand.u32 2147483648, %v13262_v14 }
 0x981   :  { %v13294_v8 = vpop.eup %8401  ;;  %4510 = vadd.xlane.f32.xlu2 %v12996_v19  ;;  %4520 = vadd.xlane.f32.xlu1 %v13026_v25  ;;  %v5897_v48 = vmul.f32 %v13289_v32, %v13222_v60  ;;  %vm13300_vm0 = vcmp.eq.f32.partialorder %v5905_v17, 8.507059e+37  ;;  %v5908_v59 = vor.u32 1.1754944e-38, %v5907_v28  ;;  %v5935_v2 = vand.u32 2147483647, %v13262_v14  ;;  %v15782_v25 = vld [vmem:[#allocation136_spill] sm:$0xff] }
 0x982   :  { %4215 = vst [vmem:[#allocation2 + $0xc0] sm:$0xff] %v4199_v13  ;;  %v5912_v34 = vmul.f32 %v13294_v8, %v13228_v3  ;;  %vm13307_vm9 = vcmp.eq.f32.partialorder %v5920_v50, 8.507059e+37  ;;  %v5923_v19 = vor.u32 1.1754944e-38, %v5922_v55  ;;  %v13313_v18 = vadd.f32 %v13217_v53, %v15782_v25  ;;  %v15784_v55 = vld [vmem:[#allocation151_spill] sm:$0xff] }
 0x983   :  { %v6973_v11 = vpop.f32.mrf.mxu2  ;;  %v6878_v42 = vadd.f32 %v13244_v9, %v6877_v39  ;;  %4687 = vadd.xlane.f32.xlu0 %v15783_v51  ;;  %v5898_v28 = vsub.f32 1.0, %v5897_v48  ;;  %vm5931_vm3 = vweird.f32 %v13262_v14  ;;  %vm5946_vm2 = vweird.f32 %v13264_v24  ;;  %v6926_v48 = vpop.f32.mrf.mxu1 }
 0x984   :  { %v6974_v23 = vadd.f32 %v6973_v11, %v6925_v16  ;;  %v8404_v16 = vpop.eup %8403  ;;  %v5913_v4 = vsub.f32 1.0, %v5912_v34  ;;  %v5938_v11 = vor.u32 1.1754944e-38, %v5937_v41  ;;  %v5950_v50 = vand.u32 2147483647, %v13264_v24  ;;  %v4232_v34 = vld [vmem:[#allocation2 + $0xa0] sm:$0xff] }
 0x985   :  { %v7022_v52 = vpop.f32.mrf.mxu3  ;;  %v13321_v22 = vadd.f32 %v4199_v13, %v15784_v55  ;;  %v8406_v53 = vpop.eup %8405  ;;  %vm5902_vm12 = vweird.f32 %v13289_v32  ;;  %v5927_v39 = vmul.f32 %v8404_v16, %v13262_v14  ;;  %vm13326_vm10 = vcmp.eq.f32.partialorder %v5935_v2, 8.507059e+37 }
 0x986   :  { %v7023_v17 = vadd.f32 %v7022_v52, %v6974_v23  ;;  %v5899_v23 = vmul.f32 %v13289_v32, %v5898_v28  ;;  %v5952_v41 = vand.u32 2147483648, %v13264_v24  ;;  %v5914_v25 = vmul.f32 %v13294_v8, %v5913_v4  ;;  %vm5903_vm6 = vmor %vm5901_vm11, %vm5902_vm12 }
 0x987   :  { %vm5917_vm15 = vweird.f32 %v13294_v8  ;;  %v5942_v13 = vmul.f32 %v8406_v53, %v13264_v24  ;;  %v6927_v51 = vadd.f32 %v6926_v48, %v6878_v42  ;;  %v5928_v2 = vsub.f32 1.0, %v5927_v39  ;;  %v15787_v48 = vld [vmem:[#allocation166_spill] sm:$0xff] }
 0x988   :  { %7056 = vst [vmem:[#allocation16 + $0x20] sm:$0xff] %v7023_v17  ;;  %v4617_v17 = vmul.f32 %v13313_v18, %v13313_v18  ;;  %v5900_v28 = vadd.f32 %v13289_v32, %v5899_v23  ;;  %vm5932_vm13 = vweird.f32 %v8404_v16  ;;  %v4295_v63 = vpop.permute.xlu1 %4294  ;;  %v5915_v4 = vadd.f32 %v13294_v8, %v5914_v25  ;;  %vm5918_vm8 = vmor %vm5916_vm4, %vm5917_vm15 }
 0x989   :  { %v5943_v61 = vsub.f32 1.0, %v5942_v13  ;;  %vm5947_vm7 = vweird.f32 %v8406_v53  ;;  %v4618_v27 = vmul.f32 %v13321_v22, %v13321_v22  ;;  %v4312_v42 = vmul.f32 %v4295_v63, %v4232_v34  ;;  %4677 = vadd.xlane.f32.xlu2 %v15787_v48  ;;  %4692 = vadd.xlane.f32.xlu1 %v15788_v40  ;;  %vm5933_vm5 = vmor %vm5931_vm3, %vm5932_vm13 }
 0x98a   :  { %v5904_v23 = vsel %vm5903_vm6, %v13289_v32, %v5900_v28  ;;  %v5929_v39 = vmul.f32 %v8404_v16, %v5928_v2  ;;  %v5919_v13 = vsel %vm5918_vm8, %v13294_v8, %v5915_v4  ;;  %v4694_v63 = vadd.f32 %v4617_v17, %v13283_v7  ;;  %vm5948_vm1 = vmor %vm5946_vm2, %vm5947_vm7  ;;  %v15793_v2 = vld [vmem:[#allocation153_spill] sm:$0xff] }
 0x98b   :  { %v6975_v55 = vpop.f32.mrf.mxu2  ;;  %v5909_v25 = vsel %vm13300_vm0, %v5908_v59, %v5904_v23  ;;  %v5944_v12 = vmul.f32 %v8406_v53, %v5943_v61  ;;  %4328 = vst [vmem:[#allocation2 + $0xa0] sm:$0xff] %v4312_v42  ;;  %v5924_v3 = vsel %vm13307_vm9, %v5923_v19, %v5919_v13  ;;  %v15789_v61 = vld [vmem:[#allocation129_spill] sm:$0xff]  ;;  %vm5951_vm14 = vcmp.eq.f32.partialorder %v5950_v50, 8.507059e+37 }
 0x98c   :  { %v6976_v9 = vadd.f32 %v6975_v55, %v6927_v51  ;;  %v6464_v34 = vmul.f32 %v5909_v25, %v13114_v21  ;;  %v5930_v51 = vadd.f32 %v8404_v16, %v5929_v39  ;;  %v6465_v28 = vmul.f32 %v5924_v3, %v13127_v15  ;;  %v15792_v15 = vld [vmem:[#allocation149_spill] sm:$0xff] }
 0x98d   :  { %v7024_v60 = vpop.f32.mrf.mxu3  ;;  %v5945_v8 = vadd.f32 %v8406_v53, %v5944_v12  ;;  %v13363_v45 = vadd.f32 %v4312_v42, %v15789_v61  ;;  %v4695_v40 = vadd.f32 %v4694_v63, %v4618_v27  ;;  %v5953_v21 = vor.u32 1.1754944e-38, %v5952_v41  ;;  %v15794_v55 = vld [vmem:[#allocation185_spill] sm:$0xff] }
 0x98e   :  { %v7025_v32 = vadd.f32 %v7024_v60, %v6976_v9  ;;  %v15791_v9 = vld [vmem:[#allocation146_spill] sm:$0xff]  ;;  %v5934_v59 = vsel %vm5933_vm5, %v8404_v16, %v5930_v51  ;;  %v6529_v26 = vadd.f32 %v6465_v28, %v15792_v15  ;;  %v4524_v24 = vadd.f32 %v15794_v55, %v15793_v2  ;;  %v15799_v51 = vld [vmem:[#allocation140_spill] sm:$0xff] }
 0x98f   :  { %15790 = vst [vmem:[#allocation155_spill] sm:$0xff] %v13363_v45  ;;  %v6528_v7 = vadd.f32 %v6464_v34, %v15791_v9  ;;  %v5939_v14 = vsel %vm13326_vm10, %v5938_v11, %v5934_v59  ;;  %v5949_v12 = vsel %vm5948_vm1, %v8406_v53, %v5945_v8  ;;  %v4534_v19 = vadd.f32 %v13278_v47, %v13363_v45  ;;  %v15795_v11 = vld [vmem:[#allocation141_spill] sm:$0xff]  ;;  %v15796_v47 = vld [vmem:[#allocation152_spill] sm:$0xff] }
 0x990   :  { %7057 = vst [vmem:[#allocation16 + $0x28] sm:$0xff] %v7025_v32  ;;  %v6466_v17 = vmul.f32 %v5939_v14, %v13130_v58  ;;  %v5954_v16 = vsel %vm5951_vm14, %v5953_v21, %v5949_v12  ;;  %v6577_v50 = vpack.c.bf16 %v6529_v26, %v13260_v56  ;;  %v4696_v52 = vadd.f32 %v4695_v40, %v13287_v29  ;;  %v15798_v56 = vld [vmem:[#allocation183_spill] sm:$0xff] }
 0x991   :  { %v6576_v27 = vpack.c.bf16 %v6528_v7, %v13257_v62  ;;  %v6467_v41 = vmul.f32 %v5954_v16, %v13133_v10  ;;  %4535 = vadd.xlane.f32.xlu0 %v4534_v19  ;;  %v6526_v53 = vadd.f32 %v13269_v37, %v15795_v11  ;;  %4525 = vadd.xlane.f32.xlu2 %v4524_v24  ;;  %v15797_v62 = vld [vmem:[#allocation143_spill] sm:$0xff] }
 0x992   :  { %v6530_v4 = vadd.f32 %v6466_v17, %v15796_v47  ;;  %v4527_v58 = vadd.f32 %v13313_v18, %v13250_v54  ;;  %6928 = vmatmul.bf16.gmra.mxu1 %v6577_v50  ;;  %v6527_v42 = vadd.f32 %v13272_v0, %v15797_v62  ;;  %4697 = vadd.xlane.f32.xlu1 %v4696_v52 }
 0x993   :  { %6879 = vmatmul.bf16.gmra.mxu0 %v6576_v27  ;;  %v6531_v23 = vadd.f32 %v6467_v41, %v15798_v56  ;;  %v4620_v37 = vmul.f32 %v13211_v38, %v13211_v38  ;;  %v4621_v48 = vmul.f32 %v13215_v57, %v13215_v57  ;;  %v4622_v0 = vmul.f32 %v13237_v33, %v13237_v33  ;;  %v15803_v56 = vld [vmem:[#allocation114_spill] sm:$0xff] }
 0x994   :  { %v6578_v10 = vpack.c.bf16 %v6530_v4, %v6526_v53  ;;  %v4528_v29 = vadd.f32 %v4527_v58, %v13321_v22  ;;  %v4623_v13 = vmul.f32 %v13363_v45, %v13363_v45  ;;  %v15800_v4 = vld [vmem:[#allocation176_spill] sm:$0xff]  ;;  %v15801_v58 = vld [vmem:[#allocation113_spill] sm:$0xff] }
 0x995   :  { %v6579_v39 = vpack.c.bf16 %v6531_v23, %v6527_v42  ;;  %v4699_v25 = vadd.f32 %v4621_v48, %v4620_v37  ;;  %v13422_v62 = vadd.f32 %v15801_v58, %v15800_v4  ;;  %v15802_v42 = vld [vmem:[#allocation177_spill] sm:$0xff] }
 0x996   :  { %6977 = vmatmul.bf16.gmra.mxu2 %v6578_v10  ;;  %v4529_v60 = vadd.f32 %v4528_v29, %v13254_v44  ;;  %v13426_v23 = vadd.f32 %v15803_v56, %v15802_v42  ;;  %v15804_v10 = vld [vmem:[#allocation178_spill] sm:$0xff]  ;;  %v15805_v29 = vld [vmem:[#allocation115_spill] sm:$0xff]  ;;  %v15808_v48 = vld [vmem:[#allocation181_spill] sm:$0xff] }
 0x997   :  { %7026 = vmatmul.bf16.gmra.mxu3 %v6579_v39  ;;  %v4700_v63 = vadd.f32 %v4699_v25, %v4622_v0  ;;  %v13430_v39 = vadd.f32 %v15805_v29, %v15804_v10  ;;  %v15811_v25 = vld [vmem:[#allocation107_spill] sm:$0xff] }
 0x999   :  { %4530 = vadd.xlane.f32.xlu2 %v4529_v60  ;;  %v4701_v32 = vadd.f32 %v4700_v63, %v4623_v13  ;;  %15806 = vst [vmem:[#allocation198_spill] sm:$0xff] %v13430_v39  ;;  %v15809_v60 = vld [vmem:[#allocation116_spill] sm:$0xff]  ;;  %v13441_v13 = vadd.f32 %v15811_v25, %v15800_v4 }
 0x99a   :  { %v13437_v0 = vadd.f32 %v15809_v60, %v15808_v48  ;;  %v15812_v63 = vld [vmem:[#allocation120_spill] sm:$0xff]  ;;  %v15827_v60 = vld [vmem:[#allocation121_spill] sm:$0xff] }
 0x99b   :  { %v13485_v25 = vadd.f32 %v15827_v60, %v15802_v42 }
 0x99c   :  { %15810 = vst [vmem:[#allocation142_spill] sm:$0xff] %v13437_v0  ;;  %v15864_v0 = vld [vmem:[#allocation159_spill] sm:$0xff] }
 0x99d   :  { %15828 = vst [vmem:[#allocation128_spill] sm:$0xff] %v13485_v25 }
 0x9a1   :  { %4702 = vadd.xlane.f32.xlu2 %v4701_v32  ;;  %v13445_v32 = vadd.f32 %v15812_v63, %v15802_v42 }
 0x9d9   :  { %v4506_v34 = vpop.xlane.xlu1 %4505 }
 0x9da   :  { %v13406_v9 = vmul.f32 %v15799_v51, %v4506_v34 }
 0x9dc   :  { %v4729_v14 = vmul.f32 %v13406_v9, %v13406_v9 }
 0x9e4   :  { %v4501_v3 = vpop.xlane.xlu2 %4500 }
 0x9e5   :  { %v13400_v28 = vmul.f32 %v15799_v51, %v4501_v3 }
 0x9e6   :  { %v4668_v8 = vpop.xlane.xlu0 %4667 }
 0x9e7   :  { %v4712_v61 = vmul.f32 %v4668_v8, %v15799_v51  ;;  %v4728_v40 = vmul.f32 %v13400_v28, %v13400_v28  ;;  %v15813_v8 = vld [vmem:[#allocation150_spill] sm:$0xff] }
 0x9e9   :  { %v4744_v7 = vsub.f32 %v4712_v61, %v4728_v40  ;;  %v13449_v61 = vadd.f32 %v15813_v8, %v15804_v10  ;;  %v15815_v40 = vld [vmem:[#allocation134_spill] sm:$0xff] }
 0x9eb   :  { %v4760_v59 = vmax.f32 %v4744_v7, 0.0  ;;  %15814 = vst [vmem:[#allocation124_spill] sm:$0xff] %v13449_v61  ;;  %v13453_v7 = vadd.f32 %v15815_v40, %v15808_v48 }
 0x9ec   :  { %v4673_v21 = vpop.xlane.xlu2 %4672  ;;  %v4516_v15 = vpop.xlane.xlu1 %4515 }
 0x9ed   :  { %v4713_v26 = vmul.f32 %v4673_v21, %v15799_v51  ;;  %v13412_v12 = vmul.f32 %v15799_v51, %v4516_v15  ;;  %v4840_v19 = vadd.f32 1e-05, %v4760_v59  ;;  %15816 = vst [vmem:[#allocation125_spill] sm:$0xff] %v13453_v7  ;;  %v15817_v59 = vld [vmem:[#allocation135_spill] sm:$0xff] }
 0x9ee   :  { %v4683_v27 = vpop.xlane.xlu0 %4682  ;;  %v13457_v21 = vadd.f32 %v15817_v59, %v15800_v4  ;;  %v15833_v59 = vld [vmem:[#allocation110_spill] sm:$0xff] }
 0x9ef   :  { %v4745_v17 = vsub.f32 %v4713_v26, %v4729_v14  ;;  %8407 = vrsqrt.f32 %v4840_v19  ;;  %v4715_v16 = vmul.f32 %v4683_v27, %v15799_v51  ;;  %v4731_v24 = vmul.f32 %v13412_v12, %v13412_v12  ;;  %v15819_v26 = vld [vmem:[#allocation132_spill] sm:$0xff]  ;;  %v15821_v27 = vld [vmem:[#allocation133_spill] sm:$0xff] }
 0x9f0   :  { %15818 = vst [vmem:[#allocation112_spill] sm:$0xff] %v13457_v21  ;;  %v13463_v14 = vadd.f32 %v15819_v26, %v15802_v42  ;;  %vm4934_vm4 = vweird.f32 %v4840_v19 }
 0x9f1   :  { %v4761_v55 = vmax.f32 %v4745_v17, 0.0  ;;  %v4747_v41 = vsub.f32 %v4715_v16, %v4731_v24  ;;  %v13467_v17 = vadd.f32 %v15821_v27, %v15804_v10  ;;  %v15823_v24 = vld [vmem:[#allocation122_spill] sm:$0xff] }
 0x9f2   :  { %15820 = vst [vmem:[#allocation170_spill] sm:$0xff] %v13463_v14 }
 0x9f3   :  { %v13417_v50 = vadd.f32 1e-05, %v4761_v55  ;;  %v4763_v53 = vmax.f32 %v4747_v41, 0.0  ;;  %15822 = vst [vmem:[#allocation119_spill] sm:$0xff] %v13467_v17  ;;  %v13474_v41 = vadd.f32 %v15823_v24, %v15808_v48 }
 0x9f4   :  { %v4511_v52 = vpop.xlane.xlu2 %4510  ;;  %v4521_v11 = vpop.xlane.xlu1 %4520 }
 0x9f5   :  { %8409 = vrsqrt.f32 %v13417_v50  ;;  %v8408_v47 = vpop.eup %8407  ;;  %v13433_v37 = vmul.f32 %v15799_v51, %v4521_v11  ;;  %v13459_v15 = vadd.f32 1e-05, %v4763_v53  ;;  %v13470_v55 = vmul.f32 %v15799_v51, %v4511_v52  ;;  %15824 = vst [vmem:[#allocation167_spill] sm:$0xff] %v13474_v41  ;;  %v15825_v11 = vld [vmem:[#allocation109_spill] sm:$0xff]  ;;  %v15829_v52 = vld [vmem:[#allocation111_spill] sm:$0xff]  ;;  %v15841_v41 = vld [vmem:[#allocation190_spill] sm:$0xff] }
 0x9f6   :  { %v4929_v34 = vmul.f32 %v8408_v47, %v4840_v19  ;;  %v4688_v3 = vpop.xlane.xlu0 %4687  ;;  %v13478_v53 = vadd.f32 %v15825_v11, %v15800_v4  ;;  %v13489_v63 = vadd.f32 %v15829_v52, %v15804_v10  ;;  %vm4935_vm11 = vweird.f32 %v8408_v47 }
 0x9f7   :  { %15807 = vst [vmem:[#allocation106_spill] sm:$0xff] %v13433_v37  ;;  %v4716_v58 = vmul.f32 %v4688_v3, %v15799_v51  ;;  %v4732_v56 = vmul.f32 %v13433_v37, %v13433_v37  ;;  %v13497_v3 = vadd.f32 %v15833_v59, %v15800_v4  ;;  %8411 = vrsqrt.f32 %v13459_v15  ;;  %v15837_v59 = vld [vmem:[#allocation188_spill] sm:$0xff]  ;;  %vm4936_vm0 = vmor %vm4934_vm4, %vm4935_vm11 }
 0x9f8   :  { %v4930_v16 = vmul.f32 %v8408_v47, %v4929_v34  ;;  %15826 = vst [vmem:[#allocation137_spill] sm:$0xff] %v13478_v53  ;;  %v15831_v34 = vld [vmem:[#allocation117_spill] sm:$0xff]  ;;  %v4730_v60 = vmul.f32 %v13470_v55, %v13470_v55  ;;  %v13510_v45 = vadd.f32 %v15837_v59, %v15804_v10  ;;  %v4800_v19 = vsub.f32 %v13065_v20, %v13400_v28 }
 0x9f9   :  { %15830 = vst [vmem:[#allocation175_spill] sm:$0xff] %v13489_v63  ;;  %v13493_v8 = vadd.f32 %v15831_v34, %v15808_v48  ;;  %v4748_v27 = vsub.f32 %v4716_v58, %v4732_v56  ;;  %v15835_v34 = vld [vmem:[#allocation123_spill] sm:$0xff]  ;;  %v15839_v58 = vld [vmem:[#allocation189_spill] sm:$0xff]  ;;  %vm4944_vm3 = vweird.f32 %v13417_v50  ;;  %vm4964_vm10 = vweird.f32 %v13459_v15 }
 0x9fa   :  { %v4931_v40 = vmul.f32 0.5, %v4930_v16  ;;  %15834 = vst [vmem:[#allocation139_spill] sm:$0xff] %v13497_v3  ;;  %v13506_v16 = vadd.f32 %v15835_v34, %v15802_v42  ;;  %v13514_v56 = vadd.f32 %v15839_v58, %v15808_v48  ;;  %v15843_v34 = vld [vmem:[#allocation191_spill] sm:$0xff] }
 0x9fb   :  { %v8410_v29 = vpop.eup %8409  ;;  %15832 = vst [vmem:[#allocation127_spill] sm:$0xff] %v13493_v8  ;;  %v4764_v3 = vmax.f32 %v4748_v27, 0.0 }
 0x9fc   :  { %v4939_v26 = vmul.f32 %v8410_v29, %v13417_v50  ;;  %v4678_v24 = vpop.xlane.xlu2 %4677  ;;  %v4932_v11 = vsub.f32 1.5, %v4931_v40  ;;  %15836 = vst [vmem:[#allocation156_spill] sm:$0xff] %v13506_v16  ;;  %v13522_v16 = vadd.f32 %v15843_v34, %v15802_v42  ;;  %vm4945_vm9 = vweird.f32 %v8410_v29 }
 0x9fd   :  { %v4714_v52 = vmul.f32 %v4678_v24, %v15799_v51  ;;  %15838 = vst [vmem:[#allocation138_spill] sm:$0xff] %v13510_v45  ;;  %v13518_v24 = vadd.f32 %v15841_v41, %v15800_v4  ;;  %v13524_v45 = vadd.f32 1e-05, %v4764_v3  ;;  %v13534_v41 = vpop.eup %8411  ;;  %v15849_v3 = vld [vmem:[#allocation165_spill] sm:$0xff]  ;;  %vm4946_vm2 = vmor %vm4944_vm3, %vm4945_vm9 }
 0x9fe   :  { %v4940_v44 = vmul.f32 %v8410_v29, %v4939_v26  ;;  %15840 = vst [vmem:[#allocation108_spill] sm:$0xff] %v13514_v56  ;;  %v4933_v40 = vmul.f32 %v8408_v47, %v4932_v11  ;;  %v15845_v26 = vld [vmem:[#allocation192_spill] sm:$0xff]  ;;  %v4805_v34 = vsub.f32 %v15849_v3, %v13406_v9  ;;  %vm4965_vm12 = vweird.f32 %v13534_v41 }
 0x9ff   :  { %v4746_v8 = vsub.f32 %v4714_v52, %v4730_v60  ;;  %15842 = vst [vmem:[#allocation136_spill] sm:$0xff] %v13518_v24  ;;  %v13528_v27 = vadd.f32 %v15845_v26, %v15804_v10  ;;  %v15847_v52 = vld [vmem:[#allocation193_spill] sm:$0xff]  ;;  %8413 = vrsqrt.f32 %v13524_v45  ;;  %vm4966_vm6 = vmor %vm4964_vm10, %vm4965_vm12  ;;  %vm4974_vm10 = vweird.f32 %v13524_v45 }
 0xa00   :  { %15844 = vst [vmem:[#allocation173_spill] sm:$0xff] %v13522_v16  ;;  %v4941_v59 = vmul.f32 0.5, %v4940_v44  ;;  %v13532_v11 = vsel %vm4936_vm0, %v8408_v47, %v4933_v40  ;;  %v13538_v58 = vadd.f32 %v15847_v52, %v15808_v48  ;;  %v4804_v44 = vsub.f32 %v13001_v36, %v13406_v9  ;;  %v4693_v47 = vpop.xlane.xlu1 %4692  ;;  %v15850_v40 = vld [vmem:[#allocation147_spill] sm:$0xff]  ;;  %v15857_v24 = vld [vmem:[#allocation157_spill] sm:$0xff] }
 0xa01   :  { %15846 = vst [vmem:[#allocation151_spill] sm:$0xff] %v13528_v27  ;;  %v4762_v60 = vmax.f32 %v4746_v8, 0.0  ;;  %v5040_v8 = vmul.f32 %v13532_v11, %v4800_v19  ;;  %v4801_v36 = vsub.f32 %v13076_v35, %v13400_v28  ;;  %v4803_v52 = vsub.f32 %v15667_v43, %v13400_v28  ;;  %v15853_v35 = vld [vmem:[#allocation118_spill] sm:$0xff] }
 0xa02   :  { %15848 = vst [vmem:[#allocation166_spill] sm:$0xff] %v13538_v58  ;;  %v4942_v26 = vsub.f32 1.5, %v4941_v59  ;;  %v4959_v59 = vmul.f32 %v13534_v41, %v13459_v15  ;;  %v4717_v10 = vmul.f32 %v4693_v47, %v15799_v51 }
 0xa03   :  { %v13545_v20 = vadd.f32 1e-05, %v4762_v60  ;;  %v4802_v60 = vsub.f32 %v12828_v46, %v13400_v28  ;;  %v5114_v50 = vmul.f32 %v11602_v6, %v5040_v8  ;;  %v5041_v58 = vmul.f32 %v13532_v11, %v4801_v36  ;;  %v15852_v8 = vld [vmem:[#allocation126_spill] sm:$0xff]  ;;  %v15854_v36 = vld [vmem:[#allocation145_spill] sm:$0xff] }
 0xa04   :  { %v4943_v48 = vmul.f32 %v8410_v29, %v4942_v26  ;;  %v4526_v3 = vpop.xlane.xlu2 %4525  ;;  %v4960_v47 = vmul.f32 %v13534_v41, %v4959_v59  ;;  %v4536_v16 = vpop.xlane.xlu0 %4535 }
 0xa05   :  { %8415 = vrsqrt.f32 %v13545_v20  ;;  %v13559_v19 = vmul.f32 %v15799_v51, %v4526_v3  ;;  %v13596_v63 = vadd.f32 %v15857_v24, %v5114_v50  ;;  %v13611_v53 = vmul.f32 %v15799_v51, %v4536_v16 }
 0xa06   :  { %v13569_v26 = vsel %vm4946_vm2, %v8410_v29, %v4943_v48  ;;  %v13583_v29 = vpop.eup %8413  ;;  %v4961_v27 = vmul.f32 0.5, %v4960_v47  ;;  %v5042_v7 = vmul.f32 %v13532_v11, %v4802_v60  ;;  %vm4954_vm15 = vweird.f32 %v13545_v20 }
 0xa07   :  { %15851 = vst [vmem:[#allocation172_spill] sm:$0xff] %v13559_v19  ;;  %v4733_v3 = vmul.f32 %v13559_v19, %v13559_v19  ;;  %v5044_v48 = vmul.f32 %v13569_v26, %v4804_v44  ;;  %v4969_v43 = vmul.f32 %v13583_v29, %v13524_v45  ;;  %v7582_v14 = vmul.f32 -1.442695, %v13596_v63 }
 0xa08   :  { %15860 = vst [vmem:[#allocation129_spill] sm:$0xff] %v13611_v53  ;;  %vm4975_vm2 = vweird.f32 %v13583_v29 }
 0xa09   :  { %v4749_v46 = vsub.f32 %v4717_v10, %v4733_v3  ;;  %v5045_v10 = vmul.f32 %v13569_v26, %v4805_v34  ;;  %v15859_v3 = vld [vmem:[#allocation158_spill] sm:$0xff]  ;;  %v5118_v50 = vmul.f32 %v11602_v6, %v5044_v48  ;;  %v4698_v34 = vpop.xlane.xlu1 %4697  ;;  %8417 = vpow2.f32 %v7582_v14 }
 0xa0a   :  { %v5115_v42 = vmul.f32 %v15859_v3, %v5041_v58 }
 0xa0b   :  { %v13598_v59 = vpop.eup %8415  ;;  %v4765_v25 = vmax.f32 %v4749_v46, 0.0  ;;  %v13620_v21 = vadd.f32 %v15857_v24, %v5118_v50  ;;  %v5119_v48 = vmul.f32 %v15859_v3, %v5045_v10  ;;  %v4718_v50 = vmul.f32 %v4698_v34, %v15799_v51 }
 0xa0c   :  { %v4949_v28 = vmul.f32 %v13598_v59, %v13545_v20  ;;  %v4531_v44 = vpop.xlane.xlu2 %4530  ;;  %v4962_v10 = vsub.f32 1.5, %v4961_v27  ;;  %v15865_v27 = vld [vmem:[#allocation182_spill] sm:$0xff]  ;;  %vm4955_vm13 = vweird.f32 %v13598_v59 }
 0xa0d   :  { %v13613_v46 = vadd.f32 1e-05, %v4765_v25  ;;  %v13616_v58 = vmul.f32 %v15799_v51, %v4531_v44  ;;  %v13629_v44 = vadd.f32 %v15864_v0, %v5115_v42  ;;  %v13638_v25 = vmul.f32 %v13532_v11, %v4803_v52  ;;  %vm4956_vm7 = vmor %vm4954_vm15, %vm4955_vm13 }
 0xa0e   :  { %v4950_v17 = vmul.f32 %v13598_v59, %v4949_v28  ;;  %v4970_v28 = vmul.f32 %v13583_v29, %v4969_v43  ;;  %v7586_v43 = vmul.f32 -1.442695, %v13620_v21  ;;  %v13645_v34 = vadd.f32 %v15864_v0, %v5119_v48 }
 0xa0f   :  { %15861 = vst [vmem:[#allocation146_spill] sm:$0xff] %v13613_v46  ;;  %8419 = vrsqrt.f32 %v13613_v46  ;;  %v4734_v14 = vmul.f32 %v13616_v58, %v13616_v58  ;;  %v6929_v11 = vpop.f32.mrf.mxu1  ;;  %v4735_v52 = vmul.f32 %v13611_v53, %v13611_v53  ;;  %v7583_v47 = vmul.f32 -1.442695, %v13629_v44  ;;  %v8418_v42 = vpop.eup %8417  ;;  %v15872_v53 = vld [vmem:[#allocation160_spill] sm:$0xff] }
 0xa10   :  { %v6880_v56 = vpop.f32.mrf.mxu0  ;;  %v4951_v30 = vmul.f32 0.5, %v4950_v17  ;;  %8421 = vpow2.f32 %v7586_v43  ;;  %v7587_v48 = vmul.f32 -1.442695, %v13645_v34  ;;  %v13658_v57 = vadd.f32 1.0, %v8418_v42 }
 0xa11   :  { %v4750_v16 = vsub.f32 %v4718_v50, %v4734_v14  ;;  %v6881_v60 = vadd.f32 %v15865_v27, %v6880_v56  ;;  %v4971_v50 = vmul.f32 0.5, %v4970_v28  ;;  %8423 = vpow2.f32 %v7583_v47 }
 0xa12   :  { %v4952_v61 = vsub.f32 1.5, %v4951_v30  ;;  %v4963_v56 = vmul.f32 %v13534_v41, %v4962_v10  ;;  %8425 = vpow2.f32 %v7587_v48  ;;  %v15870_v10 = vsub.f32 %v15850_v40, %v13406_v9 }
 0xa13   :  { %v4766_v14 = vmax.f32 %v4750_v16, 0.0  ;;  %v6930_v43 = vadd.f32 %v6929_v11, %v6881_v60  ;;  %8427 = vrcp.f32 %v13658_v57  ;;  %v4972_v60 = vsub.f32 1.5, %v4971_v50 }
 0xa14   :  { %v4703_v38 = vpop.xlane.xlu2 %4702  ;;  %v5046_v42 = vmul.f32 %v13569_v26, %v15870_v10  ;;  %v4953_v11 = vmul.f32 %v13598_v59, %v4952_v61  ;;  %v5116_v30 = vmul.f32 %v15872_v53, %v5042_v7  ;;  %vm5961_vm8 = vweird.f32 %v13658_v57 }
 0xa15   :  { %v13655_v37 = vpop.eup %8419  ;;  %v4719_v17 = vmul.f32 %v4703_v38, %v15799_v51  ;;  %v13665_v4 = vadd.f32 1e-05, %v4766_v14  ;;  %v13705_v10 = vmul.f32 %v13583_v29, %v4972_v60 }
 0xa16   :  { %15866 = vst [vmem:[#allocation149_spill] sm:$0xff] %v13655_v37  ;;  %v4979_v51 = vmul.f32 %v13655_v37, %v13613_v46  ;;  %v8422_v48 = vpop.eup %8421  ;;  %v5120_v15 = vmul.f32 %v15872_v53, %v5046_v42  ;;  %v5967_v42 = vand.u32 2147483648, %v13658_v57 }
 0xa17   :  { %15868 = vst [vmem:[#allocation185_spill] sm:$0xff] %v13665_v4  ;;  %v4751_v0 = vsub.f32 %v4719_v17, %v4735_v52  ;;  %v8424_v40 = vpop.eup %8423  ;;  %8429 = vrsqrt.f32 %v13665_v4  ;;  %v13691_v50 = vadd.f32 1.0, %v8422_v48 }
 0xa18   :  { %v6882_v1 = vpop.f32.mrf.mxu0  ;;  %v13701_v7 = vadd.f32 1.0, %v8424_v40 }
 0xa19   :  { %v6978_v47 = vpop.f32.mrf.mxu2  ;;  %v4767_v14 = vmax.f32 %v4751_v0, 0.0  ;;  %v6883_v33 = vadd.f32 %v15865_v27, %v6882_v1  ;;  %v4980_v1 = vmul.f32 %v13655_v37, %v4979_v51  ;;  %vm6021_vm14 = vweird.f32 %v13691_v50 }
 0xa1a   :  { %v6979_v17 = vadd.f32 %v6978_v47, %v6930_v43  ;;  %v7027_v52 = vpop.f32.mrf.mxu3  ;;  %v8426_v43 = vpop.eup %8425  ;;  %v13694_v47 = vsel %vm4966_vm6, %v13534_v41, %v4963_v56  ;;  %v6027_v41 = vand.u32 2147483648, %v13691_v50  ;;  %vm5976_vm0 = vweird.f32 %v13701_v7 }
 0xa1b   :  { %v13689_v0 = vadd.f32 1e-05, %v4767_v14  ;;  %v8428_v27 = vpop.eup %8427  ;;  %v6931_v56 = vpop.f32.mrf.mxu1  ;;  %v13717_v60 = vadd.f32 1.0, %v8426_v43  ;;  %v13723_v14 = vmul.f32 0.5, %v4980_v1  ;;  %v6025_v43 = vand.u32 2147483647, %v13691_v50 }
 0xa1c   :  { %v7028_v61 = vadd.f32 %v7027_v52, %v6979_v17  ;;  %v13708_v17 = vsel %vm4956_vm7, %v13598_v59, %v4953_v11  ;;  %v6932_v20 = vadd.f32 %v6931_v56, %v6883_v33  ;;  %v5957_v51 = vmul.f32 %v8428_v27, %v13658_v57  ;;  %v15874_v59 = vld [vmem:[#allocation161_spill] sm:$0xff] }
 0xa1d   :  { %15873 = vst [vmem:[#allocation141_spill] sm:$0xff] %v13689_v0  ;;  %8431 = vrsqrt.f32 %v13689_v0  ;;  %v5965_v52 = vand.u32 2147483647, %v13658_v57  ;;  %v13721_v11 = vadd.f32 %v15874_v59, %v5116_v30  ;;  %v13727_v33 = vadd.f32 %v15874_v59, %v5120_v15 }
 0xa1e   :  { %7058 = vst [vmem:[#allocation16 + $0x30] sm:$0xff] %v7028_v61  ;;  %8433 = vrcp.f32 %v13691_v50  ;;  %v5958_v40 = vsub.f32 1.0, %v5957_v51  ;;  %v13729_v61 = vpop.eup %8429  ;;  %vm5962_vm5 = vweird.f32 %v8428_v27  ;;  %v5980_v1 = vand.u32 2147483647, %v13701_v7 }
 0xa1f   :  { %8435 = vrcp.f32 %v13701_v7  ;;  %15875 = vst [vmem:[#allocation152_spill] sm:$0xff] %v13727_v33  ;;  %v5982_v51 = vand.u32 2147483648, %v13701_v7  ;;  %vm13738_vm1 = vcmp.eq.f32.partialorder %v5965_v52, 8.507059e+37  ;;  %v13745_v39 = vmul.f32 %v13729_v61, %v13665_v4  ;;  %vm5963_vm11 = vmor %vm5961_vm8, %vm5962_vm5 }
 0xa20   :  { %8437 = vrcp.f32 %v13717_v60  ;;  %v5959_v38 = vmul.f32 %v8428_v27, %v5958_v40  ;;  %v7588_v19 = vmul.f32 -1.442695, %v13727_v33  ;;  %vm13753_vm4 = vcmp.eq.f32.partialorder %v6025_v43, 8.507059e+37 }
 0xa21   :  { %v6980_v48 = vpop.f32.mrf.mxu2  ;;  %vm13760_vm9 = vcmp.eq.f32.partialorder %v5980_v1, 8.507059e+37  ;;  %v5983_v57 = vor.u32 1.1754944e-38, %v5982_v51  ;;  %vm6036_vm3 = vweird.f32 %v13717_v60  ;;  %v6042_v43 = vand.u32 2147483648, %v13717_v60 }
 0xa22   :  { %v6981_v56 = vadd.f32 %v6980_v48, %v6932_v20  ;;  %v7029_v30 = vpop.f32.mrf.mxu3  ;;  %v5968_v20 = vor.u32 1.1754944e-38, %v5967_v42  ;;  %v7584_v48 = vmul.f32 -1.442695, %v13721_v11  ;;  %v5960_v40 = vadd.f32 %v8428_v27, %v5959_v38 }
 0xa23   :  { %v13736_v16 = vpop.eup %8431  ;;  %v6040_v38 = vand.u32 2147483647, %v13717_v60  ;;  %v13844_v45 = vmul.f32 %v13729_v61, %v13745_v39 }
 0xa24   :  { %v7030_v15 = vadd.f32 %v7029_v30, %v6981_v56  ;;  %v8434_v2 = vpop.eup %8433  ;;  %v6028_v56 = vor.u32 1.1754944e-38, %v6027_v41  ;;  %v5964_v30 = vsel %vm5963_vm11, %v8428_v27, %v5960_v40  ;;  %8439 = vpow2.f32 %v7584_v48 }
 0xa25   :  { %v8436_v28 = vpop.eup %8435  ;;  %v6017_v52 = vmul.f32 %v8434_v2, %v13691_v50  ;;  %v5969_v41 = vsel %vm13738_vm1, %v5968_v20, %v5964_v30  ;;  %v15882_v27 = vsub.f32 %v12787_v5, %v13406_v9  ;;  %v4999_v51 = vmul.f32 %v13736_v16, %v13689_v0  ;;  %v15883_v20 = vld [vmem:[#allocation162_spill] sm:$0xff]  ;;  %vm4976_vm1 = vmor %vm4974_vm10, %vm4975_vm2 }
 0xa26   :  { %7059 = vst [vmem:[#allocation16 + $0x38] sm:$0xff] %v7030_v15  ;;  %v5972_v4 = vmul.f32 %v8436_v28, %v13701_v7  ;;  %v8438_v37 = vpop.eup %8437  ;;  %vm6022_vm12 = vweird.f32 %v8434_v2  ;;  %v6468_v54 = vmul.f32 %v5969_v41, %v13596_v63  ;;  %8441 = vpow2.f32 %v7588_v19 }
 0xa27   :  { %v6018_v46 = vsub.f32 1.0, %v6017_v52  ;;  %v5047_v1 = vmul.f32 %v13569_v26, %v15882_v27  ;;  %v6032_v59 = vmul.f32 %v8438_v37, %v13717_v60  ;;  %v5117_v48 = vmul.f32 %v15883_v20, %v13638_v25  ;;  %v15886_v27 = vld [vmem:[#allocation164_spill] sm:$0xff]  ;;  %vm6023_vm6 = vmor %vm6021_vm14, %vm6022_vm12 }
 0xa28   :  { %v5973_v40 = vsub.f32 1.0, %v5972_v4  ;;  %vm5977_vm15 = vweird.f32 %v8436_v28  ;;  %vm13780_vm13 = vcmp.eq.f32.partialorder %v6040_v38, 8.507059e+37  ;;  %v6043_v4 = vor.u32 1.1754944e-38, %v6042_v43 }
 0xa29   :  { %v6019_v33 = vmul.f32 %v8434_v2, %v6018_v46  ;;  %v6033_v5 = vsub.f32 1.0, %v6032_v59  ;;  %v5121_v30 = vmul.f32 %v15883_v20, %v5047_v1  ;;  %v13786_v0 = vadd.f32 %v15886_v27, %v5117_v48  ;;  %vm5978_vm8 = vmor %vm5976_vm0, %vm5977_vm15 }
 0xa2a   :  { %v5974_v52 = vmul.f32 %v8436_v28, %v5973_v40  ;;  %vm6037_vm7 = vweird.f32 %v8438_v37  ;;  %v15887_v46 = vsub.f32 %v15852_v8, %v13470_v55  ;;  %v8440_v59 = vpop.eup %8439  ;;  %v6532_v38 = vadd.f32 %v6468_v54, %v13422_v62 }
 0xa2b   :  { %v6020_v26 = vadd.f32 %v8434_v2, %v6019_v33  ;;  %v6034_v19 = vmul.f32 %v8438_v37, %v6033_v5  ;;  %v13800_v43 = vadd.f32 %v15886_v27, %v5121_v30  ;;  %v7585_v50 = vmul.f32 -1.442695, %v13786_v0  ;;  %vm6038_vm5 = vmor %vm6036_vm3, %vm6037_vm7 }
 0xa2c   :  { %v5975_v63 = vadd.f32 %v8436_v28, %v5974_v52  ;;  %v5048_v25 = vmul.f32 %v13708_v17, %v15887_v46  ;;  %v15888_v40 = vsub.f32 %v13111_v49, %v13412_v12  ;;  %v8442_v62 = vpop.eup %8441  ;;  %v13815_v48 = vadd.f32 1.0, %v8440_v59 }
 0xa2d   :  { %v6024_v33 = vsel %vm6023_vm6, %v8434_v2, %v6020_v26  ;;  %v6035_v8 = vadd.f32 %v8438_v37, %v6034_v19  ;;  %8443 = vpow2.f32 %v7585_v50  ;;  %v7589_v60 = vmul.f32 -1.442695, %v13800_v43 }
 0xa2e   :  { %v6029_v41 = vsel %vm13753_vm4, %v6028_v56, %v6024_v33  ;;  %v5979_v1 = vsel %vm5978_vm8, %v8436_v28, %v5975_v63  ;;  %v5052_v2 = vmul.f32 %v13694_v47, %v15888_v40  ;;  %v13818_v56 = vadd.f32 1.0, %v8442_v62 }
 0xa2f   :  { %v6472_v54 = vmul.f32 %v6029_v41, %v13620_v21  ;;  %v5984_v7 = vsel %vm13760_vm9, %v5983_v57, %v5979_v1  ;;  %v6039_v28 = vsel %vm6038_vm5, %v8438_v37, %v6035_v8  ;;  %v5122_v49 = vmul.f32 %v11602_v6, %v5048_v25 }
 0xa30   :  { %v6469_v42 = vmul.f32 %v5984_v7, %v13629_v44  ;;  %v6044_v21 = vsel %vm13780_vm13, %v6043_v4, %v6039_v28  ;;  %8445 = vrcp.f32 %v13815_v48  ;;  %v4825_v37 = vsub.f32 %v13313_v18, %v13616_v58 }
 0xa31   :  { %v6536_v52 = vadd.f32 %v6472_v54, %v13441_v13  ;;  %v4826_v44 = vsub.f32 %v13321_v22, %v13616_v58  ;;  %v5000_v13 = vmul.f32 %v13736_v16, %v4999_v51  ;;  %v6473_v15 = vmul.f32 %v6044_v21, %v13645_v34 }
 0xa32   :  { %v13838_v57 = vsel %vm4976_vm1, %v13583_v29, %v13705_v10  ;;  %v4982_v5 = vsub.f32 1.5, %v13723_v14  ;;  %8447 = vrcp.f32 %v13818_v56  ;;  %v6533_v26 = vadd.f32 %v6469_v42, %v13426_v23 }
 0xa33   :  { %v6580_v9 = vpack.c.bf16 %v6536_v52, %v6532_v38  ;;  %v6537_v4 = vadd.f32 %v6473_v15, %v13445_v32  ;;  %v5995_v51 = vand.u32 2147483647, %v13815_v48  ;;  %v8444_v34 = vpop.eup %8443  ;;  %v5997_v29 = vand.u32 2147483648, %v13815_v48 }
 0xa34   :  { %8449 = vpow2.f32 %v7589_v60  ;;  %v5126_v10 = vmul.f32 %v11602_v6, %v5052_v2  ;;  %v13852_v30 = vadd.f32 %v15857_v24, %v5122_v49  ;;  %v13854_v63 = vmul.f32 0.5, %v5000_v13 }
 0xa35   :  { %6884 = vmatmul.bf16.gmra.mxu0 %v6580_v9  ;;  %v6581_v39 = vpack.c.bf16 %v6537_v4, %v6533_v26  ;;  %vm5991_vm14 = vweird.f32 %v13815_v48  ;;  %v13857_v23 = vadd.f32 1.0, %v8444_v34  ;;  %v15889_v25 = vsub.f32 %v15853_v35, %v13470_v55 }
 0xa36   :  { %v8446_v32 = vpop.eup %8445  ;;  %v13860_v19 = vadd.f32 %v15857_v24, %v5126_v10  ;;  %v7590_v46 = vmul.f32 -1.442695, %v13852_v30  ;;  %v15890_v33 = vsub.f32 %v13159_v31, %v13412_v12  ;;  %vm13872_vm11 = vcmp.eq.f32.partialorder %v5995_v51, 8.507059e+37 }
 0xa37   :  { %v5049_v59 = vmul.f32 %v13708_v17, %v15889_v25  ;;  %6933 = vmatmul.bf16.gmra.mxu1 %v6581_v39  ;;  %v5987_v50 = vmul.f32 %v8446_v32, %v13815_v48  ;;  %vm6051_vm4 = vweird.f32 %v13818_v56  ;;  %v6055_v1 = vand.u32 2147483647, %v13818_v56  ;;  %v15896_v39 = vld [vmem:[#allocation159_spill] sm:$0xff] }
 0xa38   :  { %v5053_v38 = vmul.f32 %v13694_v47, %v15890_v33  ;;  %8451 = vrcp.f32 %v13857_v23  ;;  %v8448_v35 = vpop.eup %8447  ;;  %v5998_v8 = vor.u32 1.1754944e-38, %v5997_v29  ;;  %v6057_v40 = vand.u32 2147483648, %v13818_v56 }
 0xa39   :  { %8453 = vpow2.f32 %v7590_v46  ;;  %v7594_v31 = vmul.f32 -1.442695, %v13860_v19  ;;  %v5988_v2 = vsub.f32 1.0, %v5987_v50  ;;  %v6047_v62 = vmul.f32 %v8448_v35, %v13818_v56 }
 0xa3a   :  { %v6012_v54 = vand.u32 2147483648, %v13857_v23  ;;  %v15893_v7 = vsub.f32 %v15854_v36, %v13470_v55  ;;  %v8450_v42 = vpop.eup %8449  ;;  %vm5992_vm0 = vweird.f32 %v8446_v32  ;;  %v5123_v49 = vmul.f32 %v15859_v3, %v5049_v59  ;;  %v15897_v59 = vld [vmem:[#allocation163_spill] sm:$0xff] }
 0xa3b   :  { %8455 = vpow2.f32 %v7594_v31  ;;  %v5127_v52 = vmul.f32 %v15859_v3, %v5053_v38  ;;  %v5989_v21 = vmul.f32 %v8446_v32, %v5988_v2  ;;  %v6048_v60 = vsub.f32 1.0, %v6047_v62  ;;  %vm5993_vm12 = vmor %vm5991_vm14, %vm5992_vm0 }
 0xa3c   :  { %v5050_v28 = vmul.f32 %v13708_v17, %v15893_v7  ;;  %v13889_v13 = vadd.f32 1.0, %v8450_v42  ;;  %v6010_v15 = vand.u32 2147483647, %v13857_v23  ;;  %vm6052_vm9 = vweird.f32 %v8448_v35 }
 0xa3d   :  { %vm13892_vm3 = vcmp.eq.f32.partialorder %v6055_v1, 8.507059e+37  ;;  %v6058_v36 = vor.u32 1.1754944e-38, %v6057_v40  ;;  %vm6006_vm2 = vweird.f32 %v13857_v23  ;;  %v5990_v4 = vadd.f32 %v8446_v32, %v5989_v21  ;;  %vm6053_vm15 = vmor %vm6051_vm4, %vm6052_vm9  ;;  %v15901_v21 = vld [vmem:[#allocation152_spill] sm:$0xff] }
 0xa3e   :  { %v8452_v26 = vpop.eup %8451  ;;  %v6049_v51 = vmul.f32 %v8448_v35, %v6048_v60  ;;  %v6013_v34 = vor.u32 1.1754944e-38, %v6012_v54  ;;  %8457 = vrcp.f32 %v13889_v13  ;;  %v13903_v46 = vadd.f32 %v15896_v39, %v5123_v49 }
 0xa3f   :  { %v8454_v29 = vpop.eup %8453  ;;  %v6002_v10 = vmul.f32 %v8452_v26, %v13857_v23  ;;  %v13906_v25 = vadd.f32 %v15896_v39, %v5127_v52  ;;  %v15898_v33 = vsub.f32 %v15897_v59, %v13412_v12  ;;  %v5994_v50 = vsel %vm5993_vm12, %v8446_v32, %v5990_v4  ;;  %v15905_v59 = vld [vmem:[#allocation124_spill] sm:$0xff] }
 0xa40   :  { %v6050_v1 = vadd.f32 %v8448_v35, %v6049_v51  ;;  %vm13912_vm10 = vcmp.eq.f32.partialorder %v6010_v15, 8.507059e+37  ;;  %v13916_v48 = vadd.f32 1.0, %v8454_v29  ;;  %v5124_v31 = vmul.f32 %v15872_v53, %v5050_v28  ;;  %v15904_v29 = vld [vmem:[#allocation198_spill] sm:$0xff] }
 0xa41   :  { %v5054_v38 = vmul.f32 %v13694_v47, %v15898_v33  ;;  %v8456_v2 = vpop.eup %8455  ;;  %v5999_v62 = vsel %vm13872_vm11, %v5998_v8, %v5994_v50  ;;  %v6003_v54 = vsub.f32 1.0, %v6002_v10  ;;  %v6070_v32 = vand.u32 2147483647, %v13889_v13  ;;  %v15916_v50 = vld [vmem:[#allocation125_spill] sm:$0xff] }
 0xa42   :  { %v6072_v7 = vand.u32 2147483648, %v13889_v13  ;;  %v6054_v42 = vsel %vm6053_vm15, %v8448_v35, %v6050_v1  ;;  %v6470_v49 = vmul.f32 %v5999_v62, %v13721_v11  ;;  %v13927_v52 = vadd.f32 1.0, %v8456_v2  ;;  %v15902_v35 = vld [vmem:[#allocation154_spill] sm:$0xff] }
 0xa43   :  { %8459 = vrcp.f32 %v13916_v48  ;;  %v6059_v41 = vsel %vm13892_vm3, %v6058_v36, %v6054_v42  ;;  %v6004_v8 = vmul.f32 %v8452_v26, %v6003_v54  ;;  %vm6007_vm13 = vweird.f32 %v8452_v26 }
 0xa44   :  { %v7591_v56 = vmul.f32 -1.442695, %v13903_v46  ;;  %v8458_v28 = vpop.eup %8457  ;;  %v6474_v60 = vmul.f32 %v6059_v41, %v15901_v21  ;;  %v6087_v15 = vand.u32 2147483648, %v13916_v48  ;;  %8461 = vrcp.f32 %v13927_v52  ;;  %vm6008_vm7 = vmor %vm6006_vm2, %vm6007_vm13 }
 0xa45   :  { %v15903_v11 = vsub.f32 %v15902_v35, %v13470_v55  ;;  %v6005_v51 = vadd.f32 %v8452_v26, %v6004_v8  ;;  %v6062_v9 = vmul.f32 %v8458_v28, %v13889_v13  ;;  %vm6066_vm6 = vweird.f32 %v13889_v13 }
 0xa46   :  { %v6085_v36 = vand.u32 2147483647, %v13916_v48  ;;  %v6534_v10 = vadd.f32 %v6470_v49, %v15904_v29  ;;  %v6538_v33 = vadd.f32 %v6474_v60, %v15905_v59  ;;  %vm13947_vm8 = vcmp.eq.f32.partialorder %v6070_v32, 8.507059e+37  ;;  %v15911_v29 = vld [vmem:[#allocation184_spill] sm:$0xff] }
 0xa47   :  { %v5051_v4 = vmul.f32 %v13708_v17, %v15903_v11  ;;  %v6073_v55 = vor.u32 1.1754944e-38, %v6072_v7  ;;  %v6009_v17 = vsel %vm6008_vm7, %v8452_v26, %v6005_v51  ;;  %v6063_v1 = vsub.f32 1.0, %v6062_v9 }
 0xa48   :  { %vm6081_vm5 = vweird.f32 %v13916_v48  ;;  %8463 = vpow2.f32 %v7591_v56  ;;  %v6582_v62 = vpack.c.bf16 %v6538_v33, %v6534_v10  ;;  %vm6067_vm1 = vweird.f32 %v8458_v28  ;;  %v15910_v56 = vld [vmem:[#allocation161_spill] sm:$0xff] }
 0xa49   :  { %v8460_v2 = vpop.eup %8459  ;;  %v6088_v54 = vor.u32 1.1754944e-38, %v6087_v15  ;;  %v7595_v42 = vmul.f32 -1.442695, %v13906_v25  ;;  %v6014_v23 = vsel %vm13912_vm10, %v6013_v34, %v6009_v17  ;;  %v6064_v49 = vmul.f32 %v8458_v28, %v6063_v1  ;;  %vm6068_vm4 = vmor %vm6066_vm6, %vm6067_vm1 }
 0xa4a   :  { %v6077_v32 = vmul.f32 %v8460_v2, %v13916_v48  ;;  %vm13956_vm14 = vcmp.eq.f32.partialorder %v6085_v36, 8.507059e+37  ;;  %vm6141_vm11 = vweird.f32 %v13927_v52  ;;  %v8462_v26 = vpop.eup %8461  ;;  %6982 = vmatmul.bf16.gmra.mxu2 %v6582_v62  ;;  %v6145_v7 = vand.u32 2147483647, %v13927_v52 }
 0xa4b   :  { %8465 = vpow2.f32 %v7595_v42  ;;  %v5128_v8 = vmul.f32 %v15872_v53, %v5054_v38  ;;  %v13964_v21 = vadd.f32 %v15910_v56, %v5124_v31  ;;  %v6065_v34 = vadd.f32 %v8458_v28, %v6064_v49  ;;  %v15913_v42 = vld [vmem:[#allocation142_spill] sm:$0xff] }
 0xa4c   :  { %v6078_v40 = vsub.f32 1.0, %v6077_v32  ;;  %v6137_v60 = vmul.f32 %v8462_v26, %v13927_v52  ;;  %v6147_v15 = vand.u32 2147483648, %v13927_v52  ;;  %v6471_v35 = vmul.f32 %v6014_v23, %v13786_v0 }
 0xa4d   :  { %vm6082_vm0 = vweird.f32 %v8460_v2  ;;  %v13973_v11 = vadd.f32 %v15910_v56, %v5128_v8  ;;  %v7592_v38 = vmul.f32 -1.442695, %v13964_v21  ;;  %v6069_v51 = vsel %vm6068_vm4, %v8458_v28, %v6065_v34 }
 0xa4e   :  { %v8464_v31 = vpop.eup %8463  ;;  %v6079_v9 = vmul.f32 %v8460_v2, %v6078_v40  ;;  %v6138_v36 = vsub.f32 1.0, %v6137_v60  ;;  %v15912_v10 = vsub.f32 %v15911_v29, %v13412_v12  ;;  %v6074_v13 = vsel %vm13947_vm8, %v6073_v55, %v6069_v51  ;;  %vm6083_vm3 = vmor %vm6081_vm5, %vm6082_vm0  ;;  %v15919_v29 = vld [vmem:[#allocation137_spill] sm:$0xff] }
 0xa4f   :  { %v13982_v33 = vadd.f32 1.0, %v8464_v31  ;;  %8467 = vpow2.f32 %v7592_v38  ;;  %v7596_v0 = vmul.f32 -1.442695, %v13973_v11  ;;  %v6475_v17 = vmul.f32 %v6074_v13, %v13800_v43 }
 0xa50   :  { %v5055_v59 = vmul.f32 %v13694_v47, %v15912_v10  ;;  %v6080_v1 = vadd.f32 %v8460_v2, %v6079_v9  ;;  %v6139_v62 = vmul.f32 %v8462_v26, %v6138_v36  ;;  %vm6142_vm9 = vweird.f32 %v8462_v26 }
 0xa51   :  { %v8466_v28 = vpop.eup %8465  ;;  %v6535_v23 = vadd.f32 %v6471_v35, %v15913_v42  ;;  %vm13990_vm2 = vcmp.eq.f32.partialorder %v6145_v7, 8.507059e+37  ;;  %8469 = vrcp.f32 %v13982_v33  ;;  %v5125_v47 = vmul.f32 %v15883_v20, %v5051_v4  ;;  %vm6143_vm12 = vmor %vm6141_vm11, %vm6142_vm9  ;;  %v15918_v35 = vld [vmem:[#allocation112_spill] sm:$0xff] }
 0xa52   :  { %v6539_v43 = vadd.f32 %v6475_v17, %v15916_v50  ;;  %v6084_v55 = vsel %vm6083_vm3, %v8460_v2, %v6080_v1  ;;  %v6140_v49 = vadd.f32 %v8462_v26, %v6139_v62  ;;  %v13997_v32 = vadd.f32 1.0, %v8466_v28 }
 0xa53   :  { %v6089_v8 = vsel %vm13956_vm14, %v6088_v54, %v6084_v55  ;;  %v6148_v48 = vor.u32 1.1754944e-38, %v6147_v15  ;;  %8471 = vpow2.f32 %v7596_v0  ;;  %v5129_v7 = vmul.f32 %v15883_v20, %v5055_v59  ;;  %v15917_v15 = vld [vmem:[#allocation146_spill] sm:$0xff] }
 0xa54   :  { %v6583_v34 = vpack.c.bf16 %v6539_v43, %v6535_v23  ;;  %v6144_v40 = vsel %vm6143_vm12, %v8462_v26, %v6140_v49  ;;  %v6476_v4 = vmul.f32 %v6089_v8, %v13852_v30  ;;  %8473 = vrcp.f32 %v13997_v32 }
 0xa55   :  { %v8468_v2 = vpop.eup %8467  ;;  %v14007_v60 = vmul.f32 0.5, %v13844_v45  ;;  %v6149_v54 = vsel %vm13990_vm2, %v6148_v48, %v6144_v40  ;;  %v6100_v52 = vand.u32 2147483647, %v13982_v33  ;;  %v6102_v41 = vand.u32 2147483648, %v13982_v33  ;;  %v15924_v48 = vld [vmem:[#allocation149_spill] sm:$0xff] }
 0xa56   :  { %vm4984_vm10 = vweird.f32 %v15917_v15  ;;  %7031 = vmatmul.bf16.gmra.mxu3 %v6583_v34  ;;  %v6480_v26 = vmul.f32 %v6149_v54, %v13860_v19  ;;  %v6540_v30 = vadd.f32 %v6476_v4, %v15918_v35  ;;  %v14016_v38 = vadd.f32 1.0, %v8468_v2  ;;  %v15925_v2 = vld [vmem:[#allocation187_spill] sm:$0xff]  ;;  %v15926_v54 = vld [vmem:[#allocation106_spill] sm:$0xff] }
 0xa57   :  { %v14019_v31 = vadd.f32 %v15886_v27, %v5125_v47  ;;  %v8470_v45 = vpop.eup %8469  ;;  %v5002_v51 = vsub.f32 1.5, %v13854_v63  ;;  %vm6096_vm15 = vweird.f32 %v13982_v33  ;;  %v6160_v9 = vand.u32 2147483647, %v13997_v32 }
 0xa58   :  { %v14025_v36 = vadd.f32 %v15886_v27, %v5129_v7  ;;  %v6544_v10 = vadd.f32 %v6480_v26, %v15919_v29  ;;  %v6092_v19 = vmul.f32 %v8470_v45, %v13982_v33  ;;  %v6162_v59 = vand.u32 2147483648, %v13997_v32 }
 0xa59   :  { %8475 = vrcp.f32 %v14016_v38  ;;  %v8472_v13 = vpop.eup %8471  ;;  %vm14031_vm13 = vcmp.eq.f32.partialorder %v6100_v52, 8.507059e+37  ;;  %v6103_v17 = vor.u32 1.1754944e-38, %v6102_v41  ;;  %vm6156_vm6 = vweird.f32 %v13997_v32 }
 0xa5a   :  { %v7593_v1 = vmul.f32 -1.442695, %v14019_v31  ;;  %v8474_v62 = vpop.eup %8473  ;;  %v6584_v28 = vpack.c.bf16 %v6544_v10, %v6540_v30  ;;  %v6093_v42 = vsub.f32 1.0, %v6092_v19  ;;  %v14037_v23 = vadd.f32 1.0, %v8472_v13 }
 0xa5b   :  { %v7597_v12 = vmul.f32 -1.442695, %v14025_v36  ;;  %vm6097_vm7 = vweird.f32 %v8470_v45  ;;  %v6152_v47 = vmul.f32 %v8474_v62, %v13997_v32  ;;  %vm14041_vm8 = vcmp.eq.f32.partialorder %v6160_v9, 8.507059e+37 }
 0xa5c   :  { %v6115_v43 = vand.u32 2147483647, %v14016_v38  ;;  %v6117_v55 = vand.u32 2147483648, %v14016_v38  ;;  %6889 = vmatmul.bf16.gmra.mxu0 %v6584_v28  ;;  %v6094_v49 = vmul.f32 %v8470_v45, %v6093_v42  ;;  %v6163_v8 = vor.u32 1.1754944e-38, %v6162_v59  ;;  %vm6098_vm14 = vmor %vm6096_vm15, %vm6097_vm7  ;;  %v15931_v28 = vld [vmem:[#allocation172_spill] sm:$0xff] }
 0xa5d   :  { %8477 = vrcp.f32 %v14037_v23  ;;  %v4983_v7 = vmul.f32 %v15924_v48, %v4982_v5  ;;  %v6153_v34 = vsub.f32 1.0, %v6152_v47  ;;  %vm6111_vm5 = vweird.f32 %v14016_v38  ;;  %v15933_v47 = vld [vmem:[#allocation144_spill] sm:$0xff] }
 0xa5e   :  { %8479 = vpow2.f32 %v7593_v1  ;;  %vm4985_vm1 = vweird.f32 %v15924_v48  ;;  %v6095_v4 = vadd.f32 %v8470_v45, %v6094_v49  ;;  %vm6157_vm11 = vweird.f32 %v8474_v62 }
 0xa5f   :  { %v8476_v40 = vpop.eup %8475  ;;  %8481 = vpow2.f32 %v7597_v12  ;;  %v15927_v52 = vsub.f32 %v15925_v2, %v15926_v54  ;;  %v6154_v5 = vmul.f32 %v8474_v62, %v6153_v34  ;;  %vm14061_vm4 = vcmp.eq.f32.partialorder %v6115_v43, 8.507059e+37  ;;  %vm4986_vm0 = vmor %vm4984_vm10, %vm4985_vm1  ;;  %v15935_v34 = vld [vmem:[#allocation170_spill] sm:$0xff] }
 0xa60   :  { %v6107_v41 = vmul.f32 %v8476_v40, %v14016_v38  ;;  %v6118_v35 = vor.u32 1.1754944e-38, %v6117_v55  ;;  %v6099_v33 = vsel %vm6098_vm14, %v8470_v45, %v6095_v4  ;;  %v6175_v30 = vand.u32 2147483647, %v14037_v23  ;;  %vm6158_vm9 = vmor %vm6156_vm6, %vm6157_vm11  ;;  %v15930_v45 = vld [vmem:[#allocation130_spill] sm:$0xff] }
 0xa61   :  { %v5056_v14 = vmul.f32 %v13838_v57, %v15927_v52  ;;  %v14069_v9 = vsel %vm4986_vm0, %v15924_v48, %v4983_v7  ;;  %v6104_v10 = vsel %vm14031_vm13, %v6103_v17, %v6099_v33  ;;  %v6155_v19 = vadd.f32 %v8474_v62, %v6154_v5  ;;  %v15936_v52 = vld [vmem:[#allocation131_spill] sm:$0xff] }
 0xa62   :  { %v6108_v59 = vsub.f32 1.0, %v6107_v41  ;;  %v6177_v13 = vand.u32 2147483648, %v14037_v23  ;;  %v6477_v15 = vmul.f32 %v6104_v10, %v13903_v46  ;;  %vm6112_vm3 = vweird.f32 %v8476_v40 }
 0xa63   :  { %v5130_v29 = vmul.f32 %v11602_v6, %v5056_v14  ;;  %v8478_v1 = vpop.eup %8477  ;;  %v15932_v42 = vsub.f32 %v15930_v45, %v15931_v28  ;;  %v15934_v0 = vsub.f32 %v15933_v47, %v15926_v54  ;;  %v6159_v55 = vsel %vm6158_vm9, %v8474_v62, %v6155_v19  ;;  %vm6113_vm2 = vmor %vm6111_vm5, %vm6112_vm3 }
 0xa64   :  { %v8480_v43 = vpop.eup %8479  ;;  %v6109_v49 = vmul.f32 %v8476_v40, %v6108_v59  ;;  %v6167_v48 = vmul.f32 %v8478_v1, %v14037_v23  ;;  %v6164_v7 = vsel %vm14041_vm8, %v6163_v8, %v6159_v55  ;;  %v6541_v4 = vadd.f32 %v6477_v15, %v15935_v34 }
 0xa65   :  { %v5060_v12 = vmul.f32 %v14069_v9, %v15932_v42  ;;  %v5057_v17 = vmul.f32 %v13838_v57, %v15934_v0  ;;  %v14089_v32 = vadd.f32 %v15857_v24, %v5130_v29  ;;  %v8482_v46 = vpop.eup %8481  ;;  %v14094_v2 = vadd.f32 1.0, %v8480_v43  ;;  %v15938_v29 = vld [vmem:[#allocation128_spill] sm:$0xff] }
 0xa66   :  { %v15937_v14 = vsub.f32 %v15936_v52, %v15931_v28  ;;  %v6481_v62 = vmul.f32 %v6164_v7, %v13906_v25  ;;  %v6110_v41 = vadd.f32 %v8476_v40, %v6109_v49  ;;  %v6168_v33 = vsub.f32 1.0, %v6167_v48  ;;  %v15940_v7 = vld [vmem:[#allocation141_spill] sm:$0xff] }
 0xa67   :  { %v14101_v10 = vadd.f32 1.0, %v8482_v46  ;;  %vm6172_vm12 = vweird.f32 %v8478_v1  ;;  %8483 = vrcp.f32 %v14094_v2  ;;  %v5134_v50 = vmul.f32 %v11602_v6, %v5060_v12 }
 0xa68   :  { %v5061_v5 = vmul.f32 %v14069_v9, %v15937_v14  ;;  %v5131_v8 = vmul.f32 %v15859_v3, %v5057_v17  ;;  %v6545_v19 = vadd.f32 %v6481_v62, %v15938_v29  ;;  %v6114_v59 = vsel %vm6113_vm2, %v8476_v40, %v6110_v41  ;;  %v15941_v14 = vld [vmem:[#allocation175_spill] sm:$0xff] }
 0xa69   :  { %v6169_v15 = vmul.f32 %v8478_v1, %v6168_v33  ;;  %8485 = vrcp.f32 %v14101_v10  ;;  %v4992_v25 = vsub.f32 1.5, %v14007_v60  ;;  %v14115_v38 = vmul.f32 %v13736_v16, %v5002_v51  ;;  %v15942_v41 = vld [vmem:[#allocation171_spill] sm:$0xff] }
 0xa6a   :  { %v6119_v45 = vsel %vm14061_vm4, %v6118_v35, %v6114_v59  ;;  %vm6171_vm10 = vweird.f32 %v14037_v23  ;;  %v6585_v42 = vpack.c.bf16 %v6545_v19, %v6541_v4  ;;  %vm6176_vm15 = vcmp.eq.f32.partialorder %v6175_v30, 8.507059e+37  ;;  %v15944_v19 = vld [vmem:[#allocation148_spill] sm:$0xff] }
 0xa6b   :  { %v6170_v12 = vadd.f32 %v8478_v1, %v6169_v15  ;;  %v6478_v40 = vmul.f32 %v6119_v45, %v13964_v21  ;;  %vm6173_vm13 = vmor %vm6171_vm10, %vm6172_vm12  ;;  %v6178_v47 = vor.u32 1.1754944e-38, %v6177_v13  ;;  %v14123_v0 = vadd.f32 %v15857_v24, %v5134_v50 }
 0xa6c   :  { %v7598_v63 = vmul.f32 -1.442695, %v14089_v32  ;;  %v5135_v51 = vmul.f32 %v15859_v3, %v5061_v5  ;;  %6938 = vmatmul.bf16.gmra.mxu1 %v6585_v42  ;;  %vm6126_vm6 = vweird.f32 %v14094_v2  ;;  %v6130_v23 = vand.u32 2147483647, %v14094_v2 }
 0xa6d   :  { %v6174_v26 = vsel %vm6173_vm13, %v8478_v1, %v6170_v12  ;;  %v14130_v35 = vadd.f32 %v15896_v39, %v5131_v8  ;;  %v8484_v21 = vpop.eup %8483  ;;  %vm5005_vm7 = vweird.f32 %v13736_v16  ;;  %v6132_v13 = vand.u32 2147483648, %v14094_v2  ;;  %v15939_v1 = vld [vmem:[#allocation119_spill] sm:$0xff] }
 0xa6e   :  { %v6179_v30 = vsel %vm6176_vm15, %v6178_v47, %v6174_v26  ;;  %8487 = vpow2.f32 %v7598_v63  ;;  %v7602_v17 = vmul.f32 -1.442695, %v14123_v0  ;;  %v6542_v49 = vadd.f32 %v6478_v40, %v15939_v1  ;;  %v15948_v63 = vld [vmem:[#allocation186_spill] sm:$0xff] }
 0xa6f   :  { %v8486_v43 = vpop.eup %8485  ;;  %v6482_v55 = vmul.f32 %v6179_v30, %v13973_v11  ;;  %v6122_v48 = vmul.f32 %v8484_v21, %v14094_v2  ;;  %v14139_v46 = vadd.f32 %v15896_v39, %v5135_v51  ;;  %vm5004_vm8 = vweird.f32 %v15940_v7  ;;  %v15950_v2 = vld [vmem:[#allocation153_spill] sm:$0xff] }
 0xa70   :  { %v6182_v34 = vmul.f32 %v8486_v43, %v14101_v10  ;;  %v6190_v4 = vand.u32 2147483647, %v14101_v10  ;;  %8489 = vpow2.f32 %v7602_v17  ;;  %v7599_v52 = vmul.f32 -1.442695, %v14130_v35  ;;  %vm5006_vm3 = vmor %vm5004_vm8, %vm5005_vm7  ;;  %v15952_v7 = vld [vmem:[#allocation185_spill] sm:$0xff] }
 0xa71   :  { %v6546_v5 = vadd.f32 %v6482_v55, %v15941_v14  ;;  %v6123_v62 = vsub.f32 1.0, %v6122_v48  ;;  %v7603_v11 = vmul.f32 -1.442695, %v14139_v46  ;;  %v15943_v33 = vsub.f32 %v15942_v41, %v15926_v54 }
 0xa72   :  { %v6183_v8 = vsub.f32 1.0, %v6182_v34  ;;  %v6192_v29 = vand.u32 2147483648, %v14101_v10  ;;  %8491 = vpow2.f32 %v7599_v52  ;;  %v15945_v59 = vsub.f32 %v15944_v19, %v15931_v28 }
 0xa73   :  { %v5058_v50 = vmul.f32 %v13838_v57, %v15943_v33  ;;  %v6586_v45 = vpack.c.bf16 %v6546_v5, %v6542_v49  ;;  %v6124_v42 = vmul.f32 %v8484_v21, %v6123_v62  ;;  %vm6127_vm5 = vweird.f32 %v8484_v21 }
 0xa74   :  { %v5062_v15 = vmul.f32 %v14069_v9, %v15945_v59  ;;  %8493 = vpow2.f32 %v7603_v11  ;;  %v8488_v12 = vpop.eup %8487  ;;  %vm14156_vm1 = vcmp.eq.f32.partialorder %v6130_v23, 8.507059e+37  ;;  %v6184_v47 = vmul.f32 %v8486_v43, %v6183_v8  ;;  %vm6128_vm11 = vmor %vm6126_vm6, %vm6127_vm5  ;;  %v15954_v59 = vld [vmem:[#allocation127_spill] sm:$0xff] }
 0xa75   :  { %vm6187_vm14 = vweird.f32 %v8486_v43  ;;  %v15949_v51 = vsub.f32 %v15948_v63, %v15926_v54  ;;  %6987 = vmatmul.bf16.gmra.mxu2 %v6586_v45  ;;  %v6125_v30 = vadd.f32 %v8484_v21, %v6124_v42  ;;  %v6133_v17 = vor.u32 1.1754944e-38, %v6132_v13 }
 0xa76   :  { %v14164_v55 = vadd.f32 1.0, %v8488_v12  ;;  %v5132_v1 = vmul.f32 %v15872_v53, %v5058_v50  ;;  %v8490_v49 = vpop.eup %8489  ;;  %v6185_v23 = vadd.f32 %v8486_v43, %v6184_v47  ;;  %vm6186_vm4 = vweird.f32 %v14101_v10  ;;  %v15953_v50 = vld [vmem:[#allocation167_spill] sm:$0xff] }
 0xa77   :  { %v5059_v26 = vmul.f32 %v13838_v57, %v15949_v51  ;;  %vm6191_vm0 = vcmp.eq.f32.partialorder %v6190_v4, 8.507059e+37  ;;  %v5136_v48 = vmul.f32 %v15872_v53, %v5062_v15  ;;  %v6129_v54 = vsel %vm6128_vm11, %v8484_v21, %v6125_v30  ;;  %vm6188_vm9 = vmor %vm6186_vm4, %vm6187_vm14  ;;  %v15961_v51 = vld [vmem:[#allocation169_spill] sm:$0xff] }
 0xa78   :  { %v6193_v57 = vor.u32 1.1754944e-38, %v6192_v29  ;;  %v14171_v34 = vadd.f32 1.0, %v8490_v49  ;;  %8495 = vrcp.f32 %v14164_v55  ;;  %v8492_v13 = vpop.eup %8491  ;;  %v6134_v52 = vsel %vm14156_vm1, %v6133_v17, %v6129_v54 }
 0xa79   :  { %v6189_v14 = vsel %vm6188_vm9, %v8486_v43, %v6185_v23  ;;  %v15951_v5 = vsub.f32 %v15950_v2, %v15931_v28  ;;  %v5133_v4 = vmul.f32 %v15883_v20, %v5059_v26  ;;  %v6479_v11 = vmul.f32 %v6134_v52, %v14019_v31 }
 0xa7a   :  { %v8494_v62 = vpop.eup %8493  ;;  %v6194_v21 = vsel %vm6191_vm0, %v6193_v57, %v6189_v14  ;;  %8497 = vrcp.f32 %v14171_v34  ;;  %v14188_v43 = vadd.f32 %v15910_v56, %v5132_v1  ;;  %v14192_v28 = vsel %vm5006_vm3, %v13736_v16, %v14115_v38 }
 0xa7b   :  { %v5063_v10 = vmul.f32 %v14069_v9, %v15951_v5  ;;  %v6483_v9 = vmul.f32 %v6194_v21, %v14025_v36  ;;  %v6205_v41 = vand.u32 2147483647, %v14164_v55  ;;  %v14197_v33 = vadd.f32 %v15910_v56, %v5136_v48 }
 0xa7c   :  { %vm4994_vm2 = vweird.f32 %v15952_v7  ;;  %v6543_v31 = vadd.f32 %v6479_v11, %v15953_v50  ;;  %v6207_v8 = vand.u32 2147483648, %v14164_v55  ;;  %v14202_v29 = vadd.f32 1.0, %v8492_v13 }
 0xa7d   :  { %v14204_v19 = vadd.f32 1.0, %v8494_v62  ;;  %v6547_v16 = vadd.f32 %v6483_v9, %v15954_v59  ;;  %v6265_v38 = vand.u32 2147483647, %v14171_v34  ;;  %v5137_v36 = vmul.f32 %v15883_v20, %v5063_v10 }
 0xa7e   :  { %vm4995_vm12 = vweird.f32 %v13729_v61  ;;  %v8496_v15 = vpop.eup %8495  ;;  %vm6201_vm10 = vweird.f32 %v14164_v55  ;;  %8499 = vrcp.f32 %v14202_v29  ;;  %v7600_v45 = vmul.f32 -1.442695, %v14188_v43 }
 0xa7f   :  { %v14214_v42 = vadd.f32 %v15886_v27, %v5133_v4  ;;  %v6587_v12 = vpack.c.bf16 %v6547_v16, %v6543_v31  ;;  %v6197_v40 = vmul.f32 %v8496_v15, %v14164_v55  ;;  %vm6261_vm15 = vweird.f32 %v14171_v34  ;;  %vm4996_vm11 = vmor %vm4994_vm2, %vm4995_vm12 }
 0xa80   :  { %v7604_v47 = vmul.f32 -1.442695, %v14197_v33  ;;  %v8498_v63 = vpop.eup %8497  ;;  %vm14219_vm13 = vcmp.eq.f32.partialorder %v6205_v41, 8.507059e+37  ;;  %v6208_v26 = vor.u32 1.1754944e-38, %v6207_v8  ;;  %v6267_v30 = vand.u32 2147483648, %v14171_v34 }
 0xa81   :  { %8501 = vrcp.f32 %v14204_v19  ;;  %7036 = vmatmul.bf16.gmra.mxu3 %v6587_v12  ;;  %v6198_v17 = vsub.f32 1.0, %v6197_v40  ;;  %v6257_v1 = vmul.f32 %v8498_v63, %v14171_v34  ;;  %vm14226_vm6 = vcmp.eq.f32.partialorder %v6265_v38, 8.507059e+37 }
 0xa82   :  { %v6220_v23 = vand.u32 2147483647, %v14202_v29  ;;  %vm6202_vm7 = vweird.f32 %v8496_v15  ;;  %v6222_v48 = vand.u32 2147483648, %v14202_v29  ;;  %8503 = vpow2.f32 %v7600_v45 }
 0xa83   :  { %v14233_v54 = vadd.f32 %v15886_v27, %v5137_v36  ;;  %v6199_v57 = vmul.f32 %v8496_v15, %v6198_v17  ;;  %v6258_v13 = vsub.f32 1.0, %v6257_v1  ;;  %8505 = vpow2.f32 %v7604_v47  ;;  %vm6203_vm4 = vmor %vm6201_vm10, %vm6202_vm7  ;;  %v15963_v1 = vld [vmem:[#allocation139_spill] sm:$0xff] }
 0xa84   :  { %v7601_v52 = vmul.f32 -1.442695, %v14214_v42  ;;  %v8500_v14 = vpop.eup %8499  ;;  %v6268_v2 = vor.u32 1.1754944e-38, %v6267_v30  ;;  %vm6216_vm8 = vweird.f32 %v14202_v29  ;;  %v4993_v10 = vmul.f32 %v13729_v61, %v4992_v25 }
 0xa85   :  { %v7605_v5 = vmul.f32 -1.442695, %v14233_v54  ;;  %v6200_v4 = vadd.f32 %v8496_v15, %v6199_v57  ;;  %v6259_v62 = vmul.f32 %v8498_v63, %v6258_v13  ;;  %vm6262_vm5 = vweird.f32 %v8498_v63  ;;  %v15967_v57 = vld [vmem:[#allocation129_spill] sm:$0xff] }
 0xa86   :  { %v6212_v21 = vmul.f32 %v8500_v14, %v14202_v29  ;;  %vm14242_vm1 = vcmp.eq.f32.partialorder %v6220_v23, 8.507059e+37  ;;  %vm6276_vm14 = vweird.f32 %v14204_v19  ;;  %v6223_v60 = vor.u32 1.1754944e-38, %v6222_v48  ;;  %vm6263_vm0 = vmor %vm6261_vm15, %vm6262_vm5  ;;  %v15966_v48 = vld [vmem:[#allocation174_spill] sm:$0xff] }
 0xa87   :  { %v8502_v9 = vpop.eup %8501  ;;  %v6280_v25 = vand.u32 2147483647, %v14204_v19  ;;  %8507 = vpow2.f32 %v7601_v52  ;;  %v14256_v41 = vsel %vm4996_vm11, %v13729_v61, %v4993_v10  ;;  %v6204_v50 = vsel %vm6203_vm4, %v8496_v15, %v6200_v4  ;;  %v15969_v52 = vld [vmem:[#allocation136_spill] sm:$0xff] }
 0xa88   :  { %v6260_v31 = vadd.f32 %v8498_v63, %v6259_v62  ;;  %v6213_v8 = vsub.f32 1.0, %v6212_v21  ;;  %v6272_v59 = vmul.f32 %v8502_v9, %v14204_v19  ;;  %v8504_v16 = vpop.eup %8503  ;;  %v6209_v7 = vsel %vm14219_vm13, %v6208_v26, %v6204_v50 }
 0xa89   :  { %vm6217_vm9 = vweird.f32 %v8500_v14  ;;  %v6282_v55 = vand.u32 2147483648, %v14204_v19  ;;  %8509 = vpow2.f32 %v7605_v5  ;;  %v8506_v38 = vpop.eup %8505  ;;  %v6484_v36 = vmul.f32 %v6209_v7, %v14089_v32 }
 0xa8a   :  { %v6264_v61 = vsel %vm6263_vm0, %v8498_v63, %v6260_v31  ;;  %v6214_v15 = vmul.f32 %v8500_v14, %v6213_v8  ;;  %v6273_v45 = vsub.f32 1.0, %v6272_v59  ;;  %v14268_v40 = vadd.f32 1.0, %v8504_v16  ;;  %vm6218_vm2 = vmor %vm6216_vm8, %vm6217_vm9 }
 0xa8b   :  { %v6269_v12 = vsel %vm14226_vm6, %v6268_v2, %v6264_v61  ;;  %v14270_v47 = vadd.f32 1.0, %v8506_v38  ;;  %v15962_v34 = vsub.f32 %v15961_v51, %v13616_v58  ;;  %vm6277_vm3 = vweird.f32 %v8502_v9 }
 0xa8c   :  { %v6488_v30 = vmul.f32 %v6269_v12, %v14123_v0  ;;  %v6215_v17 = vadd.f32 %v8500_v14, %v6214_v15  ;;  %v6274_v63 = vmul.f32 %v8502_v9, %v6273_v45  ;;  %v6548_v23 = vadd.f32 %v6484_v36, %v15963_v1  ;;  %vm6278_vm10 = vmor %vm6276_vm14, %vm6277_vm3  ;;  %v15972_v45 = vld [vmem:[#allocation156_spill] sm:$0xff]  ;;  %v15973_v12 = vld [vmem:[#allocation173_spill] sm:$0xff] }
 0xa8d   :  { %v5064_v26 = vmul.f32 %v14256_v41, %v15962_v34  ;;  %v8508_v32 = vpop.eup %8507  ;;  %vm14281_vm12 = vcmp.eq.f32.partialorder %v6280_v25, 8.507059e+37  ;;  %8511 = vrcp.f32 %v14268_v40  ;;  %v15968_v13 = vsub.f32 %v15966_v48, %v15967_v57 }
 0xa8e   :  { %v6552_v2 = vadd.f32 %v6488_v30, %v15969_v52  ;;  %v6219_v5 = vsel %vm6218_vm2, %v8500_v14, %v6215_v17  ;;  %v6275_v10 = vadd.f32 %v8502_v9, %v6274_v63  ;;  %8513 = vrcp.f32 %v14270_v47 }
 0xa8f   :  { %v5068_v0 = vmul.f32 %v14192_v28, %v15968_v13  ;;  %v8510_v4 = vpop.eup %8509  ;;  %v6224_v29 = vsel %vm14242_vm1, %v6223_v60, %v6219_v5  ;;  %v6283_v62 = vor.u32 1.1754944e-38, %v6282_v55  ;;  %v6237_v21 = vand.u32 2147483648, %v14268_v40  ;;  %v15970_v55 = vld [vmem:[#allocation179_spill] sm:$0xff] }
 0xa90   :  { %v5138_v25 = vmul.f32 %v11602_v6, %v5064_v26  ;;  %v6588_v50 = vpack.c.bf16 %v6552_v2, %v6548_v23  ;;  %v6279_v31 = vsel %vm6278_vm10, %v8502_v9, %v6275_v10  ;;  %v6485_v8 = vmul.f32 %v6224_v29, %v14130_v35 }
 0xa91   :  { %v6235_v14 = vand.u32 2147483647, %v14268_v40  ;;  %v6284_v59 = vsel %vm14281_vm12, %v6283_v62, %v6279_v31  ;;  %v6295_v11 = vand.u32 2147483647, %v14270_v47  ;;  %v14303_v60 = vadd.f32 1.0, %v8508_v32 }
 0xa92   :  { %v14305_v19 = vadd.f32 1.0, %v8510_v4  ;;  %6894 = vmatmul.bf16.gmra.mxu0 %v6588_v50  ;;  %v6489_v16 = vmul.f32 %v6284_v59, %v14139_v46  ;;  %v6297_v7 = vand.u32 2147483648, %v14270_v47  ;;  %v5142_v9 = vmul.f32 %v11602_v6, %v5068_v0 }
 0xa93   :  { %v15971_v35 = vsub.f32 %v15970_v55, %v15967_v57  ;;  %v8512_v61 = vpop.eup %8511  ;;  %vm6231_vm15 = vweird.f32 %v14268_v40  ;;  %v6238_v36 = vor.u32 1.1754944e-38, %v6237_v21  ;;  %vm6291_vm13 = vweird.f32 %v14270_v47 }
 0xa94   :  { %8515 = vrcp.f32 %v14303_v60  ;;  %v8514_v15 = vpop.eup %8513  ;;  %v6549_v46 = vadd.f32 %v6485_v8, %v15972_v45  ;;  %v6553_v51 = vadd.f32 %v6489_v16, %v15973_v12  ;;  %v6227_v6 = vmul.f32 %v8512_v61, %v14268_v40 }
 0xa95   :  { %v5069_v38 = vmul.f32 %v14192_v28, %v15971_v35  ;;  %vm14320_vm6 = vcmp.eq.f32.partialorder %v6235_v14, 8.507059e+37  ;;  %v14325_v26 = vadd.f32 %v15857_v24, %v5138_v25  ;;  %v6287_v30 = vmul.f32 %v8514_v15, %v14270_v47 }
 0xa96   :  { %vm14328_vm7 = vcmp.eq.f32.partialorder %v6295_v11, 8.507059e+37  ;;  %v6252_v63 = vand.u32 2147483648, %v14303_v60  ;;  %8517 = vrcp.f32 %v14305_v19  ;;  %v6589_v32 = vpack.c.bf16 %v6553_v51, %v6549_v46 }
 0xa97   :  { %v6228_v1 = vsub.f32 1.0, %v6227_v6  ;;  %v6298_v23 = vor.u32 1.1754944e-38, %v6297_v7  ;;  %v6250_v49 = vand.u32 2147483647, %v14303_v60  ;;  %vm6232_vm8 = vweird.f32 %v8512_v61 }
 0xa98   :  { %v6288_v48 = vsub.f32 1.0, %v6287_v30  ;;  %vm6292_vm5 = vweird.f32 %v8514_v15  ;;  %v14336_v13 = vadd.f32 %v15857_v24, %v5142_v9  ;;  %6943 = vmatmul.bf16.gmra.mxu1 %v6589_v32  ;;  %vm6246_vm1 = vweird.f32 %v14303_v60  ;;  %vm6233_vm11 = vmor %vm6231_vm15, %vm6232_vm8  ;;  %v15982_v30 = vld [vmem:[#allocation180_spill] sm:$0xff] }
 0xa99   :  { %v6229_v0 = vmul.f32 %v8512_v61, %v6228_v1  ;;  %v7606_v52 = vmul.f32 -1.442695, %v14325_v26  ;;  %v5065_v2 = vmul.f32 %v14256_v41, %v4825_v37  ;;  %v5143_v5 = vmul.f32 %v15859_v3, %v5069_v38  ;;  %vm6293_vm4 = vmor %vm6291_vm13, %vm6292_vm5 }
 0xa9a   :  { %v8516_v10 = vpop.eup %8515  ;;  %v6289_v4 = vmul.f32 %v8514_v15, %v6288_v48  ;;  %v6253_v29 = vor.u32 1.1754944e-38, %v6252_v63  ;;  %v6310_v62 = vand.u32 2147483647, %v14305_v19  ;;  %v7610_v24 = vmul.f32 -1.442695, %v14336_v13  ;;  %v15985_v48 = vld [vmem:[#allocation194_spill] sm:$0xff] }
 0xa9b   :  { %v6230_v21 = vadd.f32 %v8512_v61, %v6229_v0  ;;  %v6242_v25 = vmul.f32 %v8516_v10, %v14303_v60  ;;  %vm14348_vm14 = vcmp.eq.f32.partialorder %v6250_v49, 8.507059e+37  ;;  %v6312_v18 = vand.u32 2147483648, %v14305_v19  ;;  %v15984_v49 = vld [vmem:[#allocation176_spill] sm:$0xff] }
 0xa9c   :  { %8519 = vpow2.f32 %v7606_v52  ;;  %v8518_v37 = vpop.eup %8517  ;;  %v6290_v31 = vadd.f32 %v8514_v15, %v6289_v4  ;;  %v5139_v8 = vmul.f32 %v15859_v3, %v5065_v2  ;;  %v14358_v14 = vadd.f32 %v15896_v39, %v5143_v5 }
 0xa9d   :  { %8521 = vpow2.f32 %v7610_v24  ;;  %v6234_v59 = vsel %vm6233_vm11, %v8512_v61, %v6230_v21  ;;  %v6243_v11 = vsub.f32 1.0, %v6242_v25  ;;  %vm6247_vm0 = vweird.f32 %v8516_v10  ;;  %v15987_v24 = vld [vmem:[#allocation195_spill] sm:$0xff] }
 0xa9e   :  { %v6302_v16 = vmul.f32 %v8518_v37, %v14305_v19  ;;  %v6239_v40 = vsel %vm14320_vm6, %v6238_v36, %v6234_v59  ;;  %v6294_v7 = vsel %vm6293_vm4, %v8514_v15, %v6290_v31  ;;  %v14367_v9 = vadd.f32 %v15896_v39, %v5139_v8  ;;  %v15980_v15 = vld [vmem:[#allocation138_spill] sm:$0xff]  ;;  %vm6248_vm3 = vmor %vm6246_vm1, %vm6247_vm0  ;;  %v15988_v25 = vld [vmem:[#allocation199_spill] sm:$0xff] }
 0xa9f   :  { %v7611_v3 = vmul.f32 -1.442695, %v14358_v14  ;;  %v6299_v55 = vsel %vm14328_vm7, %v6298_v23, %v6294_v7  ;;  %v6486_v35 = vmul.f32 %v6239_v40, %v14188_v43  ;;  %v6244_v47 = vmul.f32 %v8516_v10, %v6243_v11  ;;  %v15981_v43 = vld [vmem:[#allocation151_spill] sm:$0xff]  ;;  %v15990_v11 = vld [vmem:[#allocation108_spill] sm:$0xff]  ;;  %v15991_v40 = vld [vmem:[#allocation166_spill] sm:$0xff] }
 0xaa0   :  { %v6303_v38 = vsub.f32 1.0, %v6302_v16  ;;  %v6490_v61 = vmul.f32 %v6299_v55, %v14197_v33  ;;  %vm6307_vm9 = vweird.f32 %v8518_v37  ;;  %v7607_v45 = vmul.f32 -1.442695, %v14367_v9 }
 0xaa1   :  { %8523 = vpow2.f32 %v7611_v3  ;;  %v6550_v46 = vadd.f32 %v6486_v35, %v15980_v15  ;;  %v6245_v39 = vadd.f32 %v8516_v10, %v6244_v47  ;;  %v5066_v51 = vmul.f32 %v14256_v41, %v4826_v44 }
 0xaa2   :  { %v8520_v36 = vpop.eup %8519  ;;  %v6304_v12 = vmul.f32 %v8518_v37, %v6303_v38  ;;  %v6554_v34 = vadd.f32 %v6490_v61, %v15981_v43  ;;  %8525 = vpow2.f32 %v7607_v45  ;;  %v15983_v17 = vsub.f32 %v15982_v30, %v15967_v57  ;;  %v15993_v45 = vld [vmem:[#allocation155_spill] sm:$0xff] }
 0xaa3   :  { %v8522_v6 = vpop.eup %8521  ;;  %v14384_v33 = vadd.f32 1.0, %v8520_v36  ;;  %v6249_v32 = vsel %vm6248_vm3, %v8516_v10, %v6245_v39  ;;  %vm6306_vm2 = vweird.f32 %v14305_v19  ;;  %v6313_v60 = vor.u32 1.1754944e-38, %v6312_v18 }
 0xaa4   :  { %v5070_v63 = vmul.f32 %v14192_v28, %v15983_v17  ;;  %v6305_v1 = vadd.f32 %v8518_v37, %v6304_v12  ;;  %v14391_v22 = vadd.f32 1.0, %v8522_v6  ;;  %v6590_v44 = vpack.c.bf16 %v6554_v34, %v6550_v46  ;;  %vm6308_vm12 = vmor %vm6306_vm2, %vm6307_vm9 }
 0xaa5   :  { %v6254_v23 = vsel %vm14348_vm14, %v6253_v29, %v6249_v32  ;;  %8527 = vrcp.f32 %v14384_v33  ;;  %v14399_v0 = vadd.f32 %v15985_v48, %v15984_v49  ;;  %vm6311_vm10 = vcmp.eq.f32.partialorder %v6310_v62, 8.507059e+37  ;;  %v15986_v29 = vld [vmem:[#allocation177_spill] sm:$0xff]  ;;  %v15989_v62 = vld [vmem:[#allocation200_spill] sm:$0xff] }
 0xaa6   :  { %v6309_v52 = vsel %vm6308_vm12, %v8518_v37, %v6305_v1  ;;  %v6487_v2 = vmul.f32 %v6254_v23, %v14214_v42  ;;  %6992 = vmatmul.bf16.gmra.mxu2 %v6590_v44  ;;  %8529 = vrcp.f32 %v14391_v22  ;;  %v5140_v10 = vmul.f32 %v15872_v53, %v5066_v51 }
 0xaa7   :  { %v8524_v19 = vpop.eup %8523  ;;  %v6314_v5 = vsel %vm6311_vm10, %v6313_v60, %v6309_v52  ;;  %v5144_v4 = vmul.f32 %v15872_v53, %v5070_v63  ;;  %v14407_v21 = vadd.f32 %v15987_v24, %v15986_v29  ;;  %v14411_v50 = vadd.f32 %v15988_v25, %v15984_v49 }
 0xaa8   :  { %v14415_v42 = vadd.f32 %v15989_v62, %v15986_v29  ;;  %v6491_v18 = vmul.f32 %v6314_v5, %v14233_v54  ;;  %v8526_v37 = vpop.eup %8525  ;;  %v6325_v31 = vand.u32 2147483647, %v14384_v33  ;;  %v6327_v8 = vand.u32 2147483648, %v14384_v33  ;;  %v15992_v54 = vld [vmem:[#allocation168_spill] sm:$0xff] }
 0xaa9   :  { %v6385_v53 = vand.u32 2147483647, %v14391_v22  ;;  %v14421_v59 = vadd.f32 1.0, %v8524_v19  ;;  %v6551_v16 = vadd.f32 %v6487_v2, %v15990_v11  ;;  %v6387_v3 = vand.u32 2147483648, %v14391_v22  ;;  %v16001_v19 = vld [vmem:[#allocation196_spill] sm:$0xff] }
 0xaaa   :  { %v6555_v7 = vadd.f32 %v6491_v18, %v15991_v40  ;;  %v14426_v55 = vadd.f32 1.0, %v8526_v37  ;;  %v4827_v47 = vsub.f32 %v15992_v54, %v13616_v58  ;;  %v14432_v38 = vadd.f32 %v15910_v56, %v5140_v10 }
 0xaab   :  { %v8528_v35 = vpop.eup %8527  ;;  %8531 = vrcp.f32 %v14421_v59  ;;  %v14435_v61 = vadd.f32 %v15910_v56, %v5144_v4  ;;  %v4831_v36 = vsub.f32 %v15993_v45, %v15967_v57  ;;  %vm6321_vm15 = vweird.f32 %v14384_v33 }
 0xaac   :  { %v6591_v15 = vpack.c.bf16 %v6555_v7, %v6551_v16  ;;  %v6317_v46 = vmul.f32 %v8528_v35, %v14384_v33  ;;  %8533 = vrcp.f32 %v14426_v55  ;;  %v8530_v39 = vpop.eup %8529  ;;  %vm14442_vm13 = vcmp.eq.f32.partialorder %v6325_v31, 8.507059e+37 }
 0xaad   :  { %v6328_v12 = vor.u32 1.1754944e-38, %v6327_v8  ;;  %v5067_v51 = vmul.f32 %v14256_v41, %v4827_v47  ;;  %v6377_v6 = vmul.f32 %v8530_v39, %v14391_v22  ;;  %vm14448_vm6 = vcmp.eq.f32.partialorder %v6385_v53, 8.507059e+37 }
 0xaae   :  { %7041 = vmatmul.bf16.gmra.mxu3 %v6591_v15  ;;  %v6318_v56 = vsub.f32 1.0, %v6317_v46  ;;  %v6388_v43 = vor.u32 1.1754944e-38, %v6387_v3  ;;  %vm6381_vm7 = vweird.f32 %v14391_v22  ;;  %v6400_v34 = vand.u32 2147483647, %v14421_v59 }
 0xaaf   :  { %v7608_v30 = vmul.f32 -1.442695, %v14432_v38  ;;  %v7612_v17 = vmul.f32 -1.442695, %v14435_v61  ;;  %vm6322_vm8 = vweird.f32 %v8528_v35  ;;  %v6378_v41 = vsub.f32 1.0, %v6377_v6 }
 0xab0   :  { %v6319_v63 = vmul.f32 %v8528_v35, %v6318_v56  ;;  %vm6396_vm5 = vweird.f32 %v14421_v59  ;;  %v5071_v32 = vmul.f32 %v14192_v28, %v4831_v36  ;;  %vm6336_vm1 = vweird.f32 %v14426_v55  ;;  %vm6323_vm11 = vmor %vm6321_vm15, %vm6322_vm8 }
 0xab1   :  { %v8532_v1 = vpop.eup %8531  ;;  %v6340_v44 = vand.u32 2147483647, %v14426_v55  ;;  %v6342_v23 = vand.u32 2147483648, %v14426_v55  ;;  %8535 = vpow2.f32 %v7608_v30  ;;  %v5141_v60 = vmul.f32 %v15883_v20, %v5067_v51 }
 0xab2   :  { %v8534_v49 = vpop.eup %8533  ;;  %v6320_v48 = vadd.f32 %v8528_v35, %v6319_v63  ;;  %v6379_v52 = vmul.f32 %v8530_v39, %v6378_v41  ;;  %vm6382_vm14 = vweird.f32 %v8530_v39  ;;  %v6392_v2 = vmul.f32 %v8532_v1, %v14421_v59 }
 0xab3   :  { %v6332_v28 = vmul.f32 %v8534_v49, %v14426_v55  ;;  %vm14467_vm4 = vcmp.eq.f32.partialorder %v6400_v34, 8.507059e+37  ;;  %8537 = vpow2.f32 %v7612_v17  ;;  %v5145_v5 = vmul.f32 %v15883_v20, %v5071_v32  ;;  %vm6383_vm0 = vmor %vm6381_vm7, %vm6382_vm14 }
 0xab4   :  { %v6324_v10 = vsel %vm6323_vm11, %v8528_v35, %v6320_v48  ;;  %v6380_v4 = vadd.f32 %v8530_v39, %v6379_v52  ;;  %v6393_v29 = vsub.f32 1.0, %v6392_v2  ;;  %v14473_v24 = vadd.f32 %v15886_v27, %v5141_v60 }
 0xab5   :  { %v6329_v25 = vsel %vm14442_vm13, %v6328_v12, %v6324_v10  ;;  %v6333_v33 = vsub.f32 1.0, %v6332_v28  ;;  %vm6397_vm9 = vweird.f32 %v8532_v1  ;;  %v6402_v62 = vand.u32 2147483648, %v14421_v59  ;;  %v16000_v28 = vld [vmem:[#allocation178_spill] sm:$0xff] }
 0xab6   :  { %v6384_v18 = vsel %vm6383_vm0, %v8530_v39, %v6380_v4  ;;  %v6492_v37 = vmul.f32 %v6329_v25, %v14325_v26  ;;  %v6394_v20 = vmul.f32 %v8532_v1, %v6393_v29  ;;  %v7609_v31 = vmul.f32 -1.442695, %v14473_v24  ;;  %vm6398_vm2 = vmor %vm6396_vm5, %vm6397_vm9  ;;  %v16002_v29 = vld [vmem:[#allocation201_spill] sm:$0xff] }
 0xab7   :  { %v8536_v8 = vpop.eup %8535  ;;  %v6389_v53 = vsel %vm14448_vm6, %v6388_v43, %v6384_v18  ;;  %v6334_v11 = vmul.f32 %v8534_v49, %v6333_v33  ;;  %vm6337_vm3 = vweird.f32 %v8534_v49  ;;  %v14485_v16 = vadd.f32 %v15886_v27, %v5145_v5 }
 0xab8   :  { %v6496_v22 = vmul.f32 %v6389_v53, %v14336_v13  ;;  %v6343_v40 = vor.u32 1.1754944e-38, %v6342_v23  ;;  %v6395_v7 = vadd.f32 %v8532_v1, %v6394_v20  ;;  %v5470_v3 = vadd.f32 1.0, %v8536_v8  ;;  %vm6338_vm12 = vmor %vm6336_vm1, %vm6337_vm3 }
 0xab9   :  { %v8538_v35 = vpop.eup %8537  ;;  %v6556_v26 = vadd.f32 %v6492_v37, %v14399_v0  ;;  %v6335_v54 = vadd.f32 %v8534_v49, %v6334_v11  ;;  %v6403_v47 = vor.u32 1.1754944e-38, %v6402_v62  ;;  %8539 = vpow2.f32 %v7609_v31 }
 0xaba   :  { %v6560_v45 = vadd.f32 %v6496_v22, %v14411_v50  ;;  %v6399_v27 = vsel %vm6398_vm2, %v8532_v1, %v6395_v7  ;;  %v5474_v13 = vadd.f32 1.0, %v8538_v35  ;;  %8541 = vrcp.f32 %v5470_v3 }
 0xabb   :  { %v6339_v36 = vsel %vm6338_vm12, %v8534_v49, %v6335_v54  ;;  %vm6341_vm10 = vcmp.eq.f32.partialorder %v6340_v44, 8.507059e+37  ;;  %v6404_v0 = vsel %vm14467_vm4, %v6403_v47, %v6399_v27  ;;  %v7613_v15 = vmul.f32 -1.442695, %v14485_v16 }
 0xabc   :  { %v6592_v46 = vpack.c.bf16 %v6560_v45, %v6556_v26  ;;  %v6344_v59 = vsel %vm6341_vm10, %v6343_v40, %v6339_v36  ;;  %v6497_v39 = vmul.f32 %v6404_v0, %v14358_v14  ;;  %8543 = vrcp.f32 %v5474_v13  ;;  %v6885_v26 = vpop.f32.mrf.mxu0  ;;  %v16003_v36 = vld [vmem:[#allocation181_spill] sm:$0xff] }
 0xabd   :  { %v6493_v58 = vmul.f32 %v6344_v59, %v14367_v9  ;;  %8545 = vpow2.f32 %v7613_v15  ;;  %v6357_v30 = vand.u32 2147483648, %v5470_v3  ;;  %v6355_v63 = vand.u32 2147483647, %v5470_v3  ;;  %v16004_v0 = vld [vmem:[#allocation197_spill] sm:$0xff] }
 0xabe   :  { %6899 = vmatmul.bf16.gmra.mxu0 %v6592_v46  ;;  %v6561_v50 = vadd.f32 %v6497_v39, %v14415_v42  ;;  %vm6351_vm13 = vweird.f32 %v5470_v3  ;;  %v6417_v1 = vand.u32 2147483648, %v5474_v13  ;;  %v6415_v60 = vand.u32 2147483647, %v5474_v13  ;;  %v14513_v59 = vld [vmem:[%s14541_s11] ss:$0 sm:$0xff]  ;;  %s8706_s11 = smov [#allocation16]  }
 0xabf   :  { %v8540_v55 = vpop.eup %8539  ;;  %v6557_v12 = vadd.f32 %v6493_v58, %v14407_v21  ;;  %v6358_v21 = vor.u32 1.1754944e-38, %v6357_v30  ;;  %vm6356_vm8 = vcmp.eq.f32.partialorder %v6355_v63, 8.507059e+37  ;;  %vm6411_vm5 = vweird.f32 %v5474_v13  ;;  %v16005_v58 = vld [vmem:[#allocation202_spill] sm:$0xff]  ;;  %s7072_s27 = sshll.u32 %s8706_s11, 4  ;;  %s7073_s27 = int_to_ptr.vmem [resolvable:$true] %s7072_s27 }
 0xac0   :  { %v8542_v51 = vpop.eup %8541  ;;  %v5471_v56 = vadd.f32 1.0, %v8540_v55  ;;  %v3748_v5 = vadd.f32 %v16001_v19, %v16000_v28  ;;  %v6418_v10 = vor.u32 1.1754944e-38, %v6417_v1  ;;  %v3750_v25 = vadd.f32 %v16002_v29, %v16000_v28 }
 0xac1   :  { %v6593_v6 = vpack.c.bf16 %v6561_v50, %v6557_v12  ;;  %v6347_v57 = vmul.f32 %v8542_v51, %v5470_v3  ;;  %vm6352_vm15 = vweird.f32 %v8542_v51  ;;  %vm6416_vm14 = vcmp.eq.f32.partialorder %v6415_v60, 8.507059e+37 }
 0xac2   :  { %8547 = vrcp.f32 %v5471_v56  ;;  %v8544_v43 = vpop.eup %8543  ;;  %vm6353_vm6 = vmor %vm6351_vm13, %vm6352_vm15  ;;  %v6372_v8 = vand.u32 2147483648, %v5471_v56  ;;  %vm6366_vm4 = vweird.f32 %v5471_v56  ;;  %v6370_v11 = vand.u32 2147483647, %v5471_v56 }
 0xac3   :  { %6948 = vmatmul.bf16.gmra.mxu1 %v6593_v6  ;;  %v6348_v34 = vsub.f32 1.0, %v6347_v57  ;;  %v6407_v14 = vmul.f32 %v8544_v43, %v5474_v13  ;;  %v8546_v17 = vpop.eup %8545  ;;  %vm6412_vm7 = vweird.f32 %v8544_v43  ;;  %v3797_v15 = vadd.f32 %v16004_v0, %v16003_v36 }
 0xac4   :  { %v5475_v42 = vadd.f32 1.0, %v8546_v17  ;;  %vm6413_vm1 = vmor %vm6411_vm5, %vm6412_vm7  ;;  %v6373_v47 = vor.u32 1.1754944e-38, %v6372_v8  ;;  %vm6371_vm9 = vcmp.eq.f32.partialorder %v6370_v11, 8.507059e+37  ;;  %v6886_v39 = vadd.f32 %v14513_v59, %v6885_v26 }
 0xac5   :  { %v6349_v9 = vmul.f32 %v8542_v51, %v6348_v34  ;;  %v6408_v41 = vsub.f32 1.0, %v6407_v14  ;;  %v3799_v50 = vadd.f32 %v16005_v58, %v16003_v36  ;;  %v6887_v14 = vpop.f32.mrf.mxu0 }
 0xac6   :  { %8549 = vrcp.f32 %v5475_v42  ;;  %v6430_v27 = vand.u32 2147483647, %v5475_v42  ;;  %vm6426_vm2 = vweird.f32 %v5475_v42  ;;  %v6888_v63 = vadd.f32 %v14513_v59, %v6887_v14 }
 0xac7   :  { %v6350_v32 = vadd.f32 %v8542_v51, %v6349_v9  ;;  %v6409_v23 = vmul.f32 %v8544_v43, %v6408_v41 }
 0xac8   :  { %v8548_v44 = vpop.eup %8547  ;;  %vm6431_vm10 = vcmp.eq.f32.partialorder %v6430_v27, 8.507059e+37 }
 0xac9   :  { %v6354_v49 = vsel %vm6353_vm6, %v8542_v51, %v6350_v32  ;;  %v6362_v48 = vmul.f32 %v8548_v44, %v5471_v56  ;;  %v6410_v2 = vadd.f32 %v8544_v43, %v6409_v23  ;;  %vm6367_vm11 = vweird.f32 %v8548_v44  ;;  %v6934_v51 = vpop.f32.mrf.mxu1 }
 0xaca   :  { %v6359_v52 = vsel %vm6356_vm8, %v6358_v21, %v6354_v49  ;;  %vm6368_vm0 = vmor %vm6366_vm4, %vm6367_vm11 }
 0xacb   :  { %v6363_v4 = vsub.f32 1.0, %v6362_v48  ;;  %v6414_v33 = vsel %vm6413_vm1, %v8544_v43, %v6410_v2  ;;  %v6494_v62 = vmul.f32 %v6359_v52, %v14432_v38  ;;  %v6432_v38 = vand.u32 2147483648, %v5475_v42 }
 0xacc   :  { %v6419_v18 = vsel %vm6416_vm14, %v6418_v10, %v6414_v33  ;;  %v8550_v20 = vpop.eup %8549  ;;  %v6935_v43 = vadd.f32 %v6934_v51, %v6886_v39 }
 0xacd   :  { %v6364_v37 = vmul.f32 %v8548_v44, %v6363_v4  ;;  %v6498_v31 = vmul.f32 %v6419_v18, %v14435_v61  ;;  %v6422_v22 = vmul.f32 %v8550_v20, %v5475_v42  ;;  %v6558_v40 = vadd.f32 %v6494_v62, %v3748_v5  ;;  %v6983_v56 = vpop.f32.mrf.mxu2 }
 0xace   :  { %vm6427_vm3 = vweird.f32 %v8550_v20  ;;  %v6433_v46 = vor.u32 1.1754944e-38, %v6432_v38  ;;  %v6984_v17 = vadd.f32 %v6983_v56, %v6935_v43 }
 0xacf   :  { %v6365_v53 = vadd.f32 %v8548_v44, %v6364_v37  ;;  %v6562_v7 = vadd.f32 %v6498_v31, %v3750_v25  ;;  %v6423_v35 = vsub.f32 1.0, %v6422_v22  ;;  %vm6428_vm12 = vmor %vm6426_vm2, %vm6427_vm3 }
 0xad1   :  { %v6369_v3 = vsel %vm6368_vm0, %v8548_v44, %v6365_v53  ;;  %v6594_v54 = vpack.c.bf16 %v6562_v7, %v6558_v40  ;;  %v6424_v45 = vmul.f32 %v8550_v20, %v6423_v35  ;;  %v6936_v32 = vpop.f32.mrf.mxu1 }
 0xad2   :  { %v6374_v61 = vsel %vm6371_vm9, %v6373_v47, %v6369_v3 }
 0xad3   :  { %6997 = vmatmul.bf16.gmra.mxu2 %v6594_v54  ;;  %v6425_v13 = vadd.f32 %v8550_v20, %v6424_v45  ;;  %v6495_v12 = vmul.f32 %v6374_v61, %v14473_v24  ;;  %v6937_v24 = vadd.f32 %v6936_v32, %v6888_v63 }
 0xad5   :  { %v6429_v55 = vsel %vm6428_vm12, %v8550_v20, %v6425_v13  ;;  %v6559_v34 = vadd.f32 %v6495_v12, %v3797_v15  ;;  %v6985_v21 = vpop.f32.mrf.mxu2 }
 0xad6   :  { %v6434_v6 = vsel %vm6431_vm10, %v6433_v46, %v6429_v55  ;;  %v6986_v1 = vadd.f32 %v6985_v21, %v6937_v24 }
 0xad7   :  { %v6499_v57 = vmul.f32 %v6434_v6, %v14485_v16 }
 0xad9   :  { %v6563_v30 = vadd.f32 %v6499_v57, %v3799_v50  ;;  %v7032_v41 = vpop.f32.mrf.mxu3  ;;  %v6890_v16 = vpop.f32.mrf.mxu0 }
 0xada   :  { %v7033_v42 = vadd.f32 %v7032_v41, %v6984_v17  ;;  %v6891_v60 = vadd.f32 %v14513_v59, %v6890_v16 }
 0xadb   :  { %v6595_v9 = vpack.c.bf16 %v6563_v30, %v6559_v34 }
 0xadc   :  { %7060 = vst [vmem:[#allocation16 + $0x40] sm:$0xff] %v7033_v42 }
 0xadd   :  { %7046 = vmatmul.bf16.gmra.mxu3 %v6595_v9 }
 0xae1   :  { %v7034_v44 = vpop.f32.mrf.mxu3  ;;  %v6892_v2 = vpop.f32.mrf.mxu0 }
 0xae2   :  { %v7035_v23 = vadd.f32 %v7034_v44, %v6986_v1  ;;  %v6893_v19 = vadd.f32 %v14513_v59, %v6892_v2 }
 0xae4   :  { %7061 = vst [vmem:[#allocation16 + $0x48] sm:$0xff] %v7035_v23 }
 0xae9   :  { %v6939_v49 = vpop.f32.mrf.mxu1 }
 0xaea   :  { %v6940_v52 = vadd.f32 %v6939_v49, %v6891_v60 }
 0xaf1   :  { %v6941_v4 = vpop.f32.mrf.mxu1 }
 0xaf2   :  { %v6942_v25 = vadd.f32 %v6941_v4, %v6893_v19 }
 0xaf8   :  { %v6988_v48 = vpop.f32.mrf.mxu2 }
 0xaf9   :  { %v6989_v28 = vadd.f32 %v6988_v48, %v6940_v52 }
 0xb00   :  { %v6990_v29 = vpop.f32.mrf.mxu2 }
 0xb01   :  { %v6991_v33 = vadd.f32 %v6990_v29, %v6942_v25 }
 0xb04   :  { %v7037_v5 = vpop.f32.mrf.mxu3 }
 0xb05   :  { %v7038_v10 = vadd.f32 %v7037_v5, %v6989_v28 }
 0xb07   :  { %7062 = vst [vmem:[#allocation16 + $0x50] sm:$0xff] %v7038_v10 }
 0xb0c   :  { %v7039_v62 = vpop.f32.mrf.mxu3 }
 0xb0d   :  { %v7040_v18 = vadd.f32 %v7039_v62, %v6991_v33 }
 0xb0f   :  { %7063 = vst [vmem:[#allocation16 + $0x58] sm:$0xff] %v7040_v18  ;;  %v6895_v37 = vpop.f32.mrf.mxu0 }
 0xb10   :  { %v6896_v20 = vadd.f32 %v14513_v59, %v6895_v37 }
 0xb15   :  { %v6944_v31 = vpop.f32.mrf.mxu1 }
 0xb16   :  { %v6945_v53 = vadd.f32 %v6944_v31, %v6896_v20 }
 0xb17   :  { %v6897_v11 = vpop.f32.mrf.mxu0 }
 0xb18   :  { %v6898_v40 = vadd.f32 %v14513_v59, %v6897_v11 }
 0xb1d   :  { %v6946_v35 = vpop.f32.mrf.mxu1 }
 0xb1e   :  { %v6947_v54 = vadd.f32 %v6946_v35, %v6898_v40 }
 0xb29   :  { %v6993_v8 = vpop.f32.mrf.mxu2 }
 0xb2a   :  { %v6994_v22 = vadd.f32 %v6993_v8, %v6945_v53 }
 0xb31   :  { %v7042_v7 = vpop.f32.mrf.mxu3  ;;  %v6995_v26 = vpop.f32.mrf.mxu2 }
 0xb32   :  { %v7043_v3 = vadd.f32 %v7042_v7, %v6994_v22  ;;  %v6996_v47 = vadd.f32 %v6995_v26, %v6947_v54 }
 0xb34   :  { %7064 = vst [vmem:[#allocation16 + $0x60] sm:$0xff] %v7043_v3 }
 0xb39   :  { %v7044_v38 = vpop.f32.mrf.mxu3 }
 0xb3a   :  { %v7045_v45 = vadd.f32 %v7044_v38, %v6996_v47 }
 0xb3b   :  { %v6900_v27 = vpop.f32.mrf.mxu0 }
 0xb3c   :  { %7065 = vst [vmem:[#allocation16 + $0x68] sm:$0xff] %v7045_v45  ;;  %v6901_v61 = vadd.f32 %v14513_v59, %v6900_v27 }
 0xb40   :  { %v6949_v13 = vpop.f32.mrf.mxu1 }
 0xb41   :  { %v6950_v0 = vadd.f32 %v6949_v13, %v6901_v61 }
 0xb43   :  { %v6902_v15 = vpop.f32.mrf.mxu0 }
 0xb44   :  { %v6903_v39 = vadd.f32 %v14513_v59, %v6902_v15 }
 0xb48   :  { %v6951_v55 = vpop.f32.mrf.mxu1 }
 0xb49   :  { %v6952_v51 = vadd.f32 %v6951_v55, %v6903_v39 }
 0xb56   :  { %v6998_v36 = vpop.f32.mrf.mxu2 }
 0xb57   :  { %v6999_v46 = vadd.f32 %v6998_v36, %v6950_v0 }
 0xb5e   :  { %v7000_v12 = vpop.f32.mrf.mxu2 }
 0xb5f   :  { %v7001_v56 = vadd.f32 %v7000_v12, %v6952_v51 }
 0xb60   :  { %v7047_v58 = vpop.f32.mrf.mxu3 }
 0xb61   :  { %v7048_v50 = vadd.f32 %v7047_v58, %v6999_v46 }
 0xb63   :  { %7066 = vst [vmem:[#allocation16 + $0x70] sm:$0xff] %v7048_v50 }
 0xb68   :  { %v7049_v6 = vpop.f32.mrf.mxu3 }
 0xb69   :  { %v7050_v57 = vadd.f32 %v7049_v6, %v7001_v56 }
 0xb6b   :  { %7067 = vst [vmem:[#allocation16 + $0x78] sm:$0xff] %v7050_v57 }
 0xb6c   :  { %7080 = dma.vmem_to_hbm [thread:$0]  %s7073_s27, 2048, %s7075_s14, [#allocation10], %s8707_s15, %s8707_s15, %s8708_s17  }
 0xb6d   :  { %8685 = dma.done.wait [#allocation10], 2048  }
 0xb6e   :  { %8686 = vsyncadd [#allocation10], 4294965248 }
 0xb6f   :  { %7085 = vsyncpa [#allocation9], 1 }
 0xb70   :  { %7086 = vsyncpa [#allocation12], 1 }
 0xb71   :  { %7087 = vsyncpa [#allocation15], 1 }
 0xb72   :  { %7088 = vsyncpa [#allocation10], 1 }

</bundles_post_ra>
